<compile_context>
chip_gen: v6e
topology: v6e:2x2x1
jax: 0.10.0
libtpu: 0.0.40
codegen_flags: <defaults>
</compile_context>

<pallas_src>
import functools

import numpy as np

import jax
import jax.numpy as jnp
from jax import lax
from jax.experimental import pallas as pl
from jax.experimental.pallas import tpu as pltpu


# ----------------------------------------------------------------------------
# Host-side weight lowering (done once, outside the kernel / hot path).
# ----------------------------------------------------------------------------
def _round_up(x, m):
    return (x + m - 1) // m * m


def lower_conv_weight(w_hwio, width, pad, dtype=jnp.bfloat16):
    """Banded per-row matmul weights for a stride-1, symmetric-pad conv.

    Returns B of shape (KH, width*Cin, width*Cout) with
      B[kh, wi*Cin + ci, wo*Cout + co] = w[kh, wi - wo + pad, ci, co]
    (zero outside the band), so that for an H-padded row block xp:
      out[h, wo*Cout + co] = sum_kh (xp[h + kh, :] @ B[kh])[wo*Cout + co]
    reproduces Conv2d(..., stride=1, padding=pad).
    """
    w = np.asarray(w_hwio, np.float32)
    KH, KW, Cin, Cout = w.shape
    B = np.zeros((KH, width * Cin, width * Cout), np.float32)
    for kh in range(KH):
        for kw in range(KW):
            for wo in range(width):
                wi = wo + kw - pad
                if 0 <= wi < width:
                    B[kh, wi * Cin:(wi + 1) * Cin,
                      wo * Cout:(wo + 1) * Cout] = w[kh, kw]
    return jnp.asarray(B, dtype)


def prepare_params(params, H=32, W=32):
    """Convert PyTorch-convention params into the fused kernel's layout."""
    w1, b1, w2, b2, fcw, fcb = params
    w1 = np.asarray(w1, np.float32)
    w2 = np.asarray(w2, np.float32)
    KH1, KW1, Cin, C1 = w1.shape
    KH2 = w2.shape[0]
    C2 = w2.shape[3]
    D = np.shape(fcw)[1]

    # Pad Cin so the fused (w, c) lane count W*Cin is a multiple of 128
    # (3 -> 4 for the 32x32 case): unmasked, tile-aligned conv1 staging.
    cin_p = Cin
    while (W * cin_p) % 128:
        cin_p += 1
    w1p = np.zeros((KH1, KW1, cin_p, C1), np.float32)
    w1p[:, :, :Cin, :] = w1

    # Banded conv weights in bf16 (MXU operands); biases tiled over lanes (f32).
    b1l = lower_conv_weight(w1p, W, pad=(KH1 - 1) // 2)   # (KH1, W*cin_p, W*C1)
    b2l = lower_conv_weight(w2, W, pad=(KH2 - 1) // 2)    # (KH2, W*C1,  W*C2)
    bias1 = jnp.tile(jnp.asarray(b1, jnp.float32), W).reshape(1, W * C1)
    bias2 = jnp.tile(jnp.asarray(b2, jnp.float32), W).reshape(1, W * C2)

    # FC weight for the VPU FC: wf[d, h, w*C2 + c] = fcw[(c*H + h)*W + w, d]
    # (PyTorch flatten order is (c, h, w); kernel activation lanes are (w, c)).
    wf = np.asarray(fcw, np.float32).reshape(C2, H, W, D).transpose(3, 1, 2, 0)
    wf = jnp.asarray(wf.reshape(D, H, W * C2))

    # FC bias, zero-padded to a full 128-lane row.
    DL = _round_up(D, 128)
    fcb_pad = np.zeros((1, DL), np.float32)
    fcb_pad[0, :D] = np.asarray(fcb, np.float32)
    fcb_pad = jnp.asarray(fcb_pad)
    return b1l, bias1, b2l, bias2, wf, fcb_pad


# ----------------------------------------------------------------------------
# Fused kernel: conv1 + ReLU + conv2 + ReLU + FC, BN samples per grid step.
# ----------------------------------------------------------------------------
def _fused_net_kernel(x_ref, w1_ref, b1_ref, w2_ref, b2_ref, wf_ref, fcb_ref,
                      o_ref, xp1, xp2, *,
                      BN, H, D, DL, KH1, KH2, P1, P2, HP1, HP2, WCIN, WC1):
    f32 = jnp.float32
    bf16 = jnp.bfloat16

    # ---- Stage conv1 input (bf16): per-sample zero halo rows + data rows.
    # Only the (BN+1)*2*P1 halo rows are written with zeros each step.
    z1 = jnp.zeros((P1, WCIN), bf16)
    xp1[0:P1, :] = z1                                       # global top rows
    xp1[P1 + BN * HP1:2 * P1 + BN * HP1, :] = z1            # global bottom rows
    for s in range(BN):
        base = P1 + s * HP1
        xp1[base:base + P1, :] = z1
        xp1[base + P1:base + P1 + H, :] = x_ref[s].astype(bf16)
        xp1[base + P1 + H:base + HP1, :] = z1

    # ---- conv1 (+bias, ReLU): KH1 row-shifted bf16 MXU matmuls, f32 accumulate.
    M1 = BN * HP1
    acc1 = jnp.dot(xp1[0:M1, :], w1_ref[0], preferred_element_type=f32)
    for kh in range(1, KH1):
        acc1 = acc1 + jnp.dot(xp1[kh:kh + M1, :], w1_ref[kh],
                              preferred_element_type=f32)
    acc1 = jnp.maximum(acc1 + b1_ref[...], 0.0)

    # ---- Stage conv2 input from the VMEM-resident conv1 output (bf16).
    z2 = jnp.zeros((P2, WC1), bf16)
    xp2[0:P2, :] = z2
    xp2[P2 + BN * HP2:2 * P2 + BN * HP2, :] = z2
    for s in range(BN):
        base = P2 + s * HP2
        xp2[base:base + P2, :] = z2
        xp2[base + P2:base + P2 + H, :] = (
            acc1[s * HP1 + P1:s * HP1 + P1 + H, :].astype(bf16))
        xp2[base + P2 + H:base + HP2, :] = z2

    # ---- conv2 (+bias, ReLU).
    M2 = BN * HP2
    acc2 = jnp.dot(xp2[0:M2, :], w2_ref[0], preferred_element_type=f32)
    for kh in range(1, KH2):
        acc2 = acc2 + jnp.dot(xp2[kh:kh + M2, :], w2_ref[kh],
                              preferred_element_type=f32)
    acc2 = jnp.maximum(acc2 + b2_ref[...], 0.0)

    # ---- FC on the VPU: scores[s, d] = sum(act_s * wf[d]) + fcb[d].
    # No flatten scratch, no (H*W*C2, D) lane-padded MXU weight.
    row = lax.broadcasted_iota(jnp.int32, (BN, DL), 0)
    lane = lax.broadcasted_iota(jnp.int32, (BN, DL), 1)
    scores = jnp.zeros((BN, DL), f32)
    for s in range(BN):
        act = acc2[s * HP2 + P2:s * HP2 + P2 + H, :]        # (H, W*C2) valid rows
        for d in range(D):
            val = jnp.sum(act * wf_ref[d])
            scores = jnp.where((row == s) & (lane == d), val, scores)
    scores = scores + fcb_ref[...]
    o_ref[0] = scores[:, :D].astype(o_ref.dtype)


def _pick_block_n(n):
    """Largest divisor of n that is <= 4 and keeps the grid length >= 2."""
    cap = max(1, min(4, n // 2))
    for bn in range(cap, 0, -1):
        if n % bn == 0:
            return bn
    return 1


@functools.partial(jax.jit, static_argnames=("H", "W", "block_n"))
def three_layer_convnet(x_nchw, prepared, *, H=32, W=32, block_n=None):
    b1l, bias1, b2l, bias2, wf, fcb_pad = prepared
    N, Cin = x_nchw.shape[0], x_nchw.shape[1]
    WCIN = b1l.shape[1]
    cin_p = WCIN // W
    WC1 = b1l.shape[2]
    D = wf.shape[0]
    DL = fcb_pad.shape[1]
    KH1, KH2 = b1l.shape[0], b2l.shape[0]
    P1, P2 = (KH1 - 1) // 2, (KH2 - 1) // 2
    HP1, HP2 = H + 2 * P1, H + 2 * P2

    BN = _pick_block_n(N) if block_n is None else block_n
    assert N % BN == 0, (N, BN)
    G = N // BN

    # NCHW -> (N, H, W*cin_p): channels fused onto lanes, padded to a 128
    # multiple.  This is the only XLA op outside the kernel (tiny relayout).
    x_nhwc = jnp.transpose(x_nchw, (0, 2, 3, 1))
    if cin_p != Cin:
        x_nhwc = jnp.pad(x_nhwc, ((0, 0), (0, 0), (0, 0), (0, cin_p - Cin)))
    x2d = x_nhwc.reshape(N, H, WCIN)

    kernel = functools.partial(
        _fused_net_kernel, BN=BN, H=H, D=D, DL=DL, KH1=KH1, KH2=KH2,
        P1=P1, P2=P2, HP1=HP1, HP2=HP2, WCIN=WCIN, WC1=WC1)

    # Grid-invariant weights: whole-array VMEM operands -> staged once,
    # not double-buffered.
    def inv():
        return pl.BlockSpec(memory_space=pltpu.MemorySpace.VMEM)

    out = pl.pallas_call(
        kernel,
        out_shape=jax.ShapeDtypeStruct((G, BN, D), x_nchw.dtype),
        grid=(G,),
        in_specs=[
            pl.BlockSpec((BN, H, WCIN), lambda i: (i, 0, 0)),
            inv(), inv(), inv(), inv(), inv(), inv(),
        ],
        out_specs=pl.BlockSpec((1, BN, D), lambda i: (i, 0, 0)),
        scratch_shapes=[
            pltpu.VMEM((BN * HP1 + 2 * P1, WCIN), jnp.bfloat16),  # conv1 staging
            pltpu.VMEM((BN * HP2 + 2 * P2, WC1), jnp.bfloat16),   # conv2 staging
        ],
        compiler_params=pltpu.CompilerParams(
            dimension_semantics=("parallel",)),
    )(x2d, b1l, bias1, b2l, bias2, wf, fcb_pad)
    return out.reshape(N, D)


# ----------------------------------------------------------------------------
# Parameter init (PyTorch convention) and pure-XLA reference for validation.
# ----------------------------------------------------------------------------
def init_params(key, in_channel, channel_1, channel_2, out_dim):
    """Kaiming-normal weights (std = sqrt(2 / fan_in)), zero biases."""
    k1, k2, k3 = jax.random.split(key, 3)
    w1 = jax.random.normal(k1, (5, 5, in_channel, channel_1), jnp.float32)
    w1 = w1 * jnp.sqrt(2.0 / (in_channel * 5 * 5))
    b1 = jnp.zeros((channel_1,), jnp.float32)
    w2 = jax.random.normal(k2, (3, 3, channel_1, channel_2), jnp.float32)
    w2 = w2 * jnp.sqrt(2.0 / (channel_1 * 3 * 3))
    b2 = jnp.zeros((channel_2,), jnp.float32)
    K = channel_2 * 32 * 32
    fcw = jax.random.normal(k3, (K, out_dim), jnp.float32) * jnp.sqrt(2.0 / K)
    fcb = jnp.zeros((out_dim,), jnp.float32)
    return (w1, b1, w2, b2, fcw, fcb)


def reference_forward(x_nchw, params):
    """Pure-JAX (XLA) reference, including the PyTorch NCHW flatten order."""
    w1, b1, w2, b2, fcw, fcb = params
    dn = ("NHWC", "HWIO", "NHWC")
    x = jnp.transpose(x_nchw, (0, 2, 3, 1))
    a = jax.nn.relu(lax.conv_general_dilated(x, w1, (1, 1), [(2, 2), (2, 2)],
                                             dimension_numbers=dn) + b1)
    b = jax.nn.relu(lax.conv_general_dilated(a, w2, (1, 1), [(1, 1), (1, 1)],
                                             dimension_numbers=dn) + b2)
    b_flat = jnp.transpose(b, (0, 3, 1, 2)).reshape(b.shape[0], -1)
    return b_flat @ fcw + fcb


if __name__ == "__main__":
    # Spatial size is fixed at 32x32 by the module (fc expects channel_2*32*32).
    N, in_channel, channel_1, channel_2, out_dim = 8, 3, 8, 8, 10
    H = W = 32

    key = jax.random.PRNGKey(0)
    kx, kp = jax.random.split(key)
    x = jax.random.normal(kx, (N, in_channel, H, W), jnp.float32)   # NCHW input
    params = init_params(kp, in_channel, channel_1, channel_2, out_dim)
    prepared = prepare_params(params, H=H, W=W)

    scores = jax.block_until_ready(three_layer_convnet(x, prepared))
    assert scores.shape == (N, out_dim)
    assert bool(jnp.all(jnp.isfinite(scores)))

    ref = jax.block_until_ready(reference_forward(x, params))
    # bf16 MXU operands with f32 accumulation: allow a small numeric slack
    # relative to the pure-f32 reference.
    err = float(jnp.max(jnp.abs(scores - ref)))
    rel = float(jnp.linalg.norm(scores - ref) / (jnp.linalg.norm(ref) + 1e-12))
    assert jnp.allclose(scores, ref, rtol=1e-1, atol=1e-1), (err, rel)
    assert rel < 5e-2, (err, rel)

    print("KERNEL_OK")
</pallas_src>

<mosaic_0001>
module attributes {stable_mosaic.version = 11 : i64} {
  func.func @_fused_net_kernel(%arg0: i32, %arg1: memref<4x32x128xf32, #tpu.memory_space<vmem>>, %arg2: memref<5x128x256xbf16, #tpu.memory_space<vmem>>, %arg3: memref<1x256xf32, #tpu.memory_space<vmem>>, %arg4: memref<3x256x256xbf16, #tpu.memory_space<vmem>>, %arg5: memref<1x256xf32, #tpu.memory_space<vmem>>, %arg6: memref<10x32x256xf32, #tpu.memory_space<vmem>>, %arg7: memref<1x128xf32, #tpu.memory_space<vmem>>, %arg8: memref<1x4x10xf32, #tpu.memory_space<vmem>>, %arg9: memref<148x128xbf16, #tpu.memory_space<vmem>>, %arg10: memref<138x256xbf16, #tpu.memory_space<vmem>>) attributes {dimension_semantics = [#tpu.dimension_semantics<parallel>], iteration_bounds = array<i64: 2>, scalar_prefetch = 0 : i64, scratch_operands = 2 : i64, tpu.core_type = #tpu.core_type<tc>, window_params = [{transform_indices = @transform_0, window_bounds = array<i64: 4, 32, 128>}, {pipeline_mode = #tpu.pipeline_mode<synchronous>, transform_indices = @transform_1, window_bounds = array<i64: 5, 128, 256>}, {pipeline_mode = #tpu.pipeline_mode<synchronous>, transform_indices = @transform_2, window_bounds = array<i64: 1, 256>}, {pipeline_mode = #tpu.pipeline_mode<synchronous>, transform_indices = @transform_3, window_bounds = array<i64: 3, 256, 256>}, {pipeline_mode = #tpu.pipeline_mode<synchronous>, transform_indices = @transform_4, window_bounds = array<i64: 1, 256>}, {pipeline_mode = #tpu.pipeline_mode<synchronous>, transform_indices = @transform_5, window_bounds = array<i64: 10, 32, 256>}, {pipeline_mode = #tpu.pipeline_mode<synchronous>, transform_indices = @transform_6, window_bounds = array<i64: 1, 128>}, {transform_indices = @transform_7, window_bounds = array<i64: 1, 4, 10>}]} {
    %cst = arith.constant 0.000000e+00 : bf16
    %0 = vector.broadcast %cst : bf16 to vector<2x128xbf16>
    %c0 = arith.constant 0 : index
    %c0_0 = arith.constant 0 : index
    %1 = vector.load %arg9[%c0, %c0_0] : memref<148x128xbf16, #tpu.memory_space<vmem>>, vector<2x128xbf16>
    tpu.vector_store %arg9[%c0, %c0_0], %0 {strides = array<i32>} : memref<148x128xbf16, #tpu.memory_space<vmem>>, vector<2x128xbf16>,
    %c146 = arith.constant 146 : index
    %c0_1 = arith.constant 0 : index
    %2 = vector.load %arg9[%c146, %c0_1] : memref<148x128xbf16, #tpu.memory_space<vmem>>, vector<2x128xbf16>
    tpu.vector_store %arg9[%c146, %c0_1], %0 {strides = array<i32>} : memref<148x128xbf16, #tpu.memory_space<vmem>>, vector<2x128xbf16>,
    %c2 = arith.constant 2 : index
    %c0_2 = arith.constant 0 : index
    %3 = vector.load %arg9[%c2, %c0_2] : memref<148x128xbf16, #tpu.memory_space<vmem>>, vector<2x128xbf16>
    tpu.vector_store %arg9[%c2, %c0_2], %0 {strides = array<i32>} : memref<148x128xbf16, #tpu.memory_space<vmem>>, vector<2x128xbf16>,
    %c0_3 = arith.constant 0 : index
    %c0_4 = arith.constant 0 : index
    %c0_5 = arith.constant 0 : index
    %4 = vector.load %arg1[%c0_3, %c0_4, %c0_5] : memref<4x32x128xf32, #tpu.memory_space<vmem>>, vector<1x32x128xf32>
    %5 = vector.shape_cast %4 : vector<1x32x128xf32> to vector<32x128xf32>
    %6 = arith.truncf %5 : vector<32x128xf32> to vector<32x128xbf16>
    %c4 = arith.constant 4 : index
    %c0_6 = arith.constant 0 : index
    %7 = vector.load %arg9[%c4, %c0_6] : memref<148x128xbf16, #tpu.memory_space<vmem>>, vector<32x128xbf16>
    tpu.vector_store %arg9[%c4, %c0_6], %6 {strides = array<i32>} : memref<148x128xbf16, #tpu.memory_space<vmem>>, vector<32x128xbf16>,
    %c36 = arith.constant 36 : index
    %c0_7 = arith.constant 0 : index
    %8 = vector.load %arg9[%c36, %c0_7] : memref<148x128xbf16, #tpu.memory_space<vmem>>, vector<2x128xbf16>
    tpu.vector_store %arg9[%c36, %c0_7], %0 {strides = array<i32>} : memref<148x128xbf16, #tpu.memory_space<vmem>>, vector<2x128xbf16>,
    %c38 = arith.constant 38 : index
    %c0_8 = arith.constant 0 : index
    %9 = vector.load %arg9[%c38, %c0_8] : memref<148x128xbf16, #tpu.memory_space<vmem>>, vector<2x128xbf16>
    tpu.vector_store %arg9[%c38, %c0_8], %0 {strides = array<i32>} : memref<148x128xbf16, #tpu.memory_space<vmem>>, vector<2x128xbf16>,
    %c1 = arith.constant 1 : index
    %c0_9 = arith.constant 0 : index
    %c0_10 = arith.constant 0 : index
    %10 = vector.load %arg1[%c1, %c0_9, %c0_10] : memref<4x32x128xf32, #tpu.memory_space<vmem>>, vector<1x32x128xf32>
    %11 = vector.shape_cast %10 : vector<1x32x128xf32> to vector<32x128xf32>
    %12 = arith.truncf %11 : vector<32x128xf32> to vector<32x128xbf16>
    %c40 = arith.constant 40 : index
    %c0_11 = arith.constant 0 : index
    %13 = vector.load %arg9[%c40, %c0_11] : memref<148x128xbf16, #tpu.memory_space<vmem>>, vector<32x128xbf16>
    tpu.vector_store %arg9[%c40, %c0_11], %12 {strides = array<i32>} : memref<148x128xbf16, #tpu.memory_space<vmem>>, vector<32x128xbf16>,
    %c72 = arith.constant 72 : index
    %c0_12 = arith.constant 0 : index
    %14 = vector.load %arg9[%c72, %c0_12] : memref<148x128xbf16, #tpu.memory_space<vmem>>, vector<2x128xbf16>
    tpu.vector_store %arg9[%c72, %c0_12], %0 {strides = array<i32>} : memref<148x128xbf16, #tpu.memory_space<vmem>>, vector<2x128xbf16>,
    %c74 = arith.constant 74 : index
    %c0_13 = arith.constant 0 : index
    %15 = vector.load %arg9[%c74, %c0_13] : memref<148x128xbf16, #tpu.memory_space<vmem>>, vector<2x128xbf16>
    tpu.vector_store %arg9[%c74, %c0_13], %0 {strides = array<i32>} : memref<148x128xbf16, #tpu.memory_space<vmem>>, vector<2x128xbf16>,
    %c2_14 = arith.constant 2 : index
    %c0_15 = arith.constant 0 : index
    %c0_16 = arith.constant 0 : index
    %16 = vector.load %arg1[%c2_14, %c0_15, %c0_16] : memref<4x32x128xf32, #tpu.memory_space<vmem>>, vector<1x32x128xf32>
    %17 = vector.shape_cast %16 : vector<1x32x128xf32> to vector<32x128xf32>
    %18 = arith.truncf %17 : vector<32x128xf32> to vector<32x128xbf16>
    %c76 = arith.constant 76 : index
    %c0_17 = arith.constant 0 : index
    %19 = vector.load %arg9[%c76, %c0_17] : memref<148x128xbf16, #tpu.memory_space<vmem>>, vector<32x128xbf16>
    tpu.vector_store %arg9[%c76, %c0_17], %18 {strides = array<i32>} : memref<148x128xbf16, #tpu.memory_space<vmem>>, vector<32x128xbf16>,
    %c108 = arith.constant 108 : index
    %c0_18 = arith.constant 0 : index
    %20 = vector.load %arg9[%c108, %c0_18] : memref<148x128xbf16, #tpu.memory_space<vmem>>, vector<2x128xbf16>
    tpu.vector_store %arg9[%c108, %c0_18], %0 {strides = array<i32>} : memref<148x128xbf16, #tpu.memory_space<vmem>>, vector<2x128xbf16>,
    %c110 = arith.constant 110 : index
    %c0_19 = arith.constant 0 : index
    %21 = vector.load %arg9[%c110, %c0_19] : memref<148x128xbf16, #tpu.memory_space<vmem>>, vector<2x128xbf16>
    tpu.vector_store %arg9[%c110, %c0_19], %0 {strides = array<i32>} : memref<148x128xbf16, #tpu.memory_space<vmem>>, vector<2x128xbf16>,
    %c3 = arith.constant 3 : index
    %c0_20 = arith.constant 0 : index
    %c0_21 = arith.constant 0 : index
    %22 = vector.load %arg1[%c3, %c0_20, %c0_21] : memref<4x32x128xf32, #tpu.memory_space<vmem>>, vector<1x32x128xf32>
    %23 = vector.shape_cast %22 : vector<1x32x128xf32> to vector<32x128xf32>
    %24 = arith.truncf %23 : vector<32x128xf32> to vector<32x128xbf16>
    %c112 = arith.constant 112 : index
    %c0_22 = arith.constant 0 : index
    %25 = vector.load %arg9[%c112, %c0_22] : memref<148x128xbf16, #tpu.memory_space<vmem>>, vector<32x128xbf16>
    tpu.vector_store %arg9[%c112, %c0_22], %24 {strides = array<i32>} : memref<148x128xbf16, #tpu.memory_space<vmem>>, vector<32x128xbf16>,
    %c144 = arith.constant 144 : index
    %c0_23 = arith.constant 0 : index
    %26 = vector.load %arg9[%c144, %c0_23] : memref<148x128xbf16, #tpu.memory_space<vmem>>, vector<2x128xbf16>
    tpu.vector_store %arg9[%c144, %c0_23], %0 {strides = array<i32>} : memref<148x128xbf16, #tpu.memory_space<vmem>>, vector<2x128xbf16>,
    %c0_24 = arith.constant 0 : index
    %c0_25 = arith.constant 0 : index
    %27 = vector.load %arg9[%c0_24, %c0_25] : memref<148x128xbf16, #tpu.memory_space<vmem>>, vector<144x128xbf16>
    %c0_26 = arith.constant 0 : index
    %c0_27 = arith.constant 0 : index
    %c0_28 = arith.constant 0 : index
    %28 = vector.load %arg2[%c0_26, %c0_27, %c0_28] : memref<5x128x256xbf16, #tpu.memory_space<vmem>>, vector<1x128x256xbf16>
    %29 = vector.shape_cast %28 : vector<1x128x256xbf16> to vector<128x256xbf16>
    %cst_29 = arith.constant dense<0.000000e+00> : vector<144x256xf32>
    %30 = tpu.matmul %27, %29, %cst_29 {dimension_numbers = #tpu.dot_dimension_numbers<[1], [0], [0], [1], [0, 0, 1, 1], [], []>} : vector<144x128xbf16>, vector<128x256xbf16>, vector<144x256xf32> -> vector<144x256xf32>
    %c1_30 = arith.constant 1 : index
    %c0_31 = arith.constant 0 : index
    %31 = vector.load %arg9[%c1_30, %c0_31] : memref<148x128xbf16, #tpu.memory_space<vmem>>, vector<144x128xbf16>
    %c1_32 = arith.constant 1 : index
    %c0_33 = arith.constant 0 : index
    %c0_34 = arith.constant 0 : index
    %32 = vector.load %arg2[%c1_32, %c0_33, %c0_34] : memref<5x128x256xbf16, #tpu.memory_space<vmem>>, vector<1x128x256xbf16>
    %33 = vector.shape_cast %32 : vector<1x128x256xbf16> to vector<128x256xbf16>
    %cst_35 = arith.constant dense<0.000000e+00> : vector<144x256xf32>
    %34 = tpu.matmul %31, %33, %cst_35 {dimension_numbers = #tpu.dot_dimension_numbers<[1], [0], [0], [1], [0, 0, 1, 1], [], []>} : vector<144x128xbf16>, vector<128x256xbf16>, vector<144x256xf32> -> vector<144x256xf32>
    %35 = arith.addf %30, %34 : vector<144x256xf32>
    %c2_36 = arith.constant 2 : index
    %c0_37 = arith.constant 0 : index
    %36 = vector.load %arg9[%c2_36, %c0_37] : memref<148x128xbf16, #tpu.memory_space<vmem>>, vector<144x128xbf16>
    %c2_38 = arith.constant 2 : index
    %c0_39 = arith.constant 0 : index
    %c0_40 = arith.constant 0 : index
    %37 = vector.load %arg2[%c2_38, %c0_39, %c0_40] : memref<5x128x256xbf16, #tpu.memory_space<vmem>>, vector<1x128x256xbf16>
    %38 = vector.shape_cast %37 : vector<1x128x256xbf16> to vector<128x256xbf16>
    %cst_41 = arith.constant dense<0.000000e+00> : vector<144x256xf32>
    %39 = tpu.matmul %36, %38, %cst_41 {dimension_numbers = #tpu.dot_dimension_numbers<[1], [0], [0], [1], [0, 0, 1, 1], [], []>} : vector<144x128xbf16>, vector<128x256xbf16>, vector<144x256xf32> -> vector<144x256xf32>
    %40 = arith.addf %35, %39 : vector<144x256xf32>
    %c3_42 = arith.constant 3 : index
    %c0_43 = arith.constant 0 : index
    %41 = vector.load %arg9[%c3_42, %c0_43] : memref<148x128xbf16, #tpu.memory_space<vmem>>, vector<144x128xbf16>
    %c3_44 = arith.constant 3 : index
    %c0_45 = arith.constant 0 : index
    %c0_46 = arith.constant 0 : index
    %42 = vector.load %arg2[%c3_44, %c0_45, %c0_46] : memref<5x128x256xbf16, #tpu.memory_space<vmem>>, vector<1x128x256xbf16>
    %43 = vector.shape_cast %42 : vector<1x128x256xbf16> to vector<128x256xbf16>
    %cst_47 = arith.constant dense<0.000000e+00> : vector<144x256xf32>
    %44 = tpu.matmul %41, %43, %cst_47 {dimension_numbers = #tpu.dot_dimension_numbers<[1], [0], [0], [1], [0, 0, 1, 1], [], []>} : vector<144x128xbf16>, vector<128x256xbf16>, vector<144x256xf32> -> vector<144x256xf32>
    %45 = arith.addf %40, %44 : vector<144x256xf32>
    %c4_48 = arith.constant 4 : index
    %c0_49 = arith.constant 0 : index
    %46 = vector.load %arg9[%c4_48, %c0_49] : memref<148x128xbf16, #tpu.memory_space<vmem>>, vector<144x128xbf16>
    %c4_50 = arith.constant 4 : index
    %c0_51 = arith.constant 0 : index
    %c0_52 = arith.constant 0 : index
    %47 = vector.load %arg2[%c4_50, %c0_51, %c0_52] : memref<5x128x256xbf16, #tpu.memory_space<vmem>>, vector<1x128x256xbf16>
    %48 = vector.shape_cast %47 : vector<1x128x256xbf16> to vector<128x256xbf16>
    %cst_53 = arith.constant dense<0.000000e+00> : vector<144x256xf32>
    %49 = tpu.matmul %46, %48, %cst_53 {dimension_numbers = #tpu.dot_dimension_numbers<[1], [0], [0], [1], [0, 0, 1, 1], [], []>} : vector<144x128xbf16>, vector<128x256xbf16>, vector<144x256xf32> -> vector<144x256xf32>
    %50 = arith.addf %45, %49 : vector<144x256xf32>
    %c0_54 = arith.constant 0 : index
    %c0_55 = arith.constant 0 : index
    %51 = vector.load %arg3[%c0_54, %c0_55] : memref<1x256xf32, #tpu.memory_space<vmem>>, vector<1x256xf32>
    %52 = vector.broadcast %51 : vector<1x256xf32> to vector<144x256xf32>
    %53 = arith.addf %50, %52 : vector<144x256xf32>
    %cst_56 = arith.constant 0.000000e+00 : f32
    %54 = vector.broadcast %cst_56 : f32 to vector<144x256xf32>
    %55 = arith.maximumf %53, %54 : vector<144x256xf32>
    %cst_57 = arith.constant 0.000000e+00 : bf16
    %56 = vector.broadcast %cst_57 : bf16 to vector<1x256xbf16>
    %c0_58 = arith.constant 0 : index
    %c0_59 = arith.constant 0 : index
    %57 = vector.load %arg10[%c0_58, %c0_59] : memref<138x256xbf16, #tpu.memory_space<vmem>>, vector<1x256xbf16>
    tpu.vector_store %arg10[%c0_58, %c0_59], %56 {strides = array<i32>} : memref<138x256xbf16, #tpu.memory_space<vmem>>, vector<1x256xbf16>,
    %c137 = arith.constant 137 : index
    %c0_60 = arith.constant 0 : index
    %58 = vector.load %arg10[%c137, %c0_60] : memref<138x256xbf16, #tpu.memory_space<vmem>>, vector<1x256xbf16>
    tpu.vector_store %arg10[%c137, %c0_60], %56 {strides = array<i32>} : memref<138x256xbf16, #tpu.memory_space<vmem>>, vector<1x256xbf16>,
    %c1_61 = arith.constant 1 : index
    %c0_62 = arith.constant 0 : index
    %59 = vector.load %arg10[%c1_61, %c0_62] : memref<138x256xbf16, #tpu.memory_space<vmem>>, vector<1x256xbf16>
    tpu.vector_store %arg10[%c1_61, %c0_62], %56 {strides = array<i32>} : memref<138x256xbf16, #tpu.memory_space<vmem>>, vector<1x256xbf16>,
    %60 = vector.extract_strided_slice %55 {offsets = [2, 0], sizes = [32, 256], strides = [1, 1]} : vector<144x256xf32> to vector<32x256xf32>
    %61 = arith.truncf %60 : vector<32x256xf32> to vector<32x256xbf16>
    %c2_63 = arith.constant 2 : index
    %c0_64 = arith.constant 0 : index
    %62 = vector.load %arg10[%c2_63, %c0_64] : memref<138x256xbf16, #tpu.memory_space<vmem>>, vector<32x256xbf16>
    tpu.vector_store %arg10[%c2_63, %c0_64], %61 {strides = array<i32>} : memref<138x256xbf16, #tpu.memory_space<vmem>>, vector<32x256xbf16>,
    %c34 = arith.constant 34 : index
    %c0_65 = arith.constant 0 : index
    %63 = vector.load %arg10[%c34, %c0_65] : memref<138x256xbf16, #tpu.memory_space<vmem>>, vector<1x256xbf16>
    tpu.vector_store %arg10[%c34, %c0_65], %56 {strides = array<i32>} : memref<138x256xbf16, #tpu.memory_space<vmem>>, vector<1x256xbf16>,
    %c35 = arith.constant 35 : index
    %c0_66 = arith.constant 0 : index
    %64 = vector.load %arg10[%c35, %c0_66] : memref<138x256xbf16, #tpu.memory_space<vmem>>, vector<1x256xbf16>
    tpu.vector_store %arg10[%c35, %c0_66], %56 {strides = array<i32>} : memref<138x256xbf16, #tpu.memory_space<vmem>>, vector<1x256xbf16>,
    %65 = vector.extract_strided_slice %55 {offsets = [38, 0], sizes = [32, 256], strides = [1, 1]} : vector<144x256xf32> to vector<32x256xf32>
    %66 = arith.truncf %65 : vector<32x256xf32> to vector<32x256xbf16>
    %c36_67 = arith.constant 36 : index
    %c0_68 = arith.constant 0 : index
    %67 = vector.load %arg10[%c36_67, %c0_68] : memref<138x256xbf16, #tpu.memory_space<vmem>>, vector<32x256xbf16>
    tpu.vector_store %arg10[%c36_67, %c0_68], %66 {strides = array<i32>} : memref<138x256xbf16, #tpu.memory_space<vmem>>, vector<32x256xbf16>,
    %c68 = arith.constant 68 : index
    %c0_69 = arith.constant 0 : index
    %68 = vector.load %arg10[%c68, %c0_69] : memref<138x256xbf16, #tpu.memory_space<vmem>>, vector<1x256xbf16>
    tpu.vector_store %arg10[%c68, %c0_69], %56 {strides = array<i32>} : memref<138x256xbf16, #tpu.memory_space<vmem>>, vector<1x256xbf16>,
    %c69 = arith.constant 69 : index
    %c0_70 = arith.constant 0 : index
    %69 = vector.load %arg10[%c69, %c0_70] : memref<138x256xbf16, #tpu.memory_space<vmem>>, vector<1x256xbf16>
    tpu.vector_store %arg10[%c69, %c0_70], %56 {strides = array<i32>} : memref<138x256xbf16, #tpu.memory_space<vmem>>, vector<1x256xbf16>,
    %70 = vector.extract_strided_slice %55 {offsets = [74, 0], sizes = [32, 256], strides = [1, 1]} : vector<144x256xf32> to vector<32x256xf32>
    %71 = arith.truncf %70 : vector<32x256xf32> to vector<32x256xbf16>
    %c70 = arith.constant 70 : index
    %c0_71 = arith.constant 0 : index
    %72 = vector.load %arg10[%c70, %c0_71] : memref<138x256xbf16, #tpu.memory_space<vmem>>, vector<32x256xbf16>
    tpu.vector_store %arg10[%c70, %c0_71], %71 {strides = array<i32>} : memref<138x256xbf16, #tpu.memory_space<vmem>>, vector<32x256xbf16>,
    %c102 = arith.constant 102 : index
    %c0_72 = arith.constant 0 : index
    %73 = vector.load %arg10[%c102, %c0_72] : memref<138x256xbf16, #tpu.memory_space<vmem>>, vector<1x256xbf16>
    tpu.vector_store %arg10[%c102, %c0_72], %56 {strides = array<i32>} : memref<138x256xbf16, #tpu.memory_space<vmem>>, vector<1x256xbf16>,
    %c103 = arith.constant 103 : index
    %c0_73 = arith.constant 0 : index
    %74 = vector.load %arg10[%c103, %c0_73] : memref<138x256xbf16, #tpu.memory_space<vmem>>, vector<1x256xbf16>
    tpu.vector_store %arg10[%c103, %c0_73], %56 {strides = array<i32>} : memref<138x256xbf16, #tpu.memory_space<vmem>>, vector<1x256xbf16>,
    %75 = vector.extract_strided_slice %55 {offsets = [110, 0], sizes = [32, 256], strides = [1, 1]} : vector<144x256xf32> to vector<32x256xf32>
    %76 = arith.truncf %75 : vector<32x256xf32> to vector<32x256xbf16>
    %c104 = arith.constant 104 : index
    %c0_74 = arith.constant 0 : index
    %77 = vector.load %arg10[%c104, %c0_74] : memref<138x256xbf16, #tpu.memory_space<vmem>>, vector<32x256xbf16>
    tpu.vector_store %arg10[%c104, %c0_74], %76 {strides = array<i32>} : memref<138x256xbf16, #tpu.memory_space<vmem>>, vector<32x256xbf16>,
    %c136 = arith.constant 136 : index
    %c0_75 = arith.constant 0 : index
    %78 = vector.load %arg10[%c136, %c0_75] : memref<138x256xbf16, #tpu.memory_space<vmem>>, vector<1x256xbf16>
    tpu.vector_store %arg10[%c136, %c0_75], %56 {strides = array<i32>} : memref<138x256xbf16, #tpu.memory_space<vmem>>, vector<1x256xbf16>,
    %c0_76 = arith.constant 0 : index
    %c0_77 = arith.constant 0 : index
    %79 = vector.load %arg10[%c0_76, %c0_77] : memref<138x256xbf16, #tpu.memory_space<vmem>>, vector<136x256xbf16>
    %c0_78 = arith.constant 0 : index
    %c0_79 = arith.constant 0 : index
    %c0_80 = arith.constant 0 : index
    %80 = vector.load %arg4[%c0_78, %c0_79, %c0_80] : memref<3x256x256xbf16, #tpu.memory_space<vmem>>, vector<1x256x256xbf16>
    %81 = vector.shape_cast %80 : vector<1x256x256xbf16> to vector<256x256xbf16>
    %cst_81 = arith.constant dense<0.000000e+00> : vector<136x256xf32>
    %82 = tpu.matmul %79, %81, %cst_81 {dimension_numbers = #tpu.dot_dimension_numbers<[1], [0], [0], [1], [0, 0, 1, 1], [], []>} : vector<136x256xbf16>, vector<256x256xbf16>, vector<136x256xf32> -> vector<136x256xf32>
    %c1_82 = arith.constant 1 : index
    %c0_83 = arith.constant 0 : index
    %83 = vector.load %arg10[%c1_82, %c0_83] : memref<138x256xbf16, #tpu.memory_space<vmem>>, vector<136x256xbf16>
    %c1_84 = arith.constant 1 : index
    %c0_85 = arith.constant 0 : index
    %c0_86 = arith.constant 0 : index
    %84 = vector.load %arg4[%c1_84, %c0_85, %c0_86] : memref<3x256x256xbf16, #tpu.memory_space<vmem>>, vector<1x256x256xbf16>
    %85 = vector.shape_cast %84 : vector<1x256x256xbf16> to vector<256x256xbf16>
    %cst_87 = arith.constant dense<0.000000e+00> : vector<136x256xf32>
    %86 = tpu.matmul %83, %85, %cst_87 {dimension_numbers = #tpu.dot_dimension_numbers<[1], [0], [0], [1], [0, 0, 1, 1], [], []>} : vector<136x256xbf16>, vector<256x256xbf16>, vector<136x256xf32> -> vector<136x256xf32>
    %87 = arith.addf %82, %86 : vector<136x256xf32>
    %c2_88 = arith.constant 2 : index
    %c0_89 = arith.constant 0 : index
    %88 = vector.load %arg10[%c2_88, %c0_89] : memref<138x256xbf16, #tpu.memory_space<vmem>>, vector<136x256xbf16>
    %c2_90 = arith.constant 2 : index
    %c0_91 = arith.constant 0 : index
    %c0_92 = arith.constant 0 : index
    %89 = vector.load %arg4[%c2_90, %c0_91, %c0_92] : memref<3x256x256xbf16, #tpu.memory_space<vmem>>, vector<1x256x256xbf16>
    %90 = vector.shape_cast %89 : vector<1x256x256xbf16> to vector<256x256xbf16>
    %cst_93 = arith.constant dense<0.000000e+00> : vector<136x256xf32>
    %91 = tpu.matmul %88, %90, %cst_93 {dimension_numbers = #tpu.dot_dimension_numbers<[1], [0], [0], [1], [0, 0, 1, 1], [], []>} : vector<136x256xbf16>, vector<256x256xbf16>, vector<136x256xf32> -> vector<136x256xf32>
    %92 = arith.addf %87, %91 : vector<136x256xf32>
    %c0_94 = arith.constant 0 : index
    %c0_95 = arith.constant 0 : index
    %93 = vector.load %arg5[%c0_94, %c0_95] : memref<1x256xf32, #tpu.memory_space<vmem>>, vector<1x256xf32>
    %94 = vector.broadcast %93 : vector<1x256xf32> to vector<136x256xf32>
    %95 = arith.addf %92, %94 : vector<136x256xf32>
    %cst_96 = arith.constant 0.000000e+00 : f32
    %96 = vector.broadcast %cst_96 : f32 to vector<136x256xf32>
    %97 = arith.maximumf %95, %96 : vector<136x256xf32>
    %98 = tpu.iota {dimensions = array<i32: 0>} : vector<4x128xi32>
    %99 = tpu.iota {dimensions = array<i32: 1>} : vector<4x128xi32>
    %cst_97 = arith.constant 0.000000e+00 : f32
    %100 = vector.broadcast %cst_97 : f32 to vector<4x128xf32>
    %101 = vector.extract_strided_slice %97 {offsets = [1, 0], sizes = [32, 256], strides = [1, 1]} : vector<136x256xf32> to vector<32x256xf32>
    %c0_98 = arith.constant 0 : index
    %c0_99 = arith.constant 0 : index
    %c0_100 = arith.constant 0 : index
    %102 = vector.load %arg6[%c0_98, %c0_99, %c0_100] : memref<10x32x256xf32, #tpu.memory_space<vmem>>, vector<1x32x256xf32>
    %103 = vector.shape_cast %102 : vector<1x32x256xf32> to vector<32x256xf32>
    %104 = arith.mulf %101, %103 : vector<32x256xf32>
    %105 = vector.shape_cast %104 : vector<32x256xf32> to vector<1x32x256xf32>
    %cst_101 = arith.constant dense<0.000000e+00> : vector<1xf32>
    %106 = vector.multi_reduction <add>, %105, %cst_101 [1, 2] : vector<1x32x256xf32> to vector<1xf32>
    %107 = vector.shape_cast %106 : vector<1xf32> to vector<1x1x1xf32>
    %108 = vector.extract %107[0, 0, 0] : f32 from vector<1x1x1xf32>
    %c0_i32 = arith.constant 0 : i32
    %109 = vector.broadcast %c0_i32 : i32 to vector<4x128xi32>
    %110 = arith.cmpi eq, %98, %109 : vector<4x128xi32>
    %c0_i32_102 = arith.constant 0 : i32
    %111 = vector.broadcast %c0_i32_102 : i32 to vector<4x128xi32>
    %112 = arith.cmpi eq, %99, %111 : vector<4x128xi32>
    %113 = arith.andi %110, %112 : vector<4x128xi1>
    %114 = vector.broadcast %108 : f32 to vector<4x128xf32>
    %115 = arith.select %113, %114, %100 : vector<4x128xi1>, vector<4x128xf32>
    %c1_103 = arith.constant 1 : index
    %c0_104 = arith.constant 0 : index
    %c0_105 = arith.constant 0 : index
    %116 = vector.load %arg6[%c1_103, %c0_104, %c0_105] : memref<10x32x256xf32, #tpu.memory_space<vmem>>, vector<1x32x256xf32>
    %117 = vector.shape_cast %116 : vector<1x32x256xf32> to vector<32x256xf32>
    %118 = arith.mulf %101, %117 : vector<32x256xf32>
    %119 = vector.shape_cast %118 : vector<32x256xf32> to vector<1x32x256xf32>
    %cst_106 = arith.constant dense<0.000000e+00> : vector<1xf32>
    %120 = vector.multi_reduction <add>, %119, %cst_106 [1, 2] : vector<1x32x256xf32> to vector<1xf32>
    %121 = vector.shape_cast %120 : vector<1xf32> to vector<1x1x1xf32>
    %122 = vector.extract %121[0, 0, 0] : f32 from vector<1x1x1xf32>
    %c0_i32_107 = arith.constant 0 : i32
    %123 = vector.broadcast %c0_i32_107 : i32 to vector<4x128xi32>
    %124 = arith.cmpi eq, %98, %123 : vector<4x128xi32>
    %c1_i32 = arith.constant 1 : i32
    %125 = vector.broadcast %c1_i32 : i32 to vector<4x128xi32>
    %126 = arith.cmpi eq, %99, %125 : vector<4x128xi32>
    %127 = arith.andi %124, %126 : vector<4x128xi1>
    %128 = vector.broadcast %122 : f32 to vector<4x128xf32>
    %129 = arith.select %127, %128, %115 : vector<4x128xi1>, vector<4x128xf32>
    %c2_108 = arith.constant 2 : index
    %c0_109 = arith.constant 0 : index
    %c0_110 = arith.constant 0 : index
    %130 = vector.load %arg6[%c2_108, %c0_109, %c0_110] : memref<10x32x256xf32, #tpu.memory_space<vmem>>, vector<1x32x256xf32>
    %131 = vector.shape_cast %130 : vector<1x32x256xf32> to vector<32x256xf32>
    %132 = arith.mulf %101, %131 : vector<32x256xf32>
    %133 = vector.shape_cast %132 : vector<32x256xf32> to vector<1x32x256xf32>
    %cst_111 = arith.constant dense<0.000000e+00> : vector<1xf32>
    %134 = vector.multi_reduction <add>, %133, %cst_111 [1, 2] : vector<1x32x256xf32> to vector<1xf32>
    %135 = vector.shape_cast %134 : vector<1xf32> to vector<1x1x1xf32>
    %136 = vector.extract %135[0, 0, 0] : f32 from vector<1x1x1xf32>
    %c0_i32_112 = arith.constant 0 : i32
    %137 = vector.broadcast %c0_i32_112 : i32 to vector<4x128xi32>
    %138 = arith.cmpi eq, %98, %137 : vector<4x128xi32>
    %c2_i32 = arith.constant 2 : i32
    %139 = vector.broadcast %c2_i32 : i32 to vector<4x128xi32>
    %140 = arith.cmpi eq, %99, %139 : vector<4x128xi32>
    %141 = arith.andi %138, %140 : vector<4x128xi1>
    %142 = vector.broadcast %136 : f32 to vector<4x128xf32>
    %143 = arith.select %141, %142, %129 : vector<4x128xi1>, vector<4x128xf32>
    %c3_113 = arith.constant 3 : index
    %c0_114 = arith.constant 0 : index
    %c0_115 = arith.constant 0 : index
    %144 = vector.load %arg6[%c3_113, %c0_114, %c0_115] : memref<10x32x256xf32, #tpu.memory_space<vmem>>, vector<1x32x256xf32>
    %145 = vector.shape_cast %144 : vector<1x32x256xf32> to vector<32x256xf32>
    %146 = arith.mulf %101, %145 : vector<32x256xf32>
    %147 = vector.shape_cast %146 : vector<32x256xf32> to vector<1x32x256xf32>
    %cst_116 = arith.constant dense<0.000000e+00> : vector<1xf32>
    %148 = vector.multi_reduction <add>, %147, %cst_116 [1, 2] : vector<1x32x256xf32> to vector<1xf32>
    %149 = vector.shape_cast %148 : vector<1xf32> to vector<1x1x1xf32>
    %150 = vector.extract %149[0, 0, 0] : f32 from vector<1x1x1xf32>
    %c0_i32_117 = arith.constant 0 : i32
    %151 = vector.broadcast %c0_i32_117 : i32 to vector<4x128xi32>
    %152 = arith.cmpi eq, %98, %151 : vector<4x128xi32>
    %c3_i32 = arith.constant 3 : i32
    %153 = vector.broadcast %c3_i32 : i32 to vector<4x128xi32>
    %154 = arith.cmpi eq, %99, %153 : vector<4x128xi32>
    %155 = arith.andi %152, %154 : vector<4x128xi1>
    %156 = vector.broadcast %150 : f32 to vector<4x128xf32>
    %157 = arith.select %155, %156, %143 : vector<4x128xi1>, vector<4x128xf32>
    %c4_118 = arith.constant 4 : index
    %c0_119 = arith.constant 0 : index
    %c0_120 = arith.constant 0 : index
    %158 = vector.load %arg6[%c4_118, %c0_119, %c0_120] : memref<10x32x256xf32, #tpu.memory_space<vmem>>, vector<1x32x256xf32>
    %159 = vector.shape_cast %158 : vector<1x32x256xf32> to vector<32x256xf32>
    %160 = arith.mulf %101, %159 : vector<32x256xf32>
    %161 = vector.shape_cast %160 : vector<32x256xf32> to vector<1x32x256xf32>
    %cst_121 = arith.constant dense<0.000000e+00> : vector<1xf32>
    %162 = vector.multi_reduction <add>, %161, %cst_121 [1, 2] : vector<1x32x256xf32> to vector<1xf32>
    %163 = vector.shape_cast %162 : vector<1xf32> to vector<1x1x1xf32>
    %164 = vector.extract %163[0, 0, 0] : f32 from vector<1x1x1xf32>
    %c0_i32_122 = arith.constant 0 : i32
    %165 = vector.broadcast %c0_i32_122 : i32 to vector<4x128xi32>
    %166 = arith.cmpi eq, %98, %165 : vector<4x128xi32>
    %c4_i32 = arith.constant 4 : i32
    %167 = vector.broadcast %c4_i32 : i32 to vector<4x128xi32>
    %168 = arith.cmpi eq, %99, %167 : vector<4x128xi32>
    %169 = arith.andi %166, %168 : vector<4x128xi1>
    %170 = vector.broadcast %164 : f32 to vector<4x128xf32>
    %171 = arith.select %169, %170, %157 : vector<4x128xi1>, vector<4x128xf32>
    %c5 = arith.constant 5 : index
    %c0_123 = arith.constant 0 : index
    %c0_124 = arith.constant 0 : index
    %172 = vector.load %arg6[%c5, %c0_123, %c0_124] : memref<10x32x256xf32, #tpu.memory_space<vmem>>, vector<1x32x256xf32>
    %173 = vector.shape_cast %172 : vector<1x32x256xf32> to vector<32x256xf32>
    %174 = arith.mulf %101, %173 : vector<32x256xf32>
    %175 = vector.shape_cast %174 : vector<32x256xf32> to vector<1x32x256xf32>
    %cst_125 = arith.constant dense<0.000000e+00> : vector<1xf32>
    %176 = vector.multi_reduction <add>, %175, %cst_125 [1, 2] : vector<1x32x256xf32> to vector<1xf32>
    %177 = vector.shape_cast %176 : vector<1xf32> to vector<1x1x1xf32>
    %178 = vector.extract %177[0, 0, 0] : f32 from vector<1x1x1xf32>
    %c0_i32_126 = arith.constant 0 : i32
    %179 = vector.broadcast %c0_i32_126 : i32 to vector<4x128xi32>
    %180 = arith.cmpi eq, %98, %179 : vector<4x128xi32>
    %c5_i32 = arith.constant 5 : i32
    %181 = vector.broadcast %c5_i32 : i32 to vector<4x128xi32>
    %182 = arith.cmpi eq, %99, %181 : vector<4x128xi32>
    %183 = arith.andi %180, %182 : vector<4x128xi1>
    %184 = vector.broadcast %178 : f32 to vector<4x128xf32>
    %185 = arith.select %183, %184, %171 : vector<4x128xi1>, vector<4x128xf32>
    %c6 = arith.constant 6 : index
    %c0_127 = arith.constant 0 : index
    %c0_128 = arith.constant 0 : index
    %186 = vector.load %arg6[%c6, %c0_127, %c0_128] : memref<10x32x256xf32, #tpu.memory_space<vmem>>, vector<1x32x256xf32>
    %187 = vector.shape_cast %186 : vector<1x32x256xf32> to vector<32x256xf32>
    %188 = arith.mulf %101, %187 : vector<32x256xf32>
    %189 = vector.shape_cast %188 : vector<32x256xf32> to vector<1x32x256xf32>
    %cst_129 = arith.constant dense<0.000000e+00> : vector<1xf32>
    %190 = vector.multi_reduction <add>, %189, %cst_129 [1, 2] : vector<1x32x256xf32> to vector<1xf32>
    %191 = vector.shape_cast %190 : vector<1xf32> to vector<1x1x1xf32>
    %192 = vector.extract %191[0, 0, 0] : f32 from vector<1x1x1xf32>
    %c0_i32_130 = arith.constant 0 : i32
    %193 = vector.broadcast %c0_i32_130 : i32 to vector<4x128xi32>
    %194 = arith.cmpi eq, %98, %193 : vector<4x128xi32>
    %c6_i32 = arith.constant 6 : i32
    %195 = vector.broadcast %c6_i32 : i32 to vector<4x128xi32>
    %196 = arith.cmpi eq, %99, %195 : vector<4x128xi32>
    %197 = arith.andi %194, %196 : vector<4x128xi1>
    %198 = vector.broadcast %192 : f32 to vector<4x128xf32>
    %199 = arith.select %197, %198, %185 : vector<4x128xi1>, vector<4x128xf32>
    %c7 = arith.constant 7 : index
    %c0_131 = arith.constant 0 : index
    %c0_132 = arith.constant 0 : index
    %200 = vector.load %arg6[%c7, %c0_131, %c0_132] : memref<10x32x256xf32, #tpu.memory_space<vmem>>, vector<1x32x256xf32>
    %201 = vector.shape_cast %200 : vector<1x32x256xf32> to vector<32x256xf32>
    %202 = arith.mulf %101, %201 : vector<32x256xf32>
    %203 = vector.shape_cast %202 : vector<32x256xf32> to vector<1x32x256xf32>
    %cst_133 = arith.constant dense<0.000000e+00> : vector<1xf32>
    %204 = vector.multi_reduction <add>, %203, %cst_133 [1, 2] : vector<1x32x256xf32> to vector<1xf32>
    %205 = vector.shape_cast %204 : vector<1xf32> to vector<1x1x1xf32>
    %206 = vector.extract %205[0, 0, 0] : f32 from vector<1x1x1xf32>
    %c0_i32_134 = arith.constant 0 : i32
    %207 = vector.broadcast %c0_i32_134 : i32 to vector<4x128xi32>
    %208 = arith.cmpi eq, %98, %207 : vector<4x128xi32>
    %c7_i32 = arith.constant 7 : i32
    %209 = vector.broadcast %c7_i32 : i32 to vector<4x128xi32>
    %210 = arith.cmpi eq, %99, %209 : vector<4x128xi32>
    %211 = arith.andi %208, %210 : vector<4x128xi1>
    %212 = vector.broadcast %206 : f32 to vector<4x128xf32>
    %213 = arith.select %211, %212, %199 : vector<4x128xi1>, vector<4x128xf32>
    %c8 = arith.constant 8 : index
    %c0_135 = arith.constant 0 : index
    %c0_136 = arith.constant 0 : index
    %214 = vector.load %arg6[%c8, %c0_135, %c0_136] : memref<10x32x256xf32, #tpu.memory_space<vmem>>, vector<1x32x256xf32>
    %215 = vector.shape_cast %214 : vector<1x32x256xf32> to vector<32x256xf32>
    %216 = arith.mulf %101, %215 : vector<32x256xf32>
    %217 = vector.shape_cast %216 : vector<32x256xf32> to vector<1x32x256xf32>
    %cst_137 = arith.constant dense<0.000000e+00> : vector<1xf32>
    %218 = vector.multi_reduction <add>, %217, %cst_137 [1, 2] : vector<1x32x256xf32> to vector<1xf32>
    %219 = vector.shape_cast %218 : vector<1xf32> to vector<1x1x1xf32>
    %220 = vector.extract %219[0, 0, 0] : f32 from vector<1x1x1xf32>
    %c0_i32_138 = arith.constant 0 : i32
    %221 = vector.broadcast %c0_i32_138 : i32 to vector<4x128xi32>
    %222 = arith.cmpi eq, %98, %221 : vector<4x128xi32>
    %c8_i32 = arith.constant 8 : i32
    %223 = vector.broadcast %c8_i32 : i32 to vector<4x128xi32>
    %224 = arith.cmpi eq, %99, %223 : vector<4x128xi32>
    %225 = arith.andi %222, %224 : vector<4x128xi1>
    %226 = vector.broadcast %220 : f32 to vector<4x128xf32>
    %227 = arith.select %225, %226, %213 : vector<4x128xi1>, vector<4x128xf32>
    %c9 = arith.constant 9 : index
    %c0_139 = arith.constant 0 : index
    %c0_140 = arith.constant 0 : index
    %228 = vector.load %arg6[%c9, %c0_139, %c0_140] : memref<10x32x256xf32, #tpu.memory_space<vmem>>, vector<1x32x256xf32>
    %229 = vector.shape_cast %228 : vector<1x32x256xf32> to vector<32x256xf32>
    %230 = arith.mulf %101, %229 : vector<32x256xf32>
    %231 = vector.shape_cast %230 : vector<32x256xf32> to vector<1x32x256xf32>
    %cst_141 = arith.constant dense<0.000000e+00> : vector<1xf32>
    %232 = vector.multi_reduction <add>, %231, %cst_141 [1, 2] : vector<1x32x256xf32> to vector<1xf32>
    %233 = vector.shape_cast %232 : vector<1xf32> to vector<1x1x1xf32>
    %234 = vector.extract %233[0, 0, 0] : f32 from vector<1x1x1xf32>
    %c0_i32_142 = arith.constant 0 : i32
    %235 = vector.broadcast %c0_i32_142 : i32 to vector<4x128xi32>
    %236 = arith.cmpi eq, %98, %235 : vector<4x128xi32>
    %c9_i32 = arith.constant 9 : i32
    %237 = vector.broadcast %c9_i32 : i32 to vector<4x128xi32>
    %238 = arith.cmpi eq, %99, %237 : vector<4x128xi32>
    %239 = arith.andi %236, %238 : vector<4x128xi1>
    %240 = vector.broadcast %234 : f32 to vector<4x128xf32>
    %241 = arith.select %239, %240, %227 : vector<4x128xi1>, vector<4x128xf32>
    %242 = vector.extract_strided_slice %97 {offsets = [35, 0], sizes = [32, 256], strides = [1, 1]} : vector<136x256xf32> to vector<32x256xf32>
    %c0_143 = arith.constant 0 : index
    %c0_144 = arith.constant 0 : index
    %c0_145 = arith.constant 0 : index
    %243 = vector.load %arg6[%c0_143, %c0_144, %c0_145] : memref<10x32x256xf32, #tpu.memory_space<vmem>>, vector<1x32x256xf32>
    %244 = vector.shape_cast %243 : vector<1x32x256xf32> to vector<32x256xf32>
    %245 = arith.mulf %242, %244 : vector<32x256xf32>
    %246 = vector.shape_cast %245 : vector<32x256xf32> to vector<1x32x256xf32>
    %cst_146 = arith.constant dense<0.000000e+00> : vector<1xf32>
    %247 = vector.multi_reduction <add>, %246, %cst_146 [1, 2] : vector<1x32x256xf32> to vector<1xf32>
    %248 = vector.shape_cast %247 : vector<1xf32> to vector<1x1x1xf32>
    %249 = vector.extract %248[0, 0, 0] : f32 from vector<1x1x1xf32>
    %c1_i32_147 = arith.constant 1 : i32
    %250 = vector.broadcast %c1_i32_147 : i32 to vector<4x128xi32>
    %251 = arith.cmpi eq, %98, %250 : vector<4x128xi32>
    %c0_i32_148 = arith.constant 0 : i32
    %252 = vector.broadcast %c0_i32_148 : i32 to vector<4x128xi32>
    %253 = arith.cmpi eq, %99, %252 : vector<4x128xi32>
    %254 = arith.andi %251, %253 : vector<4x128xi1>
    %255 = vector.broadcast %249 : f32 to vector<4x128xf32>
    %256 = arith.select %254, %255, %241 : vector<4x128xi1>, vector<4x128xf32>
    %c1_149 = arith.constant 1 : index
    %c0_150 = arith.constant 0 : index
    %c0_151 = arith.constant 0 : index
    %257 = vector.load %arg6[%c1_149, %c0_150, %c0_151] : memref<10x32x256xf32, #tpu.memory_space<vmem>>, vector<1x32x256xf32>
    %258 = vector.shape_cast %257 : vector<1x32x256xf32> to vector<32x256xf32>
    %259 = arith.mulf %242, %258 : vector<32x256xf32>
    %260 = vector.shape_cast %259 : vector<32x256xf32> to vector<1x32x256xf32>
    %cst_152 = arith.constant dense<0.000000e+00> : vector<1xf32>
    %261 = vector.multi_reduction <add>, %260, %cst_152 [1, 2] : vector<1x32x256xf32> to vector<1xf32>
    %262 = vector.shape_cast %261 : vector<1xf32> to vector<1x1x1xf32>
    %263 = vector.extract %262[0, 0, 0] : f32 from vector<1x1x1xf32>
    %c1_i32_153 = arith.constant 1 : i32
    %264 = vector.broadcast %c1_i32_153 : i32 to vector<4x128xi32>
    %265 = arith.cmpi eq, %98, %264 : vector<4x128xi32>
    %c1_i32_154 = arith.constant 1 : i32
    %266 = vector.broadcast %c1_i32_154 : i32 to vector<4x128xi32>
    %267 = arith.cmpi eq, %99, %266 : vector<4x128xi32>
    %268 = arith.andi %265, %267 : vector<4x128xi1>
    %269 = vector.broadcast %263 : f32 to vector<4x128xf32>
    %270 = arith.select %268, %269, %256 : vector<4x128xi1>, vector<4x128xf32>
    %c2_155 = arith.constant 2 : index
    %c0_156 = arith.constant 0 : index
    %c0_157 = arith.constant 0 : index
    %271 = vector.load %arg6[%c2_155, %c0_156, %c0_157] : memref<10x32x256xf32, #tpu.memory_space<vmem>>, vector<1x32x256xf32>
    %272 = vector.shape_cast %271 : vector<1x32x256xf32> to vector<32x256xf32>
    %273 = arith.mulf %242, %272 : vector<32x256xf32>
    %274 = vector.shape_cast %273 : vector<32x256xf32> to vector<1x32x256xf32>
    %cst_158 = arith.constant dense<0.000000e+00> : vector<1xf32>
    %275 = vector.multi_reduction <add>, %274, %cst_158 [1, 2] : vector<1x32x256xf32> to vector<1xf32>
    %276 = vector.shape_cast %275 : vector<1xf32> to vector<1x1x1xf32>
    %277 = vector.extract %276[0, 0, 0] : f32 from vector<1x1x1xf32>
    %c1_i32_159 = arith.constant 1 : i32
    %278 = vector.broadcast %c1_i32_159 : i32 to vector<4x128xi32>
    %279 = arith.cmpi eq, %98, %278 : vector<4x128xi32>
    %c2_i32_160 = arith.constant 2 : i32
    %280 = vector.broadcast %c2_i32_160 : i32 to vector<4x128xi32>
    %281 = arith.cmpi eq, %99, %280 : vector<4x128xi32>
    %282 = arith.andi %279, %281 : vector<4x128xi1>
    %283 = vector.broadcast %277 : f32 to vector<4x128xf32>
    %284 = arith.select %282, %283, %270 : vector<4x128xi1>, vector<4x128xf32>
    %c3_161 = arith.constant 3 : index
    %c0_162 = arith.constant 0 : index
    %c0_163 = arith.constant 0 : index
    %285 = vector.load %arg6[%c3_161, %c0_162, %c0_163] : memref<10x32x256xf32, #tpu.memory_space<vmem>>, vector<1x32x256xf32>
    %286 = vector.shape_cast %285 : vector<1x32x256xf32> to vector<32x256xf32>
    %287 = arith.mulf %242, %286 : vector<32x256xf32>
    %288 = vector.shape_cast %287 : vector<32x256xf32> to vector<1x32x256xf32>
    %cst_164 = arith.constant dense<0.000000e+00> : vector<1xf32>
    %289 = vector.multi_reduction <add>, %288, %cst_164 [1, 2] : vector<1x32x256xf32> to vector<1xf32>
    %290 = vector.shape_cast %289 : vector<1xf32> to vector<1x1x1xf32>
    %291 = vector.extract %290[0, 0, 0] : f32 from vector<1x1x1xf32>
    %c1_i32_165 = arith.constant 1 : i32
    %292 = vector.broadcast %c1_i32_165 : i32 to vector<4x128xi32>
    %293 = arith.cmpi eq, %98, %292 : vector<4x128xi32>
    %c3_i32_166 = arith.constant 3 : i32
    %294 = vector.broadcast %c3_i32_166 : i32 to vector<4x128xi32>
    %295 = arith.cmpi eq, %99, %294 : vector<4x128xi32>
    %296 = arith.andi %293, %295 : vector<4x128xi1>
    %297 = vector.broadcast %291 : f32 to vector<4x128xf32>
    %298 = arith.select %296, %297, %284 : vector<4x128xi1>, vector<4x128xf32>
    %c4_167 = arith.constant 4 : index
    %c0_168 = arith.constant 0 : index
    %c0_169 = arith.constant 0 : index
    %299 = vector.load %arg6[%c4_167, %c0_168, %c0_169] : memref<10x32x256xf32, #tpu.memory_space<vmem>>, vector<1x32x256xf32>
    %300 = vector.shape_cast %299 : vector<1x32x256xf32> to vector<32x256xf32>
    %301 = arith.mulf %242, %300 : vector<32x256xf32>
    %302 = vector.shape_cast %301 : vector<32x256xf32> to vector<1x32x256xf32>
    %cst_170 = arith.constant dense<0.000000e+00> : vector<1xf32>
    %303 = vector.multi_reduction <add>, %302, %cst_170 [1, 2] : vector<1x32x256xf32> to vector<1xf32>
    %304 = vector.shape_cast %303 : vector<1xf32> to vector<1x1x1xf32>
    %305 = vector.extract %304[0, 0, 0] : f32 from vector<1x1x1xf32>
    %c1_i32_171 = arith.constant 1 : i32
    %306 = vector.broadcast %c1_i32_171 : i32 to vector<4x128xi32>
    %307 = arith.cmpi eq, %98, %306 : vector<4x128xi32>
    %c4_i32_172 = arith.constant 4 : i32
    %308 = vector.broadcast %c4_i32_172 : i32 to vector<4x128xi32>
    %309 = arith.cmpi eq, %99, %308 : vector<4x128xi32>
    %310 = arith.andi %307, %309 : vector<4x128xi1>
    %311 = vector.broadcast %305 : f32 to vector<4x128xf32>
    %312 = arith.select %310, %311, %298 : vector<4x128xi1>, vector<4x128xf32>
    %c5_173 = arith.constant 5 : index
    %c0_174 = arith.constant 0 : index
    %c0_175 = arith.constant 0 : index
    %313 = vector.load %arg6[%c5_173, %c0_174, %c0_175] : memref<10x32x256xf32, #tpu.memory_space<vmem>>, vector<1x32x256xf32>
    %314 = vector.shape_cast %313 : vector<1x32x256xf32> to vector<32x256xf32>
    %315 = arith.mulf %242, %314 : vector<32x256xf32>
    %316 = vector.shape_cast %315 : vector<32x256xf32> to vector<1x32x256xf32>
    %cst_176 = arith.constant dense<0.000000e+00> : vector<1xf32>
    %317 = vector.multi_reduction <add>, %316, %cst_176 [1, 2] : vector<1x32x256xf32> to vector<1xf32>
    %318 = vector.shape_cast %317 : vector<1xf32> to vector<1x1x1xf32>
    %319 = vector.extract %318[0, 0, 0] : f32 from vector<1x1x1xf32>
    %c1_i32_177 = arith.constant 1 : i32
    %320 = vector.broadcast %c1_i32_177 : i32 to vector<4x128xi32>
    %321 = arith.cmpi eq, %98, %320 : vector<4x128xi32>
    %c5_i32_178 = arith.constant 5 : i32
    %322 = vector.broadcast %c5_i32_178 : i32 to vector<4x128xi32>
    %323 = arith.cmpi eq, %99, %322 : vector<4x128xi32>
    %324 = arith.andi %321, %323 : vector<4x128xi1>
    %325 = vector.broadcast %319 : f32 to vector<4x128xf32>
    %326 = arith.select %324, %325, %312 : vector<4x128xi1>, vector<4x128xf32>
    %c6_179 = arith.constant 6 : index
    %c0_180 = arith.constant 0 : index
    %c0_181 = arith.constant 0 : index
    %327 = vector.load %arg6[%c6_179, %c0_180, %c0_181] : memref<10x32x256xf32, #tpu.memory_space<vmem>>, vector<1x32x256xf32>
    %328 = vector.shape_cast %327 : vector<1x32x256xf32> to vector<32x256xf32>
    %329 = arith.mulf %242, %328 : vector<32x256xf32>
    %330 = vector.shape_cast %329 : vector<32x256xf32> to vector<1x32x256xf32>
    %cst_182 = arith.constant dense<0.000000e+00> : vector<1xf32>
    %331 = vector.multi_reduction <add>, %330, %cst_182 [1, 2] : vector<1x32x256xf32> to vector<1xf32>
    %332 = vector.shape_cast %331 : vector<1xf32> to vector<1x1x1xf32>
    %333 = vector.extract %332[0, 0, 0] : f32 from vector<1x1x1xf32>
    %c1_i32_183 = arith.constant 1 : i32
    %334 = vector.broadcast %c1_i32_183 : i32 to vector<4x128xi32>
    %335 = arith.cmpi eq, %98, %334 : vector<4x128xi32>
    %c6_i32_184 = arith.constant 6 : i32
    %336 = vector.broadcast %c6_i32_184 : i32 to vector<4x128xi32>
    %337 = arith.cmpi eq, %99, %336 : vector<4x128xi32>
    %338 = arith.andi %335, %337 : vector<4x128xi1>
    %339 = vector.broadcast %333 : f32 to vector<4x128xf32>
    %340 = arith.select %338, %339, %326 : vector<4x128xi1>, vector<4x128xf32>
    %c7_185 = arith.constant 7 : index
    %c0_186 = arith.constant 0 : index
    %c0_187 = arith.constant 0 : index
    %341 = vector.load %arg6[%c7_185, %c0_186, %c0_187] : memref<10x32x256xf32, #tpu.memory_space<vmem>>, vector<1x32x256xf32>
    %342 = vector.shape_cast %341 : vector<1x32x256xf32> to vector<32x256xf32>
    %343 = arith.mulf %242, %342 : vector<32x256xf32>
    %344 = vector.shape_cast %343 : vector<32x256xf32> to vector<1x32x256xf32>
    %cst_188 = arith.constant dense<0.000000e+00> : vector<1xf32>
    %345 = vector.multi_reduction <add>, %344, %cst_188 [1, 2] : vector<1x32x256xf32> to vector<1xf32>
    %346 = vector.shape_cast %345 : vector<1xf32> to vector<1x1x1xf32>
    %347 = vector.extract %346[0, 0, 0] : f32 from vector<1x1x1xf32>
    %c1_i32_189 = arith.constant 1 : i32
    %348 = vector.broadcast %c1_i32_189 : i32 to vector<4x128xi32>
    %349 = arith.cmpi eq, %98, %348 : vector<4x128xi32>
    %c7_i32_190 = arith.constant 7 : i32
    %350 = vector.broadcast %c7_i32_190 : i32 to vector<4x128xi32>
    %351 = arith.cmpi eq, %99, %350 : vector<4x128xi32>
    %352 = arith.andi %349, %351 : vector<4x128xi1>
    %353 = vector.broadcast %347 : f32 to vector<4x128xf32>
    %354 = arith.select %352, %353, %340 : vector<4x128xi1>, vector<4x128xf32>
    %c8_191 = arith.constant 8 : index
    %c0_192 = arith.constant 0 : index
    %c0_193 = arith.constant 0 : index
    %355 = vector.load %arg6[%c8_191, %c0_192, %c0_193] : memref<10x32x256xf32, #tpu.memory_space<vmem>>, vector<1x32x256xf32>
    %356 = vector.shape_cast %355 : vector<1x32x256xf32> to vector<32x256xf32>
    %357 = arith.mulf %242, %356 : vector<32x256xf32>
    %358 = vector.shape_cast %357 : vector<32x256xf32> to vector<1x32x256xf32>
    %cst_194 = arith.constant dense<0.000000e+00> : vector<1xf32>
    %359 = vector.multi_reduction <add>, %358, %cst_194 [1, 2] : vector<1x32x256xf32> to vector<1xf32>
    %360 = vector.shape_cast %359 : vector<1xf32> to vector<1x1x1xf32>
    %361 = vector.extract %360[0, 0, 0] : f32 from vector<1x1x1xf32>
    %c1_i32_195 = arith.constant 1 : i32
    %362 = vector.broadcast %c1_i32_195 : i32 to vector<4x128xi32>
    %363 = arith.cmpi eq, %98, %362 : vector<4x128xi32>
    %c8_i32_196 = arith.constant 8 : i32
    %364 = vector.broadcast %c8_i32_196 : i32 to vector<4x128xi32>
    %365 = arith.cmpi eq, %99, %364 : vector<4x128xi32>
    %366 = arith.andi %363, %365 : vector<4x128xi1>
    %367 = vector.broadcast %361 : f32 to vector<4x128xf32>
    %368 = arith.select %366, %367, %354 : vector<4x128xi1>, vector<4x128xf32>
    %c9_197 = arith.constant 9 : index
    %c0_198 = arith.constant 0 : index
    %c0_199 = arith.constant 0 : index
    %369 = vector.load %arg6[%c9_197, %c0_198, %c0_199] : memref<10x32x256xf32, #tpu.memory_space<vmem>>, vector<1x32x256xf32>
    %370 = vector.shape_cast %369 : vector<1x32x256xf32> to vector<32x256xf32>
    %371 = arith.mulf %242, %370 : vector<32x256xf32>
    %372 = vector.shape_cast %371 : vector<32x256xf32> to vector<1x32x256xf32>
    %cst_200 = arith.constant dense<0.000000e+00> : vector<1xf32>
    %373 = vector.multi_reduction <add>, %372, %cst_200 [1, 2] : vector<1x32x256xf32> to vector<1xf32>
    %374 = vector.shape_cast %373 : vector<1xf32> to vector<1x1x1xf32>
    %375 = vector.extract %374[0, 0, 0] : f32 from vector<1x1x1xf32>
    %c1_i32_201 = arith.constant 1 : i32
    %376 = vector.broadcast %c1_i32_201 : i32 to vector<4x128xi32>
    %377 = arith.cmpi eq, %98, %376 : vector<4x128xi32>
    %c9_i32_202 = arith.constant 9 : i32
    %378 = vector.broadcast %c9_i32_202 : i32 to vector<4x128xi32>
    %379 = arith.cmpi eq, %99, %378 : vector<4x128xi32>
    %380 = arith.andi %377, %379 : vector<4x128xi1>
    %381 = vector.broadcast %375 : f32 to vector<4x128xf32>
    %382 = arith.select %380, %381, %368 : vector<4x128xi1>, vector<4x128xf32>
    %383 = vector.extract_strided_slice %97 {offsets = [69, 0], sizes = [32, 256], strides = [1, 1]} : vector<136x256xf32> to vector<32x256xf32>
    %c0_203 = arith.constant 0 : index
    %c0_204 = arith.constant 0 : index
    %c0_205 = arith.constant 0 : index
    %384 = vector.load %arg6[%c0_203, %c0_204, %c0_205] : memref<10x32x256xf32, #tpu.memory_space<vmem>>, vector<1x32x256xf32>
    %385 = vector.shape_cast %384 : vector<1x32x256xf32> to vector<32x256xf32>
    %386 = arith.mulf %383, %385 : vector<32x256xf32>
    %387 = vector.shape_cast %386 : vector<32x256xf32> to vector<1x32x256xf32>
    %cst_206 = arith.constant dense<0.000000e+00> : vector<1xf32>
    %388 = vector.multi_reduction <add>, %387, %cst_206 [1, 2] : vector<1x32x256xf32> to vector<1xf32>
    %389 = vector.shape_cast %388 : vector<1xf32> to vector<1x1x1xf32>
    %390 = vector.extract %389[0, 0, 0] : f32 from vector<1x1x1xf32>
    %c2_i32_207 = arith.constant 2 : i32
    %391 = vector.broadcast %c2_i32_207 : i32 to vector<4x128xi32>
    %392 = arith.cmpi eq, %98, %391 : vector<4x128xi32>
    %c0_i32_208 = arith.constant 0 : i32
    %393 = vector.broadcast %c0_i32_208 : i32 to vector<4x128xi32>
    %394 = arith.cmpi eq, %99, %393 : vector<4x128xi32>
    %395 = arith.andi %392, %394 : vector<4x128xi1>
    %396 = vector.broadcast %390 : f32 to vector<4x128xf32>
    %397 = arith.select %395, %396, %382 : vector<4x128xi1>, vector<4x128xf32>
    %c1_209 = arith.constant 1 : index
    %c0_210 = arith.constant 0 : index
    %c0_211 = arith.constant 0 : index
    %398 = vector.load %arg6[%c1_209, %c0_210, %c0_211] : memref<10x32x256xf32, #tpu.memory_space<vmem>>, vector<1x32x256xf32>
    %399 = vector.shape_cast %398 : vector<1x32x256xf32> to vector<32x256xf32>
    %400 = arith.mulf %383, %399 : vector<32x256xf32>
    %401 = vector.shape_cast %400 : vector<32x256xf32> to vector<1x32x256xf32>
    %cst_212 = arith.constant dense<0.000000e+00> : vector<1xf32>
    %402 = vector.multi_reduction <add>, %401, %cst_212 [1, 2] : vector<1x32x256xf32> to vector<1xf32>
    %403 = vector.shape_cast %402 : vector<1xf32> to vector<1x1x1xf32>
    %404 = vector.extract %403[0, 0, 0] : f32 from vector<1x1x1xf32>
    %c2_i32_213 = arith.constant 2 : i32
    %405 = vector.broadcast %c2_i32_213 : i32 to vector<4x128xi32>
    %406 = arith.cmpi eq, %98, %405 : vector<4x128xi32>
    %c1_i32_214 = arith.constant 1 : i32
    %407 = vector.broadcast %c1_i32_214 : i32 to vector<4x128xi32>
    %408 = arith.cmpi eq, %99, %407 : vector<4x128xi32>
    %409 = arith.andi %406, %408 : vector<4x128xi1>
    %410 = vector.broadcast %404 : f32 to vector<4x128xf32>
    %411 = arith.select %409, %410, %397 : vector<4x128xi1>, vector<4x128xf32>
    %c2_215 = arith.constant 2 : index
    %c0_216 = arith.constant 0 : index
    %c0_217 = arith.constant 0 : index
    %412 = vector.load %arg6[%c2_215, %c0_216, %c0_217] : memref<10x32x256xf32, #tpu.memory_space<vmem>>, vector<1x32x256xf32>
    %413 = vector.shape_cast %412 : vector<1x32x256xf32> to vector<32x256xf32>
    %414 = arith.mulf %383, %413 : vector<32x256xf32>
    %415 = vector.shape_cast %414 : vector<32x256xf32> to vector<1x32x256xf32>
    %cst_218 = arith.constant dense<0.000000e+00> : vector<1xf32>
    %416 = vector.multi_reduction <add>, %415, %cst_218 [1, 2] : vector<1x32x256xf32> to vector<1xf32>
    %417 = vector.shape_cast %416 : vector<1xf32> to vector<1x1x1xf32>
    %418 = vector.extract %417[0, 0, 0] : f32 from vector<1x1x1xf32>
    %c2_i32_219 = arith.constant 2 : i32
    %419 = vector.broadcast %c2_i32_219 : i32 to vector<4x128xi32>
    %420 = arith.cmpi eq, %98, %419 : vector<4x128xi32>
    %c2_i32_220 = arith.constant 2 : i32
    %421 = vector.broadcast %c2_i32_220 : i32 to vector<4x128xi32>
    %422 = arith.cmpi eq, %99, %421 : vector<4x128xi32>
    %423 = arith.andi %420, %422 : vector<4x128xi1>
    %424 = vector.broadcast %418 : f32 to vector<4x128xf32>
    %425 = arith.select %423, %424, %411 : vector<4x128xi1>, vector<4x128xf32>
    %c3_221 = arith.constant 3 : index
    %c0_222 = arith.constant 0 : index
    %c0_223 = arith.constant 0 : index
    %426 = vector.load %arg6[%c3_221, %c0_222, %c0_223] : memref<10x32x256xf32, #tpu.memory_space<vmem>>, vector<1x32x256xf32>
    %427 = vector.shape_cast %426 : vector<1x32x256xf32> to vector<32x256xf32>
    %428 = arith.mulf %383, %427 : vector<32x256xf32>
    %429 = vector.shape_cast %428 : vector<32x256xf32> to vector<1x32x256xf32>
    %cst_224 = arith.constant dense<0.000000e+00> : vector<1xf32>
    %430 = vector.multi_reduction <add>, %429, %cst_224 [1, 2] : vector<1x32x256xf32> to vector<1xf32>
    %431 = vector.shape_cast %430 : vector<1xf32> to vector<1x1x1xf32>
    %432 = vector.extract %431[0, 0, 0] : f32 from vector<1x1x1xf32>
    %c2_i32_225 = arith.constant 2 : i32
    %433 = vector.broadcast %c2_i32_225 : i32 to vector<4x128xi32>
    %434 = arith.cmpi eq, %98, %433 : vector<4x128xi32>
    %c3_i32_226 = arith.constant 3 : i32
    %435 = vector.broadcast %c3_i32_226 : i32 to vector<4x128xi32>
    %436 = arith.cmpi eq, %99, %435 : vector<4x128xi32>
    %437 = arith.andi %434, %436 : vector<4x128xi1>
    %438 = vector.broadcast %432 : f32 to vector<4x128xf32>
    %439 = arith.select %437, %438, %425 : vector<4x128xi1>, vector<4x128xf32>
    %c4_227 = arith.constant 4 : index
    %c0_228 = arith.constant 0 : index
    %c0_229 = arith.constant 0 : index
    %440 = vector.load %arg6[%c4_227, %c0_228, %c0_229] : memref<10x32x256xf32, #tpu.memory_space<vmem>>, vector<1x32x256xf32>
    %441 = vector.shape_cast %440 : vector<1x32x256xf32> to vector<32x256xf32>
    %442 = arith.mulf %383, %441 : vector<32x256xf32>
    %443 = vector.shape_cast %442 : vector<32x256xf32> to vector<1x32x256xf32>
    %cst_230 = arith.constant dense<0.000000e+00> : vector<1xf32>
    %444 = vector.multi_reduction <add>, %443, %cst_230 [1, 2] : vector<1x32x256xf32> to vector<1xf32>
    %445 = vector.shape_cast %444 : vector<1xf32> to vector<1x1x1xf32>
    %446 = vector.extract %445[0, 0, 0] : f32 from vector<1x1x1xf32>
    %c2_i32_231 = arith.constant 2 : i32
    %447 = vector.broadcast %c2_i32_231 : i32 to vector<4x128xi32>
    %448 = arith.cmpi eq, %98, %447 : vector<4x128xi32>
    %c4_i32_232 = arith.constant 4 : i32
    %449 = vector.broadcast %c4_i32_232 : i32 to vector<4x128xi32>
    %450 = arith.cmpi eq, %99, %449 : vector<4x128xi32>
    %451 = arith.andi %448, %450 : vector<4x128xi1>
    %452 = vector.broadcast %446 : f32 to vector<4x128xf32>
    %453 = arith.select %451, %452, %439 : vector<4x128xi1>, vector<4x128xf32>
    %c5_233 = arith.constant 5 : index
    %c0_234 = arith.constant 0 : index
    %c0_235 = arith.constant 0 : index
    %454 = vector.load %arg6[%c5_233, %c0_234, %c0_235] : memref<10x32x256xf32, #tpu.memory_space<vmem>>, vector<1x32x256xf32>
    %455 = vector.shape_cast %454 : vector<1x32x256xf32> to vector<32x256xf32>
    %456 = arith.mulf %383, %455 : vector<32x256xf32>
    %457 = vector.shape_cast %456 : vector<32x256xf32> to vector<1x32x256xf32>
    %cst_236 = arith.constant dense<0.000000e+00> : vector<1xf32>
    %458 = vector.multi_reduction <add>, %457, %cst_236 [1, 2] : vector<1x32x256xf32> to vector<1xf32>
    %459 = vector.shape_cast %458 : vector<1xf32> to vector<1x1x1xf32>
    %460 = vector.extract %459[0, 0, 0] : f32 from vector<1x1x1xf32>
    %c2_i32_237 = arith.constant 2 : i32
    %461 = vector.broadcast %c2_i32_237 : i32 to vector<4x128xi32>
    %462 = arith.cmpi eq, %98, %461 : vector<4x128xi32>
    %c5_i32_238 = arith.constant 5 : i32
    %463 = vector.broadcast %c5_i32_238 : i32 to vector<4x128xi32>
    %464 = arith.cmpi eq, %99, %463 : vector<4x128xi32>
    %465 = arith.andi %462, %464 : vector<4x128xi1>
    %466 = vector.broadcast %460 : f32 to vector<4x128xf32>
    %467 = arith.select %465, %466, %453 : vector<4x128xi1>, vector<4x128xf32>
    %c6_239 = arith.constant 6 : index
    %c0_240 = arith.constant 0 : index
    %c0_241 = arith.constant 0 : index
    %468 = vector.load %arg6[%c6_239, %c0_240, %c0_241] : memref<10x32x256xf32, #tpu.memory_space<vmem>>, vector<1x32x256xf32>
    %469 = vector.shape_cast %468 : vector<1x32x256xf32> to vector<32x256xf32>
    %470 = arith.mulf %383, %469 : vector<32x256xf32>
    %471 = vector.shape_cast %470 : vector<32x256xf32> to vector<1x32x256xf32>
    %cst_242 = arith.constant dense<0.000000e+00> : vector<1xf32>
    %472 = vector.multi_reduction <add>, %471, %cst_242 [1, 2] : vector<1x32x256xf32> to vector<1xf32>
    %473 = vector.shape_cast %472 : vector<1xf32> to vector<1x1x1xf32>
    %474 = vector.extract %473[0, 0, 0] : f32 from vector<1x1x1xf32>
    %c2_i32_243 = arith.constant 2 : i32
    %475 = vector.broadcast %c2_i32_243 : i32 to vector<4x128xi32>
    %476 = arith.cmpi eq, %98, %475 : vector<4x128xi32>
    %c6_i32_244 = arith.constant 6 : i32
    %477 = vector.broadcast %c6_i32_244 : i32 to vector<4x128xi32>
    %478 = arith.cmpi eq, %99, %477 : vector<4x128xi32>
    %479 = arith.andi %476, %478 : vector<4x128xi1>
    %480 = vector.broadcast %474 : f32 to vector<4x128xf32>
    %481 = arith.select %479, %480, %467 : vector<4x128xi1>, vector<4x128xf32>
    %c7_245 = arith.constant 7 : index
    %c0_246 = arith.constant 0 : index
    %c0_247 = arith.constant 0 : index
    %482 = vector.load %arg6[%c7_245, %c0_246, %c0_247] : memref<10x32x256xf32, #tpu.memory_space<vmem>>, vector<1x32x256xf32>
    %483 = vector.shape_cast %482 : vector<1x32x256xf32> to vector<32x256xf32>
    %484 = arith.mulf %383, %483 : vector<32x256xf32>
    %485 = vector.shape_cast %484 : vector<32x256xf32> to vector<1x32x256xf32>
    %cst_248 = arith.constant dense<0.000000e+00> : vector<1xf32>
    %486 = vector.multi_reduction <add>, %485, %cst_248 [1, 2] : vector<1x32x256xf32> to vector<1xf32>
    %487 = vector.shape_cast %486 : vector<1xf32> to vector<1x1x1xf32>
    %488 = vector.extract %487[0, 0, 0] : f32 from vector<1x1x1xf32>
    %c2_i32_249 = arith.constant 2 : i32
    %489 = vector.broadcast %c2_i32_249 : i32 to vector<4x128xi32>
    %490 = arith.cmpi eq, %98, %489 : vector<4x128xi32>
    %c7_i32_250 = arith.constant 7 : i32
    %491 = vector.broadcast %c7_i32_250 : i32 to vector<4x128xi32>
    %492 = arith.cmpi eq, %99, %491 : vector<4x128xi32>
    %493 = arith.andi %490, %492 : vector<4x128xi1>
    %494 = vector.broadcast %488 : f32 to vector<4x128xf32>
    %495 = arith.select %493, %494, %481 : vector<4x128xi1>, vector<4x128xf32>
    %c8_251 = arith.constant 8 : index
    %c0_252 = arith.constant 0 : index
    %c0_253 = arith.constant 0 : index
    %496 = vector.load %arg6[%c8_251, %c0_252, %c0_253] : memref<10x32x256xf32, #tpu.memory_space<vmem>>, vector<1x32x256xf32>
    %497 = vector.shape_cast %496 : vector<1x32x256xf32> to vector<32x256xf32>
    %498 = arith.mulf %383, %497 : vector<32x256xf32>
    %499 = vector.shape_cast %498 : vector<32x256xf32> to vector<1x32x256xf32>
    %cst_254 = arith.constant dense<0.000000e+00> : vector<1xf32>
    %500 = vector.multi_reduction <add>, %499, %cst_254 [1, 2] : vector<1x32x256xf32> to vector<1xf32>
    %501 = vector.shape_cast %500 : vector<1xf32> to vector<1x1x1xf32>
    %502 = vector.extract %501[0, 0, 0] : f32 from vector<1x1x1xf32>
    %c2_i32_255 = arith.constant 2 : i32
    %503 = vector.broadcast %c2_i32_255 : i32 to vector<4x128xi32>
    %504 = arith.cmpi eq, %98, %503 : vector<4x128xi32>
    %c8_i32_256 = arith.constant 8 : i32
    %505 = vector.broadcast %c8_i32_256 : i32 to vector<4x128xi32>
    %506 = arith.cmpi eq, %99, %505 : vector<4x128xi32>
    %507 = arith.andi %504, %506 : vector<4x128xi1>
    %508 = vector.broadcast %502 : f32 to vector<4x128xf32>
    %509 = arith.select %507, %508, %495 : vector<4x128xi1>, vector<4x128xf32>
    %c9_257 = arith.constant 9 : index
    %c0_258 = arith.constant 0 : index
    %c0_259 = arith.constant 0 : index
    %510 = vector.load %arg6[%c9_257, %c0_258, %c0_259] : memref<10x32x256xf32, #tpu.memory_space<vmem>>, vector<1x32x256xf32>
    %511 = vector.shape_cast %510 : vector<1x32x256xf32> to vector<32x256xf32>
    %512 = arith.mulf %383, %511 : vector<32x256xf32>
    %513 = vector.shape_cast %512 : vector<32x256xf32> to vector<1x32x256xf32>
    %cst_260 = arith.constant dense<0.000000e+00> : vector<1xf32>
    %514 = vector.multi_reduction <add>, %513, %cst_260 [1, 2] : vector<1x32x256xf32> to vector<1xf32>
    %515 = vector.shape_cast %514 : vector<1xf32> to vector<1x1x1xf32>
    %516 = vector.extract %515[0, 0, 0] : f32 from vector<1x1x1xf32>
    %c2_i32_261 = arith.constant 2 : i32
    %517 = vector.broadcast %c2_i32_261 : i32 to vector<4x128xi32>
    %518 = arith.cmpi eq, %98, %517 : vector<4x128xi32>
    %c9_i32_262 = arith.constant 9 : i32
    %519 = vector.broadcast %c9_i32_262 : i32 to vector<4x128xi32>
    %520 = arith.cmpi eq, %99, %519 : vector<4x128xi32>
    %521 = arith.andi %518, %520 : vector<4x128xi1>
    %522 = vector.broadcast %516 : f32 to vector<4x128xf32>
    %523 = arith.select %521, %522, %509 : vector<4x128xi1>, vector<4x128xf32>
    %524 = vector.extract_strided_slice %97 {offsets = [103, 0], sizes = [32, 256], strides = [1, 1]} : vector<136x256xf32> to vector<32x256xf32>
    %c0_263 = arith.constant 0 : index
    %c0_264 = arith.constant 0 : index
    %c0_265 = arith.constant 0 : index
    %525 = vector.load %arg6[%c0_263, %c0_264, %c0_265] : memref<10x32x256xf32, #tpu.memory_space<vmem>>, vector<1x32x256xf32>
    %526 = vector.shape_cast %525 : vector<1x32x256xf32> to vector<32x256xf32>
    %527 = arith.mulf %524, %526 : vector<32x256xf32>
    %528 = vector.shape_cast %527 : vector<32x256xf32> to vector<1x32x256xf32>
    %cst_266 = arith.constant dense<0.000000e+00> : vector<1xf32>
    %529 = vector.multi_reduction <add>, %528, %cst_266 [1, 2] : vector<1x32x256xf32> to vector<1xf32>
    %530 = vector.shape_cast %529 : vector<1xf32> to vector<1x1x1xf32>
    %531 = vector.extract %530[0, 0, 0] : f32 from vector<1x1x1xf32>
    %c3_i32_267 = arith.constant 3 : i32
    %532 = vector.broadcast %c3_i32_267 : i32 to vector<4x128xi32>
    %533 = arith.cmpi eq, %98, %532 : vector<4x128xi32>
    %c0_i32_268 = arith.constant 0 : i32
    %534 = vector.broadcast %c0_i32_268 : i32 to vector<4x128xi32>
    %535 = arith.cmpi eq, %99, %534 : vector<4x128xi32>
    %536 = arith.andi %533, %535 : vector<4x128xi1>
    %537 = vector.broadcast %531 : f32 to vector<4x128xf32>
    %538 = arith.select %536, %537, %523 : vector<4x128xi1>, vector<4x128xf32>
    %c1_269 = arith.constant 1 : index
    %c0_270 = arith.constant 0 : index
    %c0_271 = arith.constant 0 : index
    %539 = vector.load %arg6[%c1_269, %c0_270, %c0_271] : memref<10x32x256xf32, #tpu.memory_space<vmem>>, vector<1x32x256xf32>
    %540 = vector.shape_cast %539 : vector<1x32x256xf32> to vector<32x256xf32>
    %541 = arith.mulf %524, %540 : vector<32x256xf32>
    %542 = vector.shape_cast %541 : vector<32x256xf32> to vector<1x32x256xf32>
    %cst_272 = arith.constant dense<0.000000e+00> : vector<1xf32>
    %543 = vector.multi_reduction <add>, %542, %cst_272 [1, 2] : vector<1x32x256xf32> to vector<1xf32>
    %544 = vector.shape_cast %543 : vector<1xf32> to vector<1x1x1xf32>
    %545 = vector.extract %544[0, 0, 0] : f32 from vector<1x1x1xf32>
    %c3_i32_273 = arith.constant 3 : i32
    %546 = vector.broadcast %c3_i32_273 : i32 to vector<4x128xi32>
    %547 = arith.cmpi eq, %98, %546 : vector<4x128xi32>
    %c1_i32_274 = arith.constant 1 : i32
    %548 = vector.broadcast %c1_i32_274 : i32 to vector<4x128xi32>
    %549 = arith.cmpi eq, %99, %548 : vector<4x128xi32>
    %550 = arith.andi %547, %549 : vector<4x128xi1>
    %551 = vector.broadcast %545 : f32 to vector<4x128xf32>
    %552 = arith.select %550, %551, %538 : vector<4x128xi1>, vector<4x128xf32>
    %c2_275 = arith.constant 2 : index
    %c0_276 = arith.constant 0 : index
    %c0_277 = arith.constant 0 : index
    %553 = vector.load %arg6[%c2_275, %c0_276, %c0_277] : memref<10x32x256xf32, #tpu.memory_space<vmem>>, vector<1x32x256xf32>
    %554 = vector.shape_cast %553 : vector<1x32x256xf32> to vector<32x256xf32>
    %555 = arith.mulf %524, %554 : vector<32x256xf32>
    %556 = vector.shape_cast %555 : vector<32x256xf32> to vector<1x32x256xf32>
    %cst_278 = arith.constant dense<0.000000e+00> : vector<1xf32>
    %557 = vector.multi_reduction <add>, %556, %cst_278 [1, 2] : vector<1x32x256xf32> to vector<1xf32>
    %558 = vector.shape_cast %557 : vector<1xf32> to vector<1x1x1xf32>
    %559 = vector.extract %558[0, 0, 0] : f32 from vector<1x1x1xf32>
    %c3_i32_279 = arith.constant 3 : i32
    %560 = vector.broadcast %c3_i32_279 : i32 to vector<4x128xi32>
    %561 = arith.cmpi eq, %98, %560 : vector<4x128xi32>
    %c2_i32_280 = arith.constant 2 : i32
    %562 = vector.broadcast %c2_i32_280 : i32 to vector<4x128xi32>
    %563 = arith.cmpi eq, %99, %562 : vector<4x128xi32>
    %564 = arith.andi %561, %563 : vector<4x128xi1>
    %565 = vector.broadcast %559 : f32 to vector<4x128xf32>
    %566 = arith.select %564, %565, %552 : vector<4x128xi1>, vector<4x128xf32>
    %c3_281 = arith.constant 3 : index
    %c0_282 = arith.constant 0 : index
    %c0_283 = arith.constant 0 : index
    %567 = vector.load %arg6[%c3_281, %c0_282, %c0_283] : memref<10x32x256xf32, #tpu.memory_space<vmem>>, vector<1x32x256xf32>
    %568 = vector.shape_cast %567 : vector<1x32x256xf32> to vector<32x256xf32>
    %569 = arith.mulf %524, %568 : vector<32x256xf32>
    %570 = vector.shape_cast %569 : vector<32x256xf32> to vector<1x32x256xf32>
    %cst_284 = arith.constant dense<0.000000e+00> : vector<1xf32>
    %571 = vector.multi_reduction <add>, %570, %cst_284 [1, 2] : vector<1x32x256xf32> to vector<1xf32>
    %572 = vector.shape_cast %571 : vector<1xf32> to vector<1x1x1xf32>
    %573 = vector.extract %572[0, 0, 0] : f32 from vector<1x1x1xf32>
    %c3_i32_285 = arith.constant 3 : i32
    %574 = vector.broadcast %c3_i32_285 : i32 to vector<4x128xi32>
    %575 = arith.cmpi eq, %98, %574 : vector<4x128xi32>
    %c3_i32_286 = arith.constant 3 : i32
    %576 = vector.broadcast %c3_i32_286 : i32 to vector<4x128xi32>
    %577 = arith.cmpi eq, %99, %576 : vector<4x128xi32>
    %578 = arith.andi %575, %577 : vector<4x128xi1>
    %579 = vector.broadcast %573 : f32 to vector<4x128xf32>
    %580 = arith.select %578, %579, %566 : vector<4x128xi1>, vector<4x128xf32>
    %c4_287 = arith.constant 4 : index
    %c0_288 = arith.constant 0 : index
    %c0_289 = arith.constant 0 : index
    %581 = vector.load %arg6[%c4_287, %c0_288, %c0_289] : memref<10x32x256xf32, #tpu.memory_space<vmem>>, vector<1x32x256xf32>
    %582 = vector.shape_cast %581 : vector<1x32x256xf32> to vector<32x256xf32>
    %583 = arith.mulf %524, %582 : vector<32x256xf32>
    %584 = vector.shape_cast %583 : vector<32x256xf32> to vector<1x32x256xf32>
    %cst_290 = arith.constant dense<0.000000e+00> : vector<1xf32>
    %585 = vector.multi_reduction <add>, %584, %cst_290 [1, 2] : vector<1x32x256xf32> to vector<1xf32>
    %586 = vector.shape_cast %585 : vector<1xf32> to vector<1x1x1xf32>
    %587 = vector.extract %586[0, 0, 0] : f32 from vector<1x1x1xf32>
    %c3_i32_291 = arith.constant 3 : i32
    %588 = vector.broadcast %c3_i32_291 : i32 to vector<4x128xi32>
    %589 = arith.cmpi eq, %98, %588 : vector<4x128xi32>
    %c4_i32_292 = arith.constant 4 : i32
    %590 = vector.broadcast %c4_i32_292 : i32 to vector<4x128xi32>
    %591 = arith.cmpi eq, %99, %590 : vector<4x128xi32>
    %592 = arith.andi %589, %591 : vector<4x128xi1>
    %593 = vector.broadcast %587 : f32 to vector<4x128xf32>
    %594 = arith.select %592, %593, %580 : vector<4x128xi1>, vector<4x128xf32>
    %c5_293 = arith.constant 5 : index
    %c0_294 = arith.constant 0 : index
    %c0_295 = arith.constant 0 : index
    %595 = vector.load %arg6[%c5_293, %c0_294, %c0_295] : memref<10x32x256xf32, #tpu.memory_space<vmem>>, vector<1x32x256xf32>
    %596 = vector.shape_cast %595 : vector<1x32x256xf32> to vector<32x256xf32>
    %597 = arith.mulf %524, %596 : vector<32x256xf32>
    %598 = vector.shape_cast %597 : vector<32x256xf32> to vector<1x32x256xf32>
    %cst_296 = arith.constant dense<0.000000e+00> : vector<1xf32>
    %599 = vector.multi_reduction <add>, %598, %cst_296 [1, 2] : vector<1x32x256xf32> to vector<1xf32>
    %600 = vector.shape_cast %599 : vector<1xf32> to vector<1x1x1xf32>
    %601 = vector.extract %600[0, 0, 0] : f32 from vector<1x1x1xf32>
    %c3_i32_297 = arith.constant 3 : i32
    %602 = vector.broadcast %c3_i32_297 : i32 to vector<4x128xi32>
    %603 = arith.cmpi eq, %98, %602 : vector<4x128xi32>
    %c5_i32_298 = arith.constant 5 : i32
    %604 = vector.broadcast %c5_i32_298 : i32 to vector<4x128xi32>
    %605 = arith.cmpi eq, %99, %604 : vector<4x128xi32>
    %606 = arith.andi %603, %605 : vector<4x128xi1>
    %607 = vector.broadcast %601 : f32 to vector<4x128xf32>
    %608 = arith.select %606, %607, %594 : vector<4x128xi1>, vector<4x128xf32>
    %c6_299 = arith.constant 6 : index
    %c0_300 = arith.constant 0 : index
    %c0_301 = arith.constant 0 : index
    %609 = vector.load %arg6[%c6_299, %c0_300, %c0_301] : memref<10x32x256xf32, #tpu.memory_space<vmem>>, vector<1x32x256xf32>
    %610 = vector.shape_cast %609 : vector<1x32x256xf32> to vector<32x256xf32>
    %611 = arith.mulf %524, %610 : vector<32x256xf32>
    %612 = vector.shape_cast %611 : vector<32x256xf32> to vector<1x32x256xf32>
    %cst_302 = arith.constant dense<0.000000e+00> : vector<1xf32>
    %613 = vector.multi_reduction <add>, %612, %cst_302 [1, 2] : vector<1x32x256xf32> to vector<1xf32>
    %614 = vector.shape_cast %613 : vector<1xf32> to vector<1x1x1xf32>
    %615 = vector.extract %614[0, 0, 0] : f32 from vector<1x1x1xf32>
    %c3_i32_303 = arith.constant 3 : i32
    %616 = vector.broadcast %c3_i32_303 : i32 to vector<4x128xi32>
    %617 = arith.cmpi eq, %98, %616 : vector<4x128xi32>
    %c6_i32_304 = arith.constant 6 : i32
    %618 = vector.broadcast %c6_i32_304 : i32 to vector<4x128xi32>
    %619 = arith.cmpi eq, %99, %618 : vector<4x128xi32>
    %620 = arith.andi %617, %619 : vector<4x128xi1>
    %621 = vector.broadcast %615 : f32 to vector<4x128xf32>
    %622 = arith.select %620, %621, %608 : vector<4x128xi1>, vector<4x128xf32>
    %c7_305 = arith.constant 7 : index
    %c0_306 = arith.constant 0 : index
    %c0_307 = arith.constant 0 : index
    %623 = vector.load %arg6[%c7_305, %c0_306, %c0_307] : memref<10x32x256xf32, #tpu.memory_space<vmem>>, vector<1x32x256xf32>
    %624 = vector.shape_cast %623 : vector<1x32x256xf32> to vector<32x256xf32>
    %625 = arith.mulf %524, %624 : vector<32x256xf32>
    %626 = vector.shape_cast %625 : vector<32x256xf32> to vector<1x32x256xf32>
    %cst_308 = arith.constant dense<0.000000e+00> : vector<1xf32>
    %627 = vector.multi_reduction <add>, %626, %cst_308 [1, 2] : vector<1x32x256xf32> to vector<1xf32>
    %628 = vector.shape_cast %627 : vector<1xf32> to vector<1x1x1xf32>
    %629 = vector.extract %628[0, 0, 0] : f32 from vector<1x1x1xf32>
    %c3_i32_309 = arith.constant 3 : i32
    %630 = vector.broadcast %c3_i32_309 : i32 to vector<4x128xi32>
    %631 = arith.cmpi eq, %98, %630 : vector<4x128xi32>
    %c7_i32_310 = arith.constant 7 : i32
    %632 = vector.broadcast %c7_i32_310 : i32 to vector<4x128xi32>
    %633 = arith.cmpi eq, %99, %632 : vector<4x128xi32>
    %634 = arith.andi %631, %633 : vector<4x128xi1>
    %635 = vector.broadcast %629 : f32 to vector<4x128xf32>
    %636 = arith.select %634, %635, %622 : vector<4x128xi1>, vector<4x128xf32>
    %c8_311 = arith.constant 8 : index
    %c0_312 = arith.constant 0 : index
    %c0_313 = arith.constant 0 : index
    %637 = vector.load %arg6[%c8_311, %c0_312, %c0_313] : memref<10x32x256xf32, #tpu.memory_space<vmem>>, vector<1x32x256xf32>
    %638 = vector.shape_cast %637 : vector<1x32x256xf32> to vector<32x256xf32>
    %639 = arith.mulf %524, %638 : vector<32x256xf32>
    %640 = vector.shape_cast %639 : vector<32x256xf32> to vector<1x32x256xf32>
    %cst_314 = arith.constant dense<0.000000e+00> : vector<1xf32>
    %641 = vector.multi_reduction <add>, %640, %cst_314 [1, 2] : vector<1x32x256xf32> to vector<1xf32>
    %642 = vector.shape_cast %641 : vector<1xf32> to vector<1x1x1xf32>
    %643 = vector.extract %642[0, 0, 0] : f32 from vector<1x1x1xf32>
    %c3_i32_315 = arith.constant 3 : i32
    %644 = vector.broadcast %c3_i32_315 : i32 to vector<4x128xi32>
    %645 = arith.cmpi eq, %98, %644 : vector<4x128xi32>
    %c8_i32_316 = arith.constant 8 : i32
    %646 = vector.broadcast %c8_i32_316 : i32 to vector<4x128xi32>
    %647 = arith.cmpi eq, %99, %646 : vector<4x128xi32>
    %648 = arith.andi %645, %647 : vector<4x128xi1>
    %649 = vector.broadcast %643 : f32 to vector<4x128xf32>
    %650 = arith.select %648, %649, %636 : vector<4x128xi1>, vector<4x128xf32>
    %c9_317 = arith.constant 9 : index
    %c0_318 = arith.constant 0 : index
    %c0_319 = arith.constant 0 : index
    %651 = vector.load %arg6[%c9_317, %c0_318, %c0_319] : memref<10x32x256xf32, #tpu.memory_space<vmem>>, vector<1x32x256xf32>
    %652 = vector.shape_cast %651 : vector<1x32x256xf32> to vector<32x256xf32>
    %653 = arith.mulf %524, %652 : vector<32x256xf32>
    %654 = vector.shape_cast %653 : vector<32x256xf32> to vector<1x32x256xf32>
    %cst_320 = arith.constant dense<0.000000e+00> : vector<1xf32>
    %655 = vector.multi_reduction <add>, %654, %cst_320 [1, 2] : vector<1x32x256xf32> to vector<1xf32>
    %656 = vector.shape_cast %655 : vector<1xf32> to vector<1x1x1xf32>
    %657 = vector.extract %656[0, 0, 0] : f32 from vector<1x1x1xf32>
    %c3_i32_321 = arith.constant 3 : i32
    %658 = vector.broadcast %c3_i32_321 : i32 to vector<4x128xi32>
    %659 = arith.cmpi eq, %98, %658 : vector<4x128xi32>
    %c9_i32_322 = arith.constant 9 : i32
    %660 = vector.broadcast %c9_i32_322 : i32 to vector<4x128xi32>
    %661 = arith.cmpi eq, %99, %660 : vector<4x128xi32>
    %662 = arith.andi %659, %661 : vector<4x128xi1>
    %663 = vector.broadcast %657 : f32 to vector<4x128xf32>
    %664 = arith.select %662, %663, %650 : vector<4x128xi1>, vector<4x128xf32>
    %c0_323 = arith.constant 0 : index
    %c0_324 = arith.constant 0 : index
    %665 = vector.load %arg7[%c0_323, %c0_324] : memref<1x128xf32, #tpu.memory_space<vmem>>, vector<1x128xf32>
    %666 = vector.broadcast %665 : vector<1x128xf32> to vector<4x128xf32>
    %667 = arith.addf %664, %666 : vector<4x128xf32>
    %668 = vector.extract_strided_slice %667 {offsets = [0, 0], sizes = [4, 10], strides = [1, 1]} : vector<4x128xf32> to vector<4x10xf32>
    %c0_325 = arith.constant 0 : index
    %c0_326 = arith.constant 0 : index
    %c0_327 = arith.constant 0 : index
    %669 = vector.load %arg8[%c0_325, %c0_326, %c0_327] : memref<1x4x10xf32, #tpu.memory_space<vmem>>, vector<1x4x10xf32>
    %670 = vector.shape_cast %669 : vector<1x4x10xf32> to vector<4x10xf32>
    %671 = vector.shape_cast %668 : vector<4x10xf32> to vector<1x4x10xf32>
    tpu.vector_store %arg8[%c0_325, %c0_326, %c0_327], %671 {strides = array<i32>} : memref<1x4x10xf32, #tpu.memory_space<vmem>>, vector<1x4x10xf32>,
    return
  }
  func.func @transform_0(%arg0: i32) -> (i32, i32, i32) {
    %c0_i32 = arith.constant 0 : i32
    %c0_i32_0 = arith.constant 0 : i32
    %c0_i32_1 = arith.constant 0 : i32
    return %arg0, %c0_i32, %c0_i32_0 : i32, i32, i32
  }
  func.func @transform_1(%arg0: i32) -> (i32, i32, i32) {
    %c0_i32 = arith.constant 0 : i32
    %c0_i32_0 = arith.constant 0 : i32
    %c0_i32_1 = arith.constant 0 : i32
    %c0_i32_2 = arith.constant 0 : i32
    return %c0_i32, %c0_i32_0, %c0_i32_1 : i32, i32, i32
  }
  func.func @transform_2(%arg0: i32) -> (i32, i32) {
    %c0_i32 = arith.constant 0 : i32
    %c0_i32_0 = arith.constant 0 : i32
    %c0_i32_1 = arith.constant 0 : i32
    return %c0_i32, %c0_i32_0 : i32, i32
  }
  func.func @transform_3(%arg0: i32) -> (i32, i32, i32) {
    %c0_i32 = arith.constant 0 : i32
    %c0_i32_0 = arith.constant 0 : i32
    %c0_i32_1 = arith.constant 0 : i32
    %c0_i32_2 = arith.constant 0 : i32
    return %c0_i32, %c0_i32_0, %c0_i32_1 : i32, i32, i32
  }
  func.func @transform_4(%arg0: i32) -> (i32, i32) {
    %c0_i32 = arith.constant 0 : i32
    %c0_i32_0 = arith.constant 0 : i32
    %c0_i32_1 = arith.constant 0 : i32
    return %c0_i32, %c0_i32_0 : i32, i32
  }
  func.func @transform_5(%arg0: i32) -> (i32, i32, i32) {
    %c0_i32 = arith.constant 0 : i32
    %c0_i32_0 = arith.constant 0 : i32
    %c0_i32_1 = arith.constant 0 : i32
    %c0_i32_2 = arith.constant 0 : i32
    return %c0_i32, %c0_i32_0, %c0_i32_1 : i32, i32, i32
  }
  func.func @transform_6(%arg0: i32) -> (i32, i32) {
    %c0_i32 = arith.constant 0 : i32
    %c0_i32_0 = arith.constant 0 : i32
    %c0_i32_1 = arith.constant 0 : i32
    return %c0_i32, %c0_i32_0 : i32, i32
  }
  func.func @transform_7(%arg0: i32) -> (i32, i32, i32) {
    %c0_i32 = arith.constant 0 : i32
    %c0_i32_0 = arith.constant 0 : i32
    %c0_i32_1 = arith.constant 0 : i32
    return %arg0, %c0_i32, %c0_i32_0 : i32, i32, i32
  }
}

</mosaic_0001>

<bundles_post_ra>
// kernel: three_layer_convnet.1
= control target key start
LH: loop header
LB: loop body
LE: loop exit
PB: predicated region body
PF: predicated region fallthrough
CT: control target
= control target key end

     0   :  { %12 = vsyncpa [#allocation5], 0  ;;  %s13558_s0 = inlined_call_operand.vmem [shape: f32[8,32,128], index: 0, kind: input, shape index: {}]   ;;  %s13559_s1 = inlined_call_operand.vmem [shape: bf16[5,128,256], index: 1, kind: input, shape index: {}]   ;;  %s13560_s2 = inlined_call_operand.vmem [shape: f32[1,256], index: 2, kind: input, shape index: {}]   ;;  %s13561_s3 = inlined_call_operand.vmem [shape: bf16[3,256,256], index: 3, kind: input, shape index: {}]   ;;  %s13562_s4 = inlined_call_operand.vmem [shape: f32[1,256], index: 4, kind: input, shape index: {}]   ;;  %s13563_s5 = inlined_call_operand.vmem [shape: f32[10,32,256], index: 5, kind: input, shape index: {}]   ;;  %s13564_s6 = inlined_call_operand.vmem [shape: f32[1,128], index: 6, kind: input, shape index: {}]   ;;  %s13565_s7 = inlined_call_operand.hbm [shape: f32[2,4,10], index: 7, kind: output, shape index: {}]  }
   0x1   :  { %14 = vsyncpa [#allocation5 + $0x1], 0  ;;  %s8650_s24 = smov 0   ;;  %s8652_s25 = smov 0  }
   0x2   :  { %s8654_s26 = smov 0   ;;  %s8656_s27 = smov 0  }
   0x3 LB: > { %s8671_s28 = sadd.s32 4294967295, %s8606_s27   ;;  %s7486_s29 = sadd.s32 4294967294, %s8606_s27   ;;  %s8606_s27 = sphi %s8656_s27, %s14586_s27   ;;  %s8602_s26 = sphi %s8654_s26, %s14585_s26   ;;  %s8598_s25 = sphi %s8652_s25, %s14584_s25   ;;  %s8594_s24 = sphi %s8650_s24, %s14583_s24  }
   0x4   : > { %s8675_s30 = sadd.s32 1, %s8606_s27   ;;  %s179_s8 = sadd.s32 1, %s8602_s26 }
   0x5   : > { %s176_s9 = ssub.s32 %s8606_s27, %s8675_s30  ;;  %p189_p0 = scmp.ne.s32.totalorder %s8602_s26, %s8598_s25 }
   0x6   : > { %p177_p1 = scmp.eq.s32.totalorder %s176_s9, 0  ;;  %p190_p2 = scmp.eq.s32.totalorder %s8671_s28, 1 }
   0x7   : > { %p195_p3 = scmp.ne.s32.totalorder %s8598_s25, %s8594_s24  ;;  %p196_p4 = scmp.eq.s32.totalorder %s7486_s29, 1 }
   0x8   : > { %s8686_s10 = scalar_select %p177_p1, %s8602_s26, %s179_s8  }
   0x9   : > { %p8688_p5 = por %p190_p2, %p189_p0  ;;  %p8692_p6 = por %p196_p4, %p195_p3 }
   0xa   : > { %p7489_p7 = scmp.ge.s32.totalorder %s8606_s27, 1  ;;  %p242_p8 = scmp.lt.s32.totalorder %s8606_s27, 3 }
   0xc   : > { %p243_p9 = pnand %p7489_p7, %p242_p8 }
   0xe   : > { %246 = sbr.rel (%p243_p9) target bundleno = 1450 (0x5aa), region = 48 }
  0x13   : > { %v8135_v0 = vld [vmem:[%s13559_s1 + $0xf4] ss:$8 sps:$4 sm:$0xff]   ;;  %v8608_v2 = vmov 0   ;;  %v8139_v3 = vld [vmem:[%s13559_s1 + $0xf0] ss:$8 sps:$4 sm:$0xff]   ;;  %s7491_s23 = sshll.u32 %s8671_s28, 2 }
  0x14   : > { %v8137_v1 = vld [vmem:[%s13559_s1 + $0x74] ss:$8 sps:$4 sm:$0xff]   ;;  %719 = vmatprep.mubr.bf16.mxu0 %v8608_v2  ;;  %283 = vst [vmem:[#allocation2] sm:$0x1] %v8608_v2  ;;  %285 = vst [vmem:[#allocation2] sm:$0x2] %v8608_v2  ;;  %931 = vmatprep.mubr.bf16.mxu1 %v8608_v2 }
  0x15   : > { %326 = vst [vmem:[#allocation2 + $0x10] sm:$0x4] %v8608_v2  ;;  %327 = vst [vmem:[#allocation2 + $0x10] sm:$0x8] %v8608_v2  ;;  %687 = vmatprep.subr.bf16.mxu0 %v8135_v0  ;;  %v8140_v4 = vld [vmem:[%s13559_s1 + $0x70] ss:$8 sps:$4 sm:$0xff]   ;;  %899 = vmatprep.subr.bf16.mxu1 %v8137_v1 }
  0x16   : > { %353 = vst [vmem:[#allocation2 + $0x24] sm:$0x1] %v8608_v2  ;;  %354 = vst [vmem:[#allocation2 + $0x24] sm:$0x2] %v8608_v2  ;;  %v8141_v5 = vld [vmem:[%s13559_s1 + $0xe4] ss:$8 sps:$4 sm:$0xff]   ;;  %688 = vmatpush1.bf16.msra.mxu0 %v8139_v3  ;;  %900 = vmatpush1.bf16.msra.mxu1 %v8140_v4 }
  0x17   : > { %393 = vst [vmem:[#allocation2 + $0x34] sm:$0x4] %v8608_v2  ;;  %394 = vst [vmem:[#allocation2 + $0x34] sm:$0x8] %v8608_v2  ;;  %v8143_v6 = vld [vmem:[%s13559_s1 + $0x64] ss:$8 sps:$4 sm:$0xff]   ;;  %689 = vmatprep.subr.bf16.mxu0 %v8141_v5 }
  0x18   : > { %420 = vst [vmem:[#allocation2 + $0x48] sm:$0x1] %v8608_v2  ;;  %v8145_v7 = vld [vmem:[%s13559_s1 + $0xe0] ss:$8 sps:$4 sm:$0xff]   ;;  %901 = vmatprep.subr.bf16.mxu1 %v8143_v6  ;;  %v8147_v9 = vld [vmem:[%s13559_s1 + $0xd4] ss:$8 sps:$4 sm:$0xff]  }
  0x19   : > { %v8146_v8 = vld [vmem:[%s13559_s1 + $0x60] ss:$8 sps:$4 sm:$0xff]   ;;  %p276_p10 = scmp.lt.s32.totalorder %s7491_s23, 7  ;;  %v8149_v10 = vld [vmem:[%s13559_s1 + $0x54] ss:$8 sps:$4 sm:$0xff]   ;;  %vm302_vm0 = vcmask 1041408  }
  0x1a   : > { %v8151_v11 = vld [vmem:[%s13559_s1 + $0xd0] ss:$8 sps:$4 sm:$0xff]   ;;  %690 = vmatpush1.bf16.msra.mxu0 %v8145_v7  ;;  %902 = vmatpush1.bf16.msra.mxu1 %v8146_v8  ;;  %v8153_v13 = vld [vmem:[%s13559_s1 + $0xc4] ss:$8 sps:$4 sm:$0xff]   ;;  %v8157_v15 = vld [vmem:[%s13559_s1 + $0xc0] ss:$8 sps:$4 sm:$0xff]  }
  0x1b   : > { %v8152_v12 = vld [vmem:[%s13559_s1 + $0x50] ss:$8 sps:$4 sm:$0xff]   ;;  %691 = vmatprep.subr.bf16.mxu0 %v8147_v9  ;;  %903 = vmatprep.subr.bf16.mxu1 %v8149_v10  ;;  %v8155_v14 = vld [vmem:[%s13559_s1 + $0x44] ss:$8 sps:$4 sm:$0xff]   ;;  %s14588_s23 = smov (!%p276_p10, %s7491_s23), 7  ;;  %vm303_vm1 = vcmask 1045508  }
  0x1c   : > { %v8158_v16 = vld [vmem:[%s13559_s1 + $0x40] ss:$8 sps:$4 sm:$0xff]   ;;  %v8159_v17 = vld [vmem:[%s13559_s1 + $0xb4] ss:$8 sps:$4 sm:$0xff]   ;;  %v8163_v19 = vld [vmem:[%s13559_s1 + $0xb0] ss:$8 sps:$4 sm:$0xff]  }
  0x1d   : > { %v8161_v18 = vld [vmem:[%s13559_s1 + $0x34] ss:$8 sps:$4 sm:$0xff]   ;;  %v8164_v20 = vld [vmem:[%s13559_s1 + $0x30] ss:$8 sps:$4 sm:$0xff]   ;;  %s7960_s14 = sshll.u32 %s14588_s23, 5  ;;  %vm8810_vm2 = vmor %vm302_vm0, %vm303_vm1  ;;  %v13694_v42 = vmov 0 }
  0x1e   : > { %692 = vmatpush1.bf16.msra.mxu0 %v8151_v11  ;;  %904 = vmatpush1.bf16.msra.mxu1 %v8152_v12  ;;  %v8165_v21 = vld [vmem:[%s13559_s1 + $0xa4] ss:$8 sps:$4 sm:$0xff]   ;;  %s8779_s21 = scalar_lea.vmem %s13558_s0, %s7960_s14  ;;  %v8169_v23 = vld [vmem:[%s13559_s1 + $0xa0] ss:$8 sps:$4 sm:$0xff]   ;;  %v8171_v25 = vld [vmem:[%s13559_s1 + $0x94] ss:$8 sps:$4 sm:$0xff]  }
  0x1f   : > { %693 = vmatprep.subr.bf16.mxu0 %v8153_v13  ;;  %905 = vmatprep.subr.bf16.mxu1 %v8155_v14  ;;  %v8167_v22 = vld [vmem:[%s13559_s1 + $0x24] ss:$8 sps:$4 sm:$0xff]   ;;  %v8170_v24 = vld [vmem:[%s13559_s1 + $0x20] ss:$8 sps:$4 sm:$0xff]   ;;  %v8173_v26 = vld [vmem:[%s13559_s1 + $0x14] ss:$8 sps:$4 sm:$0xff]  }
  0x20   : > { %v286_v27 = vld [vmem:[%s8779_s21] sm:$0xff]  ;;  %v287_v28 = vld [vmem:[%s8779_s21 + $0x8] sm:$0xff]  ;;  %v8175_v29 = vld [vmem:[%s13559_s1 + $0x90] ss:$8 sps:$4 sm:$0xff]   ;;  %v13695_v42 = vsel %vm8810_vm2, 4294967295, %v13694_v42  ;;  %vm13568_vm4 = vcmask 1046528  }
  0x21   : > { %v8176_v30 = vld [vmem:[%s13559_s1 + $0x10] ss:$8 sps:$4 sm:$0xff]   ;;  %v7961_v33 = vpack.c.bf16 %v286_v27, %v286_v27  ;;  %v7962_v34 = vpack.c.bf16 %v287_v28, %v287_v28  ;;  %v8177_v35 = vld [vmem:[%s13559_s1 + $0x84] ss:$8 sps:$4 sm:$0xff]   ;;  %13696 = vst [vmem:[#allocation7_spill] sm:$0xff] %v13695_v42  ;;  %vm1651_vm6 = vcmask 1045504  }
  0x22   : > { %694 = vmatpush1.bf16.msra.mxu0 %v8157_v15  ;;  %906 = vmatpush1.bf16.msra.mxu1 %v8158_v16  ;;  %v288_v31 = vld [vmem:[%s8779_s21 + $0x10] sm:$0xff]  ;;  %v289_v32 = vld [vmem:[%s8779_s21 + $0x18] sm:$0xff]  ;;  %v8179_v38 = vld [vmem:[%s13559_s1 + $0x4] ss:$8 sps:$4 sm:$0xff]   ;;  %vm521_vm3 = vsmask.f32 7424 }
  0x23   : > { %695 = vmatprep.subr.bf16.mxu0 %v8159_v17  ;;  %907 = vmatprep.subr.bf16.mxu1 %v8161_v18  ;;  %v7963_v36 = vpack.c.bf16 %v288_v31, %v288_v31  ;;  %v7964_v37 = vpack.c.bf16 %v289_v32, %v289_v32  ;;  %v305_v39 = vrot.slane %v7961_v33, 6  ;;  %v307_v40 = vrot.slane %v7962_v34, 6  ;;  %v7498_v41 = vld [vmem:[%s8779_s21 + $0x20] sm:$0xff]  ;;  %v7499_v46 = vld [vmem:[%s8779_s21 + $0x28] sm:$0xff]  ;;  %v7500_v49 = vld [vmem:[%s8779_s21 + $0x30] sm:$0xff] }
  0x24   : > { %v7965_v45 = vpack.c.bf16 %v7498_v41, %v7498_v41  ;;  %v8181_v50 = vld [vmem:[%s13559_s1 + $0x80] ss:$8 sps:$4 sm:$0xff]   ;;  %v8000_v53 = vpack.c.bf16 %v7500_v49, %v7499_v46  ;;  %v7501_v54 = vld [vmem:[%s8779_s21 + $0x38] sm:$0xff]  ;;  %v7508_v0 = vld [vmem:[%s8779_s21 + $0x50] sm:$0xff]  ;;  %vm1332_vm5 = vsmask.f32 6400 }
  0x25   : > { %v310_v43 = vrot.slane %v7963_v36, 6  ;;  %v313_v44 = vrot.slane %v7964_v37, 6  ;;  %v306_v47 = vrot.slane %v305_v39, 4  ;;  %v309_v48 = vrot.slane %v307_v40, 4  ;;  %321 = vst [vmem:[#allocation2] sm:$0xc] %v305_v39 }
  0x26   : > { %696 = vmatpush1.bf16.msra.mxu0 %v8163_v19  ;;  %908 = vmatpush1.bf16.msra.mxu1 %v8164_v20  ;;  %349 = vst [vmem:[#allocation2 + $0x14] sm:$0xf] %v7965_v45  ;;  %v8182_v55 = vld [vmem:[%s13559_s1] ss:$8 sps:$4 sm:$0xff]   ;;  %v7968_v58 = vpack.c.bf16 %v7501_v54, %v7501_v54  ;;  %v8187_v61 = vld [vmem:[%s13559_s1 + $0x174] ss:$8 sps:$4 sm:$0xff]   ;;  %v7971_v4 = vpack.c.bf16 %v7508_v0, %v7508_v0 }
  0x27   : > { %697 = vmatprep.subr.bf16.mxu0 %v8165_v21  ;;  %909 = vmatprep.subr.bf16.mxu1 %v8167_v22  ;;  %v312_v51 = vrot.slane %v310_v43, 4  ;;  %v315_v52 = vrot.slane %v313_v44, 4  ;;  %v308_v56 = vsel %vm8810_vm2, %v306_v47, %v307_v40  ;;  %v311_v57 = vsel %vm8810_vm2, %v309_v48, %v310_v43  ;;  %v7506_v59 = vld [vmem:[%s8779_s21 + $0x40] sm:$0xff]  ;;  %8012 = vst [vmem:[#allocation2 + $0x18] sm:$0xff] %v8000_v53   ;;  %v7507_v63 = vld [vmem:[%s8779_s21 + $0x48] sm:$0xff]  ;;  %v7509_v5 = vld [vmem:[%s8779_s21 + $0x58] sm:$0xff] }
  0x28   : > { %322 = vst [vmem:[#allocation2 + $0x4] sm:$0xf] %v308_v56  ;;  %323 = vst [vmem:[#allocation2 + $0x8] sm:$0xf] %v311_v57  ;;  %v7969_v62 = vpack.c.bf16 %v7506_v59, %v7506_v59  ;;  %v7970_v3 = vpack.c.bf16 %v7507_v63, %v7507_v63  ;;  %v377_v8 = vrot.slane %v7971_v4, 6  ;;  %v7972_v9 = vpack.c.bf16 %v7509_v5, %v7509_v5  ;;  %v7514_v36 = vld [vmem:[%s8779_s21 + $0x60] sm:$0xff] }
  0x29   : > { %v314_v60 = vsel %vm8810_vm2, %v312_v51, %v313_v44  ;;  %325 = vst [vmem:[#allocation2 + $0x10] sm:$0x3] %v315_v52  ;;  %352 = vst [vmem:[#allocation2 + $0x20] sm:$0xf] %v7968_v58  ;;  %v8207_v11 = vld [vmem:[%s13559_s1 + $0x1f4] ss:$8 sps:$4 sm:$0xff]  }
  0x2a   : > { %698 = vmatpush1.bf16.msra.mxu0 %v8169_v23  ;;  %910 = vmatpush1.bf16.msra.mxu1 %v8170_v24  ;;  %324 = vst [vmem:[#allocation2 + $0xc] sm:$0xf] %v314_v60  ;;  %v372_v1 = vrot.slane %v7969_v62, 6  ;;  %v374_v7 = vrot.slane %v7970_v3, 6  ;;  %v379_v14 = vrot.slane %v377_v8, 4  ;;  %v380_v15 = vrot.slane %v7972_v9, 6 }
  0x2b   : > { %699 = vmatprep.subr.bf16.mxu0 %v8171_v25  ;;  %911 = vmatprep.subr.bf16.mxu1 %v8173_v26  ;;  %v8205_v16 = vld [vmem:[%s13559_s1 + $0x1f0] ss:$8 sps:$4 sm:$0xff]   ;;  %v8191_v31 = vld [vmem:[%s13559_s1 + $0x164] ss:$8 sps:$4 sm:$0xff]   ;;  %v8189_v41 = vld [vmem:[%s13559_s1 + $0x160] ss:$8 sps:$4 sm:$0xff]  }
  0x2c   : > { %v373_v6 = vrot.slane %v372_v1, 4  ;;  %388 = vst [vmem:[#allocation2 + $0x24] sm:$0xc] %v372_v1  ;;  %v421_v10 = vld [vmem:[#allocation2] sm:$0xf]  ;;  %v376_v13 = vrot.slane %v374_v7, 4  ;;  %v381_v21 = vsel %vm8810_vm2, %v379_v14, %v380_v15 }
  0x2d   : > { %v382_v22 = vrot.slane %v380_v15, 4  ;;  %391 = vst [vmem:[#allocation2 + $0x30] sm:$0xf] %v381_v21  ;;  %v7515_v39 = vld [vmem:[%s8779_s21 + $0x68] sm:$0xff]  ;;  %v8195_v51 = vld [vmem:[%s13559_s1 + $0x154] ss:$8 sps:$4 sm:$0xff]  }
  0x2e   : > { %700 = vmatpush1.bf16.msra.mxu0 %v8175_v29  ;;  %912 = vmatpush1.bf16.msra.mxu1 %v8176_v30  ;;  %v375_v12 = vsel %vm8810_vm2, %v373_v6, %v374_v7  ;;  %v378_v20 = vsel %vm8810_vm2, %v376_v13, %v377_v8  ;;  %v8185_v29 = vld [vmem:[%s13559_s1 + $0x170] ss:$8 sps:$4 sm:$0xff]   ;;  %v8005_v43 = vpack.c.bf16 %v7515_v39, %v7514_v36  ;;  %v8217_v52 = vld [vmem:[%s13559_s1 + $0x1d4] ss:$8 sps:$4 sm:$0xff]   ;;  %v8199_v6 = vld [vmem:[%s13559_s1 + $0x144] ss:$8 sps:$4 sm:$0xff]  }
  0x2f   : > { %701 = vmatprep.subr.bf16.mxu0 %v8177_v35  ;;  %913 = vmatprep.subr.bf16.mxu1 %v8179_v38  ;;  %v8844_v17 = vld [vmem:[#allocation2 + $0x4] sm:$0xf]  ;;  %389 = vst [vmem:[#allocation2 + $0x28] sm:$0xf] %v375_v12  ;;  %390 = vst [vmem:[#allocation2 + $0x2c] sm:$0xf] %v378_v20 }
  0x30   : > { %v7538_v18 = vcombine.low %v421_v10, %v8844_v17  ;;  %v8854_v26 = vld [vmem:[#allocation2 + $0x10] sm:$0xff]   ;;  %392 = vst [vmem:[#allocation2 + $0x34] sm:$0x3] %v382_v22  ;;  %v8864_v32 = vld [vmem:[#allocation2 + $0x18] sm:$0xff]   ;;  %v8211_v35 = vld [vmem:[%s13559_s1 + $0x1e0] ss:$8 sps:$4 sm:$0xff]  }
  0x31   : > { %v8847_v19 = vld [vmem:[#allocation2 + $0x8] sm:$0xff]   ;;  %v538_v34 = vshll.u32 %v8854_v26, 16  ;;  %v542_v37 = vshrl.u32 %v8854_v26, 16  ;;  %v1047_v45 = vrot.slane %v8854_v26, 1  ;;  %v546_v48 = vshll.u32 %v8864_v32, 16  ;;  %8013 = vst [vmem:[#allocation2 + $0x38] sm:$0xff] %v8005_v43  }
  0x32   : > { %702 = vmatpush1.bf16.msra.mxu0 %v8181_v50  ;;  %914 = vmatpush1.bf16.msra.mxu1 %v8182_v55  ;;  %v523_v23 = vshrl.u32 %v7538_v18, 16  ;;  %v525_v24 = vshll.u32 %v7538_v18, 16  ;;  %v530_v25 = vshll.u32 %v8847_v19, 16  ;;  %v534_v30 = vshrl.u32 %v8847_v19, 16  ;;  %v8213_v38 = vld [vmem:[%s13559_s1 + $0x1e4] ss:$8 sps:$4 sm:$0xff]  }
  0x33   : > { %1152 = vmatprep.subr.bf16.mxu0 %v8187_v61  ;;  %1471 = vmatprep.subr.bf16.mxu1 %v8207_v11  ;;  %v1045_v44 = vrot.slane %v8847_v19, 1  ;;  %v540_v50 = vrot.slane %v538_v34, 1  ;;  %v1345_v54 = vrot.slane %v542_v37, 1  ;;  %v8896_v55 = vld [vmem:[#allocation2 + $0x20] sm:$0xff]   ;;  %v8193_v56 = vld [vmem:[%s13559_s1 + $0x150] ss:$8 sps:$4 sm:$0xff]  }
  0x34   : > { %v527_v27 = vrot.slane %v525_v24, 1  ;;  %v532_v28 = vrot.slane %v530_v25, 1  ;;  %v1342_v46 = vrot.slane %v530_v25, 2  ;;  %v1341_v47 = vrot.slane %v534_v30, 1  ;;  %v8215_v57 = vld [vmem:[%s13559_s1 + $0x1d0] ss:$8 sps:$4 sm:$0xff]  }
  0x35   : > { %932 = vmatmul.mubr.bf16.vlgmr.msra.gmra.mxu1 %v7538_v18  ;;  %v8893_v53 = vsel %vm13568_vm4, %v1045_v44, %v1047_v45  ;;  %v1346_v58 = vrot.slane %v538_v34, 2  ;;  %v8905_v59 = vrot.slane %v546_v48, 1  ;;  %v550_v60 = vshrl.u32 %v8864_v32, 16  ;;  %v8223_v61 = vld [vmem:[%s13559_s1 + $0x1c4] ss:$8 sps:$4 sm:$0xff]   ;;  %v7516_v62 = vld [vmem:[%s8779_s21 + $0x70] sm:$0xff] }
  0x36   : > { %941 = vmatprep.mubr.bf16.mxu1 %v8608_v2  ;;  %1472 = vmatpush1.bf16.msra.mxu1 %v8205_v16  ;;  %v528_v33 = vor.u32 %v527_v27, %v523_v23  ;;  %v536_v49 = vor.u32 %v534_v30, %v532_v28  ;;  %v7517_v0 = vld [vmem:[%s8779_s21 + $0x78] sm:$0xff]  ;;  %v8914_v1 = vor.u32 %v1342_v46, %v1341_v47  ;;  %v1049_v4 = vrot.slane %v8864_v32, 1  ;;  %v8221_v10 = vld [vmem:[%s13559_s1 + $0x1c0] ss:$8 sps:$4 sm:$0xff]   ;;  %v8230_v36 = vld [vmem:[%s13559_s1 + $0x1a4] ss:$8 sps:$4 sm:$0xff]  }
  0x37   : > { %1473 = vmatprep.subr.bf16.mxu1 %v8213_v38  ;;  %v1347_v3 = vor.u32 %v1346_v58, %v1345_v54  ;;  %v554_v5 = vshll.u32 %v8896_v55, 16  ;;  %v558_v7 = vshrl.u32 %v8896_v55, 16  ;;  %v8010_v8 = vpack.c.bf16 %v7517_v0, %v7516_v62  ;;  %v8227_v11 = vld [vmem:[%s13559_s1 + $0x1b4] ss:$8 sps:$4 sm:$0xff]   ;;  %v8937_v15 = vld [vmem:[#allocation2 + $0x28] sm:$0xff]  }
  0x38   : > { %v533_v40 = vsel %vm521_vm3, %v528_v33, %v532_v28  ;;  %v541_v63 = vsel %vm521_vm3, %v536_v49, %v540_v50  ;;  %v1349_v9 = vrot.slane %v550_v60, 1  ;;  %v8935_v13 = vsel %vm13568_vm4, %v1047_v45, %v1049_v4  ;;  %v8197_v20 = vld [vmem:[%s13559_s1 + $0x140] ss:$8 sps:$4 sm:$0xff]   ;;  %v8203_v24 = vld [vmem:[%s13559_s1 + $0x134] ss:$8 sps:$4 sm:$0xff]  }
  0x39   : > { %720 = vmatmul.mubr.bf16.vlgmr.msra.gmra.mxu0 %v533_v40  ;;  %v8932_v12 = vsel %vm1332_vm5, %v8914_v1, %v1347_v3  ;;  %v1350_v14 = vrot.slane %v546_v48, 2  ;;  %8014 = vst [vmem:[#allocation2 + $0x40] sm:$0xff] %v8010_v8   ;;  %v1051_v16 = vrot.slane %v8896_v55, 1  ;;  %v544_v18 = vor.u32 %v542_v37, %v540_v50  ;;  %v8201_v27 = vld [vmem:[%s13559_s1 + $0x130] ss:$8 sps:$4 sm:$0xff]  }
  0x3a   : > { %1153 = vmatpush1.bf16.msra.mxu0 %v8185_v29  ;;  %729 = vmatprep.mubr.bf16.mxu0 %v8608_v2  ;;  %v1353_v22 = vrot.slane %v558_v7, 1  ;;  %v1354_v23 = vrot.slane %v554_v5, 2  ;;  %v8225_v28 = vld [vmem:[%s13559_s1 + $0x1b0] ss:$8 sps:$4 sm:$0xff]   ;;  %v562_v33 = vshll.u32 %v8937_v15, 16  ;;  %v566_v34 = vshrl.u32 %v8937_v15, 16 }
  0x3b   : > { %1154 = vmatprep.subr.bf16.mxu0 %v8191_v31  ;;  %1474 = vmatpush1.bf16.msra.mxu1 %v8211_v35  ;;  %v1351_v21 = vor.u32 %v1350_v14, %v1349_v9  ;;  %v8951_v25 = vsel %vm13568_vm4, %v1049_v4, %v1051_v16  ;;  %v1053_v31 = vrot.slane %v8937_v15, 1  ;;  %v8210_v35 = vld [vmem:[%s13559_s1 + $0x124] ss:$8 sps:$4 sm:$0xff]   ;;  %v549_v37 = vsel %vm521_vm3, %v544_v18, %v8905_v59  ;;  %v8974_v38 = vld [vmem:[#allocation2 + $0x30] sm:$0xff]   ;;  %v8228_v39 = vld [vmem:[%s13559_s1 + $0x1a0] ss:$8 sps:$4 sm:$0xff]  }
  0x3c   : > { %1475 = vmatprep.subr.bf16.mxu1 %v8217_v52  ;;  %v1355_v30 = vor.u32 %v1354_v23, %v1353_v22  ;;  %v1022_v43 = vld [vmem:[#allocation2] sm:$0xe]  ;;  %v1357_v45 = vrot.slane %v566_v34, 1  ;;  %v1358_v46 = vrot.slane %v562_v33, 2  ;;  %v8989_v47 = vld [vmem:[#allocation2 + $0x38] sm:$0xff]   ;;  %v552_v49 = vor.u32 %v550_v60, %v8905_v59 }
  0x3d   : > { %942 = vmatmul.mubr.bf16.gmra.mxu1 %v8847_v19  ;;  %v8961_v29 = vsel %vm1332_vm5, %v1347_v3, %v1351_v21  ;;  %v7596_v48 = vcombine.low %v1022_v43, %v8844_v17  ;;  %v8208_v50 = vld [vmem:[%s13559_s1 + $0x120] ss:$8 sps:$4 sm:$0xff]   ;;  %v1055_v54 = vrot.slane %v8974_v38, 1  ;;  %v574_v60 = vshrl.u32 %v8974_v38, 16  ;;  %v8218_v4 = vld [vmem:[%s13559_s1 + $0x110] ss:$8 sps:$4 sm:$0xff]  }
  0x3e   : > { %951 = vmatprep.mubr.bf16.mxu1 %v8608_v2  ;;  %1155 = vmatpush1.bf16.msra.mxu0 %v8189_v41  ;;  %v8980_v40 = vsel %vm1332_vm5, %v1351_v21, %v1355_v30  ;;  %v8983_v41 = vsel %vm13568_vm4, %v1051_v16, %v1053_v31  ;;  %v1359_v52 = vor.u32 %v1358_v46, %v1357_v45  ;;  %v578_v3 = vshll.u32 %v8989_v47, 16  ;;  %v8235_v8 = vld [vmem:[%s13559_s1 + $0x190] ss:$8 sps:$4 sm:$0xff]   ;;  %v9045_v23 = vld [vmem:[#allocation2 + $0x48] ss:$0 sps:$4 sm:$0x11]  }
  0x3f   : > { %1156 = vmatprep.subr.bf16.mxu0 %v8195_v51  ;;  %1476 = vmatpush1.bf16.msra.mxu1 %v8215_v57  ;;  %v8237_v51 = vld [vmem:[%s13559_s1 + $0x194] ss:$8 sps:$4 sm:$0xff]   ;;  %v570_v57 = vshll.u32 %v8974_v38, 16  ;;  %v1044_v58 = vrot.slane %v7596_v48, 1  ;;  %v1334_v59 = vshrl.u32 %v7596_v48, 16  ;;  %v1337_v62 = vshll.u32 %v7596_v48, 16 }
  0x40   : > { %1477 = vmatprep.subr.bf16.mxu1 %v8223_v61  ;;  %v8220_v61 = vld [vmem:[%s13559_s1 + $0x114] ss:$8 sps:$4 sm:$0xff]   ;;  %v9013_v0 = vsel %vm13568_vm4, %v1053_v31, %v1055_v54  ;;  %v1361_v16 = vrot.slane %v574_v60, 1  ;;  %v1057_v21 = vrot.slane %v8989_v47, 1  ;;  %v8238_v31 = vld [vmem:[%s13559_s1 + $0x180] ss:$8 sps:$4 sm:$0xff]  }
  0x41   : > { %730 = vmatmul.mubr.bf16.gmra.mxu0 %v541_v63  ;;  %v9010_v63 = vsel %vm1332_vm5, %v1355_v30, %v1359_v52  ;;  %v9029_v9 = vsel %vm13568_vm4, %v1044_v58, %v1045_v44  ;;  %v1339_v14 = vrot.slane %v1337_v62, 2  ;;  %v1362_v44 = vrot.slane %v570_v57, 2  ;;  %v8231_v46 = vld [vmem:[%s13559_s1 + $0x100] ss:$8 sps:$4 sm:$0xff]  }
  0x42   : > { %739 = vmatprep.mubr.bf16.mxu0 %v8608_v2  ;;  %1157 = vmatpush1.bf16.msra.mxu0 %v8193_v56  ;;  %v556_v56 = vrot.slane %v554_v5, 1  ;;  %v9020_v5 = vld [vmem:[#allocation2 + $0x40] sm:$0xff]   ;;  %v1655_v62 = vrot.slane %v8854_v26, 2  ;;  %vm13566_vm7 = vcmask 1040384   ;;  %vm2004_vm8 = vsmask.f32 256 }
  0x43   : > { %1158 = vmatprep.subr.bf16.mxu0 %v8199_v6  ;;  %1478 = vmatpush1.bf16.msra.mxu1 %v8221_v10  ;;  %v582_v6 = vshrl.u32 %v8989_v47, 16  ;;  %v1336_v10 = vrot.slane %v1334_v59, 1  ;;  %v586_v30 = vshll.u32 %v9020_v5, 16  ;;  %v1059_v43 = vrot.slane %v9020_v5, 1  ;;  %v1630_v58 = vld [vmem:[#allocation2] sm:$0xc]  ;;  %vm9405_vm10 = vmand %vm13566_vm7, %vm2004_vm8 }
  0x44   : > { %1479 = vmatprep.subr.bf16.mxu1 %v8227_v11  ;;  %v8240_v11 = vld [vmem:[%s13559_s1 + $0x184] ss:$8 sps:$4 sm:$0xff]   ;;  %v557_v18 = vsel %vm521_vm3, %v552_v49, %v556_v56  ;;  %v560_v22 = vor.u32 %v558_v7, %v556_v56  ;;  %v1366_v7 = vrot.slane %v578_v3, 2  ;;  %v1061_v49 = vrot.slane %v9045_v23, 1 }
  0x45   : > { %952 = vmatmul.mubr.bf16.gmra.mxu1 %v8854_v26  ;;  %v7662_v59 = vcombine.low %v1630_v58, %v8844_v17  ;;  %vm13567_vm9 = vcmask 1044484   ;;  %vm2007_vm11 = vsmask.f32 4352  ;;  %vm2013_vm14 = vsmask.f32 7938 }
  0x46   : > { %961 = vmatprep.mubr.bf16.mxu1 %v8608_v2  ;;  %1159 = vmatpush1.bf16.msra.mxu0 %v8197_v20  ;;  %v8233_v20 = vld [vmem:[%s13559_s1 + $0x104] ss:$8 sps:$4 sm:$0xff]   ;;  %v9092_v56 = vsel %vm13568_vm4, %v1059_v43, %v1061_v49  ;;  %v8262_v49 = vld [vmem:[%s13559_s1 + $0x214] ss:$8 sps:$4 sm:$0xff]   ;;  %vm9416_vm12 = vmand %vm13567_vm9, %vm2007_vm11  ;;  %vm2015_vm15 = vsmask.f32 7954 }
  0x47   : > { %1160 = vmatprep.subr.bf16.mxu0 %v8203_v24  ;;  %1480 = vmatpush1.bf16.msra.mxu1 %v8225_v28  ;;  %v590_v24 = vshrl.u32 %v9020_v5, 16  ;;  %v1365_v28 = vrot.slane %v582_v6, 1  ;;  %vm2009_vm13 = vmor %vm9416_vm12, %vm9405_vm10  ;;  %vm2061_vm8 = vcmask 1041409   ;;  %vm2062_vm11 = vsmask.f32 1280 }
  0x48   : > { %1481 = vmatprep.subr.bf16.mxu1 %v8230_v36  ;;  %v9055_v36 = vsel %vm13568_vm4, %v1055_v54, %v1057_v21  ;;  %vm9464_vm0 = vmand %vm13566_vm7, %vm2013_vm14  ;;  %vm2064_vm14 = vcmask 1045509   ;;  %vm2065_vm7 = vsmask.f32 5376 }
  0x49   : > { %740 = vmatmul.mubr.bf16.gmra.mxu0 %v549_v37  ;;  %v564_v37 = vrot.slane %v562_v33, 1  ;;  %v1369_v45 = vrot.slane %v590_v24, 1  ;;  %v1367_v33 = vor.u32 %v1366_v7, %v1365_v28  ;;  %v594_v28 = vshll.u32 %v9045_v23, 16  ;;  %v8242_v23 = vld [vmem:[%s13559_s1 + $0x270] ss:$8 sps:$4 sm:$0xff]   ;;  %vm9477_vm1 = vmand %vm13567_vm9, %vm2015_vm15 }
  0x4a   : > { %749 = vmatprep.mubr.bf16.mxu0 %v8608_v2  ;;  %1161 = vmatpush1.bf16.msra.mxu0 %v8201_v27  ;;  %v1340_v27 = vor.u32 %v1339_v14, %v1336_v10  ;;  %vm2063_vm15 = vmand %vm2061_vm8, %vm2062_vm11 }
  0x4b   : > { %1162 = vmatprep.subr.bf16.mxu0 %v8210_v35  ;;  %1482 = vmatpush1.bf16.msra.mxu1 %v8228_v39  ;;  %v1363_v35 = vor.u32 %v1362_v44, %v1361_v16  ;;  %v568_v26 = vor.u32 %v566_v34, %v564_v37  ;;  %v1659_v16 = vrot.slane %v8896_v55, 2  ;;  %vm2066_vm9 = vmand %vm2064_vm14, %vm2065_vm7  ;;  %vm2071_vm7 = vsmask.f32 7942 }
  0x4c   : > { %1483 = vmatprep.subr.bf16.mxu1 %v8237_v51  ;;  %v9063_v39 = vsel %vm1332_vm5, %v1340_v27, %v8914_v1  ;;  %v1370_v1 = vrot.slane %v586_v30, 2  ;;  %v9083_v51 = vsel %vm13568_vm4, %v1057_v21, %v1059_v43  ;;  %vm2067_vm4 = vmor %vm2066_vm9, %vm2063_vm15  ;;  %vm2073_vm9 = vsmask.f32 7958 }
  0x4d   : > { %962 = vmatmul.mubr.bf16.gmra.mxu1 %v8864_v32  ;;  %v9073_v48 = vsel %vm1332_vm5, %v1359_v52, %v1363_v35  ;;  %v9087_v52 = vsel %vm1332_vm5, %v1363_v35, %v1367_v33  ;;  %vm2074_vm11 = vmand %vm2064_vm14, %vm2073_vm9  ;;  %vm2134_vm14 = vsmask.f32 2304  ;;  %vm2144_vm9 = vsmask.f32 7962 }
  0x4e   : > { %971 = vmatprep.mubr.bf16.mxu1 %v8608_v2  ;;  %1163 = vmatpush1.bf16.msra.mxu0 %v8208_v50  ;;  %v8244_v50 = vld [vmem:[%s13559_s1 + $0x274] ss:$8 sps:$4 sm:$0xff]   ;;  %v9089_v54 = vor.u32 %v1370_v1, %v1369_v45  ;;  %v8253_v45 = vld [vmem:[%s13559_s1 + $0x244] ss:$8 sps:$4 sm:$0xff]  }
  0x4f   : > { %1164 = vmatprep.subr.bf16.mxu0 %v8220_v61  ;;  %1484 = vmatpush1.bf16.msra.mxu1 %v8235_v8  ;;  %v1653_v61 = vrot.slane %v8847_v19, 2  ;;  %v565_v8 = vsel %vm521_vm3, %v560_v22, %v564_v37  ;;  %v8245_v37 = vld [vmem:[%s13559_s1 + $0x260] ss:$8 sps:$4 sm:$0xff]   ;;  %v8259_v1 = vld [vmem:[%s13559_s1 + $0x224] ss:$8 sps:$4 sm:$0xff]  }
  0x50   : > { %1485 = vmatprep.subr.bf16.mxu1 %v8240_v11  ;;  %v9101_v10 = vsel %vm1332_vm5, %v1367_v33, %v9089_v54  ;;  %v1652_v11 = vrot.slane %v7662_v59, 2  ;;  %v8256_v33 = vld [vmem:[%s13559_s1 + $0x234] ss:$8 sps:$4 sm:$0xff]  }
  0x51   : > { %750 = vmatmul.mubr.bf16.gmra.mxu0 %v557_v18  ;;  %v9104_v14 = vsel %vm1651_vm6, %v1653_v61, %v1655_v62 }
  0x52   : > { %759 = vmatprep.mubr.bf16.mxu0 %v8608_v2  ;;  %1165 = vmatpush1.bf16.msra.mxu0 %v8218_v4  ;;  %v1657_v4 = vrot.slane %v8864_v32, 2  ;;  %v9110_v19 = vsel %vm1651_vm6, %v1652_v11, %v1653_v61  ;;  %v572_v32 = vrot.slane %v570_v57, 1  ;;  %v580_v57 = vrot.slane %v578_v3, 1  ;;  %v8279_v61 = vld [vmem:[%s13561_s3 + $0x174] ss:$8 sps:$4 sm:$0xff]  }
  0x53   : > { %1166 = vmatprep.subr.bf16.mxu0 %v8233_v20  ;;  %1486 = vmatpush1.bf16.msra.mxu1 %v8238_v31  ;;  %v588_v3 = vrot.slane %v586_v30, 1  ;;  %v596_v30 = vrot.slane %v594_v28, 1  ;;  %v1665_v31 = vrot.slane %v8989_v47, 2  ;;  %v8286_v11 = vld [vmem:[%s13561_s3 + $0x160] ss:$8 sps:$4 sm:$0xff]  }
  0x54   : > { %v9107_v17 = vsel %vm1651_vm6, %v1655_v62, %v1657_v4  ;;  %v9121_v18 = vsel %vm1651_vm6, %v1657_v4, %v1659_v16  ;;  %v573_v20 = vsel %vm521_vm3, %v568_v26, %v572_v32  ;;  %v576_v34 = vor.u32 %v574_v60, %v572_v32  ;;  %v8277_v62 = vld [vmem:[%s13561_s3 + $0x170] ss:$8 sps:$4 sm:$0xff]   ;;  %2744 = vmatprep.subr.bf16.mxu1 %v8279_v61  ;;  %v8282_v4 = vld [vmem:[%s13561_s3 + $0x44] ss:$8 sps:$4 sm:$0xff]  }
  0x55   : > { %972 = vmatmul.mubr.bf16.gmra.mxu1 %v8896_v55  ;;  %v1661_v55 = vrot.slane %v8937_v15, 2  ;;  %v584_v60 = vor.u32 %v582_v6, %v580_v57  ;;  %v592_v6 = vor.u32 %v590_v24, %v588_v3  ;;  %v1667_v24 = vrot.slane %v9020_v5, 2  ;;  %v8292_v26 = vld [vmem:[%s13561_s3 + $0x150] ss:$8 sps:$4 sm:$0xff]   ;;  %v8291_v32 = vld [vmem:[%s13561_s3 + $0x24] ss:$8 sps:$4 sm:$0xff]  }
  0x56   : > { %981 = vmatprep.mubr.bf16.mxu1 %v8608_v2  ;;  %1167 = vmatpush1.bf16.msra.mxu0 %v8231_v46  ;;  %v581_v21 = vsel %vm521_vm3, %v576_v34, %v580_v57  ;;  %v8251_v46 = vld [vmem:[%s13559_s1 + $0x240] ss:$8 sps:$4 sm:$0xff]   ;;  %v8327_v61 = vld [vmem:[%s13561_s3 + $0xc4] ss:$8 sps:$4 sm:$0xff]  }
  0x57   : > { %1760 = vmatprep.subr.bf16.mxu0 %v8244_v50  ;;  %v9133_v44 = vsel %vm1651_vm6, %v1659_v16, %v1661_v55  ;;  %v589_v27 = vsel %vm521_vm3, %v584_v60, %v588_v3  ;;  %v9170_v7 = vsel %vm1651_vm6, %v1665_v31, %v1667_v24  ;;  %v8265_v50 = vld [vmem:[%s13559_s1 + $0x204] ss:$8 sps:$4 sm:$0xff]   ;;  %v8298_v34 = vld [vmem:[%s13561_s3 + $0x140] ss:$8 sps:$4 sm:$0xff]   ;;  %v8306_v60 = vld [vmem:[%s13561_s3 + $0x134] ss:$8 sps:$4 sm:$0xff]  }
  0x58   : > { %v8304_v3 = vld [vmem:[%s13561_s3 + $0x130] ss:$8 sps:$4 sm:$0xff]  }
  0x59   : > { %760 = vmatmul.mubr.bf16.gmra.mxu0 %v565_v8  ;;  %v8280_v8 = vld [vmem:[%s13561_s3 + $0x40] ss:$8 sps:$4 sm:$0xff]  }
  0x5a   : > { %769 = vmatprep.mubr.bf16.mxu0 %v8608_v2 }
  0x5d   : > { %982 = vmatmul.mubr.bf16.gmra.mxu1 %v8937_v15  ;;  %v1663_v15 = vrot.slane %v8974_v38, 2 }
  0x5e   : > { %991 = vmatprep.mubr.bf16.mxu1 %v8608_v2 }
  0x5f   : > { %v9145_v22 = vsel %vm1651_vm6, %v1661_v55, %v1663_v15  ;;  %v9157_v35 = vsel %vm1651_vm6, %v1663_v15, %v1665_v31  ;;  %v8297_v55 = vld [vmem:[%s13561_s3 + $0x14] ss:$8 sps:$4 sm:$0xff]  }
  0x61   : > { %770 = vmatmul.mubr.bf16.gmra.mxu0 %v573_v20  ;;  %v8300_v20 = vld [vmem:[%s13561_s3 + $0x144] ss:$8 sps:$4 sm:$0xff]  }
  0x62   : > { %779 = vmatprep.mubr.bf16.mxu0 %v8608_v2 }
  0x65   : > { %992 = vmatmul.mubr.bf16.gmra.mxu1 %v8974_v38  ;;  %v597_v38 = vsel %vm521_vm3, %v592_v6, %v596_v30  ;;  %v8301_v6 = vld [vmem:[%s13561_s3] ss:$8 sps:$4 sm:$0xff]   ;;  %v8312_v30 = vld [vmem:[%s13561_s3 + $0x124] ss:$8 sps:$4 sm:$0xff]  }
  0x66   : > { %1001 = vmatprep.mubr.bf16.mxu1 %v8608_v2 }
  0x69   : > { %780 = vmatmul.mubr.bf16.gmra.mxu0 %v581_v21  ;;  %v8295_v21 = vld [vmem:[%s13561_s3 + $0x10] ss:$8 sps:$4 sm:$0xff]  }
  0x6a   : > { %789 = vmatprep.mubr.bf16.mxu0 %v8608_v2 }
  0x6d   : > { %1002 = vmatmul.mubr.bf16.gmra.mxu1 %v8989_v47  ;;  %v8247_v47 = vld [vmem:[%s13559_s1 + $0x264] ss:$8 sps:$4 sm:$0xff]  }
  0x6e   : > { %1011 = vmatprep.mubr.bf16.mxu1 %v8608_v2 }
  0x71   : > { %790 = vmatmul.mubr.bf16.gmra.mxu0 %v589_v27  ;;  %v8303_v27 = vld [vmem:[%s13561_s3 + $0x4] ss:$8 sps:$4 sm:$0xff]  }
  0x72   : > { %799 = vmatprep.mubr.bf16.mxu0 %v8608_v2 }
  0x75   : > { %1012 = vmatmul.mubr.bf16.gmra.mxu1 %v9020_v5  ;;  %v8250_v5 = vld [vmem:[%s13559_s1 + $0x254] ss:$8 sps:$4 sm:$0xff]  }
  0x76   : > { %1503 = vmatprep.mubr.bf16.mxu1 %v8608_v2 }
  0x79   : > { %800 = vmatmul.mubr.bf16.gmra.mxu0 %v597_v38 }
  0x7a   : > { %1184 = vmatprep.mubr.bf16.mxu0 %v8608_v2 }
  0x7d   : > { %1504 = vmatmul.mubr.bf16.vlgmr.msra.gmra.mxu1 %v9063_v39  ;;  %v8266_v39 = vld [vmem:[#allocation2 + $0x48] ss:$0 sps:$4 sm:$0x33]  }
  0x7e   : > { %1513 = vmatprep.mubr.bf16.mxu1 %v8608_v2  ;;  %v1669_v43 = vrot.slane %v8266_v39, 2  ;;  %2745 = vmatpush1.bf16.msra.mxu1 %v8277_v62  ;;  %v8366_v62 = vld [vmem:[%s13561_s3 + $0x274] ss:$8 sps:$4 sm:$0xff]  }
  0x81   : > { %1185 = vmatmul.mubr.bf16.vlgmr.msra.gmra.mxu0 %v9029_v9  ;;  %v8248_v9 = vld [vmem:[%s13559_s1 + $0x250] ss:$8 sps:$4 sm:$0xff]  }
  0x82   : > { %1761 = vmatpush1.bf16.msra.mxu0 %v8242_v23  ;;  %1194 = vmatprep.mubr.bf16.mxu0 %v8608_v2 }
  0x83   : > { %1762 = vmatprep.subr.bf16.mxu0 %v8247_v47 }
  0x85   : > { %1514 = vmatmul.mubr.bf16.gmra.mxu1 %v8932_v12  ;;  %v9189_v12 = vsel %vm1651_vm6, %v1667_v24, %v1669_v43  ;;  %vm2017_vm6 = vmor %vm9477_vm1, %vm9464_vm0 }
  0x86   : > { %1523 = vmatprep.mubr.bf16.mxu1 %v8608_v2  ;;  %1763 = vmatpush1.bf16.msra.mxu0 %v8245_v37  ;;  %v8309_v37 = vld [vmem:[%s13561_s3 + $0xf4] ss:$8 sps:$4 sm:$0xff]  }
  0x87   : > { %1764 = vmatprep.subr.bf16.mxu0 %v8250_v5 }
  0x89   : > { %1195 = vmatmul.mubr.bf16.gmra.mxu0 %v8893_v53  ;;  %v8254_v53 = vld [vmem:[%s13559_s1 + $0x230] ss:$8 sps:$4 sm:$0xff]  }
  0x8a   : > { %1204 = vmatprep.mubr.bf16.mxu0 %v8608_v2  ;;  %1765 = vmatpush1.bf16.msra.mxu0 %v8248_v9  ;;  %v8318_v9 = vld [vmem:[%s13561_s3 + $0x114] ss:$8 sps:$4 sm:$0xff]  }
  0x8b   : > { %1766 = vmatprep.subr.bf16.mxu0 %v8253_v45 }
  0x8d   : > { %1524 = vmatmul.mubr.bf16.gmra.mxu1 %v8961_v29  ;;  %v8257_v29 = vld [vmem:[%s13559_s1 + $0x220] ss:$8 sps:$4 sm:$0xff]  }
  0x8e   : > { %1533 = vmatprep.mubr.bf16.mxu1 %v8608_v2  ;;  %1767 = vmatpush1.bf16.msra.mxu0 %v8251_v46  ;;  %v8316_v46 = vld [vmem:[%s13561_s3 + $0x110] ss:$8 sps:$4 sm:$0xff]  }
  0x8f   : > { %1768 = vmatprep.subr.bf16.mxu0 %v8256_v33 }
  0x91   : > { %1205 = vmatmul.mubr.bf16.gmra.mxu0 %v8935_v13  ;;  %v8260_v13 = vld [vmem:[%s13559_s1 + $0x210] ss:$8 sps:$4 sm:$0xff]  }
  0x92   : > { %1214 = vmatprep.mubr.bf16.mxu0 %v8608_v2  ;;  %1769 = vmatpush1.bf16.msra.mxu0 %v8254_v53 }
  0x93   : > { %1770 = vmatprep.subr.bf16.mxu0 %v8259_v1  ;;  %v8315_v1 = vld [vmem:[%s13561_s3 + $0xe4] ss:$8 sps:$4 sm:$0xff]  }
  0x95   : > { %1534 = vmatmul.mubr.bf16.gmra.mxu1 %v8980_v40  ;;  %v8263_v40 = vld [vmem:[%s13559_s1 + $0x200] ss:$8 sps:$4 sm:$0xff]  }
  0x96   : > { %1543 = vmatprep.mubr.bf16.mxu1 %v8608_v2  ;;  %1771 = vmatpush1.bf16.msra.mxu0 %v8257_v29 }
  0x97   : > { %1772 = vmatprep.subr.bf16.mxu0 %v8262_v49  ;;  %v8313_v49 = vld [vmem:[%s13561_s3 + $0xe0] ss:$8 sps:$4 sm:$0xff]  }
  0x99   : > { %1215 = vmatmul.mubr.bf16.gmra.mxu0 %v8951_v25  ;;  %v1374_v25 = vshrl.u32 %v8266_v39, 16 }
  0x9a   : > { %1224 = vmatprep.mubr.bf16.mxu0 %v8608_v2  ;;  %1773 = vmatpush1.bf16.msra.mxu0 %v8260_v13  ;;  %v8324_v13 = vld [vmem:[%s13561_s3 + $0x104] ss:$8 sps:$4 sm:$0xff]  }
  0x9b   : > { %1774 = vmatprep.subr.bf16.mxu0 %v8265_v50  ;;  %v1376_v58 = vrot.slane %v1374_v25, 1 }
  0x9d   : > { %1544 = vmatmul.mubr.bf16.gmra.mxu1 %v9010_v63  ;;  %v1377_v63 = vshll.u32 %v8266_v39, 16  ;;  %v8307_v39 = vld [vmem:[%s13561_s3 + $0xf0] ss:$8 sps:$4 sm:$0xff]  }
  0x9e   : > { %1553 = vmatprep.mubr.bf16.mxu1 %v8608_v2  ;;  %1775 = vmatpush1.bf16.msra.mxu0 %v8263_v40  ;;  %v8322_v40 = vld [vmem:[%s13561_s3 + $0x100] ss:$8 sps:$4 sm:$0xff]  }
  0x9f   : > { %v1379_v59 = vrot.slane %v1377_v63, 2 }
  0xa1   : > { %1225 = vmatmul.mubr.bf16.gmra.mxu0 %v8983_v41  ;;  %v1380_v41 = vor.u32 %v1379_v59, %v1376_v58  ;;  %v8321_v58 = vld [vmem:[%s13561_s3 + $0xd4] ss:$8 sps:$4 sm:$0xff]  }
  0xa2   : > { %1234 = vmatprep.mubr.bf16.mxu0 %v8608_v2 }
  0xa5   : > { %1554 = vmatmul.mubr.bf16.gmra.mxu1 %v9073_v48  ;;  %v8268_v48 = vld [vmem:[%s13561_s3 + $0x70] ss:$8 sps:$4 sm:$0xff]  }
  0xa6   : > { %1563 = vmatprep.mubr.bf16.mxu1 %v8608_v2 }
  0xa9   : > { %1235 = vmatmul.mubr.bf16.gmra.mxu0 %v9013_v0  ;;  %v1381_v0 = vsel %vm1332_vm5, %v9089_v54, %v1380_v41  ;;  %v8276_v54 = vld [vmem:[%s13561_s3 + $0x54] ss:$8 sps:$4 sm:$0xff]   ;;  %v8319_v41 = vld [vmem:[%s13561_s3 + $0xd0] ss:$8 sps:$4 sm:$0xff]  }
  0xaa   : > { %1244 = vmatprep.mubr.bf16.mxu0 %v8608_v2 }
  0xad   : > { %1564 = vmatmul.mubr.bf16.gmra.mxu1 %v9087_v52  ;;  %v8271_v52 = vld [vmem:[%s13561_s3 + $0x60] ss:$8 sps:$4 sm:$0xff]  }
  0xae   : > { %1573 = vmatprep.mubr.bf16.mxu1 %v8608_v2 }
  0xb1   : > { %1245 = vmatmul.mubr.bf16.gmra.mxu0 %v9055_v36  ;;  %v8270_v36 = vld [vmem:[%s13561_s3 + $0x74] ss:$8 sps:$4 sm:$0xff]  }
  0xb2   : > { %1254 = vmatprep.mubr.bf16.mxu0 %v8608_v2  ;;  %3045 = vmatprep.subr.bf16.mxu0 %v8270_v36 }
  0xb5   : > { %1574 = vmatmul.mubr.bf16.gmra.mxu1 %v9101_v10  ;;  %v8288_v10 = vld [vmem:[%s13561_s3 + $0x164] ss:$8 sps:$4 sm:$0xff]  }
  0xb6   : > { %1583 = vmatprep.mubr.bf16.mxu1 %v8608_v2  ;;  %2746 = vmatprep.subr.bf16.mxu1 %v8288_v10 }
  0xb7   : > { %2747 = vmatpush1.bf16.msra.mxu1 %v8286_v11 }
  0xb9   : > { %1255 = vmatmul.mubr.bf16.gmra.mxu0 %v9083_v51  ;;  %v8273_v51 = vld [vmem:[%s13561_s3 + $0x64] ss:$8 sps:$4 sm:$0xff]  }
  0xba   : > { %1264 = vmatprep.mubr.bf16.mxu0 %v8608_v2 }
  0xbd   : > { %1584 = vmatmul.mubr.bf16.gmra.mxu1 %v1381_v0  ;;  %v8330_v0 = vld [vmem:[%s13561_s3 + $0x1f4] ss:$8 sps:$4 sm:$0xff]  }
  0xc1   : > { %1265 = vmatmul.mubr.bf16.gmra.mxu0 %v9092_v56  ;;  %v8274_v56 = vld [vmem:[%s13561_s3 + $0x50] ss:$8 sps:$4 sm:$0xff]  }
  0xc2   : > { %1792 = vmatprep.mubr.bf16.mxu0 %v8608_v2 }
  0xc9   : > { %1793 = vmatmul.mubr.bf16.vlgmr.msra.gmra.mxu0 %v9110_v19  ;;  %v8294_v19 = vld [vmem:[%s13561_s3 + $0x154] ss:$8 sps:$4 sm:$0xff]  }
  0xca   : > { %1802 = vmatprep.mubr.bf16.mxu0 %v8608_v2  ;;  %3046 = vmatpush1.bf16.msra.mxu0 %v8268_v48 }
  0xcb   : > { %3047 = vmatprep.subr.bf16.mxu0 %v8273_v51  ;;  %2748 = vmatprep.subr.bf16.mxu1 %v8294_v19  ;;  %v8328_v51 = vld [vmem:[%s13561_s3 + $0x1f0] ss:$8 sps:$4 sm:$0xff]  }
  0xcc   : > { %2749 = vmatpush1.bf16.msra.mxu1 %v8292_v26 }
  0xcd   : > { %2750 = vmatprep.subr.bf16.mxu1 %v8300_v20 }
  0xce   : > { %3048 = vmatpush1.bf16.msra.mxu0 %v8271_v52 }
  0xcf   : > { %3049 = vmatprep.subr.bf16.mxu0 %v8276_v54 }
  0xd0   : > { %2751 = vmatpush1.bf16.msra.mxu1 %v8298_v34  ;;  %v8331_v34 = vld [vmem:[%s13561_s3 + $0xb0] ss:$8 sps:$4 sm:$0xff]  }
  0xd1   : > { %1803 = vmatmul.mubr.bf16.gmra.mxu0 %v9104_v14  ;;  %v8285_v14 = vld [vmem:[%s13561_s3 + $0x34] ss:$8 sps:$4 sm:$0xff]   ;;  %2752 = vmatprep.subr.bf16.mxu1 %v8306_v60 }
  0xd2   : > { %1812 = vmatprep.mubr.bf16.mxu0 %v8608_v2  ;;  %3050 = vmatpush1.bf16.msra.mxu0 %v8274_v56 }
  0xd3   : > { %3051 = vmatprep.subr.bf16.mxu0 %v8282_v4 }
  0xd4   : > { %2753 = vmatpush1.bf16.msra.mxu1 %v8304_v3 }
  0xd5   : > { %2754 = vmatprep.subr.bf16.mxu1 %v8312_v30  ;;  %v8337_v30 = vld [vmem:[%s13561_s3 + $0xa0] ss:$8 sps:$4 sm:$0xff]  }
  0xd6   : > { %3052 = vmatpush1.bf16.msra.mxu0 %v8280_v8  ;;  %v8325_v8 = vld [vmem:[%s13561_s3 + $0xc0] ss:$8 sps:$4 sm:$0xff]  }
  0xd7   : > { %3053 = vmatprep.subr.bf16.mxu0 %v8285_v14  ;;  %v8334_v14 = vld [vmem:[%s13561_s3 + $0x1e0] ss:$8 sps:$4 sm:$0xff]  }
  0xd9   : > { %1813 = vmatmul.mubr.bf16.gmra.mxu0 %v9107_v17  ;;  %v8283_v17 = vld [vmem:[%s13561_s3 + $0x30] ss:$8 sps:$4 sm:$0xff]  }
  0xda   : > { %1822 = vmatprep.mubr.bf16.mxu0 %v8608_v2  ;;  %3054 = vmatpush1.bf16.msra.mxu0 %v8283_v17  ;;  %v2010_v17 = vld [vmem:[#allocation3] sm:$0x11] }
  0xdb   : > { %3055 = vmatprep.subr.bf16.mxu0 %v8291_v32  ;;  %v2011_v26 = vsel %vm2009_vm13, 0, %v2010_v17 }
  0xdc   : > { %2012 = vst [vmem:[#allocation3] sm:$0x11] %v2011_v26  ;;  %v8360_v26 = vld [vmem:[%s13561_s3 + $0x194] ss:$8 sps:$4 sm:$0xff]  }
  0xe1   : > { %1823 = vmatmul.mubr.bf16.gmra.mxu0 %v9121_v18  ;;  %v8289_v18 = vld [vmem:[%s13561_s3 + $0x20] ss:$8 sps:$4 sm:$0xff]  }
  0xe2   : > { %1832 = vmatprep.mubr.bf16.mxu0 %v8608_v2  ;;  %3056 = vmatpush1.bf16.msra.mxu0 %v8289_v18  ;;  %v8333_v18 = vld [vmem:[%s13561_s3 + $0xb4] ss:$8 sps:$4 sm:$0xff]  }
  0xe3   : > { %3057 = vmatprep.subr.bf16.mxu0 %v8297_v55 }
  0xe6   : > { %3058 = vmatpush1.bf16.msra.mxu0 %v8295_v21  ;;  %v8340_v21 = vld [vmem:[%s13561_s3 + $0x1d0] ss:$8 sps:$4 sm:$0xff]  }
  0xe7   : > { %3059 = vmatprep.subr.bf16.mxu0 %v8303_v27 }
  0xe9   : > { %1833 = vmatmul.mubr.bf16.gmra.mxu0 %v9133_v44 }
  0xea   : > { %1842 = vmatprep.mubr.bf16.mxu0 %v8608_v2  ;;  %3060 = vmatpush1.bf16.msra.mxu0 %v8301_v6 }
  0xeb   : > { %3061 = vmatprep.subr.bf16.mxu0 %v8309_v37 }
  0xee   : > { %3062 = vmatpush2.bf16.msra.mxu0 %v8307_v39  ;;  %v2021_v39 = vld [vmem:[#allocation3] sm:$0x11] }
  0xef   : > { %3063 = vmatprep.subr.bf16.mxu0 %v8315_v1 }
  0xf1   : > { %1843 = vmatmul.mubr.bf16.gmra.mxu0 %v9145_v22 }
  0xf2   : > { %1852 = vmatprep.mubr.bf16.mxu0 %v8608_v2  ;;  %3064 = vmatpush2.bf16.msra.mxu0 %v8313_v49  ;;  %v8343_v49 = vld [vmem:[%s13561_s3 + $0x90] ss:$8 sps:$4 sm:$0xff]  }
  0xf3   : > { %3065 = vmatprep.subr.bf16.mxu0 %v8321_v58  ;;  %v8351_v58 = vld [vmem:[%s13561_s3 + $0x84] ss:$8 sps:$4 sm:$0xff]  }
  0xf5   : > { %v933_v16 = vpop.f32.mrf.mxu1 }
  0xf6   : > { %3066 = vmatpush2.bf16.msra.mxu0 %v8319_v41 }
  0xf7   : > { %v935_v57 = vpop.f32.mrf.mxu1  ;;  %3067 = vmatprep.subr.bf16.mxu0 %v8327_v61 }
  0xf9   : > { %v937_v44 = vpop.f32.mrf.mxu1  ;;  %v721_v22 = vpop.f32.mrf.mxu0  ;;  %1853 = vmatmul.mubr.bf16.gmra.mxu0 %v9157_v35  ;;  %v8310_v35 = vld [vmem:[%s13561_s3 + $0x120] ss:$8 sps:$4 sm:$0xff]  }
  0xfa   : > { %v9338_v28 = vadd.f32 %v933_v16, %v721_v22  ;;  %1862 = vmatprep.mubr.bf16.mxu0 %v8608_v2  ;;  %2755 = vmatpush1.bf16.msra.mxu1 %v8310_v35  ;;  %v8339_v22 = vld [vmem:[%s13561_s3 + $0xa4] ss:$8 sps:$4 sm:$0xff]  }
  0xfb   : > { %v9332_v15 = vpop.f32.mrf.mxu1  ;;  %v723_v38 = vpop.f32.mrf.mxu0  ;;  %2756 = vmatprep.subr.bf16.mxu1 %v8318_v9  ;;  %3068 = vmatpush2.bf16.msra.mxu0 %v8325_v8  ;;  %v8355_v8 = vld [vmem:[%s13561_s3 + $0x1a0] ss:$8 sps:$4 sm:$0xff]  }
  0xfc   : > { %v9350_v23 = vadd.f32 %v935_v57, %v723_v38  ;;  %v8342_v57 = vld [vmem:[%s13561_s3 + $0x1d4] ss:$8 sps:$4 sm:$0xff]   ;;  %3069 = vmatprep.subr.bf16.mxu0 %v8333_v18  ;;  %v8348_v38 = vld [vmem:[%s13561_s3 + $0x1c4] ss:$8 sps:$4 sm:$0xff]  }
  0xfd   : > { %v943_v31 = vpop.f32.mrf.mxu1  ;;  %v725_v24 = vpop.f32.mrf.mxu0 }
  0xfe   : > { %v9355_v5 = vadd.f32 %v937_v44, %v725_v24  ;;  %2757 = vmatpush1.bf16.msra.mxu1 %v8316_v46  ;;  %v8345_v46 = vld [vmem:[%s13561_s3 + $0x94] ss:$8 sps:$4 sm:$0xff]  }
  0xff   : > { %v945_v47 = vpop.f32.mrf.mxu1  ;;  %v9363_v43 = vpop.f32.mrf.mxu0  ;;  %2758 = vmatprep.subr.bf16.mxu1 %v8324_v13  ;;  %3070 = vmatpush2.bf16.msra.mxu0 %v8331_v34  ;;  %v8354_v13 = vld [vmem:[%s13561_s3 + $0x1b4] ss:$8 sps:$4 sm:$0xff]  }
 0x100   : > { %3071 = vmatprep.subr.bf16.mxu0 %v8339_v22  ;;  %v2068_v34 = vld [vmem:[#allocation3 + $0x88] sm:$0x22] }
 0x101   : > { %v947_v45 = vpop.f32.mrf.mxu1  ;;  %v731_v33 = vpop.f32.mrf.mxu0  ;;  %1863 = vmatmul.mubr.bf16.gmra.mxu0 %v9170_v7  ;;  %v2069_v22 = vsel %vm2067_vm4, 0, %v2068_v34  ;;  %vm2072_vm4 = vmand %vm2061_vm8, %vm2071_vm7  ;;  %vm2133_vm8 = vcmask 1042434   ;;  %vm2136_vm7 = vcmask 1046534  }
 0x102   : > { %v9374_v29 = vadd.f32 %v943_v31, %v731_v33  ;;  %1872 = vmatprep.mubr.bf16.mxu0 %v8608_v2  ;;  %2759 = vmatpush1.bf16.msra.mxu1 %v8322_v40  ;;  %v2022_v33 = vsel %vm2017_vm6, 0, %v2021_v39  ;;  %v8352_v40 = vld [vmem:[%s13561_s3 + $0x1b0] ss:$8 sps:$4 sm:$0xff]   ;;  %2070 = vst [vmem:[#allocation3 + $0x88] sm:$0x22] %v2069_v22  ;;  %vm2075_vm15 = vmor %vm2074_vm11, %vm2072_vm4  ;;  %vm2200_vm4 = vcmask 1043459  }
 0x103   : > { %v9369_v53 = vpop.f32.mrf.mxu1  ;;  %v733_v7 = vpop.f32.mrf.mxu0  ;;  %2760 = vmatprep.subr.bf16.mxu1 %v8330_v0  ;;  %3072 = vmatpush2.bf16.msra.mxu0 %v8337_v30  ;;  %2023 = vst [vmem:[#allocation3] sm:$0x11] %v2022_v33  ;;  %v8349_v0 = vld [vmem:[%s13561_s3 + $0x80] ss:$8 sps:$4 sm:$0xff]   ;;  %vm2135_vm0 = vmand %vm2133_vm8, %vm2134_vm14  ;;  %vm2201_vm11 = vsmask.f32 3328 }
 0x104   : > { %v9386_v25 = vadd.f32 %v945_v47, %v733_v7  ;;  %v8346_v47 = vld [vmem:[%s13561_s3 + $0x1c0] ss:$8 sps:$4 sm:$0xff]   ;;  %3073 = vmatprep.subr.bf16.mxu0 %v8345_v46  ;;  %vm2137_vm1 = vmand %vm2136_vm7, %vm1332_vm5  ;;  %vm2142_vm5 = vsmask.f32 7946 }
 0x105   : > { %v953_v50 = vpop.f32.mrf.mxu1  ;;  %v735_v2 = vpop.f32.mrf.mxu0  ;;  %vm2143_vm10 = vmand %vm2133_vm8, %vm2142_vm5 }
 0x106   : > { %v9391_v59 = vadd.f32 %v947_v45, %v735_v2  ;;  %2761 = vmatpush2.bf16.msra.mxu1 %v8328_v51  ;;  %vm2145_vm12 = vmand %vm2136_vm7, %vm2144_vm9 }
 0x107   : > { %v955_v63 = vpop.f32.mrf.mxu1  ;;  %v9399_v36 = vpop.f32.mrf.mxu0  ;;  %3074 = vmatpush2.bf16.msra.mxu0 %v8343_v49  ;;  %vm2202_vm8 = vmand %vm2200_vm4, %vm2201_vm11 }
 0x108   : > { %3075 = vmatprep.subr.bf16.mxu0 %v8351_v58 }
 0x109   : > { %v957_v48 = vpop.f32.mrf.mxu1  ;;  %v741_v54 = vpop.f32.mrf.mxu0  ;;  %1873 = vmatmul.mubr.bf16.gmra.mxu0 %v9189_v12  ;;  %v8336_v12 = vld [vmem:[%s13561_s3 + $0x1e4] ss:$8 sps:$4 sm:$0xff]  }
 0x10a   : > { %v9420_v4 = vadd.f32 %v953_v50, %v741_v54  ;;  %2762 = vmatprep.subr.bf16.mxu1 %v8336_v12  ;;  %v8357_v54 = vld [vmem:[%s13561_s3 + $0x1a4] ss:$8 sps:$4 sm:$0xff]  }
 0x10b   : > { %v9410_v56 = vpop.f32.mrf.mxu1  ;;  %v743_v10 = vpop.f32.mrf.mxu0  ;;  %2763 = vmatpush2.bf16.msra.mxu1 %v8334_v14  ;;  %3076 = vmatpush2.bf16.msra.mxu0 %v8349_v0 }
 0x10c   : > { %v9435_v19 = vadd.f32 %v955_v63, %v743_v10  ;;  %2764 = vmatprep.subr.bf16.mxu1 %v8342_v57 }
 0x10d   : > { %v963_v11 = vpop.f32.mrf.mxu1  ;;  %v745_v32 = vpop.f32.mrf.mxu0 }
 0x10e   : > { %v9445_v20 = vadd.f32 %v957_v48, %v745_v32  ;;  %v8358_v32 = vld [vmem:[%s13561_s3 + $0x190] ss:$8 sps:$4 sm:$0xff]  }
 0x10f   : > { %v965_v16 = vpop.f32.mrf.mxu1  ;;  %v9453_v55 = vpop.f32.mrf.mxu0  ;;  %2765 = vmatpush2.bf16.msra.mxu1 %v8340_v21 }
 0x110   : > { %2766 = vmatprep.subr.bf16.mxu1 %v8348_v38  ;;  %v8361_v38 = vld [vmem:[%s13561_s3 + $0x180] ss:$8 sps:$4 sm:$0xff]  }
 0x111   : > { %v967_v44 = vpop.f32.mrf.mxu1  ;;  %v751_v60 = vpop.f32.mrf.mxu0 }
 0x112   : > { %v9468_v6 = vadd.f32 %v963_v11, %v751_v60  ;;  %v8363_v60 = vld [vmem:[%s13561_s3 + $0x184] ss:$8 sps:$4 sm:$0xff]  }
 0x113   : > { %v9458_v3 = vpop.f32.mrf.mxu1  ;;  %v753_v35 = vpop.f32.mrf.mxu0  ;;  %2767 = vmatpush2.bf16.msra.mxu1 %v8346_v47 }
 0x114   : > { %v9488_v37 = vadd.f32 %v965_v16, %v753_v35  ;;  %2768 = vmatprep.subr.bf16.mxu1 %v8354_v13 }
 0x115   : > { %v973_v24 = vpop.f32.mrf.mxu1  ;;  %v755_v9 = vpop.f32.mrf.mxu0 }
 0x116   : > { %v9498_v1 = vadd.f32 %v967_v44, %v755_v9 }
 0x117   : > { %v975_v45 = vpop.f32.mrf.mxu1  ;;  %v9506_v7 = vpop.f32.mrf.mxu0  ;;  %2769 = vmatpush2.bf16.msra.mxu1 %v8352_v40  ;;  %v2076_v40 = vld [vmem:[#allocation3 + $0x88] sm:$0x22] }
 0x118   : > { %2770 = vmatprep.subr.bf16.mxu1 %v8357_v54  ;;  %v2077_v0 = vsel %vm2075_vm15, 0, %v2076_v40  ;;  %vm2203_vm15 = vcmask 1047559  }
 0x119   : > { %v977_v50 = vpop.f32.mrf.mxu1  ;;  %v761_v2 = vpop.f32.mrf.mxu0  ;;  %2078 = vst [vmem:[#allocation3 + $0x88] sm:$0x22] %v2077_v0  ;;  %vm2204_vm14 = vmand %vm2203_vm15, %vm521_vm3 }
 0x11a   : > { %v9516_v41 = vadd.f32 %v973_v24, %v761_v2  ;;  %vm2205_vm7 = vmor %vm2204_vm14, %vm2202_vm8  ;;  %vm13768_vm8 = vcmask 1044484   ;;  %vm13769_vm14 = vcmask 1040384  }
 0x11b   : > { %v9511_v63 = vpop.f32.mrf.mxu1  ;;  %v763_v48 = vpop.f32.mrf.mxu0  ;;  %2771 = vmatpush2.bf16.msra.mxu1 %v8355_v8 }
 0x11c   : > { %v9524_v61 = vadd.f32 %v975_v45, %v763_v48  ;;  %2772 = vmatprep.subr.bf16.mxu1 %v8360_v26 }
 0x11d   : > { %v983_v51 = vpop.f32.mrf.mxu1  ;;  %v765_v12 = vpop.f32.mrf.mxu0 }
 0x11e   : > { %v9529_v11 = vadd.f32 %v977_v50, %v765_v12  ;;  %v2018_v50 = vld [vmem:[#allocation3 + $0x30] sm:$0x11] }
 0x11f   : > { %v985_v10 = vpop.f32.mrf.mxu1  ;;  %v9531_v14 = vpop.f32.mrf.mxu0  ;;  %2773 = vmatpush2.bf16.msra.mxu1 %v8358_v32  ;;  %v2019_v58 = vsel %vm2017_vm6, 0, %v2018_v50  ;;  %v2139_v32 = vld [vmem:[#allocation3 + $0x38] sm:$0x44]  ;;  %vm2138_vm6 = vmor %vm2137_vm1, %vm2135_vm0  ;;  %vm2209_vm0 = vsmask.f32 7950 }
 0x120   : > { %2774 = vmatprep.subr.bf16.mxu1 %v8363_v60  ;;  %2020 = vst [vmem:[#allocation3 + $0x30] sm:$0x11] %v2019_v58  ;;  %v2140_v22 = vsel %vm2138_vm6, 0, %v2139_v32  ;;  %vm2211_vm1 = vsmask.f32 7966  ;;  %vm2210_vm6 = vmand %vm2200_vm4, %vm2209_vm0  ;;  %vm13760_vm4 = vcmask 1046528  }
 0x121   : > { %v987_v17 = vpop.f32.mrf.mxu1  ;;  %v771_v16 = vpop.f32.mrf.mxu0  ;;  %2141 = vst [vmem:[#allocation3 + $0x38] sm:$0x44] %v2140_v22  ;;  %vm2212_vm5 = vmand %vm2203_vm15, %vm2211_vm1 }
 0x122   : > { %v9543_v57 = vadd.f32 %v983_v51, %v771_v16  ;;  %vm2213_vm9 = vmor %vm2212_vm5, %vm2210_vm6 }
 0x123   : > { %v9540_v18 = vpop.f32.mrf.mxu1  ;;  %v773_v44 = vpop.f32.mrf.mxu0  ;;  %2775 = vmatpush2.bf16.msra.mxu1 %v8361_v38  ;;  %vm13761_vm11 = vmmov %vm13760_vm4 }
 0x124   : > { %v9548_v30 = vadd.f32 %v985_v10, %v773_v44  ;;  %3417 = vmatprep.subr.bf16.mxu1 %v8366_v62  ;;  %vm13767_vm15 = vmmov %vm13760_vm4 }
 0x125   : > { %v993_v21 = vpop.f32.mrf.mxu1  ;;  %v775_v35 = vpop.f32.mrf.mxu0 }
 0x126   : > { %v9553_v47 = vadd.f32 %v987_v17, %v775_v35 }
 0x127   : > { %v995_v24 = vpop.f32.mrf.mxu1  ;;  %v9555_v39 = vpop.f32.mrf.mxu0  ;;  %v2266_v34 = vld [vmem:[#allocation3 + $0x30] sm:$0x11] }
 0x128   : > { %v2267_v60 = vsel %vm2009_vm13, 0, %v2266_v34  ;;  %vm2146_vm13 = vmor %vm2145_vm12, %vm2143_vm10  ;;  %v2147_v0 = vld [vmem:[#allocation3 + $0x38] sm:$0x44]  ;;  %vm2106_vm10 = vcmask 1042432   ;;  %vm2107_vm12 = vcmask 1046532  }
 0x129   : > { %v997_v9 = vpop.f32.mrf.mxu1  ;;  %v781_v45 = vpop.f32.mrf.mxu0  ;;  %2268 = vst [vmem:[#allocation3 + $0x30] sm:$0x11] %v2267_v60 }
 0x12a   : > { %v9560_v33 = vadd.f32 %v993_v21, %v781_v45 }
 0x12b   : > { %v9557_v46 = vpop.f32.mrf.mxu1  ;;  %v783_v49 = vpop.f32.mrf.mxu0 }
 0x12c   : > { %v9563_v2 = vadd.f32 %v995_v24, %v783_v49 }
 0x12d   : > { %v1003_v13 = vpop.f32.mrf.mxu1  ;;  %v785_v48 = vpop.f32.mrf.mxu0 }
 0x12e   : > { %v9570_v54 = vadd.f32 %v997_v9, %v785_v48 }
 0x12f   : > { %v1005_v51 = vpop.f32.mrf.mxu1  ;;  %v9572_v8 = vpop.f32.mrf.mxu0 }
 0x131   : > { %v1007_v12 = vpop.f32.mrf.mxu1  ;;  %v791_v10 = vpop.f32.mrf.mxu0 }
 0x132   : > { %v9576_v31 = vadd.f32 %v1003_v13, %v791_v10 }
 0x133   : > { %v9574_v17 = vpop.f32.mrf.mxu1  ;;  %v793_v27 = vpop.f32.mrf.mxu0 }
 0x134   : > { %v9581_v16 = vadd.f32 %v1005_v51, %v793_v27  ;;  %v2148_v51 = vsel %vm2146_vm13, 0, %v2147_v0  ;;  %vm9941_vm13 = vmor %vm2106_vm10, %vm2107_vm12 }
 0x135   : > { %v1013_v26 = vpop.f32.mrf.mxu1  ;;  %v795_v44 = vpop.f32.mrf.mxu0  ;;  %2149 = vst [vmem:[#allocation3 + $0x38] sm:$0x44] %v2148_v51 }
 0x136   : > { %v9588_v38 = vadd.f32 %v1007_v12, %v795_v44 }
 0x137   : > { %v1015_v21 = vpop.f32.mrf.mxu1  ;;  %v9590_v35 = vpop.f32.mrf.mxu0 }
 0x139   : > { %v1017_v24 = vpop.f32.mrf.mxu1  ;;  %v801_v9 = vpop.f32.mrf.mxu0 }
 0x13a   : > { %v9592_v49 = vadd.f32 %v1013_v26, %v801_v9 }
 0x13b   : > { %v1019_v45 = vpop.f32.mrf.mxu1  ;;  %v803_v52 = vpop.f32.mrf.mxu0 }
 0x13c   : > { %v9600_v50 = vadd.f32 %v1015_v21, %v803_v52 }
 0x13d   : > { %v9597_v13 = vpop.f32.mrf.mxu1  ;;  %v805_v40 = vpop.f32.mrf.mxu0 }
 0x13e   : > { %v9605_v48 = vadd.f32 %v1017_v24, %v805_v40 }
 0x13f   : > { %v9603_v58 = vpop.f32.mrf.mxu1  ;;  %v807_v12 = vpop.f32.mrf.mxu0 }
 0x140   : > { %v9609_v27 = vadd.f32 %v1019_v45, %v807_v12 }
 0x141   : > { %v9607_v10 = vpop.f32.mrf.mxu1  ;;  %v1186_v26 = vpop.f32.mrf.mxu0 }
 0x142   : > { %v9614_v34 = vadd.f32 %v1186_v26, %v9338_v28 }
 0x143   : > { %v9611_v32 = vpop.f32.mrf.mxu1  ;;  %v1188_v44 = vpop.f32.mrf.mxu0 }
 0x144   : > { %v9619_v60 = vadd.f32 %v1188_v44, %v9350_v23  ;;  %v2206_v23 = vld [vmem:[#allocation3 + $0x40] sm:$0x88] }
 0x145   : > { %v9616_v21 = vpop.f32.mrf.mxu1  ;;  %v1190_v22 = vpop.f32.mrf.mxu0  ;;  %v2207_v51 = vsel %vm2205_vm7, 0, %v2206_v23  ;;  %vm10139_vm7 = vmor %vm13769_vm14, %vm13768_vm8 }
 0x146   : > { %v9624_v9 = vadd.f32 %v1190_v22, %v9355_v5  ;;  %2208 = vst [vmem:[#allocation3 + $0x40] sm:$0x88] %v2207_v51 }
 0x147   : > { %v9621_v24 = vpop.f32.mrf.mxu1  ;;  %v9626_v45 = vpop.f32.mrf.mxu0 }
 0x149   : > { %v9628_v62 = vpop.f32.mrf.mxu1  ;;  %v1196_v28 = vpop.f32.mrf.mxu0 }
 0x14a   : > { %v9636_v40 = vadd.f32 %v1196_v28, %v9374_v29 }
 0x14b   : > { %v9631_v52 = vpop.f32.mrf.mxu1  ;;  %v1198_v5 = vpop.f32.mrf.mxu0 }
 0x14c   : > { %13705 = vst [vmem:[#allocation8_spill] sm:$0xff] %v9631_v52  ;;  %v9641_v12 = vadd.f32 %v1198_v5, %v9386_v25 }
 0x14d   : > { %v9638_v0 = vpop.f32.mrf.mxu1  ;;  %v1200_v26 = vpop.f32.mrf.mxu0 }
 0x14e   : > { %13706 = vst [vmem:[#allocation9_spill] sm:$0xff] %v9638_v0  ;;  %v9646_v22 = vadd.f32 %v1200_v26, %v9391_v59  ;;  %v2214_v59 = vld [vmem:[#allocation3 + $0x40] sm:$0x88] }
 0x14f   : > { %v9643_v44 = vpop.f32.mrf.mxu1  ;;  %v9648_v42 = vpop.f32.mrf.mxu0  ;;  %v2215_v26 = vsel %vm2213_vm9, 0, %v2214_v59 }
 0x150   : > { %13707 = vst [vmem:[#allocation10_spill] sm:$0xff] %v9643_v44  ;;  %2216 = vst [vmem:[#allocation3 + $0x40] sm:$0x88] %v2215_v26 }
 0x151   : > { %v9650_v52 = vpop.f32.mrf.mxu1  ;;  %v1206_v29 = vpop.f32.mrf.mxu0 }
 0x152   : > { %13708 = vst [vmem:[#allocation11_spill] sm:$0xff] %v9650_v52  ;;  %v9656_v25 = vadd.f32 %v1206_v29, %v9420_v4 }
 0x153   : > { %v9652_v28 = vpop.f32.mrf.mxu1  ;;  %v1208_v23 = vpop.f32.mrf.mxu0 }
 0x154   : > { %13709 = vst [vmem:[#allocation12_spill] sm:$0xff] %v9652_v28  ;;  %13710 = vst [vmem:[#allocation13_spill] sm:$0xff] %v9656_v25  ;;  %v9660_v5 = vadd.f32 %v1208_v23, %v9435_v19 }
 0x155   : > { %v9662_v51 = vpop.f32.mrf.mxu1  ;;  %v1210_v52 = vpop.f32.mrf.mxu0 }
 0x156   : > { %13711 = vst [vmem:[#allocation14_spill] sm:$0xff] %v9662_v51  ;;  %v9665_v28 = vadd.f32 %v1210_v52, %v9445_v20 }
 0x157   : > { %v9667_v44 = vpop.f32.mrf.mxu0  ;;  %v9669_v4 = vpop.f32.mrf.mxu1 }
 0x158   : > { %13712 = vst [vmem:[#allocation15_spill] sm:$0xff] %v9669_v4 }
 0x159   : > { %v1216_v29 = vpop.f32.mrf.mxu0  ;;  %v9677_v23 = vpop.f32.mrf.mxu1 }
 0x15a   : > { %v9672_v0 = vadd.f32 %v1216_v29, %v9468_v6  ;;  %13713 = vst [vmem:[#allocation16_spill] sm:$0xff] %v9677_v23 }
 0x15b   : > { %v1218_v25 = vpop.f32.mrf.mxu0  ;;  %v9684_v52 = vpop.f32.mrf.mxu1 }
 0x15c   : > { %v9675_v19 = vadd.f32 %v1218_v25, %v9488_v37  ;;  %13715 = vst [vmem:[#allocation18_spill] sm:$0xff] %v9684_v52 }
 0x15d   : > { %v1220_v59 = vpop.f32.mrf.mxu0  ;;  %v9692_v37 = vpop.f32.mrf.mxu1 }
 0x15e   : > { %v9680_v26 = vadd.f32 %v1220_v59, %v9498_v1 }
 0x15f   : > { %v9682_v20 = vpop.f32.mrf.mxu0  ;;  %v9699_v59 = vpop.f32.mrf.mxu1 }
 0x160   : > { %13714 = vst [vmem:[#allocation17_spill] sm:$0xff] %v9680_v26  ;;  %13718 = vst [vmem:[#allocation21_spill] sm:$0xff] %v9699_v59 }
 0x161   : > { %v1226_v51 = vpop.f32.mrf.mxu0 }
 0x162   : > { %v9687_v4 = vadd.f32 %v1226_v51, %v9516_v41  ;;  %v9704_v51 = vpop.f32.mrf.mxu1 }
 0x163   : > { %v1228_v6 = vpop.f32.mrf.mxu0 }
 0x164   : > { %v9690_v29 = vadd.f32 %v1228_v6, %v9524_v61 }
 0x165   : > { %v1230_v25 = vpop.f32.mrf.mxu0 }
 0x166   : > { %13716 = vst [vmem:[#allocation19_spill] sm:$0xff] %v9690_v29  ;;  %v9695_v23 = vadd.f32 %v1230_v25, %v9529_v11  ;;  %v9714_v25 = vpop.f32.mrf.mxu1 }
 0x167   : > { %v9697_v1 = vpop.f32.mrf.mxu0 }
 0x168   : > { %13717 = vst [vmem:[#allocation20_spill] sm:$0xff] %v9695_v23 }
 0x169   : > { %v1236_v26 = vpop.f32.mrf.mxu0 }
 0x16a   : > { %v9702_v52 = vadd.f32 %v1236_v26, %v9543_v57  ;;  %v9719_v26 = vpop.f32.mrf.mxu1 }
 0x16b   : > { %v1238_v41 = vpop.f32.mrf.mxu0 }
 0x16c   : > { %13719 = vst [vmem:[#allocation22_spill] sm:$0xff] %v9702_v52  ;;  %v9707_v61 = vadd.f32 %v1238_v41, %v9548_v30 }
 0x16d   : > { %v1240_v6 = vpop.f32.mrf.mxu0 }
 0x16e   : > { %13720 = vst [vmem:[#allocation23_spill] sm:$0xff] %v9707_v61  ;;  %v9710_v29 = vadd.f32 %v1240_v6, %v9553_v47  ;;  %v9729_v6 = vpop.f32.mrf.mxu1 }
 0x16f   : > { %v9712_v11 = vpop.f32.mrf.mxu0 }
 0x170   : > { %13721 = vst [vmem:[#allocation24_spill] sm:$0xff] %v9710_v29 }
 0x171   : > { %v1246_v23 = vpop.f32.mrf.mxu0 }
 0x172   : > { %v9717_v59 = vadd.f32 %v1246_v23, %v9560_v33  ;;  %v9734_v23 = vpop.f32.mrf.mxu1 }
 0x173   : > { %v1248_v57 = vpop.f32.mrf.mxu0  ;;  %13726 = vst [vmem:[#allocation29_spill] sm:$0xff] %v9734_v23 }
 0x174   : > { %13722 = vst [vmem:[#allocation25_spill] sm:$0xff] %v9717_v59  ;;  %v9722_v52 = vadd.f32 %v1248_v57, %v9563_v2  ;;  %v13571_v2 = vlaneseq }
 0x175   : > { %v1250_v30 = vpop.f32.mrf.mxu0 }
 0x176   : > { %13723 = vst [vmem:[#allocation26_spill] sm:$0xff] %v9722_v52  ;;  %v9725_v41 = vadd.f32 %v1250_v30, %v9570_v54  ;;  %v9744_v30 = vpop.f32.mrf.mxu1 }
 0x177   : > { %v9727_v47 = vpop.f32.mrf.mxu0 }
 0x178   : > { %13724 = vst [vmem:[#allocation27_spill] sm:$0xff] %v9725_v41  ;;  %v9747_v41 = vshrl.u32 %v13571_v2, 7  ;;  %v9752_v23 = vpop.f32.mrf.mxu1 }
 0x179   : > { %v1256_v29 = vpop.f32.mrf.mxu0 }
 0x17a   : > { %v9732_v61 = vadd.f32 %v1256_v29, %v9576_v31  ;;  %13728 = vst [vmem:[#allocation31_spill] sm:$0xff] %v9747_v41 }
 0x17b   : > { %v1258_v33 = vpop.f32.mrf.mxu0 }
 0x17c   : > { %13725 = vst [vmem:[#allocation28_spill] sm:$0xff] %v9732_v61  ;;  %v9737_v59 = vadd.f32 %v1258_v33, %v9581_v16 }
 0x17d   : > { %v1260_v57 = vpop.f32.mrf.mxu0 }
 0x17e   : > { %v9740_v52 = vadd.f32 %v1260_v57, %v9588_v38  ;;  %v1919_v57 = vld [vmem:[%s13560_s2] sm:$0x3] }
 0x17f   : > { %v9742_v54 = vpop.f32.mrf.mxu0 }
 0x180   : > { %13727 = vst [vmem:[#allocation30_spill] sm:$0xff] %v9740_v52 }
 0x181   : > { %v1266_v31 = vpop.f32.mrf.mxu0 }
 0x182   : > { %v9750_v29 = vadd.f32 %v1266_v31, %v9592_v49  ;;  %v940_v31 = vadd.f32 %v9332_v15, %v9363_v43  ;;  %v13734_v15 = vsub.s32 1, %v9747_v41 }
 0x183   : > { %v1268_v61 = vpop.f32.mrf.mxu0 }
 0x184   : > { %13729 = vst [vmem:[#allocation32_spill] sm:$0xff] %v9750_v29  ;;  %v9755_v16 = vadd.f32 %v1268_v61, %v9600_v50  ;;  %v1594_v50 = vadd.f32 %v9597_v13, %v9614_v34  ;;  %v9769_v61 = vpop.f32.mrf.mxu1  ;;  %v1278_v52 = vadd.f32 %v9626_v45, %v940_v31  ;;  %v9783_v43 = vrot.slane %v1919_v57, %v13734_v15 }
 0x185   : > { %v1270_v33 = vpop.f32.mrf.mxu0  ;;  %v970_v45 = vadd.f32 %v9458_v3, %v9506_v7 }
 0x186   : > { %13730 = vst [vmem:[#allocation33_spill] sm:$0xff] %v9755_v16  ;;  %v9762_v2 = vadd.f32 %v1270_v33, %v9605_v48  ;;  %v13733_v16 = vsub.s32 0, %v9747_v41  ;;  %v1595_v33 = vadd.f32 %v9603_v58, %v9619_v60  ;;  %v9787_v34 = vpop.f32.mrf.mxu1  ;;  %v960_v58 = vadd.f32 %v9410_v56, %v9453_v55 }
 0x187   : > { %v1272_v49 = vpop.f32.mrf.mxu0 }
 0x188   : > { %13731 = vst [vmem:[#allocation34_spill] sm:$0xff] %v9762_v2  ;;  %v9772_v38 = vadd.f32 %v1272_v49, %v9609_v27  ;;  %v9776_v29 = vrot.slane %v1919_v57, %v13733_v16  ;;  %v1596_v27 = vadd.f32 %v9607_v10, %v9624_v9  ;;  %v1597_v57 = vadd.f32 %v9611_v32, %v1278_v52  ;;  %v9805_v55 = vpop.f32.mrf.mxu1 }
 0x189   : > { %v1794_v48 = vpop.f32.mrf.mxu0  ;;  %v980_v9 = vadd.f32 %v9511_v63, %v9531_v14  ;;  %v9812_v63 = vadd.f32 %v9574_v17, %v9590_v35  ;;  %v1599_v14 = vadd.f32 %v9621_v24, %v9641_v12  ;;  %v13738_v17 = vld [vmem:[#allocation10_spill] sm:$0xff]  ;;  %v1290_v24 = vadd.f32 %v9682_v20, %v970_v45  ;;  %v13742_v45 = vld [vmem:[#allocation15_spill] sm:$0xff] }
 0x18a   : > { %13732 = vst [vmem:[#allocation35_spill] sm:$0xff] %v9772_v38  ;;  %v1883_v2 = vadd.f32 %v1794_v48, %v1594_v50  ;;  %v950_v38 = vadd.f32 %v9369_v53, %v9399_v36  ;;  %v1598_v53 = vadd.f32 %v9616_v21, %v9636_v40  ;;  %v1000_v50 = vadd.f32 %v9557_v46, %v9572_v8  ;;  %v13735_v48 = vld [vmem:[#allocation8_spill] sm:$0xff]  ;;  %v13736_v46 = vld [vmem:[#allocation13_spill] sm:$0xff] }
 0x18b   : > { %v1796_v13 = vpop.f32.mrf.mxu0  ;;  %v13737_v8 = vld [vmem:[#allocation9_spill] sm:$0xff]  ;;  %v1603_v35 = vadd.f32 %v13738_v17, %v9660_v5  ;;  %v1294_v5 = vadd.f32 %v9697_v1, %v980_v9 }
 0x18c   : > { %v1931_v16 = vadd.f32 %v9776_v29, %v1883_v2  ;;  %v1884_v49 = vadd.f32 %v1796_v13, %v1595_v33  ;;  %v990_v2 = vadd.f32 %v9540_v18, %v9555_v39  ;;  %v1282_v36 = vadd.f32 %v9648_v42, %v950_v38 }
 0x18d   : > { %v1798_v60 = vpop.f32.mrf.mxu0  ;;  %v1286_v42 = vadd.f32 %v9667_v44, %v960_v58  ;;  %v1600_v39 = vadd.f32 %v9628_v62, %v9646_v22  ;;  %v1602_v15 = vadd.f32 %v13737_v8, %v13736_v46  ;;  %v1575_v44 = vpop.f32.mrf.mxu1  ;;  %v13740_v58 = vld [vmem:[#allocation12_spill] sm:$0xff]  ;;  %v1302_v8 = vadd.f32 %v9727_v47, %v1000_v50 }
 0x18e   : > { %v1932_v31 = vadd.f32 %v9783_v43, %v1884_v49  ;;  %v1885_v10 = vadd.f32 %v1798_v60, %v1596_v27  ;;  %v1967_v3 = vmax.f32 %v1931_v16, 0.0  ;;  %v1601_v33 = vadd.f32 %v13735_v48, %v1282_v36  ;;  %v13739_v16 = vld [vmem:[#allocation11_spill] sm:$0xff]  ;;  %v13748_v48 = vld [vmem:[#allocation20_spill] sm:$0xff] }
 0x18f   : > { %v1800_v56 = vpop.f32.mrf.mxu0  ;;  %v1604_v49 = vadd.f32 %v13739_v16, %v9665_v28  ;;  %v1605_v60 = vadd.f32 %v13740_v58, %v1286_v42  ;;  %v13744_v28 = vld [vmem:[#allocation16_spill] sm:$0xff]  ;;  %v1298_v1 = vadd.f32 %v9712_v11, %v990_v2  ;;  %v9856_v9 = vpop.f32.mrf.mxu1  ;;  %v9866_v46 = vadd.f32 %v9704_v51, %v13748_v48  ;;  %v13752_v51 = vld [vmem:[#allocation29_spill] sm:$0xff] }
 0x190   : > { %v1968_v7 = vmax.f32 %v1932_v31, 0.0  ;;  %v1933_v32 = vadd.f32 %v9776_v29, %v1885_v10  ;;  %v1886_v52 = vadd.f32 %v1800_v56, %v1597_v57  ;;  %v13741_v57 = vld [vmem:[#allocation14_spill] sm:$0xff]  ;;  %v9839_v10 = vadd.f32 %v13742_v45, %v9675_v19  ;;  %v13753_v58 = vld [vmem:[#allocation25_spill] sm:$0xff] }
 0x191   : > { %v1804_v18 = vpop.f32.mrf.mxu0  ;;  %v9834_v31 = vadd.f32 %v13741_v57, %v9672_v0  ;;  %v9853_v0 = vadd.f32 %v9692_v37, %v9687_v4  ;;  %v9869_v4 = vadd.f32 %v9714_v25, %v1294_v5  ;;  %v13749_v37 = vld [vmem:[#allocation22_spill] sm:$0xff]  ;;  %v9886_v25 = vadd.f32 %v9744_v30, %v1298_v1  ;;  %v9888_v16 = vpop.f32.mrf.mxu1 }
 0x192   : > { %v7977_v21 = vpack.c.bf16 %v1968_v7, %v1967_v3  ;;  %v1934_v40 = vadd.f32 %v9783_v43, %v1886_v52  ;;  %v1887_v38 = vadd.f32 %v1804_v18, %v1598_v53  ;;  %v1969_v13 = vmax.f32 %v1933_v32, 0.0  ;;  %v13743_v3 = vld [vmem:[#allocation17_spill] sm:$0xff]  ;;  %v13745_v32 = vld [vmem:[#allocation18_spill] sm:$0xff] }
 0x193   : > { %v1806_v12 = vpop.f32.mrf.mxu0  ;;  %v9846_v7 = vadd.f32 %v13744_v28, %v13743_v3  ;;  %v9849_v52 = vadd.f32 %v13745_v32, %v1290_v24  ;;  %v9873_v11 = vadd.f32 %v9719_v26, %v13749_v37  ;;  %v13750_v24 = vld [vmem:[#allocation23_spill] sm:$0xff]  ;;  %v9894_v57 = vadd.f32 %v9752_v23, %v13753_v58  ;;  %v13754_v5 = vld [vmem:[#allocation26_spill] sm:$0xff]  ;;  %v13756_v23 = vld [vmem:[#allocation28_spill] sm:$0xff] }
 0x194   : > { %2056 = vst [vmem:[#allocation3] sm:$0xee] %v7977_v21  ;;  %v1970_v27 = vmax.f32 %v1934_v40, 0.0  ;;  %v9827_v62 = vadd.f32 %v9776_v29, %v1887_v38  ;;  %v1888_v22 = vadd.f32 %v1806_v12, %v1599_v14  ;;  %v13746_v21 = vld [vmem:[#allocation19_spill] sm:$0xff]  ;;  %v13747_v40 = vld [vmem:[#allocation21_spill] sm:$0xff]  ;;  %v9879_v12 = vadd.f32 %v9729_v6, %v13750_v24 }
 0x195   : > { %v1808_v20 = vpop.f32.mrf.mxu0  ;;  %v9862_v38 = vadd.f32 %v13747_v40, %v13746_v21  ;;  %v9898_v30 = vadd.f32 %v9769_v61, %v13754_v5  ;;  %v9910_v1 = vadd.f32 %v1575_v44, %v13756_v23 }
 0x196   : > { %v9841_v53 = vpack.c.bf16 %v1970_v27, %v1969_v13  ;;  %v1936_v36 = vadd.f32 %v9783_v43, %v1888_v22  ;;  %v1889_v56 = vadd.f32 %v1808_v20, %v1600_v39  ;;  %v1971_v14 = vmax.f32 %v9827_v62, 0.0  ;;  %v13751_v13 = vld [vmem:[#allocation24_spill] sm:$0xff]  ;;  %v13755_v20 = vld [vmem:[#allocation27_spill] sm:$0xff] }
 0x197   : > { %v1810_v19 = vpop.f32.mrf.mxu0  ;;  %v9883_v27 = vadd.f32 %v13752_v51, %v13751_v13  ;;  %v9902_v45 = vadd.f32 %v9787_v34, %v13755_v20  ;;  %v9912_v34 = vpop.f32.mrf.mxu1  ;;  %v1306_v20 = vadd.f32 %v9742_v54, %v9812_v63 }
 0x198   : > { %v1972_v42 = vmax.f32 %v1936_v36, 0.0  ;;  %v1937_v18 = vadd.f32 %v9776_v29, %v1889_v56  ;;  %v1890_v39 = vadd.f32 %v1810_v19, %v1601_v33 }
 0x199   : > { %v1814_v2 = vpop.f32.mrf.mxu0 }
 0x19a   : > { %v1938_v33 = vadd.f32 %v9783_v43, %v1890_v39  ;;  %v1891_v17 = vadd.f32 %v1814_v2, %v1602_v15  ;;  %v1973_v62 = vmax.f32 %v1937_v18, 0.0 }
 0x19b   : > { %v1816_v26 = vpop.f32.mrf.mxu0  ;;  %v2269_v22 = vld [vmem:[#allocation3] sm:$0xff] }
 0x19c   : > { %v1974_v47 = vmax.f32 %v1938_v33, 0.0  ;;  %v1939_v50 = vadd.f32 %v9776_v29, %v1891_v17  ;;  %v1892_v15 = vadd.f32 %v1816_v26, %v1603_v35  ;;  %v7733_v6 = vcombine.low %v2269_v22, %v9841_v53  ;;  %v3166_v32 = vld [vmem:[#allocation3] sm:$0xee] }
 0x19d   : > { %v1818_v36 = vpop.f32.mrf.mxu0  ;;  %v7734_v56 = vcombine.high %v2269_v22, %v9841_v53  ;;  %v9906_v35 = vadd.f32 %v9805_v55, %v1302_v8  ;;  %v9917_v2 = vpack.c.bf16 %v1973_v62, %v1971_v14  ;;  %v7849_v8 = vcombine.low %v3166_v32, %v9841_v53  ;;  %v1585_v62 = vpop.f32.mrf.mxu1 }
 0x19e   : > { %v1940_v3 = vadd.f32 %v9783_v43, %v1892_v15  ;;  %v1893_v28 = vadd.f32 %v1818_v36, %v1604_v49  ;;  %v1975_v19 = vmax.f32 %v1939_v50, 0.0  ;;  %v2427_v18 = vshll.u32 %v7733_v6, 16 }
 0x19f   : > { %v1820_v61 = vpop.f32.mrf.mxu0  ;;  %v2439_v39 = vshll.u32 %v7734_v56, 16  ;;  %3077 = vmatprep.mubr.bf16.mxu0 %v7734_v56  ;;  %v9915_v55 = vpack.c.bf16 %v1974_v47, %v1972_v42  ;;  %v7850_v13 = vcombine.high %v3166_v32, %v9841_v53  ;;  %v2437_v42 = vshrl.u32 %v7734_v56, 16 }
 0x1a0   : > { %v1976_v21 = vmax.f32 %v1940_v3, 0.0  ;;  %v1941_v40 = vadd.f32 %v9776_v29, %v1893_v28  ;;  %v1894_v48 = vadd.f32 %v1820_v61, %v1605_v60  ;;  %3078 = vmatmul.mubr.bf16.vlgmr.msra.gmra.mxu0 %v7733_v6  ;;  %v2429_v49 = vrot.slane %v2427_v18, 1  ;;  %v8364_v28 = vld [vmem:[%s13561_s3 + $0x270] ss:$8 sps:$4 sm:$0xff]   ;;  %v1587_v61 = vpop.f32.mrf.mxu1 }
 0x1a1   : > { %v1824_v37 = vpop.f32.mrf.mxu0  ;;  %v2441_v44 = vrot.slane %v2439_v39, 1  ;;  %3087 = vmatprep.mubr.bf16.mxu0 %v9915_v55  ;;  %v2425_v60 = vshrl.u32 %v7733_v6, 16  ;;  %v2444_v26 = vshll.u32 %v9915_v55, 16  ;;  %v2432_v14 = vshll.u32 %v9917_v2, 16 }
 0x1a2   : > { %v7981_v33 = vpack.c.bf16 %v1976_v21, %v1975_v19  ;;  %v1942_v17 = vadd.f32 %v9783_v43, %v1894_v48  ;;  %v1895_v24 = vadd.f32 %v1824_v37, %v9834_v31  ;;  %v1977_v22 = vmax.f32 %v1941_v40, 0.0 }
 0x1a3   : > { %v1826_v51 = vpop.f32.mrf.mxu0  ;;  %v2442_v58 = vor.u32 %v2441_v44, %v2437_v42  ;;  %v9928_v5 = vrot.slane %v2444_v26, 1  ;;  %v2430_v53 = vor.u32 %v2429_v49, %v2425_v60  ;;  %v9930_v6 = vrot.slane %v2432_v14, 1 }
 0x1a4   : > { %2060 = vst [vmem:[#allocation3 + $0x88] sm:$0x11] %v7981_v33  ;;  %v1978_v47 = vmax.f32 %v1942_v17, 0.0  ;;  %v1943_v50 = vadd.f32 %v9776_v29, %v1895_v24  ;;  %v1896_v15 = vadd.f32 %v1826_v51, %v9839_v10  ;;  %v7689_v10 = vrot.slane %v7981_v33, 9  ;;  %v13759_v17 = vld [vmem:[#allocation30_spill] sm:$0xff] }
 0x1a5   : > { %v1828_v31 = vpop.f32.mrf.mxu0  ;;  %v2447_v54 = vsel %vm521_vm3, %v2442_v58, %v9928_v5  ;;  %v2435_v63 = vsel %vm521_vm3, %v2430_v53, %v9930_v6  ;;  %v3205_v19 = vrot.slane %v7849_v8, 1  ;;  %v3208_v49 = vrot.slane %v7850_v13, 1  ;;  %v8367_v13 = vld [vmem:[%s13561_s3 + $0x260] ss:$8 sps:$4 sm:$0xff]  }
 0x1a6   : > { %v7983_v36 = vpack.c.bf16 %v1978_v47, %v1977_v22  ;;  %v1944_v56 = vadd.f32 %v9783_v43, %v1896_v15  ;;  %v1897_v3 = vadd.f32 %v1828_v31, %v9846_v7  ;;  %v8369_v7 = vld [vmem:[%s13561_s3 + $0x264] ss:$8 sps:$4 sm:$0xff]   ;;  %v1979_v39 = vmax.f32 %v1943_v50, 0.0  ;;  %2776 = vmatprep.mubr.bf16.mxu1 %v2447_v54 }
 0x1a7   : > { %v1830_v23 = vpop.f32.mrf.mxu0  ;;  %2777 = vmatmul.mubr.bf16.vlgmr.msra.gmra.mxu1 %v2435_v63  ;;  %v3209_v44 = vrot.slane %v9915_v55, 1  ;;  %v3206_v33 = vrot.slane %v9917_v2, 1  ;;  %v9959_v8 = vadd.f32 %v9856_v9, %v9737_v59  ;;  %v9963_v24 = vadd.f32 %v9888_v16, %v13759_v17  ;;  %v8372_v9 = vld [vmem:[%s13561_s3 + $0x254] ss:$8 sps:$4 sm:$0xff]   ;;  %v13762_v15 = vld [vmem:[#allocation32_spill] sm:$0xff] }
 0x1a8   : > { %v2111_v18 = vrot.slane %v7983_v36, 5  ;;  %v1980_v21 = vmax.f32 %v1944_v56, 0.0  ;;  %v1898_v40 = vadd.f32 %v1830_v23, %v9849_v52  ;;  %3088 = vmatmul.mubr.bf16.gmra.mxu0 %v9917_v2  ;;  %v1945_v48 = vadd.f32 %v9776_v29, %v1897_v3  ;;  %3418 = vmatpush1.bf16.msra.mxu1 %v8364_v28  ;;  %v13763_v3 = vld [vmem:[#allocation33_spill] sm:$0xff] }
 0x1a9   : > { %v1834_v37 = vpop.f32.mrf.mxu0  ;;  %3419 = vmatprep.subr.bf16.mxu1 %v8369_v7  ;;  %v9978_v16 = vsel %vm13760_vm4, %v3208_v49, %v3209_v44  ;;  %v9983_v26 = vsel %vm13761_vm11, %v3205_v19, %v3206_v33  ;;  %v9986_v14 = vadd.f32 %v9912_v34, %v1306_v20  ;;  %v9990_v31 = vadd.f32 %v1585_v62, %v13762_v15  ;;  %v13764_v62 = vld [vmem:[#allocation34_spill] sm:$0xff] }
 0x1aa   : > { %v2112_v52 = vsel %vm9941_vm13, %v7689_v10, %v2111_v18  ;;  %v7984_v60 = vpack.c.bf16 %v1980_v21, %v1979_v39  ;;  %v1946_v51 = vadd.f32 %v9783_v43, %v1898_v40  ;;  %v1899_v42 = vadd.f32 %v1834_v37, %v9853_v0  ;;  %v1589_v0 = vpop.f32.mrf.mxu1 }
 0x1ab   : > { %2128 = vst [vmem:[#allocation3 + $0x88] sm:$0xcc] %v2112_v52  ;;  %v1836_v59 = vpop.f32.mrf.mxu0  ;;  %v2113_v22 = vrot.slane %v2111_v18, 4  ;;  %v1981_v58 = vmax.f32 %v1945_v48, 0.0  ;;  %v9994_v28 = vadd.f32 %v1587_v61, %v13763_v3  ;;  %v10004_v23 = vadd.f32 %v1589_v0, %v13764_v62  ;;  %v8375_v61 = vld [vmem:[%s13561_s3 + $0x244] ss:$8 sps:$4 sm:$0xff]  }
 0x1ac   : > { %v2114_v47 = vrot.slane %v7984_v60, 5  ;;  %v1900_v50 = vadd.f32 %v1836_v59, %v9862_v38  ;;  %v1982_v53 = vmax.f32 %v1946_v51, 0.0  ;;  %v1947_v36 = vadd.f32 %v9776_v29, %v1899_v42  ;;  %3420 = vmatpush1.bf16.msra.mxu1 %v8367_v13  ;;  %v8370_v38 = vld [vmem:[%s13561_s3 + $0x250] ss:$8 sps:$4 sm:$0xff]   ;;  %v8373_v59 = vld [vmem:[%s13561_s3 + $0x240] ss:$8 sps:$4 sm:$0xff]  }
 0x1ad   : > { %v1838_v56 = vpop.f32.mrf.mxu0  ;;  %v2456_v7 = vshrl.u32 %v9915_v55, 16  ;;  %v2448_v19 = vshrl.u32 %v9917_v2, 16  ;;  %3421 = vmatprep.subr.bf16.mxu1 %v8372_v9 }
 0x1ae   : > { %v2115_v34 = vsel %vm9941_vm13, %v2113_v22, %v2114_v47  ;;  %v1948_v20 = vadd.f32 %v9783_v43, %v1900_v50  ;;  %v1901_v10 = vadd.f32 %v1838_v56, %v9866_v46  ;;  %v7985_v54 = vpack.c.bf16 %v1982_v53, %v1981_v58 }
 0x1af   : > { %v1840_v63 = vpop.f32.mrf.mxu0  ;;  %v1983_v46 = vmax.f32 %v1947_v36, 0.0  ;;  %v2116_v40 = vrot.slane %v2114_v47, 4  ;;  %v2458_v49 = vor.u32 %v2456_v7, %v9928_v5  ;;  %v2450_v17 = vor.u32 %v2448_v19, %v9930_v6 }
 0x1b0   : > { %v1984_v18 = vmax.f32 %v1948_v20, 0.0  ;;  %v1949_v39 = vadd.f32 %v9776_v29, %v1901_v10  ;;  %v1902_v21 = vadd.f32 %v1840_v63, %v9869_v4  ;;  %v2117_v48 = vrot.slane %v7985_v54, 5  ;;  %3422 = vmatpush1.bf16.msra.mxu1 %v8370_v38 }
 0x1b1   : > { %v1844_v37 = vpop.f32.mrf.mxu0  ;;  %3423 = vmatprep.subr.bf16.mxu1 %v8375_v61 }
 0x1b2   : > { %v7986_v52 = vpack.c.bf16 %v1984_v18, %v1983_v46  ;;  %v1985_v60 = vmax.f32 %v1949_v39, 0.0  ;;  %v1950_v13 = vadd.f32 %v9783_v43, %v1902_v21  ;;  %v1903_v51 = vadd.f32 %v1844_v37, %v9873_v11  ;;  %v2273_v42 = vld [vmem:[#allocation3 + $0x88] sm:$0xff] }
 0x1b3   : > { %v2118_v4 = vsel %vm9941_vm13, %v2116_v40, %v2117_v48  ;;  %v2119_v9 = vrot.slane %v2117_v48, 4  ;;  %v1846_v0 = vpop.f32.mrf.mxu0  ;;  %v10022_v5 = vcombine.high %v2273_v42, %v2115_v34  ;;  %v10024_v6 = vcombine.low %v2273_v42, %v2115_v34  ;;  %v8378_v11 = vld [vmem:[%s13561_s3 + $0x234] ss:$8 sps:$4 sm:$0xff]   ;;  %v8376_v18 = vld [vmem:[%s13561_s3 + $0x230] ss:$8 sps:$4 sm:$0xff]  }
 0x1b4   : > { %v2120_v22 = vrot.slane %v7986_v52, 5  ;;  %v1986_v47 = vmax.f32 %v1950_v13, 0.0  ;;  %v1951_v50 = vadd.f32 %v9776_v29, %v1903_v51  ;;  %v1904_v15 = vadd.f32 %v1846_v0, %v9879_v12  ;;  %3424 = vmatpush1.bf16.msra.mxu1 %v8373_v59 }
 0x1b5   : > { %v1848_v58 = vpop.f32.mrf.mxu0  ;;  %3097 = vmatprep.mubr.bf16.mxu0 %v10022_v5  ;;  %v2460_v53 = vshll.u32 %v10022_v5, 16  ;;  %v2452_v36 = vshll.u32 %v10024_v6, 16  ;;  %v2472_v56 = vshrl.u32 %v10022_v5, 16  ;;  %v2464_v3 = vshrl.u32 %v10024_v6, 16  ;;  %3425 = vmatprep.subr.bf16.mxu1 %v8378_v11 }
 0x1b6   : > { %v2121_v34 = vsel %vm9941_vm13, %v2119_v9, %v2120_v22  ;;  %v2122_v20 = vrot.slane %v2120_v22, 4  ;;  %v7987_v10 = vpack.c.bf16 %v1986_v47, %v1985_v60  ;;  %v1987_v38 = vmax.f32 %v1951_v50, 0.0  ;;  %3098 = vmatmul.mubr.bf16.gmra.mxu0 %v10024_v6 }
 0x1b7   : > { %v1952_v12 = vadd.f32 %v9783_v43, %v1904_v15  ;;  %v1905_v62 = vadd.f32 %v1848_v58, %v9883_v27  ;;  %v1850_v54 = vpop.f32.mrf.mxu0  ;;  %v2462_v63 = vrot.slane %v2460_v53, 1  ;;  %v2454_v7 = vrot.slane %v2452_v36, 1  ;;  %v8384_v53 = vld [vmem:[%s13561_s3 + $0x214] ss:$8 sps:$4 sm:$0xff]  }
 0x1b8   : > { %2132 = vst [vmem:[#allocation3 + $0x38] sm:$0x33] %v2122_v20  ;;  %v2177_v19 = vrot.slane %v7987_v10, 6  ;;  %v1906_v61 = vadd.f32 %v1850_v54, %v9886_v25  ;;  %v10042_v32 = vcombine.high %v2118_v4, %v2121_v34  ;;  %v10044_v46 = vcombine.low %v2118_v4, %v2121_v34  ;;  %v8381_v25 = vld [vmem:[%s13561_s3 + $0x224] ss:$8 sps:$4 sm:$0xff]   ;;  %3426 = vmatpush1.bf16.msra.mxu1 %v8376_v18 }
 0x1b9   : > { %v1988_v39 = vmax.f32 %v1952_v12, 0.0  ;;  %v1953_v21 = vadd.f32 %v9776_v29, %v1905_v62  ;;  %v1854_v27 = vpop.f32.mrf.mxu0  ;;  %v2463_v40 = vsel %vm521_vm3, %v2458_v49, %v2462_v63  ;;  %v2455_v48 = vsel %vm521_vm3, %v2450_v17, %v2454_v7  ;;  %3427 = vmatprep.subr.bf16.mxu1 %v8381_v25  ;;  %v13766_v18 = vld [vmem:[#allocation35_spill] sm:$0xff] }
 0x1ba   : > { %v2178_v37 = vrot.slane %v2177_v19, 4  ;;  %2195 = vst [vmem:[#allocation3 + $0x38] sm:$0x88] %v2177_v19  ;;  %v1954_v52 = vadd.f32 %v9783_v43, %v1906_v61  ;;  %v1907_v60 = vadd.f32 %v1854_v27, %v9894_v57  ;;  %2786 = vmatprep.mubr.bf16.mxu1 %v2463_v40  ;;  %3107 = vmatprep.mubr.bf16.mxu0 %v10042_v32  ;;  %v2476_v49 = vshll.u32 %v10042_v32, 16  ;;  %v8379_v57 = vld [vmem:[%s13561_s3 + $0x220] ss:$8 sps:$4 sm:$0xff]  }
 0x1bb   : > { %v2474_v13 = vor.u32 %v2472_v56, %v2462_v63  ;;  %v7988_v51 = vpack.c.bf16 %v1988_v39, %v1987_v38  ;;  %v1989_v42 = vmax.f32 %v1953_v21, 0.0  ;;  %v1856_v59 = vpop.f32.mrf.mxu0  ;;  %2787 = vmatmul.mubr.bf16.gmra.mxu1 %v2455_v48  ;;  %v2466_v17 = vor.u32 %v2464_v3, %v2454_v7  ;;  %v8387_v25 = vld [vmem:[%s13561_s3 + $0x204] ss:$8 sps:$4 sm:$0xff]  }
 0x1bc   : > { %v1990_v4 = vmax.f32 %v1954_v52, 0.0  ;;  %v1955_v9 = vadd.f32 %v9776_v29, %v1907_v60  ;;  %v1908_v0 = vadd.f32 %v1856_v59, %v9898_v30  ;;  %v2468_v11 = vshll.u32 %v10044_v46, 16  ;;  %v1591_v30 = vpop.f32.mrf.mxu1  ;;  %3428 = vmatpush1.bf16.msra.mxu1 %v8379_v57 }
 0x1bd   : > { %v2179_v22 = vrot.slane %v7988_v51, 6  ;;  %v1858_v47 = vpop.f32.mrf.mxu0  ;;  %v2478_v50 = vrot.slane %v2476_v49, 1  ;;  %v2488_v15 = vshrl.u32 %v10042_v32, 16  ;;  %v2480_v58 = vshrl.u32 %v10044_v46, 16  ;;  %3429 = vmatprep.subr.bf16.mxu1 %v8384_v53 }
 0x1be   : > { %v7989_v36 = vpack.c.bf16 %v1990_v4, %v1989_v42  ;;  %v1991_v56 = vmax.f32 %v1955_v9, 0.0  ;;  %v1956_v3 = vadd.f32 %v9783_v43, %v1908_v0  ;;  %v1909_v34 = vadd.f32 %v1858_v47, %v9902_v45  ;;  %3108 = vmatmul.mubr.bf16.gmra.mxu0 %v10044_v46  ;;  %v8382_v45 = vld [vmem:[%s13561_s3 + $0x210] ss:$8 sps:$4 sm:$0xff]  }
 0x1bf   : > { %v2180_v10 = vsel %vm8810_vm2, %v2178_v37, %v2179_v22  ;;  %v2181_v38 = vrot.slane %v2179_v22, 4  ;;  %v1860_v12 = vpop.f32.mrf.mxu0  ;;  %v2479_v62 = vsel %vm521_vm3, %v2474_v13, %v2478_v50  ;;  %v2470_v54 = vrot.slane %v2468_v11, 1  ;;  %v8385_v11 = vld [vmem:[%s13561_s3 + $0x200] ss:$8 sps:$4 sm:$0xff]  }
 0x1c0   : > { %v2182_v63 = vrot.slane %v7989_v36, 6  ;;  %v1992_v7 = vmax.f32 %v1956_v3, 0.0  ;;  %v1957_v19 = vadd.f32 %v9776_v29, %v1909_v34  ;;  %v1910_v61 = vadd.f32 %v1860_v12, %v9906_v35  ;;  %2796 = vmatprep.mubr.bf16.mxu1 %v2479_v62  ;;  %3430 = vmatpush1.bf16.msra.mxu1 %v8382_v45  ;;  %v8393_v45 = vld [vmem:[%s13561_s3 + $0x2e4] ss:$8 sps:$4 sm:$0xff]  }
 0x1c1   : > { %v10082_v39 = vadd.f32 %v1591_v30, %v13766_v18  ;;  %v1864_v21 = vpop.f32.mrf.mxu0  ;;  %v2471_v27 = vsel %vm521_vm3, %v2466_v17, %v2470_v54  ;;  %v2277_v40 = vld [vmem:[#allocation3 + $0x38] sm:$0xff]  ;;  %v2490_v48 = vor.u32 %v2488_v15, %v2478_v50  ;;  %v3213_v35 = vrot.slane %v10022_v5, 1  ;;  %3431 = vmatprep.subr.bf16.mxu1 %v8387_v25  ;;  %v8390_v15 = vld [vmem:[%s13561_s3 + $0x2f4] ss:$8 sps:$4 sm:$0xff]  }
 0x1c2   : > { %v2183_v37 = vsel %vm8810_vm2, %v2181_v38, %v2182_v63  ;;  %v2184_v52 = vrot.slane %v2182_v63, 4  ;;  %v7990_v60 = vpack.c.bf16 %v1992_v7, %v1991_v56  ;;  %v2482_v13 = vor.u32 %v2480_v58, %v2470_v54  ;;  %v8388_v54 = vld [vmem:[%s13561_s3 + $0x2f0] ss:$8 sps:$4 sm:$0xff]  }
 0x1c3   : > { %v1958_v51 = vadd.f32 %v9783_v43, %v1910_v61  ;;  %v1911_v42 = vadd.f32 %v1864_v21, %v9910_v1  ;;  %v1866_v59 = vpop.f32.mrf.mxu0  ;;  %2797 = vmatmul.mubr.bf16.gmra.mxu1 %v2471_v27  ;;  %v10093_v49 = vcombine.high %v2277_v40, %v2180_v10  ;;  %v10095_v17 = vcombine.low %v2277_v40, %v2180_v10 }
 0x1c4   : > { %v2185_v4 = vrot.slane %v7990_v60, 6  ;;  %v1993_v9 = vmax.f32 %v1957_v19, 0.0  ;;  %v1912_v0 = vadd.f32 %v1866_v59, %v9959_v8  ;;  %v10106_v1 = vsel %vm13767_vm15, %v3209_v44, %v3213_v35  ;;  %3432 = vmatpush1.bf16.msra.mxu1 %v8385_v11  ;;  %v8391_v59 = vld [vmem:[%s13561_s3 + $0x2e0] ss:$8 sps:$4 sm:$0xff]   ;;  %v8396_v11 = vld [vmem:[%s13561_s3 + $0x2d4] ss:$8 sps:$4 sm:$0xff]  }
 0x1c5   : > { %v1994_v57 = vmax.f32 %v1958_v51, 0.0  ;;  %v1959_v22 = vadd.f32 %v9776_v29, %v1911_v42  ;;  %v1868_v47 = vpop.f32.mrf.mxu0  ;;  %3117 = vmatprep.mubr.bf16.mxu0 %v10093_v49  ;;  %v2492_v8 = vshll.u32 %v10093_v49, 16  ;;  %v2484_v50 = vshll.u32 %v10095_v17, 16  ;;  %3433 = vmatprep.subr.bf16.mxu1 %v8390_v15 }
 0x1c6   : > { %v2186_v55 = vsel %vm8810_vm2, %v2184_v52, %v2185_v4  ;;  %v2187_v44 = vrot.slane %v2185_v4, 4  ;;  %v1960_v58 = vadd.f32 %v9783_v43, %v1912_v0  ;;  %v1913_v53 = vadd.f32 %v1868_v47, %v9963_v24  ;;  %3118 = vmatmul.mubr.bf16.gmra.mxu0 %v10095_v17 }
 0x1c7   : > { %v7991_v30 = vpack.c.bf16 %v1994_v57, %v1993_v9  ;;  %v1995_v36 = vmax.f32 %v1959_v22, 0.0  ;;  %v1870_v56 = vpop.f32.mrf.mxu0  ;;  %v2494_v3 = vrot.slane %v2492_v8, 1  ;;  %v2486_v34 = vrot.slane %v2484_v50, 1 }
 0x1c8   : > { %v1996_v10 = vmax.f32 %v1960_v58, 0.0  ;;  %v1961_v38 = vadd.f32 %v9776_v29, %v1913_v53  ;;  %v1914_v12 = vadd.f32 %v1870_v56, %v9986_v14  ;;  %v10122_v62 = vcombine.high %v2183_v37, %v2186_v55  ;;  %3434 = vmatpush2.bf16.msra.mxu1 %v8388_v54 }
 0x1c9   : > { %v2188_v24 = vrot.slane %v7991_v30, 6  ;;  %v7700_v63 = vrot.slane %v7991_v30, 11  ;;  %v1874_v7 = vpop.f32.mrf.mxu0  ;;  %v2495_v19 = vsel %vm521_vm3, %v2490_v48, %v2494_v3  ;;  %v2487_v61 = vsel %vm521_vm3, %v2482_v13, %v2486_v34  ;;  %3435 = vmatprep.subr.bf16.mxu1 %v8393_v45 }
 0x1ca   : > { %v7993_v14 = vpack.c.bf16 %v1996_v10, %v1995_v36  ;;  %v1997_v18 = vmax.f32 %v1961_v38, 0.0  ;;  %v1962_v21 = vadd.f32 %v9783_v43, %v1914_v12  ;;  %v1915_v27 = vadd.f32 %v1874_v7, %v9990_v31  ;;  %2806 = vmatprep.mubr.bf16.mxu1 %v2495_v19  ;;  %3127 = vmatprep.mubr.bf16.mxu0 %v10122_v62 }
 0x1cb   : > { %v2189_v40 = vsel %vm8810_vm2, %v2187_v44, %v2188_v24  ;;  %v1876_v25 = vpop.f32.mrf.mxu0  ;;  %2807 = vmatmul.mubr.bf16.gmra.mxu1 %v2487_v61  ;;  %v10143_v52 = vcombine.low %v2183_v37, %v2186_v55  ;;  %v2504_v60 = vshrl.u32 %v10093_v49, 16  ;;  %v2508_v31 = vshll.u32 %v10122_v62, 16  ;;  %vm13772_vm2 = vmmov %vm13760_vm4 }
 0x1cc   : > { %2199 = vst [vmem:[#allocation3 + $0x40] sm:$0x77] %v2189_v40  ;;  %v2247_v13 = vrot.slane %v7993_v14, 7  ;;  %v1998_v51 = vmax.f32 %v1962_v21, 0.0  ;;  %v1963_v20 = vadd.f32 %v9776_v29, %v1915_v27  ;;  %v1916_v42 = vadd.f32 %v1876_v25, %v9994_v28  ;;  %3436 = vmatpush2.bf16.msra.mxu1 %v8391_v59  ;;  %v8402_v27 = vld [vmem:[%s13561_s3 + $0x2b4] ss:$8 sps:$4 sm:$0xff]   ;;  %vm13773_vm0 = vmmov %vm13772_vm2 }
 0x1cd   : > { %v1878_v4 = vpop.f32.mrf.mxu0  ;;  %v2506_v9 = vor.u32 %v2504_v60, %v2494_v3  ;;  %v2510_v37 = vrot.slane %v2508_v31, 1  ;;  %v2500_v0 = vshll.u32 %v10143_v52, 16  ;;  %v3211_v57 = vrot.slane %v10024_v6, 1  ;;  %v8394_v3 = vld [vmem:[%s13561_s3 + $0x2d0] ss:$8 sps:$4 sm:$0xff]   ;;  %3437 = vmatprep.subr.bf16.mxu1 %v8396_v11  ;;  %vm13774_vm1 = vmmov %vm13773_vm0 }
 0x1ce   : > { %v2248_v28 = vsel %vm10139_vm7, %v7700_v63, %v2247_v13  ;;  %v2249_v22 = vrot.slane %v2247_v13, 4  ;;  %v7994_v47 = vpack.c.bf16 %v1998_v51, %v1997_v18  ;;  %3128 = vmatmul.mubr.bf16.gmra.mxu0 %v10143_v52  ;;  %v2496_v8 = vshrl.u32 %v10095_v17, 16  ;;  %v2318_v11 = vld [vmem:[#allocation3 + $0x30] sm:$0x11]  ;;  %vm13775_vm6 = vmmov %vm13773_vm0 }
 0x1cf   : > { %v1999_v50 = vmax.f32 %v1963_v20, 0.0  ;;  %v1964_v15 = vadd.f32 %v9783_v43, %v1916_v42  ;;  %v1917_v55 = vadd.f32 %v1878_v4, %v10004_v23  ;;  %v1880_v44 = vpop.f32.mrf.mxu0  ;;  %v2511_v58 = vsel %vm521_vm3, %v2506_v9, %v2510_v37  ;;  %v8399_v23 = vld [vmem:[%s13561_s3 + $0x2c4] ss:$8 sps:$4 sm:$0xff]   ;;  %vm13776_vm5 = vmmov %vm13773_vm0 }
 0x1d0   : > { %v2250_v53 = vrot.slane %v7994_v47, 7  ;;  %v1918_v30 = vadd.f32 %v1880_v44, %v10082_v39  ;;  %2816 = vmatprep.mubr.bf16.mxu1 %v2511_v58  ;;  %v2498_v36 = vor.u32 %v2496_v8, %v2486_v34  ;;  %v2502_v56 = vrot.slane %v2500_v0, 1  ;;  %3438 = vmatpush2.bf16.msra.mxu1 %v8394_v3  ;;  %vm13777_vm9 = vmmov %vm13773_vm0 }
 0x1d1   : > { %v2000_v10 = vmax.f32 %v1964_v15, 0.0  ;;  %v1965_v38 = vadd.f32 %v9776_v29, %v1917_v55  ;;  %v2520_v12 = vshrl.u32 %v10122_v62, 16  ;;  %v10178_v39 = vsel %vm13772_vm2, %v3206_v33, %v3211_v57  ;;  %3439 = vmatprep.subr.bf16.mxu1 %v8399_v23  ;;  %vm13778_vm12 = vmmov %vm13773_vm0 }
 0x1d2   : > { %v2251_v34 = vsel %vm10139_vm7, %v2249_v22, %v2250_v53  ;;  %v1966_v54 = vadd.f32 %v9783_v43, %v1918_v30  ;;  %v2503_v29 = vsel %vm521_vm3, %v2498_v36, %v2502_v56  ;;  %v2512_v24 = vshrl.u32 %v10143_v52, 16  ;;  %v8397_v43 = vld [vmem:[%s13561_s3 + $0x2c0] ss:$8 sps:$4 sm:$0xff]   ;;  %vm13779_vm13 = vmmov %vm13773_vm0 }
 0x1d3   : > { %v2252_v63 = vrot.slane %v2250_v53, 4  ;;  %v7995_v7 = vpack.c.bf16 %v2000_v10, %v1999_v50  ;;  %v2001_v19 = vmax.f32 %v1965_v38, 0.0  ;;  %2817 = vmatmul.mubr.bf16.gmra.mxu1 %v2503_v29  ;;  %v2281_v61 = vld [vmem:[#allocation3 + $0x40] sm:$0xff]  ;;  %v2522_v45 = vor.u32 %v2520_v12, %v2510_v37  ;;  %v8403_v10 = vld [vmem:[%s13561_s3 + $0x2a0] ss:$8 sps:$4 sm:$0xff]   ;;  %vm13780_vm4 = vmmov %vm13773_vm0 }
 0x1d4   : > { %v2002_v14 = vmax.f32 %v1966_v54, 0.0  ;;  %v10185_v2 = vcombine.high %v2281_v61, %v2248_v28  ;;  %v10187_v33 = vcombine.low %v2281_v61, %v2248_v28  ;;  %v3217_v18 = vrot.slane %v10042_v32, 1  ;;  %3440 = vmatpush2.bf16.msra.mxu1 %v8397_v43  ;;  %v8400_v28 = vld [vmem:[%s13561_s3 + $0x2b0] ss:$8 sps:$4 sm:$0xff]   ;;  %v8408_v54 = vld [vmem:[%s13561_s3 + $0x294] ss:$8 sps:$4 sm:$0xff]   ;;  %vm13781_vm11 = vmmov %vm13773_vm0 }
 0x1d5   : > { %v2253_v21 = vrot.slane %v7995_v7, 7  ;;  %v3215_v40 = vrot.slane %v10044_v46, 1  ;;  %v3221_v25 = vrot.slane %v10093_v49, 1  ;;  %v3219_v60 = vrot.slane %v10095_v17, 1  ;;  %3441 = vmatprep.subr.bf16.mxu1 %v8402_v27  ;;  %vm13782_vm15 = vmmov %vm13773_vm0  ;;  %v8409_v17 = vld [vmem:[%s13561_s3 + $0x280] ss:$8 sps:$4 sm:$0xff]  }
 0x1d6   : > { %v7996_v31 = vpack.c.bf16 %v2002_v14, %v2001_v19  ;;  %3137 = vmatprep.mubr.bf16.mxu0 %v10185_v2  ;;  %v2524_v13 = vshll.u32 %v10185_v2, 16  ;;  %v2514_v51 = vor.u32 %v2512_v24, %v2502_v56  ;;  %v2516_v32 = vshll.u32 %v10187_v33, 16  ;;  %v8406_v14 = vld [vmem:[%s13561_s3 + $0x290] ss:$8 sps:$4 sm:$0xff]   ;;  %vm13784_vm8 = vmmov %vm13773_vm0 }
 0x1d7   : > { %v2254_v20 = vsel %vm10139_vm7, %v2252_v63, %v2253_v21  ;;  %v2255_v42 = vrot.slane %v2253_v21, 4  ;;  %3138 = vmatmul.mubr.bf16.gmra.mxu0 %v10187_v33  ;;  %v2536_v46 = vshrl.u32 %v10185_v2, 16  ;;  %v10209_v49 = vsel %vm13773_vm0, %v3213_v35, %v3217_v18 }
 0x1d8   : > { %v2256_v59 = vrot.slane %v7996_v31, 7  ;;  %v2526_v4 = vrot.slane %v2524_v13, 1  ;;  %v2518_v9 = vrot.slane %v2516_v32, 1  ;;  %v10211_v37 = vcombine.high %v2251_v34, %v2254_v20  ;;  %3442 = vmatpush2.bf16.msra.mxu1 %v8400_v28 }
 0x1d9   : > { %v10213_v0 = vcombine.low %v2251_v34, %v2254_v20  ;;  %v10221_v5 = vsel %vm13774_vm1, %v3211_v57, %v3215_v40  ;;  %v10224_v35 = vsel %vm13775_vm6, %v3217_v18, %v3221_v25  ;;  %v10229_v22 = vsel %vm13776_vm5, %v3215_v40, %v3219_v60  ;;  %v8405_v57 = vld [vmem:[%s13561_s3 + $0x2a4] ss:$8 sps:$4 sm:$0xff]  }
 0x1da   : > { %v10233_v47 = vsel %vm10139_vm7, %v2255_v42, %v2256_v59  ;;  %v2527_v8 = vsel %vm521_vm3, %v2522_v45, %v2526_v4  ;;  %v2519_v50 = vsel %vm521_vm3, %v2514_v51, %v2518_v9  ;;  %3147 = vmatprep.mubr.bf16.mxu0 %v10211_v37  ;;  %v2528_v6 = vshrl.u32 %v10187_v33, 16  ;;  %3443 = vmatprep.subr.bf16.mxu1 %v8405_v57  ;;  %vm13812_vm7 = vmmov %vm13769_vm14 }
 0x1db   : > { %2826 = vmatprep.mubr.bf16.mxu1 %v2527_v8  ;;  %v2538_v15 = vor.u32 %v2536_v46, %v2526_v4  ;;  %v2540_v55 = vshll.u32 %v10211_v37, 16  ;;  %v2532_v48 = vshll.u32 %v10213_v0, 16  ;;  %v10245_v58 = vcombine.high %v10233_v47, %v2318_v11  ;;  %vm13817_vm2 = vmmov %vm13812_vm7 }
 0x1dc   : > { %2827 = vmatmul.mubr.bf16.gmra.mxu1 %v2519_v50  ;;  %v2530_v44 = vor.u32 %v2528_v6, %v2518_v9  ;;  %v2552_v53 = vshrl.u32 %v10211_v37, 16  ;;  %v10249_v30 = vcombine.low %v10233_v47, %v2318_v11  ;;  %v2544_v3 = vshrl.u32 %v10213_v0, 16 }
 0x1dd   : > { %v2542_v36 = vrot.slane %v2540_v55, 1  ;;  %v2534_v56 = vrot.slane %v2532_v48, 1  ;;  %v3225_v38 = vrot.slane %v10122_v62, 1  ;;  %v7784_v12 = vcombine.high %v10233_v47, %v10233_v47  ;;  %3444 = vmatpush2.bf16.msra.mxu1 %v8403_v10 }
 0x1de   : > { %v2556_v23 = vshll.u32 %v10245_v58, 16  ;;  %v2548_v34 = vshll.u32 %v10249_v30, 16  ;;  %v3223_v45 = vrot.slane %v10143_v52, 1  ;;  %v3229_v43 = vrot.slane %v10185_v2, 1  ;;  %3445 = vmatprep.subr.bf16.mxu1 %v8408_v54  ;;  %v8411_v52 = vld [vmem:[%s13561_s3 + $0x284] ss:$8 sps:$4 sm:$0xff]  }
 0x1df   : > { %3148 = vmatmul.mubr.bf16.gmra.mxu0 %v10213_v0  ;;  %v2543_v29 = vsel %vm521_vm3, %v2538_v15, %v2542_v36  ;;  %v2535_v24 = vsel %vm521_vm3, %v2530_v44, %v2534_v56  ;;  %v2554_v63 = vor.u32 %v2552_v53, %v2542_v36  ;;  %v2546_v62 = vor.u32 %v2544_v3, %v2534_v56 }
 0x1e0   : > { %3157 = vmatprep.mubr.bf16.mxu0 %v7784_v12  ;;  %2836 = vmatprep.mubr.bf16.mxu1 %v2543_v29  ;;  %v2558_v7 = vrot.slane %v2556_v23, 1  ;;  %v2550_v19 = vrot.slane %v2548_v34, 1  ;;  %v3226_v61 = vsel %vm13777_vm9, %v3221_v25, %v3225_v38  ;;  %v3227_v18 = vrot.slane %v10187_v33, 1 }
 0x1e1   : > { %v3233_v21 = vrot.slane %v10211_v37, 1  ;;  %v3231_v27 = vrot.slane %v10213_v0, 1  ;;  %v3224_v25 = vsel %vm13778_vm12, %v3219_v60, %v3223_v45  ;;  %v3230_v2 = vsel %vm13779_vm13, %v3225_v38, %v3229_v43  ;;  %3446 = vmatpush2.bf16.msra.mxu1 %v8406_v14 }
 0x1e2   : > { %v2559_v40 = vsel %vm521_vm3, %v2554_v63, %v2558_v7  ;;  %v2551_v31 = vsel %vm521_vm3, %v2546_v62, %v2550_v19  ;;  %v3228_v33 = vsel %vm13780_vm4, %v3223_v45, %v3227_v18  ;;  %v3237_v32 = vrot.slane %v10245_v58, 1  ;;  %3447 = vmatprep.subr.bf16.mxu1 %v8411_v52  ;;  %vm13783_vm3 = vmmov %vm13773_vm0 }
 0x1e3   : > { %v3234_v13 = vsel %vm13781_vm11, %v3229_v43, %v3233_v21  ;;  %v3232_v51 = vsel %vm13782_vm15, %v3227_v18, %v3231_v27  ;;  %v3235_v20 = vrot.slane %v10249_v30, 1  ;;  %v7783_v42 = vcombine.low %v10233_v47, %v10233_v47  ;;  %v3572_v43 = vld [vmem:[%s13562_s4] sm:$0x3]  ;;  %vm13819_vm0 = vmmov %vm13817_vm2 }
 0x1e4   : > { %2837 = vmatmul.mubr.bf16.gmra.mxu1 %v2535_v24  ;;  %v3238_v60 = vsel %vm13783_vm3, %v3233_v21, %v3237_v32  ;;  %v2563_v59 = vshrl.u32 %v10245_v58, 16  ;;  %v2560_v9 = vshrl.u32 %v10249_v30, 16  ;;  %vm13821_vm1 = vmmov %vm13819_vm0 }
 0x1e5   : > { %2846 = vmatprep.mubr.bf16.mxu1 %v2559_v40  ;;  %v3236_v46 = vsel %vm13784_vm8, %v3231_v27, %v3235_v20  ;;  %3448 = vmatpush2.bf16.msra.mxu1 %v8409_v17  ;;  %v10342_v27 = vld [vmem:[%s13563_s5 + $0x80] sm:$0xff]  ;;  %v10347_v40 = vld [vmem:[%s13563_s5 + $0x90] sm:$0xff]  ;;  %vm13823_vm6 = vmmov %vm13819_vm0 }
 0x1e6   : > { %v2565_v4 = vor.u32 %v2563_v59, %v2558_v7  ;;  %v2562_v37 = vor.u32 %v2560_v9, %v2550_v19  ;;  %13795 = vst [vmem:[#allocation18_spill] sm:$0xff] %v10342_v27  ;;  %13796 = vst [vmem:[#allocation19_spill] sm:$0xff] %v10347_v40  ;;  %v13573_v59 = vrot.slane %v10342_v27, 7 }
 0x1e7   : > { %3158 = vmatmul.mubr.bf16.gmra.mxu0 %v7783_v42  ;;  %v10382_v42 = vld [vmem:[%s13563_s5 + $0xb8] sm:$0xff]  ;;  %vm13826_vm5 = vmmov %vm13819_vm0 }
 0x1e8   : > { %13802 = vst [vmem:[#allocation29_spill] sm:$0xff] %v10382_v42  ;;  %vm13830_vm9 = vmmov %vm13819_vm0 }
 0x1e9   : > { %vm13832_vm12 = vmmov %vm13819_vm0 }
 0x1ea   : > { %vm13835_vm13 = vmmov %vm13819_vm0 }
 0x1eb   : > { %vm13838_vm4 = vmmov %vm13819_vm0 }
 0x1ec   : > { %2847 = vmatmul.mubr.bf16.gmra.mxu1 %v2551_v31  ;;  %v10352_v31 = vld [vmem:[%s13563_s5 + $0x98] sm:$0xff]  ;;  %vm13844_vm11 = vmmov %vm13819_vm0 }
 0x1ed   : > { %2856 = vmatprep.mubr.bf16.mxu1 %v2565_v4  ;;  %13797 = vst [vmem:[#allocation21_spill] sm:$0xff] %v10352_v31  ;;  %v3891_v4 = vrot.slane %v10347_v40, 7  ;;  %v3893_v9 = vrot.slane %v10352_v31, 7  ;;  %vm13847_vm15 = vmmov %vm13819_vm0 }
 0x1ee   : > { %vm13850_vm3 = vmmov %vm13819_vm0 }
 0x1ef   : > { %vm13853_vm8 = vmmov %vm13819_vm0 }
 0x1f4   : > { %2857 = vmatmul.mubr.bf16.gmra.mxu1 %v2562_v37  ;;  %v10394_v37 = vld [vmem:[%s13563_s5 + $0x10] sm:$0xff] }
 0x1f5   : > { %3449 = vmatprep.mubr.bf16.mxu1 %v9978_v16 }
 0x1fc   : > { %3450 = vmatmul.mubr.bf16.vlgmr.msra.gmra.mxu1 %v9983_v26 }
 0x1fd   : > { %3459 = vmatprep.mubr.bf16.mxu1 %v10106_v1 }
 0x204   : > { %3460 = vmatmul.mubr.bf16.gmra.mxu1 %v10178_v39 }
 0x205   : > { %3469 = vmatprep.mubr.bf16.mxu1 %v10209_v49 }
 0x20c   : > { %3470 = vmatmul.mubr.bf16.gmra.mxu1 %v10221_v5 }
 0x20d   : > { %3479 = vmatprep.mubr.bf16.mxu1 %v10224_v35 }
 0x214   : > { %3480 = vmatmul.mubr.bf16.gmra.mxu1 %v10229_v22 }
 0x215   : > { %3489 = vmatprep.mubr.bf16.mxu1 %v3226_v61 }
 0x21c   : > { %3490 = vmatmul.mubr.bf16.gmra.mxu1 %v3224_v25  ;;  %v10357_v25 = vld [vmem:[%s13563_s5 + $0x88] sm:$0xff] }
 0x21d   : > { %3499 = vmatprep.mubr.bf16.mxu1 %v3230_v2  ;;  %13798 = vst [vmem:[#allocation20_spill] sm:$0xff] %v10357_v25  ;;  %v7895_v2 = vld [vmem:[%s13563_s5 + $0xa0] sm:$0xff] }
 0x224   : > { %3500 = vmatmul.mubr.bf16.gmra.mxu1 %v3228_v33  ;;  %v10365_v33 = vld [vmem:[%s13563_s5] sm:$0xff] }
 0x225   : > { %3509 = vmatprep.mubr.bf16.mxu1 %v3234_v13  ;;  %13799 = vst [vmem:[#allocation22_spill] sm:$0xff] %v10365_v33 }
 0x22c   : > { %3510 = vmatmul.mubr.bf16.gmra.mxu1 %v3232_v51 }
 0x22d   : > { %3519 = vmatprep.mubr.bf16.mxu1 %v3238_v60  ;;  %v13803_v60 = vsub.s32 0, %v9747_v41 }
 0x234   : > { %3520 = vmatmul.mubr.bf16.gmra.mxu1 %v3236_v46  ;;  %v10386_v46 = vrot.slane %v3572_v43, %v13803_v60  ;;  %v10508_v60 = vld [vmem:[%s13563_s5 + $0xe0] sm:$0xff] }
 0x235   : > { %3529 = vmatprep.mubr.bf16.mxu1 %v3237_v32  ;;  %v7896_v32 = vld [vmem:[%s13563_s5 + $0xa8] sm:$0xff] }
 0x23c   : > { %3530 = vmatmul.mubr.bf16.gmra.mxu1 %v3235_v20  ;;  %v10377_v20 = vld [vmem:[%s13563_s5 + $0xb0] sm:$0xff] }
 0x23d   : > { %13801 = vst [vmem:[#allocation24_spill] sm:$0xff] %v10377_v20 }
 0x260   : > { %v3079_v16 = vpop.f32.mrf.mxu0 }
 0x262   : > { %v3081_v26 = vpop.f32.mrf.mxu0 }
 0x264   : > { %v3083_v1 = vpop.f32.mrf.mxu0 }
 0x266   : > { %v3085_v39 = vpop.f32.mrf.mxu0 }
 0x267   : > { %v2778_v0 = vpop.f32.mrf.mxu1 }
 0x268   : > { %v3089_v49 = vpop.f32.mrf.mxu0  ;;  %v10306_v11 = vadd.f32 %v3079_v16, %v2778_v0  ;;  %v10399_v16 = vld [vmem:[%s13563_s5 + $0xc0] sm:$0xff]  ;;  %v3895_v0 = vrot.slane %v7895_v2, 7  ;;  %v10470_v2 = vld [vmem:[%s13563_s5 + $0xd0] sm:$0xff] }
 0x269   : > { %v2780_v28 = vpop.f32.mrf.mxu1  ;;  %13804 = vst [vmem:[#allocation25_spill] sm:$0xff] %v10399_v16 }
 0x26a   : > { %v3091_v5 = vpop.f32.mrf.mxu0  ;;  %v10308_v35 = vadd.f32 %v3081_v26, %v2780_v28  ;;  %v10404_v26 = vld [vmem:[%s13563_s5 + $0x40] sm:$0xff]  ;;  %v10414_v28 = vld [vmem:[%s13563_s5 + $0x18] sm:$0xff] }
 0x26b   : > { %v2782_v22 = vpop.f32.mrf.mxu1  ;;  %13805 = vst [vmem:[#allocation26_spill] sm:$0xff] %v10404_v26 }
 0x26c   : > { %v10310_v47 = vadd.f32 %v3083_v1, %v2782_v22  ;;  %v3093_v50 = vpop.f32.mrf.mxu0  ;;  %v13578_v22 = vrot.slane %v10365_v33, 7 }
 0x26d   : > { %v2784_v8 = vpop.f32.mrf.mxu1 }
 0x26e   : > { %13785 = vst [vmem:[#allocation8_spill] sm:$0xff] %v10310_v47  ;;  %v10312_v6 = vadd.f32 %v3085_v39, %v2784_v8  ;;  %v3095_v57 = vpop.f32.mrf.mxu0  ;;  %v10924_v47 = vld [vmem:[%s13563_s5 + $0x1b8] sm:$0xff] }
 0x26f   : > { %13936 = vst [vmem:[#allocation101_spill] sm:$0xff] %v10924_v47 }
 0x270   : > { %13786 = vst [vmem:[#allocation13_spill] sm:$0xff] %v10312_v6 }
 0x276   : > { %v3099_v15 = vpop.f32.mrf.mxu0 }
 0x278   : > { %v3101_v55 = vpop.f32.mrf.mxu0 }
 0x27a   : > { %v3103_v48 = vpop.f32.mrf.mxu0 }
 0x27b   : > { %v2788_v44 = vpop.f32.mrf.mxu1 }
 0x27c   : > { %v10314_v58 = vadd.f32 %v3089_v49, %v2788_v44  ;;  %v3105_v53 = vpop.f32.mrf.mxu0  ;;  %v13572_v49 = vrot.slane %v10357_v25, 7  ;;  %v10431_v44 = vld [vmem:[%s13563_s5 + $0x8] sm:$0xff] }
 0x27d   : > { %v2790_v30 = vpop.f32.mrf.mxu1  ;;  %13808 = vst [vmem:[#allocation28_spill] sm:$0xff] %v10431_v44 }
 0x27e   : > { %13787 = vst [vmem:[#allocation9_spill] sm:$0xff] %v10314_v58  ;;  %v10316_v36 = vadd.f32 %v3091_v5, %v2790_v30  ;;  %v3109_v56 = vpop.f32.mrf.mxu0  ;;  %v10419_v5 = vld [vmem:[%s13563_s5 + $0x20] sm:$0xff]  ;;  %v10441_v30 = vld [vmem:[%s13563_s5 + $0x30] sm:$0xff] }
 0x27f   : > { %v2792_v3 = vpop.f32.mrf.mxu1  ;;  %13809 = vst [vmem:[#allocation30_spill] sm:$0xff] %v10441_v30 }
 0x280   : > { %13788 = vst [vmem:[#allocation10_spill] sm:$0xff] %v10316_v36  ;;  %v10318_v10 = vadd.f32 %v3093_v50, %v2792_v3  ;;  %v3111_v38 = vpop.f32.mrf.mxu0  ;;  %v13807_v50 = vsub.s32 1, %v9747_v41  ;;  %v10534_v41 = vld [vmem:[%s13563_s5 + $0xf0] sm:$0xff] }
 0x281   : > { %v2794_v12 = vpop.f32.mrf.mxu1  ;;  %13828 = vst [vmem:[#allocation43_spill] sm:$0xff] %v10534_v41 }
 0x282   : > { %13789 = vst [vmem:[#allocation11_spill] sm:$0xff] %v10318_v10  ;;  %v10320_v23 = vadd.f32 %v3095_v57, %v2794_v12  ;;  %v3113_v34 = vpop.f32.mrf.mxu0  ;;  %v10424_v57 = vrot.slane %v3572_v43, %v13807_v50  ;;  %v3677_v43 = vrot.slane %v10414_v28, 7 }
 0x283   : > { %v2798_v54 = vpop.f32.mrf.mxu1 }
 0x284   : > { %13790 = vst [vmem:[#allocation12_spill] sm:$0xff] %v10320_v23  ;;  %v10322_v29 = vadd.f32 %v3099_v15, %v2798_v54  ;;  %v3115_v24 = vpop.f32.mrf.mxu0  ;;  %v3897_v15 = vrot.slane %v7896_v32, 7 }
 0x285   : > { %v2800_v63 = vpop.f32.mrf.mxu1 }
 0x286   : > { %13791 = vst [vmem:[#allocation14_spill] sm:$0xff] %v10322_v29  ;;  %v10324_v62 = vadd.f32 %v3101_v55, %v2800_v63  ;;  %v10326_v7 = vpop.f32.mrf.mxu0  ;;  %v13575_v55 = vrot.slane %v10377_v20, 7  ;;  %v10493_v54 = vsel %vm13819_vm0, %v3893_v9, %v3897_v15 }
 0x287   : > { %v2802_v19 = vpop.f32.mrf.mxu1  ;;  %13820 = vst [vmem:[#allocation38_spill] sm:$0xff] %v10493_v54  ;;  %v13846_v54 = vrot.slane %v10399_v16, 7 }
 0x288   : > { %13792 = vst [vmem:[#allocation15_spill] sm:$0xff] %v10324_v62  ;;  %v10328_v61 = vadd.f32 %v3103_v48, %v2802_v19  ;;  %v10330_v45 = vpop.f32.mrf.mxu0  ;;  %v13574_v48 = vrot.slane %v10382_v42, 7  ;;  %v10453_v19 = vsel %vm13769_vm14, %v13573_v59, %v3891_v4  ;;  %v10487_v59 = vld [vmem:[%s13563_s5 + $0xd8] sm:$0xff]  ;;  %v10498_v12 = vsel %vm13821_vm1, %v3895_v0, %v13575_v55  ;;  %v10529_v55 = vld [vmem:[%s13563_s5 + $0xe8] sm:$0xff]  ;;  %v10555_v42 = vld [vmem:[%s13563_s5 + $0x60] sm:$0xff] }
 0x289   : > { %v2804_v14 = vpop.f32.mrf.mxu1  ;;  %13811 = vst [vmem:[#allocation33_spill] sm:$0xff] %v10453_v19  ;;  %13822 = vst [vmem:[#allocation39_spill] sm:$0xff] %v10498_v12 }
 0x28a   : > { %13793 = vst [vmem:[#allocation17_spill] sm:$0xff] %v10328_v61  ;;  %v10335_v18 = vadd.f32 %v3105_v53, %v2804_v14  ;;  %v10337_v21 = vpop.f32.mrf.mxu0  ;;  %v10436_v53 = vld [vmem:[%s13563_s5 + $0x28] sm:$0xff]  ;;  %v10458_v14 = vsel %vm13812_vm7, %v13572_v49, %v3893_v9  ;;  %v10503_v50 = vsel %vm13823_vm6, %v3897_v15, %v13574_v48  ;;  %v13829_v48 = vrot.slane %v10431_v44, 7  ;;  %v10596_v61 = vld [vmem:[%s13563_s5 + $0x78] sm:$0xff]  ;;  %vm13856_vm14 = vmmov %vm13819_vm0 }
 0x28b   : > { %v2808_v52 = vpop.f32.mrf.mxu1  ;;  %13813 = vst [vmem:[#allocation34_spill] sm:$0xff] %v10458_v14  ;;  %v10482_v49 = vld [vmem:[%s13563_s5 + $0xc8] sm:$0xff]  ;;  %13824 = vst [vmem:[#allocation40_spill] sm:$0xff] %v10503_v50  ;;  %v10591_v50 = vld [vmem:[%s13563_s5 + $0x70] sm:$0xff] }
 0x28c   : > { %13794 = vst [vmem:[#allocation16_spill] sm:$0xff] %v10335_v18  ;;  %v10367_v13 = vadd.f32 %v3109_v56, %v2808_v52  ;;  %v10369_v51 = vpop.f32.mrf.mxu0  ;;  %v3679_v52 = vrot.slane %v10419_v5, 7  ;;  %13816 = vst [vmem:[#allocation36_spill] sm:$0xff] %v10482_v49  ;;  %v4002_v18 = vrot.slane %v10508_v60, 7  ;;  %v10646_v14 = vld [vmem:[%s13563_s5 + $0x140] sm:$0xff] }
 0x28d   : > { %v2810_v17 = vpop.f32.mrf.mxu1  ;;  %13841 = vst [vmem:[#allocation50_spill] sm:$0xff] %v10596_v61  ;;  %13855 = vst [vmem:[#allocation57_spill] sm:$0xff] %v10646_v14 }
 0x28e   : > { %13800 = vst [vmem:[#allocation23_spill] sm:$0xff] %v10367_v13  ;;  %v10406_v1 = vadd.f32 %v3111_v38, %v2810_v17  ;;  %v10408_v39 = vpop.f32.mrf.mxu0  ;;  %v3675_v38 = vrot.slane %v10394_v37, 7  ;;  %vm13859_vm7 = vmmov %vm13819_vm0 }
 0x28f   : > { %v2812_v8 = vpop.f32.mrf.mxu1  ;;  %vm13867_vm1 = vmmov %vm13819_vm0 }
 0x290   : > { %13806 = vst [vmem:[#allocation27_spill] sm:$0xff] %v10406_v1  ;;  %v10443_v56 = vadd.f32 %v3113_v34, %v2812_v8  ;;  %v10445_v3 = vpop.f32.mrf.mxu0  ;;  %v10463_v34 = vld [vmem:[%s13563_s5 + $0x38] sm:$0xff]  ;;  %v3681_v8 = vrot.slane %v10436_v53, 7  ;;  %v10523_v15 = vsel %vm13826_vm5, %v13578_v22, %v3675_v38  ;;  %v4000_v1 = vrot.slane %v10487_v59, 7  ;;  %vm13873_vm6 = vmmov %vm13819_vm0 }
 0x291   : > { %v2814_v63 = vpop.f32.mrf.mxu1  ;;  %13814 = vst [vmem:[#allocation7_spill] sm:$0xff] %v10463_v34  ;;  %13827 = vst [vmem:[#allocation42_spill] sm:$0xff] %v10523_v15 }
 0x292   : > { %13810 = vst [vmem:[#allocation32_spill] sm:$0xff] %v10443_v56  ;;  %v10472_v32 = vadd.f32 %v3115_v24, %v2814_v63  ;;  %v10474_v17 = vpop.f32.mrf.mxu0  ;;  %v10490_v63 = vsel %vm13817_vm2, %v3891_v4, %v3895_v0  ;;  %v10513_v4 = vld [vmem:[%s13563_s5 + $0x50] sm:$0xff]  ;;  %v10561_v20 = vsel %vm13835_vm13, %v3677_v43, %v3681_v8  ;;  %v10571_v56 = vld [vmem:[%s13563_s5 + $0xf8] sm:$0xff]  ;;  %vm13862_vm2 = vmmov %vm13819_vm0 }
 0x293   : > { %v2818_v24 = vpop.f32.mrf.mxu1  ;;  %13818 = vst [vmem:[#allocation37_spill] sm:$0xff] %v10490_v63  ;;  %13836 = vst [vmem:[#allocation47_spill] sm:$0xff] %v10561_v20  ;;  %v13843_v20 = vrot.slane %v10463_v34, 7  ;;  %v13872_v15 = vrot.slane %v10571_v56, 7 }
 0x294   : > { %13815 = vst [vmem:[#allocation35_spill] sm:$0xff] %v10472_v32  ;;  %v10516_v9 = vadd.f32 %v10326_v7, %v2818_v24  ;;  %v10518_v0 = vpop.f32.mrf.mxu0  ;;  %v3998_v7 = vrot.slane %v10470_v2, 7  ;;  %v10540_v24 = vld [vmem:[%s13563_s5 + $0x58] sm:$0xff]  ;;  %v10548_v32 = vsel %vm13832_vm12, %v3675_v38, %v3679_v52  ;;  %13840 = vst [vmem:[#allocation49_spill] sm:$0xff] %v10571_v56 }
 0x295   : > { %v2820_v22 = vpop.f32.mrf.mxu1  ;;  %13833 = vst [vmem:[#allocation45_spill] sm:$0xff] %v10548_v32  ;;  %v3786_v12 = vrot.slane %v10540_v24, 7  ;;  %v3788_v32 = vrot.slane %v10555_v42, 7  ;;  %vm13875_vm5 = vmmov %vm13819_vm0 }
 0x296   : > { %13825 = vst [vmem:[#allocation41_spill] sm:$0xff] %v10516_v9  ;;  %v10545_v9 = vsel %vm13830_vm9, %v13829_v48, %v3677_v43  ;;  %v10558_v13 = vadd.f32 %v10330_v45, %v2820_v22  ;;  %v13837_v48 = vrot.slane %v10441_v30, 7  ;;  %v10577_v45 = vld [vmem:[%s13563_s5 + $0x48] sm:$0xff]  ;;  %v10611_v29 = vsel %vm13847_vm15, %v13846_v54, %v3998_v7  ;;  %v7917_v54 = vld [vmem:[%s13563_s5 + $0x150] sm:$0xff]  ;;  %vm13878_vm9 = vmmov %vm13819_vm0 }
 0x297   : > { %13831 = vst [vmem:[#allocation44_spill] sm:$0xff] %v10545_v9  ;;  %v10582_v22 = vld [vmem:[%s13563_s5 + $0x68] sm:$0xff]  ;;  %v10584_v43 = vpop.f32.mrf.mxu0  ;;  %13848 = vst [vmem:[#allocation53_spill] sm:$0xff] %v10611_v29  ;;  %v13849_v9 = vrot.slane %v10482_v49, 7 }
 0x298   : > { %13834 = vst [vmem:[#allocation46_spill] sm:$0xff] %v10558_v13  ;;  %v10566_v38 = vsel %vm13838_vm4, %v3679_v52, %v13837_v48  ;;  %v2822_v52 = vpop.f32.mrf.mxu1  ;;  %v4004_v48 = vrot.slane %v10529_v55, 7  ;;  %v10606_v13 = vsel %vm13844_vm11, %v3681_v8, %v13843_v20  ;;  %v3790_v8 = vrot.slane %v10582_v22, 7  ;;  %vm13881_vm12 = vmmov %vm13819_vm0 }
 0x299   : > { %13839 = vst [vmem:[#allocation48_spill] sm:$0xff] %v10566_v38  ;;  %v3784_v38 = vrot.slane %v10513_v4, 7  ;;  %v10601_v62 = vadd.f32 %v10337_v21, %v2822_v52  ;;  %13845 = vst [vmem:[#allocation52_spill] sm:$0xff] %v10606_v13  ;;  %v10614_v63 = vpop.f32.mrf.mxu0  ;;  %v10619_v21 = vsel %vm13850_vm3, %v13849_v9, %v4000_v1  ;;  %v10633_v13 = vld [vmem:[%s13563_s5 + $0x160] sm:$0xff]  ;;  %v10639_v52 = vsel %vm13853_vm8, %v3998_v7, %v4002_v18 }
 0x29a   : > { %v2824_v23 = vpop.f32.mrf.mxu1  ;;  %13851 = vst [vmem:[#allocation54_spill] sm:$0xff] %v10619_v21  ;;  %13854 = vst [vmem:[#allocation56_spill] sm:$0xff] %v10639_v52  ;;  %v10651_v29 = vsel %vm13856_vm14, %v4000_v1, %v4004_v48  ;;  %v13861_v7 = vrot.slane %v10404_v26, 7  ;;  %v13864_v21 = vrot.slane %v10577_v45, 7  ;;  %v10671_v1 = vld [vmem:[%s13563_s5 + $0x148] sm:$0xff]  ;;  %v7909_v52 = vld [vmem:[%s13563_s5 + $0x110] sm:$0xff]  ;;  %v10701_v19 = vsel %vm13873_vm6, %v4004_v48, %v13872_v15 }
 0x29b   : > { %13842 = vst [vmem:[#allocation51_spill] sm:$0xff] %v10601_v62  ;;  %v7918_v62 = vld [vmem:[%s13563_s5 + $0x158] sm:$0xff]  ;;  %v10636_v9 = vadd.f32 %v10369_v51, %v2824_v23  ;;  %v10648_v10 = vpop.f32.mrf.mxu0  ;;  %13857 = vst [vmem:[#allocation58_spill] sm:$0xff] %v10651_v29  ;;  %v13858_v23 = vrot.slane %v10534_v41, 7  ;;  %v4216_v29 = vrot.slane %v10633_v13, 7  ;;  %v10704_v36 = vsel %vm13875_vm5, %v3786_v12, %v3790_v8 }
 0x29c   : > { %v10661_v20 = vsel %vm13862_vm2, %v13861_v7, %v3784_v38  ;;  %13866 = vst [vmem:[#allocation62_spill] sm:$0xff] %v10671_v1  ;;  %v10682_v7 = vld [vmem:[%s13563_s5 + $0x170] sm:$0xff]  ;;  %13874 = vst [vmem:[#allocation67_spill] sm:$0xff] %v10701_v19  ;;  %v7910_v13 = vld [vmem:[%s13563_s5 + $0x118] sm:$0xff] }
 0x29d   : > { %13852 = vst [vmem:[#allocation55_spill] sm:$0xff] %v10636_v9  ;;  %v10656_v51 = vsel %vm13859_vm7, %v4002_v18, %v13858_v23  ;;  %13863 = vst [vmem:[#allocation60_spill] sm:$0xff] %v10661_v20  ;;  %v10666_v9 = vsel %vm13819_vm0, %v13864_v21, %v3786_v12  ;;  %v7920_v18 = vld [vmem:[%s13563_s5 + $0x168] sm:$0xff]  ;;  %v2828_v23 = vpop.f32.mrf.mxu1  ;;  %v10687_v21 = vld [vmem:[%s13563_s5 + $0x178] sm:$0xff]  ;;  %v4214_v20 = vrot.slane %v7918_v62, 7 }
 0x29e   : > { %13860 = vst [vmem:[#allocation59_spill] sm:$0xff] %v10656_v51  ;;  %13865 = vst [vmem:[#allocation61_spill] sm:$0xff] %v10666_v9  ;;  %v10677_v51 = vsel %vm13867_vm1, %v3784_v38, %v3788_v32  ;;  %v4212_v9 = vrot.slane %v7917_v54, 7  ;;  %v10694_v38 = vadd.f32 %v10408_v39, %v2828_v23  ;;  %v13877_v39 = vrot.slane %v10591_v50, 7  ;;  %v10724_v62 = vld [vmem:[%s13563_s5 + $0x100] sm:$0xff]  ;;  %v10744_v12 = vld [vmem:[%s13563_s5 + $0x108] sm:$0xff] }
 0x29f   : > { %13868 = vst [vmem:[#allocation63_spill] sm:$0xff] %v10677_v51  ;;  %13869 = vst [vmem:[#allocation64_spill] sm:$0xff] %v10682_v7  ;;  %v10696_v51 = vpop.f32.mrf.mxu0  ;;  %v2830_v54 = vpop.f32.mrf.mxu1  ;;  %v4218_v48 = vrot.slane %v7920_v18, 7  ;;  %v13887_v18 = vrot.slane %v10646_v14, 7  ;;  %v10777_v14 = vld [vmem:[%s13563_s5 + $0x138] sm:$0xff] }
 0x2a0   : > { %13870 = vst [vmem:[#allocation65_spill] sm:$0xff] %v10687_v21  ;;  %13871 = vst [vmem:[#allocation66_spill] sm:$0xff] %v10694_v38  ;;  %v10713_v23 = vsel %vm13878_vm9, %v3788_v32, %v13877_v39  ;;  %v13880_v38 = vrot.slane %v10596_v61, 7  ;;  %v10732_v32 = vld [vmem:[%s13563_s5 + $0x128] sm:$0xff] }
 0x2a1   : > { %13876 = vst [vmem:[#allocation68_spill] sm:$0xff] %v10704_v36  ;;  %13879 = vst [vmem:[#allocation69_spill] sm:$0xff] %v10713_v23  ;;  %v7911_v36 = vld [vmem:[%s13563_s5 + $0x120] sm:$0xff]  ;;  %v4105_v23 = vrot.slane %v7909_v52, 7  ;;  %v4107_v52 = vrot.slane %v7910_v13, 7 }
 0x2a2   : > { %v10718_v15 = vsel %vm13881_vm12, %v3790_v8, %v13880_v38  ;;  %13883 = vst [vmem:[#allocation71_spill] sm:$0xff] %v10724_v62  ;;  %v10735_v8 = vadd.f32 %v10445_v3, %v2830_v54  ;;  %v10737_v38 = vpop.f32.mrf.mxu0  ;;  %13885 = vst [vmem:[#allocation73_spill] sm:$0xff] %v10744_v12  ;;  %v10754_v3 = vld [vmem:[%s13563_s5 + $0x1d0] sm:$0xff]  ;;  %v2832_v54 = vpop.f32.mrf.mxu1 }
 0x2a3   : > { %13882 = vst [vmem:[#allocation70_spill] sm:$0xff] %v10718_v15  ;;  %v10749_v15 = vld [vmem:[%s13563_s5 + $0x130] sm:$0xff]  ;;  %vm13888_vm13 = vmmov %vm13819_vm0  ;;  %v10770_v6 = vadd.f32 %v10474_v17, %v2832_v54  ;;  %v7934_v17 = vld [vmem:[%s13563_s5 + $0x1d8] sm:$0xff] }
 0x2a4   : > { %13884 = vst [vmem:[#allocation72_spill] sm:$0xff] %v10735_v8  ;;  %13886 = vst [vmem:[#allocation74_spill] sm:$0xff] %v10749_v15  ;;  %v10759_v39 = vsel %vm13888_vm13, %v13887_v18, %v4212_v9  ;;  %v13890_v8 = vrot.slane %v10671_v1, 7  ;;  %v10772_v31 = vpop.f32.mrf.mxu0  ;;  %v2834_v13 = vpop.f32.mrf.mxu1  ;;  %v13902_v1 = vrot.slane %v10682_v7, 7  ;;  %v10882_v7 = vld [vmem:[%s13563_s5 + $0x1a8] sm:$0xff] }
 0x2a5   : > { %13889 = vst [vmem:[#allocation75_spill] sm:$0xff] %v10759_v39  ;;  %vm13891_vm4 = vmmov %vm13819_vm0  ;;  %v4109_v39 = vrot.slane %v7911_v36, 7  ;;  %v10797_v36 = vld [vmem:[%s13563_s5 + $0x1c8] sm:$0xff] }
 0x2a6   : > { %v10764_v19 = vsel %vm13891_vm4, %v13890_v8, %v4214_v20  ;;  %vm13893_vm11 = vmmov %vm13819_vm0  ;;  %13895 = vst [vmem:[#allocation78_spill] sm:$0xff] %v10770_v6  ;;  %v4111_v8 = vrot.slane %v10732_v32, 7  ;;  %v4426_v32 = vrot.slane %v10754_v3, 7  ;;  %v13905_v6 = vrot.slane %v10687_v21, 7  ;;  %v7936_v3 = vld [vmem:[%s13563_s5 + $0x1e8] sm:$0xff] }
 0x2a7   : > { %13892 = vst [vmem:[#allocation76_spill] sm:$0xff] %v10764_v19  ;;  %v10767_v58 = vsel %vm13893_vm11, %v4212_v9, %v4216_v29  ;;  %13896 = vst [vmem:[#allocation79_spill] sm:$0xff] %v10777_v14  ;;  %v10784_v9 = vld [vmem:[%s13563_s5 + $0x1c0] sm:$0xff]  ;;  %v10803_v19 = vpop.f32.mrf.mxu0 }
 0x2a8   : > { %13894 = vst [vmem:[#allocation77_spill] sm:$0xff] %v10767_v58  ;;  %13897 = vst [vmem:[#allocation80_spill] sm:$0xff] %v10784_v9  ;;  %v10801_v58 = vadd.f32 %v10518_v0, %v2834_v13  ;;  %v7935_v0 = vld [vmem:[%s13563_s5 + $0x1e0] sm:$0xff] }
 0x2a9   : > { %vm13898_vm15 = vmmov %vm13819_vm0  ;;  %13900 = vst [vmem:[#allocation82_spill] sm:$0xff] %v10797_v36  ;;  %v4430_v21 = vrot.slane %v7935_v0, 7 }
 0x2aa   : > { %v10790_v54 = vsel %vm13898_vm15, %v4214_v20, %v4218_v48  ;;  %13901 = vst [vmem:[#allocation83_spill] sm:$0xff] %v10801_v58  ;;  %vm13903_vm3 = vmmov %vm13819_vm0  ;;  %v7927_v58 = vld [vmem:[%s13563_s5 + $0x1a0] sm:$0xff] }
 0x2ab   : > { %13899 = vst [vmem:[#allocation81_spill] sm:$0xff] %v10790_v54  ;;  %v10808_v20 = vsel %vm13903_vm3, %v4216_v29, %v13902_v1  ;;  %vm13906_vm8 = vmmov %vm13819_vm0  ;;  %v13908_v54 = vrot.slane %v10724_v62, 7  ;;  %v2838_v29 = vpop.f32.mrf.mxu1  ;;  %v13911_v1 = vrot.slane %v10744_v12, 7  ;;  %v10855_v62 = vsel %vm13819_vm0, %v4107_v52, %v4111_v8 }
 0x2ac   : > { %13904 = vst [vmem:[#allocation84_spill] sm:$0xff] %v10808_v20  ;;  %v10813_v18 = vsel %vm13906_vm8, %v4218_v48, %v13905_v6  ;;  %vm13909_vm14 = vmmov %vm13819_vm0  ;;  %v10835_v48 = vld [vmem:[%s13563_s5 + $0x1f0] sm:$0xff]  ;;  %v10849_v6 = vpop.f32.mrf.mxu0 }
 0x2ad   : > { %13907 = vst [vmem:[#allocation85_spill] sm:$0xff] %v10813_v18  ;;  %v10818_v25 = vsel %vm13909_vm14, %v13908_v54, %v4105_v23  ;;  %vm13912_vm7 = vmmov %vm13819_vm0  ;;  %v10840_v54 = vld [vmem:[%s13563_s5 + $0x1f8] sm:$0xff]  ;;  %v4323_v18 = vrot.slane %v7927_v58, 7  ;;  %v10932_v58 = vld [vmem:[%s13563_s5 + $0x240] sm:$0xff] }
 0x2ae   : > { %13910 = vst [vmem:[#allocation86_spill] sm:$0xff] %v10818_v25  ;;  %v10829_v13 = vsel %vm13912_vm7, %v13911_v1, %v4107_v52  ;;  %13914 = vst [vmem:[#allocation88_spill] sm:$0xff] %v10835_v48  ;;  %v4428_v25 = vrot.slane %v7934_v17, 7  ;;  %v7925_v1 = vld [vmem:[%s13563_s5 + $0x190] sm:$0xff]  ;;  %v7926_v17 = vld [vmem:[%s13563_s5 + $0x198] sm:$0xff]  ;;  %v10892_v0 = vpop.f32.mrf.mxu0 }
 0x2af   : > { %13913 = vst [vmem:[#allocation87_spill] sm:$0xff] %v10829_v13  ;;  %13915 = vst [vmem:[#allocation89_spill] sm:$0xff] %v10840_v54  ;;  %v10847_v13 = vadd.f32 %v10584_v43, %v2838_v29  ;;  %v2840_v43 = vpop.f32.mrf.mxu1  ;;  %v13920_v29 = vrot.slane %v10749_v15, 7  ;;  %v10904_v15 = vld [vmem:[%s13563_s5 + $0x250] sm:$0xff] }
 0x2b0   : > { %vm13917_vm2 = vmmov %vm13819_vm0  ;;  %13919 = vst [vmem:[#allocation92_spill] sm:$0xff] %v10855_v62  ;;  %v4432_v62 = vrot.slane %v7936_v3, 7  ;;  %v13932_v3 = vrot.slane %v10797_v36, 7  ;;  %v10919_v20 = vpop.f32.mrf.mxu0  ;;  %v4640_v36 = vrot.slane %v10904_v15, 7  ;;  %v7951_v15 = vld [vmem:[%s13563_s5 + $0x260] sm:$0xff] }
 0x2b1   : > { %13916 = vst [vmem:[#allocation90_spill] sm:$0xff] %v10847_v13  ;;  %v10852_v12 = vsel %vm13917_vm2, %v4105_v23, %v4109_v39  ;;  %vm13921_vm1 = vmmov %vm13819_vm0  ;;  %v13923_v23 = vrot.slane %v10784_v9, 7  ;;  %v4319_v9 = vrot.slane %v7925_v1, 7 }
 0x2b2   : > { %13918 = vst [vmem:[#allocation91_spill] sm:$0xff] %v10852_v12  ;;  %v10867_v13 = vsel %vm13921_vm1, %v4109_v39, %v13920_v29  ;;  %vm13924_vm6 = vmmov %vm13819_vm0  ;;  %v10877_v12 = vld [vmem:[%s13563_s5 + $0x180] sm:$0xff]  ;;  %v10887_v39 = vld [vmem:[%s13563_s5 + $0x1b0] sm:$0xff]  ;;  %v10890_v29 = vadd.f32 %v10614_v63, %v2840_v43  ;;  %v13930_v63 = vrot.slane %v10777_v14, 7 }
 0x2b3   : > { %13922 = vst [vmem:[#allocation93_spill] sm:$0xff] %v10867_v13  ;;  %v10872_v52 = vsel %vm13924_vm6, %v13923_v23, %v4426_v32  ;;  %13926 = vst [vmem:[#allocation95_spill] sm:$0xff] %v10877_v12  ;;  %v2842_v13 = vpop.f32.mrf.mxu1 }
 0x2b4   : > { %13925 = vst [vmem:[#allocation94_spill] sm:$0xff] %v10872_v52  ;;  %13927 = vst [vmem:[#allocation96_spill] sm:$0xff] %v10887_v39  ;;  %v10899_v52 = vld [vmem:[%s13563_s5 + $0x188] sm:$0xff]  ;;  %v10917_v1 = vadd.f32 %v10648_v10, %v2842_v13 }
 0x2b5   : > { %13928 = vst [vmem:[#allocation97_spill] sm:$0xff] %v10890_v29  ;;  %13929 = vst [vmem:[#allocation98_spill] sm:$0xff] %v10899_v52  ;;  %v4321_v29 = vrot.slane %v7926_v17, 7  ;;  %v2844_v10 = vpop.f32.mrf.mxu1 }
 0x2b6   : > { %vm13931_vm5 = vmmov %vm13819_vm0  ;;  %13935 = vst [vmem:[#allocation100_spill] sm:$0xff] %v10917_v1  ;;  %v3163_v1 = vpop.f32.mrf.mxu0 }
 0x2b7   : > { %v10909_v43 = vsel %vm13931_vm5, %v4111_v8, %v13930_v63  ;;  %vm13933_vm9 = vmmov %vm13819_vm0  ;;  %v4325_v63 = vrot.slane %v10882_v7, 7  ;;  %13937 = vst [vmem:[#allocation102_spill] sm:$0xff] %v10932_v58  ;;  %v10944_v7 = vld [vmem:[%s13563_s5 + $0x248] sm:$0xff]  ;;  %v10948_v8 = vadd.f32 %v10696_v51, %v2844_v10  ;;  %v7950_v51 = vld [vmem:[%s13563_s5 + $0x258] sm:$0xff] }
 0x2b8   : > { %v10914_v23 = vsel %vm13933_vm9, %v13932_v3, %v4428_v25  ;;  %vm13938_vm12 = vmmov %vm13819_vm0 }
 0x2b9   : > { %13934 = vst [vmem:[#allocation99_spill] sm:$0xff] %v10914_v23  ;;  %v10935_v13 = vsel %vm13938_vm12, %v4426_v32, %v4430_v21  ;;  %vm13940_vm13 = vmmov %vm13819_vm0  ;;  %v13943_v23 = vrot.slane %v10835_v48, 7 }
 0x2ba   : > { %13939 = vst [vmem:[#allocation103_spill] sm:$0xff] %v10935_v13  ;;  %v10938_v17 = vsel %vm13940_vm13, %v4428_v25, %v4432_v62  ;;  %13942 = vst [vmem:[#allocation105_spill] sm:$0xff] %v10948_v8  ;;  %v13946_v25 = vrot.slane %v10840_v54, 7  ;;  %v10991_v8 = vld [vmem:[%s13563_s5 + $0x278] sm:$0xff]  ;;  %v13973_v54 = vrot.slane %v10924_v47, 7 }
 0x2bb   : > { %13941 = vst [vmem:[#allocation104_spill] sm:$0xff] %v10938_v17  ;;  %vm13944_vm4 = vmmov %vm13819_vm0  ;;  %v13949_v17 = vrot.slane %v10877_v12, 7  ;;  %v4644_v12 = vrot.slane %v7951_v15, 7 }
 0x2bc   : > { %v10953_v32 = vsel %vm13944_vm4, %v4430_v21, %v13943_v23  ;;  %vm13947_vm11 = vmmov %vm13819_vm0  ;;  %v7952_v21 = vld [vmem:[%s13563_s5 + $0x268] sm:$0xff]  ;;  %v2848_v23 = vpop.f32.mrf.mxu1  ;;  %13958 = vst [vmem:[#allocation112_spill] sm:$0xff] %v10991_v8  ;;  %v11051_v48 = vsel %vm13819_vm0, %v4325_v63, %v13973_v54 }
 0x2bd   : > { %13945 = vst [vmem:[#allocation106_spill] sm:$0xff] %v10953_v32  ;;  %v10958_v3 = vsel %vm13947_vm11, %v4432_v62, %v13946_v25  ;;  %vm13950_vm15 = vmmov %vm13819_vm0  ;;  %v13952_v62 = vrot.slane %v10899_v52, 7  ;;  %v10986_v25 = vld [vmem:[%s13563_s5 + $0x270] sm:$0xff] }
 0x2be   : > { %13948 = vst [vmem:[#allocation107_spill] sm:$0xff] %v10958_v3  ;;  %v10963_v13 = vsel %vm13950_vm15, %v13949_v17, %v4319_v9  ;;  %vm13953_vm3 = vmmov %vm13819_vm0  ;;  %v3164_v17 = vpop.f32.mrf.mxu0 }
 0x2bf   : > { %13951 = vst [vmem:[#allocation108_spill] sm:$0xff] %v10963_v13  ;;  %v10977_v1 = vsel %vm13953_vm3, %v13952_v62, %v4321_v29  ;;  %vm13955_vm8 = vmmov %vm13819_vm0  ;;  %v7941_v62 = vld [vmem:[%s13563_s5 + $0x210] sm:$0xff]  ;;  %v7942_v13 = vld [vmem:[%s13563_s5 + $0x218] sm:$0xff]  ;;  %v13965_v17 = vrot.slane %v10932_v58, 7 }
 0x2c0   : > { %13954 = vst [vmem:[#allocation109_spill] sm:$0xff] %v10977_v1  ;;  %v10980_v10 = vsel %vm13955_vm8, %v4319_v9, %v4323_v18  ;;  %13957 = vst [vmem:[#allocation111_spill] sm:$0xff] %v10986_v25  ;;  %v10998_v9 = vadd.f32 %v10737_v38, %v2848_v23  ;;  %v13962_v1 = vrot.slane %v10887_v39, 7  ;;  %v7943_v38 = vld [vmem:[%s13563_s5 + $0x220] sm:$0xff]  ;;  %v2850_v23 = vpop.f32.mrf.mxu1  ;;  %v11036_v58 = vld [vmem:[%s13563_s5 + $0x238] sm:$0xff]  ;;  %v4535_v3 = vrot.slane %v7942_v13, 7 }
 0x2c1   : > { %13956 = vst [vmem:[#allocation110_spill] sm:$0xff] %v10980_v10  ;;  %vm13960_vm14 = vmmov %vm13819_vm0  ;;  %v11026_v39 = vld [vmem:[%s13563_s5 + $0x200] sm:$0xff]  ;;  %v4537_v32 = vrot.slane %v7943_v38, 7 }
 0x2c2   : > { %13959 = vst [vmem:[#allocation113_spill] sm:$0xff] %v10998_v9  ;;  %v11001_v10 = vsel %vm13960_vm14, %v4321_v29, %v4325_v63  ;;  %vm13963_vm7 = vmmov %vm13819_vm0  ;;  %v7944_v29 = vld [vmem:[%s13563_s5 + $0x228] sm:$0xff]  ;;  %v4646_v9 = vrot.slane %v7952_v21, 7  ;;  %v13603_v15 = vrot.slane %v11026_v39, 7  ;;  %vm14054_vm14 = vcmask 1046528  }
 0x2c3   : > { %13961 = vst [vmem:[#allocation114_spill] sm:$0xff] %v11001_v10  ;;  %v11006_v52 = vsel %vm13963_vm7, %v4323_v18, %v13962_v1  ;;  %vm13966_vm2 = vmmov %vm13819_vm0  ;;  %v4642_v1 = vrot.slane %v7950_v51, 7  ;;  %v11046_v21 = vld [vmem:[%s13563_s5 + $0x208] sm:$0xff]  ;;  %v2852_v10 = vpop.f32.mrf.mxu1 }
 0x2c4   : > { %13964 = vst [vmem:[#allocation115_spill] sm:$0xff] %v11006_v52  ;;  %v11021_v18 = vsel %vm13966_vm2, %v13965_v17, %v4640_v36  ;;  %13968 = vst [vmem:[#allocation117_spill] sm:$0xff] %v11026_v39  ;;  %v11031_v52 = vld [vmem:[%s13563_s5 + $0x230] sm:$0xff]  ;;  %v11039_v17 = vadd.f32 %v10772_v31, %v2850_v23  ;;  %v4539_v31 = vrot.slane %v7944_v29, 7  ;;  %v11054_v23 = vadd.f32 %v10803_v19, %v2852_v10 }
 0x2c5   : > { %13967 = vst [vmem:[#allocation116_spill] sm:$0xff] %v11021_v18  ;;  %13969 = vst [vmem:[#allocation118_spill] sm:$0xff] %v11031_v52  ;;  %v4533_v18 = vrot.slane %v7941_v62, 7  ;;  %v13604_v51 = vrot.slane %v11031_v52, 7  ;;  %v2854_v14 = vpop.f32.mrf.mxu1  ;;  %v13975_v62 = vrot.slane %v10944_v7, 7  ;;  %v13602_v19 = vrot.slane %v11046_v21, 7 }
 0x2c6   : > { %13970 = vst [vmem:[#allocation119_spill] sm:$0xff] %v11036_v58  ;;  %13971 = vst [vmem:[#allocation120_spill] sm:$0xff] %v11039_v17  ;;  %v13605_v17 = vrot.slane %v11036_v58, 7  ;;  %v11072_v13 = vadd.f32 %v10849_v6, %v2854_v14  ;;  %v13980_v10 = vrot.slane %v10986_v25, 7  ;;  %v13982_v29 = vrot.slane %v10991_v8, 7 }
 0x2c7   : > { %13972 = vst [vmem:[#allocation121_spill] sm:$0xff] %v11046_v21  ;;  %13974 = vst [vmem:[#allocation122_spill] sm:$0xff] %v11054_v23 }
 0x2c8   : > { %vm13976_vm1 = vmmov %vm13819_vm0  ;;  %13979 = vst [vmem:[#allocation123_spill] sm:$0xff] %v11072_v13 }
 0x2c9   : > { %v11062_v47 = vsel %vm13976_vm1, %v13975_v62, %v4642_v1  ;;  %vm13977_vm6 = vmmov %vm13819_vm0 }
 0x2ca   : > { %v11065_v54 = vsel %vm13977_vm6, %v4640_v36, %v4644_v12  ;;  %vm13978_vm5 = vmmov %vm13819_vm0 }
 0x2cb   : > { %v11068_v63 = vsel %vm13978_vm5, %v4642_v1, %v4646_v9  ;;  %vm13981_vm9 = vmmov %vm13819_vm0  ;;  %v2858_v1 = vpop.f32.mrf.mxu1 }
 0x2cc   : > { %v11077_v38 = vsel %vm13981_vm9, %v4644_v12, %v13980_v10  ;;  %vm13983_vm12 = vmmov %vm13819_vm0  ;;  %v11102_v10 = vadd.f32 %v10892_v0, %v2858_v1  ;;  %v5002_v1 = vrot.slane %v10487_v59, 5  ;;  %v14008_v59 = vrot.slane %v10591_v50, 5 }
 0x2cd   : > { %v11082_v62 = vsel %vm13983_vm12, %v4646_v9, %v13982_v29  ;;  %vm13985_vm13 = vmmov %vm13819_vm0  ;;  %v4822_v9 = vrot.slane %v10513_v4, 5  ;;  %v4828_v4 = vrot.slane %v10582_v22, 5  ;;  %v4737_v22 = vrot.slane %v10436_v53, 5 }
 0x2ce   : > { %13984 = vst [vmem:[#allocation124_spill] sm:$0xff] %v11082_v62  ;;  %v11087_v36 = vsel %vm13985_vm13, %v13603_v15, %v4533_v18  ;;  %vm13987_vm4 = vmmov %vm13819_vm0  ;;  %v2860_v15 = vpop.f32.mrf.mxu1 }
 0x2cf   : > { %13986 = vst [vmem:[#allocation125_spill] sm:$0xff] %v11087_v36  ;;  %v11092_v14 = vsel %vm13987_vm4, %v13602_v19, %v4535_v3  ;;  %vm13989_vm11 = vmmov %vm13819_vm0 }
 0x2d0   : > { %13988 = vst [vmem:[#allocation126_spill] sm:$0xff] %v11092_v14  ;;  %v11095_v6 = vsel %vm13989_vm11, %v4533_v18, %v4537_v32  ;;  %vm13991_vm15 = vmmov %vm13819_vm0  ;;  %v4731_v18 = vrot.slane %v10394_v37, 5 }
 0x2d1   : > { %13990 = vst [vmem:[#allocation127_spill] sm:$0xff] %v11095_v6  ;;  %v11098_v12 = vsel %vm13991_vm15, %v4535_v3, %v4539_v31  ;;  %13993 = vst [vmem:[#allocation129_spill] sm:$0xff] %v11102_v10  ;;  %v13606_v3 = vrot.slane %v10404_v26, 5  ;;  %v11120_v10 = vadd.f32 %v10919_v20, %v2860_v15  ;;  %v14002_v20 = vrot.slane %v10577_v45, 5  ;;  %v14065_v6 = vld [vmem:[#allocation48_spill] sm:$0xff] }
 0x2d2   : > { %13992 = vst [vmem:[#allocation128_spill] sm:$0xff] %v11098_v12  ;;  %vm13994_vm3 = vmmov %vm13819_vm0 }
 0x2d3   : > { %v11107_v29 = vsel %vm13994_vm3, %v4537_v32, %v13604_v51  ;;  %vm13996_vm8 = vmmov %vm13819_vm0  ;;  %13998 = vst [vmem:[#allocation132_spill] sm:$0xff] %v11120_v10  ;;  %v4824_v32 = vrot.slane %v10540_v24, 5  ;;  %v4826_v51 = vrot.slane %v10555_v42, 5  ;;  %v11128_v37 = vsel %vm2106_vm10, %v13606_v3, %v4822_v9 }
 0x2d4   : > { %13995 = vst [vmem:[#allocation130_spill] sm:$0xff] %v11107_v29  ;;  %v11112_v19 = vsel %vm13996_vm8, %v4539_v31, %v13605_v17  ;;  %v4733_v31 = vrot.slane %v10414_v28, 5  ;;  %v2862_v17 = vpop.f32.mrf.mxu1  ;;  %13999 = vst [vmem:[#allocation133_spill] sm:$0xff] %v11128_v37  ;;  %v14000_v24 = vrot.slane %v10365_v33, 5  ;;  %v4735_v3 = vrot.slane %v10419_v5, 5  ;;  %v14055_v37 = vld [vmem:[#allocation45_spill] sm:$0xff] }
 0x2d5   : > { %13997 = vst [vmem:[#allocation131_spill] sm:$0xff] %v11112_v19  ;;  %v5000_v17 = vrot.slane %v10470_v2, 5  ;;  %v11148_v10 = vsel %vm2106_vm10, %v14002_v20, %v4824_v32  ;;  %v14005_v28 = vrot.slane %v10431_v44, 5  ;;  %v5004_v5 = vrot.slane %v10508_v60, 5  ;;  %vm14057_vm7 = vmmov %vm14054_vm14 }
 0x2d6   : > { %v11137_v42 = vsel %vm2106_vm10, %v14000_v24, %v4731_v18  ;;  %v2863_v15 = vpop.f32.mrf.mxu1  ;;  %14003 = vst [vmem:[#allocation135_spill] sm:$0xff] %v11148_v10  ;;  %v11151_v24 = vsel %vm2106_vm10, %v4822_v9, %v4826_v51  ;;  %v11165_v0 = vsel %vm2106_vm10, %v4826_v51, %v14008_v59  ;;  %v5006_v9 = vrot.slane %v10529_v55, 5  ;;  %vm14060_vm2 = vmmov %vm14057_vm7 }
 0x2d7   : > { %14001 = vst [vmem:[#allocation134_spill] sm:$0xff] %v11137_v42  ;;  %14004 = vst [vmem:[#allocation136_spill] sm:$0xff] %v11151_v24  ;;  %v11156_v2 = vsel %vm2106_vm10, %v14005_v28, %v4733_v31  ;;  %v11160_v15 = vsel %vm2106_vm10, %v4824_v32, %v4828_v4  ;;  %v14010_v28 = vrot.slane %v10596_v61, 5  ;;  %v14012_v60 = vrot.slane %v10399_v16, 5 }
 0x2d8   : > { %14006 = vst [vmem:[#allocation137_spill] sm:$0xff] %v11156_v2  ;;  %v3451_v53 = vpop.f32.mrf.mxu1  ;;  %14007 = vst [vmem:[#allocation138_spill] sm:$0xff] %v11160_v15  ;;  %v11182_v59 = vsel %vm2106_vm10, %v4731_v18, %v4735_v3  ;;  %v11185_v55 = vsel %vm2106_vm10, %v4733_v31, %v4737_v22  ;;  %v11200_v18 = vsel %vm2106_vm10, %v5000_v17, %v5004_v5  ;;  %v14025_v31 = vrot.slane %v10534_v41, 5 }
 0x2d9   : > { %14009 = vst [vmem:[#allocation139_spill] sm:$0xff] %v11165_v0  ;;  %v3538_v13 = vadd.f32 %v3451_v53, %v10306_v11  ;;  %v11173_v23 = vsel %vm2106_vm10, %v4828_v4, %v14010_v28  ;;  %v11178_v32 = vsel %vm2106_vm10, %v14012_v60, %v5000_v17  ;;  %14014 = vst [vmem:[#allocation142_spill] sm:$0xff] %v11182_v59  ;;  %v14016_v11 = vrot.slane %v10441_v30, 5  ;;  %v14024_v17 = vld [vmem:[#allocation8_spill] sm:$0xff] }
 0x2da   : > { %14011 = vst [vmem:[#allocation140_spill] sm:$0xff] %v11173_v23  ;;  %14013 = vst [vmem:[#allocation141_spill] sm:$0xff] %v11178_v32  ;;  %v3453_v51 = vpop.f32.mrf.mxu1  ;;  %v14018_v4 = vrot.slane %v10482_v49, 5  ;;  %v14021_v32 = vrot.slane %v10463_v34, 5 }
 0x2db   : > { %14015 = vst [vmem:[#allocation143_spill] sm:$0xff] %v11185_v55  ;;  %v11190_v53 = vsel %vm2106_vm10, %v4735_v3, %v14016_v11  ;;  %v3584_v60 = vadd.f32 %v10386_v46, %v3538_v13  ;;  %v3539_v2 = vadd.f32 %v3453_v51, %v10308_v35  ;;  %14020 = vst [vmem:[#allocation146_spill] sm:$0xff] %v11200_v18  ;;  %v13608_v13 = vrot.slane %v10347_v40, 5 }
 0x2dc   : > { %14017 = vst [vmem:[#allocation144_spill] sm:$0xff] %v11190_v53  ;;  %v11195_v28 = vsel %vm2106_vm10, %v14018_v4, %v5002_v1  ;;  %v3455_v20 = vpop.f32.mrf.mxu1  ;;  %v11206_v3 = vsel %vm2106_vm10, %v4737_v22, %v14021_v32  ;;  %v11209_v11 = vsel %vm2106_vm10, %v5002_v1, %v5006_v9  ;;  %v11220_v18 = vsel %vm2106_vm10, %v5004_v5, %v14025_v31  ;;  %v14029_v4 = vld [vmem:[#allocation20_spill] sm:$0xff]  ;;  %v14033_v31 = vld [vmem:[#allocation13_spill] sm:$0xff]  ;;  %vm14064_vm0 = vmmov %vm14060_vm2 }
 0x2dd   : > { %14019 = vst [vmem:[#allocation145_spill] sm:$0xff] %v11195_v28  ;;  %14022 = vst [vmem:[#allocation147_spill] sm:$0xff] %v11206_v3  ;;  %v11213_v28 = vmax.f32 %v3584_v60, 0.0  ;;  %v3585_v35 = vadd.f32 %v10424_v57, %v3539_v2  ;;  %v3540_v51 = vadd.f32 %v3455_v20, %v14024_v17  ;;  %v14027_v32 = vrot.slane %v10571_v56, 5 }
 0x2de   : > { %14023 = vst [vmem:[#allocation148_spill] sm:$0xff] %v11209_v11  ;;  %14026 = vst [vmem:[#allocation8_spill] sm:$0xff] %v11220_v18  ;;  %v3457_v22 = vpop.f32.mrf.mxu1  ;;  %v14030_v60 = vrot.slane %v10342_v27, 5  ;;  %v14035_v40 = vrot.slane %v10365_v33, 7 }
 0x2df   : > { %v11225_v1 = vsel %vm2106_vm10, %v5006_v9, %v14027_v32  ;;  %v11236_v3 = vmax.f32 %v3585_v35, 0.0  ;;  %v3586_v5 = vadd.f32 %v10386_v46, %v3540_v51  ;;  %v3541_v18 = vadd.f32 %v3457_v22, %v14033_v31  ;;  %v14038_v22 = vld [vmem:[#allocation57_spill] sm:$0xff]  ;;  %vm14068_vm1 = vmmov %vm14064_vm0 }
 0x2e0   : > { %14028 = vst [vmem:[#allocation149_spill] sm:$0xff] %v11225_v1  ;;  %v11233_v2 = vsel %vm2106_vm10, %v14030_v60, %v13608_v13  ;;  %v14034_v9 = vrot.slane %v10342_v27, 7  ;;  %v3461_v11 = vpop.f32.mrf.mxu1  ;;  %v3697_v1 = vmul.f32 %v14035_v40, %v11213_v28  ;;  %v14036_v60 = vrot.slane %v10399_v16, 7  ;;  %v14040_v40 = vld [vmem:[#allocation9_spill] sm:$0xff]  ;;  %vm14073_vm6 = vmmov %vm14064_vm0 }
 0x2e1   : > { %14031 = vst [vmem:[#allocation150_spill] sm:$0xff] %v11233_v2  ;;  %v14037_v35 = vrot.slane %v10404_v26, 7  ;;  %v14039_v31 = vrot.slane %v14038_v22, 7  ;;  %v3587_v2 = vadd.f32 %v10424_v57, %v3541_v18  ;;  %v3542_v27 = vadd.f32 %v3461_v11, %v14040_v40  ;;  %v14044_v40 = vld [vmem:[#allocation10_spill] sm:$0xff]  ;;  %vm14079_vm5 = vmmov %vm14064_vm0 }
 0x2e2   : > { %v3913_v32 = vmul.f32 %v14034_v9, %v11213_v28  ;;  %v11249_v13 = vmul.f32 %v14036_v60, %v11213_v28  ;;  %v11261_v9 = vmax.f32 %v3586_v5, 0.0  ;;  %v14041_v60 = vrot.slane %v14029_v4, 7  ;;  %v3463_v16 = vpop.f32.mrf.mxu1  ;;  %vm14082_vm9 = vmmov %vm14064_vm0 }
 0x2e3   : > { %v11254_v51 = vmul.f32 %v14037_v35, %v11213_v28  ;;  %v11259_v17 = vmul.f32 %v14039_v31, %v11213_v28  ;;  %v14042_v35 = vrot.slane %v10431_v44, 7  ;;  %v3718_v22 = vrot.slane %v3697_v1, 1  ;;  %vm14084_vm12 = vmmov %vm14064_vm0 }
 0x2e4   : > { %v3914_v20 = vmul.f32 %v14041_v60, %v11236_v3  ;;  %v3933_v53 = vrot.slane %v3913_v32, 1  ;;  %v14043_v5 = vrot.slane %v10482_v49, 7  ;;  %v11278_v18 = vmax.f32 %v3587_v2, 0.0  ;;  %v14045_v60 = vld [vmem:[#allocation33_spill] sm:$0xff]  ;;  %v3465_v59 = vpop.f32.mrf.mxu1  ;;  %vm14086_vm13 = vmmov %vm14064_vm0 }
 0x2e5   : > { %v11271_v55 = vmul.f32 %v14042_v35, %v11236_v3  ;;  %v3588_v11 = vadd.f32 %v10386_v46, %v3542_v27  ;;  %v3543_v4 = vadd.f32 %v3463_v16, %v14044_v40  ;;  %v3915_v32 = vmul.f32 %v14045_v60, %v11261_v9  ;;  %v14046_v35 = vld [vmem:[#allocation42_spill] sm:$0xff]  ;;  %v14048_v16 = vld [vmem:[#allocation11_spill] sm:$0xff]  ;;  %vm14088_vm4 = vmmov %vm14064_vm0 }
 0x2e6   : > { %v11276_v31 = vmul.f32 %v14043_v5, %v11236_v3  ;;  %v3936_v42 = vrot.slane %v3914_v20, 1  ;;  %v11286_v44 = vmul.f32 %v14046_v35, %v11261_v9  ;;  %v14047_v5 = vld [vmem:[#allocation53_spill] sm:$0xff]  ;;  %v3544_v40 = vadd.f32 %v3465_v59, %v14048_v16  ;;  %v14049_v60 = vld [vmem:[#allocation34_spill] sm:$0xff]  ;;  %v3467_v20 = vpop.f32.mrf.mxu1  ;;  %v14050_v35 = vld [vmem:[#allocation44_spill] sm:$0xff] }
 0x2e7   : > { %v11291_v49 = vmul.f32 %v14047_v5, %v11261_v9  ;;  %v11293_v2 = vmax.f32 %v3588_v11, 0.0  ;;  %v3589_v27 = vadd.f32 %v10424_v57, %v3543_v4  ;;  %v3916_v33 = vmul.f32 %v14049_v60, %v11278_v18  ;;  %v14051_v5 = vld [vmem:[#allocation54_spill] sm:$0xff]  ;;  %v14052_v59 = vld [vmem:[#allocation12_spill] sm:$0xff]  ;;  %v14053_v60 = vld [vmem:[#allocation37_spill] sm:$0xff] }
 0x2e8   : > { %v3934_v23 = vrot.slane %v3915_v32, 1  ;;  %v11301_v0 = vmul.f32 %v14050_v35, %v11278_v18  ;;  %v11306_v15 = vmul.f32 %v14051_v5, %v11278_v18  ;;  %v3590_v4 = vadd.f32 %v10386_v46, %v3544_v40  ;;  %v3471_v32 = vpop.f32.mrf.mxu1  ;;  %vm14090_vm11 = vmmov %vm14064_vm0 }
 0x2e9   : > { %v11308_v11 = vmax.f32 %v3589_v27, 0.0  ;;  %v3545_v16 = vadd.f32 %v3467_v20, %v14052_v59  ;;  %v3917_v24 = vmul.f32 %v14053_v60, %v11293_v2  ;;  %v3937_v35 = vrot.slane %v3916_v33, 1  ;;  %v14058_v20 = vld [vmem:[#allocation14_spill] sm:$0xff]  ;;  %vm14091_vm15 = vmmov %vm14064_vm0 }
 0x2ea   : > { %v3935_v10 = vsel %vm14054_vm14, %v3933_v53, %v3934_v23  ;;  %v11317_v1 = vmul.f32 %v14055_v37, %v11293_v2  ;;  %v14056_v5 = vrot.slane %v11286_v44, 1  ;;  %v11324_v26 = vmax.f32 %v3590_v4, 0.0  ;;  %v14059_v60 = vld [vmem:[#allocation38_spill] sm:$0xff]  ;;  %v3473_v53 = vpop.f32.mrf.mxu1  ;;  %v14061_v37 = vld [vmem:[#allocation47_spill] sm:$0xff]  ;;  %vm14092_vm3 = vmmov %vm14064_vm0 }
 0x2eb   : > { %v3591_v40 = vadd.f32 %v10424_v57, %v3545_v16  ;;  %v3546_v59 = vadd.f32 %v3471_v32, %v14058_v20  ;;  %v3918_v58 = vmul.f32 %v14059_v60, %v11308_v11  ;;  %v3938_v33 = vsel %vm14060_vm2, %v3936_v42, %v3937_v35  ;;  %v14062_v16 = vld [vmem:[#allocation15_spill] sm:$0xff]  ;;  %vm14093_vm8 = vmmov %vm14064_vm0 }
 0x2ec   : > { %v11322_v27 = vsel %vm14057_vm7, %v3718_v22, %v14056_v5  ;;  %v3939_v52 = vrot.slane %v3917_v24, 1  ;;  %v11333_v19 = vmul.f32 %v14061_v37, %v11308_v11  ;;  %v3722_v22 = vrot.slane %v11301_v0, 1  ;;  %v14063_v32 = vld [vmem:[#allocation39_spill] sm:$0xff]  ;;  %v3475_v60 = vpop.f32.mrf.mxu1  ;;  %vm14096_vm14 = vmmov %vm14064_vm0 }
 0x2ed   : > { %v11336_v5 = vmax.f32 %v3591_v40, 0.0  ;;  %v3592_v4 = vadd.f32 %v10386_v46, %v3546_v59  ;;  %v3547_v29 = vadd.f32 %v3473_v53, %v14062_v16  ;;  %v3919_v20 = vmul.f32 %v14063_v32, %v11324_v26  ;;  %v14066_v40 = vld [vmem:[#allocation17_spill] sm:$0xff]  ;;  %v14067_v59 = vld [vmem:[#allocation40_spill] sm:$0xff]  ;;  %vm14104_vm7 = vmmov %vm14064_vm0 }
 0x2ee   : > { %v3940_v12 = vsel %vm14064_vm0, %v3934_v23, %v3939_v52  ;;  %v3941_v42 = vrot.slane %v3918_v58, 1  ;;  %v3959_v24 = vadd.f32 %v3938_v33, %v3935_v10  ;;  %v3703_v37 = vmul.f32 %v14065_v6, %v11324_v26  ;;  %v3477_v16 = vpop.f32.mrf.mxu1  ;;  %v14069_v58 = vld [vmem:[#allocation52_spill] sm:$0xff]  ;;  %vm14105_vm2 = vmmov %vm14064_vm0 }
 0x2ef   : > { %v11345_v14 = vmax.f32 %v3592_v4, 0.0  ;;  %v3593_v0 = vadd.f32 %v10424_v57, %v3547_v29  ;;  %v3548_v36 = vadd.f32 %v3475_v60, %v14066_v40  ;;  %v3920_v53 = vmul.f32 %v14067_v59, %v11336_v5  ;;  %v14070_v33 = vld [vmem:[#allocation16_spill] sm:$0xff] }
 0x2f0   : > { %v3942_v32 = vsel %vm14068_vm1, %v3937_v35, %v3941_v42  ;;  %v3943_v21 = vrot.slane %v3919_v20, 1  ;;  %v3960_v39 = vadd.f32 %v3959_v24, %v3940_v12  ;;  %v3704_v23 = vmul.f32 %v14069_v58, %v11336_v5  ;;  %v14071_v29 = vld [vmem:[#allocation24_spill] sm:$0xff]  ;;  %v3481_v8 = vpop.f32.mrf.mxu1  ;;  %vm14106_vm1 = vmmov %vm14064_vm0 }
 0x2f1   : > { %v11354_v10 = vmax.f32 %v3593_v0, 0.0  ;;  %v3594_v6 = vadd.f32 %v10386_v46, %v3548_v36  ;;  %v3549_v4 = vadd.f32 %v3477_v16, %v14070_v33  ;;  %v14072_v60 = vrot.slane %v14071_v29, 7  ;;  %v14076_v36 = vld [vmem:[#allocation23_spill] sm:$0xff]  ;;  %v14077_v16 = vld [vmem:[#allocation29_spill] sm:$0xff] }
 0x2f2   : > { %v3944_v59 = vsel %vm14073_vm6, %v3939_v52, %v3943_v21  ;;  %v3945_v25 = vrot.slane %v3920_v53, 1  ;;  %v3961_v35 = vadd.f32 %v3960_v39, %v3942_v32  ;;  %v14074_v12 = vrot.slane %v10441_v30, 7  ;;  %vm14107_vm6 = vmmov %vm14064_vm0 }
 0x2f3   : > { %v3921_v40 = vmul.f32 %v14072_v60, %v11345_v14  ;;  %v11365_v24 = vmax.f32 %v3594_v6, 0.0  ;;  %v3595_v0 = vadd.f32 %v10424_v57, %v3549_v4  ;;  %v3550_v58 = vadd.f32 %v3481_v8, %v14076_v36  ;;  %v3483_v60 = vpop.f32.mrf.mxu1  ;;  %v14081_v4 = vld [vmem:[#allocation27_spill] sm:$0xff] }
 0x2f4   : > { %v3705_v20 = vmul.f32 %v14074_v12, %v11345_v14  ;;  %v14078_v33 = vrot.slane %v14077_v16, 7  ;;  %v3946_v62 = vsel %vm14079_vm5, %v3941_v42, %v3945_v25  ;;  %v3962_v53 = vadd.f32 %v3961_v35, %v3944_v59  ;;  %vm14108_vm5 = vmmov %vm14064_vm0 }
 0x2f5   : > { %14075 = vst [vmem:[#allocation13_spill] sm:$0xff] %v11365_v24  ;;  %v3947_v52 = vrot.slane %v3921_v40, 1  ;;  %v14080_v39 = vrot.slane %v10463_v34, 7  ;;  %v11376_v12 = vmax.f32 %v3595_v0, 0.0  ;;  %v3596_v6 = vadd.f32 %v10386_v46, %v3550_v58  ;;  %v3485_v36 = vpop.f32.mrf.mxu1  ;;  %v14085_v0 = vld [vmem:[#allocation32_spill] sm:$0xff] }
 0x2f6   : > { %v3922_v29 = vmul.f32 %v14078_v33, %v11354_v10  ;;  %v3551_v30 = vadd.f32 %v3483_v60, %v14081_v4  ;;  %v3963_v33 = vadd.f32 %v3962_v53, %v3946_v62  ;;  %v14083_v24 = vrot.slane %v11271_v55, 1 }
 0x2f7   : > { %v3706_v32 = vmul.f32 %v14080_v39, %v11354_v10  ;;  %v3948_v16 = vsel %vm14082_vm9, %v3943_v21, %v3947_v52  ;;  %v3724_v40 = vrot.slane %v11317_v1, 1  ;;  %v11385_v59 = vmax.f32 %v3596_v6, 0.0  ;;  %v3487_v60 = vpop.f32.mrf.mxu1  ;;  %v14089_v52 = vld [vmem:[#allocation35_spill] sm:$0xff]  ;;  %vm14109_vm9 = vmmov %vm14064_vm0 }
 0x2f8   : > { %v3949_v8 = vrot.slane %v3922_v29, 1  ;;  %v3723_v42 = vsel %vm14084_vm12, %v14083_v24, %v3722_v22  ;;  %v3597_v35 = vadd.f32 %v10424_v57, %v3551_v30  ;;  %v3552_v39 = vadd.f32 %v3485_v36, %v14085_v0  ;;  %vm14112_vm12 = vmmov %vm14064_vm0 }
 0x2f9   : > { %v3964_v29 = vadd.f32 %v3963_v33, %v3948_v16  ;;  %v14087_v4 = vrot.slane %v11286_v44, 1  ;;  %v3726_v62 = vrot.slane %v11333_v19, 1  ;;  %v3728_v55 = vrot.slane %v3703_v37, 1  ;;  %v3491_v16 = vpop.f32.mrf.mxu1 }
 0x2fa   : > { %v3950_v58 = vsel %vm14086_vm13, %v3945_v25, %v3949_v8  ;;  %v11394_v24 = vmax.f32 %v3597_v35, 0.0  ;;  %v3598_v1 = vadd.f32 %v10386_v46, %v3552_v39  ;;  %v3553_v53 = vadd.f32 %v3487_v60, %v14089_v52  ;;  %v14100_v52 = vld [vmem:[#allocation67_spill] sm:$0xff]  ;;  %vm14120_vm13 = vmmov %vm14064_vm0 }
 0x2fb   : > { %v3725_v21 = vsel %vm14088_vm4, %v14087_v4, %v3724_v40  ;;  %v3730_v30 = vrot.slane %v3704_v23, 1  ;;  %v3965_v6 = vadd.f32 %v3964_v29, %v3950_v58  ;;  %v3727_v36 = vsel %vm14090_vm11, %v3722_v22, %v3726_v62  ;;  %v14094_v23 = vld [vmem:[#allocation41_spill] sm:$0xff]  ;;  %v3493_v58 = vpop.f32.mrf.mxu1  ;;  %v14095_v22 = vld [vmem:[#allocation56_spill] sm:$0xff]  ;;  %v14097_v29 = vld [vmem:[#allocation46_spill] sm:$0xff] }
 0x2fc   : > { %v3729_v25 = vsel %vm14091_vm15, %v3724_v40, %v3728_v55  ;;  %v3732_v8 = vrot.slane %v3705_v20, 1  ;;  %v11400_v44 = vmax.f32 %v3598_v1, 0.0  ;;  %v3599_v33 = vadd.f32 %v10424_v57, %v3553_v53  ;;  %vm14121_vm4 = vmmov %vm14064_vm0 }
 0x2fd   : > { %v3731_v19 = vsel %vm14092_vm3, %v3726_v62, %v3730_v30  ;;  %v3734_v37 = vrot.slane %v3706_v32, 1  ;;  %3966 = vadd.xlane.f32.xlu1 %v3965_v6  ;;  %v3744_v0 = vadd.f32 %v3723_v42, %v11322_v27  ;;  %v3554_v39 = vadd.f32 %v3491_v16, %v14094_v23  ;;  %v14098_v62 = vld [vmem:[#allocation58_spill] sm:$0xff]  ;;  %v14099_v27 = vld [vmem:[#allocation59_spill] sm:$0xff]  ;;  %v11420_v6 = vpop.f32.mrf.mxu1  ;;  %vm14122_vm11 = vmmov %vm14064_vm0 }
 0x2fe   : > { %v3733_v35 = vsel %vm14093_vm8, %v3728_v55, %v3732_v8  ;;  %v4024_v40 = vmul.f32 %v14095_v22, %v11293_v2  ;;  %v11409_v20 = vmax.f32 %v3599_v33, 0.0  ;;  %v3555_v4 = vadd.f32 %v3493_v58, %v14097_v29  ;;  %vm14123_vm15 = vmmov %vm14064_vm0 }
 0x2ff   : > { %v3735_v60 = vsel %vm14096_vm14, %v3730_v30, %v3734_v37  ;;  %v4025_v32 = vmul.f32 %v14098_v62, %v11308_v11  ;;  %v3745_v1 = vadd.f32 %v3744_v0, %v3725_v21  ;;  %v3600_v55 = vadd.f32 %v10386_v46, %v3554_v39  ;;  %v3497_v22 = vpop.f32.mrf.mxu1  ;;  %vm14124_vm3 = vmmov %vm14064_vm0 }
 0x300   : > { %v4026_v42 = vmul.f32 %v14099_v27, %v11324_v26  ;;  %v4027_v53 = vmul.f32 %v14100_v52, %v11336_v5  ;;  %v3601_v8 = vadd.f32 %v10424_v57, %v3555_v4  ;;  %v14101_v30 = vrot.slane %v10534_v41, 7  ;;  %vm14125_vm8 = vmmov %vm14064_vm0 }
 0x301   : > { %v14102_v33 = vrot.slane %v10571_v56, 7  ;;  %v4040_v37 = vrot.slane %v11249_v13, 1  ;;  %v3746_v0 = vadd.f32 %v3745_v1, %v3727_v36  ;;  %v11430_v23 = vmax.f32 %v3600_v55, 0.0  ;;  %v11438_v13 = vpop.f32.mrf.mxu1  ;;  %vm14126_vm14 = vmmov %vm14064_vm0 }
 0x302   : > { %v4028_v16 = vmul.f32 %v14101_v30, %v11345_v14  ;;  %v4041_v39 = vrot.slane %v11291_v49, 1  ;;  %v4043_v58 = vrot.slane %v11276_v31, 1  ;;  %v11434_v29 = vmax.f32 %v3601_v8, 0.0 }
 0x303   : > { %v4029_v21 = vmul.f32 %v14102_v33, %v11354_v10  ;;  %v4044_v4 = vrot.slane %v11306_v15, 1  ;;  %v4046_v62 = vrot.slane %v4024_v40, 1  ;;  %v4048_v27 = vrot.slane %v4025_v32, 1 }
 0x304   : > { %14103 = vst [vmem:[#allocation57_spill] sm:$0xff] %v11434_v29  ;;  %v3747_v52 = vadd.f32 %v3746_v0, %v3729_v25  ;;  %v4042_v30 = vsel %vm14104_vm7, %v4040_v37, %v4041_v39  ;;  %v4050_v33 = vrot.slane %v4026_v42, 1  ;;  %v4052_v56 = vrot.slane %v4027_v53, 1  ;;  %v14111_v37 = vld [vmem:[#allocation60_spill] sm:$0xff]  ;;  %vm14132_vm7 = vmmov %vm14064_vm0 }
 0x305   : > { %v4045_v36 = vsel %vm14105_vm2, %v4043_v58, %v4044_v4  ;;  %v4047_v49 = vsel %vm14064_vm0, %v4041_v39, %v4046_v62  ;;  %v4049_v31 = vsel %vm14106_vm1, %v4044_v4, %v4048_v27  ;;  %v4054_v1 = vrot.slane %v4028_v16, 1  ;;  %v11451_v39 = vpop.f32.mrf.mxu1  ;;  %v14113_v16 = vld [vmem:[#allocation61_spill] sm:$0xff]  ;;  %vm14144_vm2 = vmmov %vm14064_vm0 }
 0x306   : > { %v3748_v55 = vadd.f32 %v3747_v52, %v3731_v19  ;;  %v4051_v8 = vsel %vm14107_vm6, %v4046_v62, %v4050_v33  ;;  %v4053_v15 = vsel %vm14108_vm5, %v4048_v27, %v4052_v56  ;;  %v4056_v40 = vrot.slane %v4029_v21, 1  ;;  %v14114_v21 = vld [vmem:[#allocation63_spill] sm:$0xff]  ;;  %v14115_v52 = vld [vmem:[#allocation68_spill] sm:$0xff]  ;;  %vm14145_vm1 = vmmov %vm14064_vm0 }
 0x307   : > { %v4055_v25 = vsel %vm14109_vm9, %v4050_v33, %v4054_v1  ;;  %v4066_v32 = vadd.f32 %v4045_v36, %v4042_v30  ;;  %v14110_v42 = vrot.slane %v10577_v45, 7  ;;  %v3808_v0 = vmul.f32 %v14111_v37, %v11261_v9  ;;  %v14116_v33 = vld [vmem:[#allocation69_spill] sm:$0xff]  ;;  %v14117_v1 = vld [vmem:[#allocation70_spill] sm:$0xff]  ;;  %v11471_v41 = vpop.f32.mrf.mxu1  ;;  %vm14146_vm6 = vmmov %vm14064_vm0 }
 0x308   : > { %v3749_v58 = vadd.f32 %v3748_v55, %v3733_v35  ;;  %v4057_v19 = vsel %vm14112_vm12, %v4052_v56, %v4056_v40  ;;  %v3809_v4 = vmul.f32 %v14113_v16, %v11278_v18  ;;  %v3810_v62 = vmul.f32 %v14114_v21, %v11293_v2  ;;  %vm14147_vm5 = vmmov %vm14064_vm0 }
 0x309   : > { %v3807_v53 = vmul.f32 %v14110_v42, %v11236_v3  ;;  %v4067_v27 = vadd.f32 %v4066_v32, %v4047_v49  ;;  %v3811_v30 = vmul.f32 %v14115_v52, %v11308_v11  ;;  %v3812_v36 = vmul.f32 %v14116_v33, %v11324_v26  ;;  %vm14148_vm9 = vmmov %vm14064_vm0 }
 0x30a   : > { %v3813_v42 = vmul.f32 %v14117_v1, %v11336_v5  ;;  %v3750_v37 = vadd.f32 %v3749_v58, %v3735_v60  ;;  %v14118_v56 = vrot.slane %v10591_v50, 7  ;;  %v14119_v55 = vrot.slane %v10596_v61, 7  ;;  %vm14149_vm12 = vmmov %vm14064_vm0 }
 0x30b   : > { %v3826_v49 = vrot.slane %v11254_v51, 1  ;;  %v4068_v32 = vadd.f32 %v4067_v27, %v4049_v31  ;;  %v3827_v16 = vrot.slane %v3808_v0, 1  ;;  %v3829_v21 = vrot.slane %v3807_v53, 1 }
 0x30c   : > { %v3814_v35 = vmul.f32 %v14118_v56, %v11345_v14  ;;  %v3815_v40 = vmul.f32 %v14119_v55, %v11354_v10  ;;  %v3830_v52 = vrot.slane %v3809_v4, 1  ;;  %3751 = vadd.xlane.f32.xlu0 %v3750_v37  ;;  %v3832_v33 = vrot.slane %v3810_v62, 1 }
 0x30d   : > { %v3834_v1 = vrot.slane %v3811_v30, 1  ;;  %v3836_v60 = vrot.slane %v3812_v36, 1  ;;  %v3838_v58 = vrot.slane %v3813_v42, 1  ;;  %v4069_v34 = vadd.f32 %v4068_v32, %v4051_v8  ;;  %v11480_v30 = vpop.f32.mrf.mxu1  ;;  %v14127_v8 = vld [vmem:[#allocation51_spill] sm:$0xff] }
 0x30e   : > { %v3828_v56 = vsel %vm14120_vm13, %v3826_v49, %v3827_v16  ;;  %v3831_v29 = vsel %vm14121_vm4, %v3829_v21, %v3830_v52  ;;  %v3840_v61 = vrot.slane %v3814_v35, 1  ;;  %v3833_v55 = vsel %vm14122_vm11, %v3827_v16, %v3832_v33  ;;  %v14128_v42 = vld [vmem:[#allocation55_spill] sm:$0xff]  ;;  %v14129_v35 = vld [vmem:[#allocation62_spill] sm:$0xff]  ;;  %vm14155_vm13 = vmmov %vm14064_vm0 }
 0x30f   : > { %v3835_v51 = vsel %vm14123_vm15, %v3830_v52, %v3834_v1  ;;  %v3837_v31 = vsel %vm14124_vm3, %v3832_v33, %v3836_v60  ;;  %v3839_v53 = vsel %vm14125_vm8, %v3834_v1, %v3838_v58  ;;  %v4070_v0 = vadd.f32 %v4069_v34, %v4053_v15  ;;  %v14131_v16 = vld [vmem:[#allocation75_spill] sm:$0xff]  ;;  %v14135_v1 = vld [vmem:[#allocation81_spill] sm:$0xff]  ;;  %vm14165_vm4 = vmmov %vm14064_vm0 }
 0x310   : > { %v3841_v4 = vsel %vm14126_vm14, %v3836_v60, %v3840_v61  ;;  %v3842_v62 = vrot.slane %v3815_v40, 1  ;;  %v3852_v27 = vadd.f32 %v3831_v29, %v3828_v56  ;;  %v3556_v36 = vadd.f32 %v11420_v6, %v14127_v8  ;;  %v14133_v29 = vld [vmem:[#allocation76_spill] sm:$0xff]  ;;  %vm14166_vm11 = vmmov %vm14064_vm0 }
 0x311   : > { %v3557_v37 = vadd.f32 %v3497_v22, %v14128_v42  ;;  %v14130_v49 = vrot.slane %v14129_v35, 7  ;;  %v4236_v21 = vmul.f32 %v14131_v16, %v11261_v9  ;;  %v4071_v52 = vadd.f32 %v4070_v0, %v4055_v25  ;;  %v14134_v22 = vld [vmem:[#allocation77_spill] sm:$0xff]  ;;  %v14136_v25 = vld [vmem:[#allocation84_spill] sm:$0xff]  ;;  %vm14167_vm15 = vmmov %vm14064_vm0 }
 0x312   : > { %v3843_v34 = vsel %vm14132_vm7, %v3838_v58, %v3842_v62  ;;  %v3853_v61 = vadd.f32 %v3852_v27, %v3833_v55  ;;  %v4237_v15 = vmul.f32 %v14133_v29, %v11278_v18  ;;  %v3602_v40 = vadd.f32 %v10386_v46, %v3556_v36  ;;  %v14137_v58 = vld [vmem:[#allocation85_spill] sm:$0xff]  ;;  %v11503_v62 = vpop.f32.mrf.mxu1  ;;  %v14140_v42 = vld [vmem:[#allocation64_spill] sm:$0xff]  ;;  %vm14168_vm3 = vmmov %vm14064_vm0 }
 0x313   : > { %v4235_v32 = vmul.f32 %v14130_v49, %v11236_v3  ;;  %v3603_v6 = vadd.f32 %v10424_v57, %v3557_v37  ;;  %v4238_v33 = vmul.f32 %v14134_v22, %v11293_v2  ;;  %v4239_v60 = vmul.f32 %v14135_v1, %v11308_v11  ;;  %v14142_v49 = vld [vmem:[#allocation65_spill] sm:$0xff]  ;;  %vm14169_vm8 = vmmov %vm14064_vm0 }
 0x314   : > { %v4072_v56 = vadd.f32 %v4071_v52, %v4057_v19  ;;  %v3854_v8 = vadd.f32 %v3853_v61, %v3835_v51  ;;  %v4240_v0 = vmul.f32 %v14136_v25, %v11324_v26  ;;  %v4241_v55 = vmul.f32 %v14137_v58, %v11336_v5  ;;  %vm14170_vm14 = vmmov %vm14064_vm0 }
 0x315   : > { %v11505_v27 = vmax.f32 %v3602_v40, 0.0  ;;  %v11507_v36 = vmax.f32 %v3603_v6, 0.0  ;;  %v14141_v37 = vrot.slane %v14140_v42, 7  ;;  %v14143_v19 = vrot.slane %v14142_v49, 7  ;;  %vm14171_vm7 = vmmov %vm14064_vm0 }
 0x316   : > { %4073 = vadd.xlane.f32.xlu1 %v4072_v56  ;;  %v3855_v16 = vadd.f32 %v3854_v8, %v3837_v31  ;;  %v4254_v52 = vrot.slane %v11259_v17, 1  ;;  %v4255_v61 = vrot.slane %v4236_v21, 1  ;;  %v4257_v29 = vrot.slane %v4235_v32, 1 }
 0x317   : > { %14138 = vst [vmem:[#allocation9_spill] sm:$0xff] %v11505_v27  ;;  %14139 = vst [vmem:[#allocation10_spill] sm:$0xff] %v11507_v36  ;;  %v4242_v35 = vmul.f32 %v14141_v37, %v11345_v14  ;;  %v4243_v51 = vmul.f32 %v14143_v19, %v11354_v10  ;;  %v4258_v22 = vrot.slane %v4237_v15, 1  ;;  %v4260_v1 = vrot.slane %v4238_v33, 1  ;;  %v11517_v37 = vpop.f32.mrf.mxu1 }
 0x318   : > { %v4262_v40 = vrot.slane %v4239_v60, 1  ;;  %v4264_v25 = vrot.slane %v4240_v0, 1  ;;  %v3856_v6 = vadd.f32 %v3855_v16, %v3839_v53  ;;  %v4256_v58 = vsel %vm14144_vm2, %v4254_v52, %v4255_v61  ;;  %v14150_v60 = vld [vmem:[#allocation71_spill] sm:$0xff]  ;;  %v14154_v16 = vld [vmem:[#allocation86_spill] sm:$0xff]  ;;  %vm14173_vm2 = vmmov %vm14064_vm0 }
 0x319   : > { %v4266_v36 = vrot.slane %v4241_v55, 1  ;;  %v4268_v42 = vrot.slane %v4242_v35, 1  ;;  %v4259_v49 = vsel %vm14064_vm0, %v4257_v29, %v4258_v22  ;;  %v4261_v56 = vsel %vm14145_vm1, %v4255_v61, %v4260_v1  ;;  %v14152_v55 = vld [vmem:[#allocation73_spill] sm:$0xff]  ;;  %v14156_v29 = vld [vmem:[#allocation87_spill] sm:$0xff]  ;;  %vm14192_vm1 = vmmov %vm14064_vm0 }
 0x31a   : > { %v4263_v31 = vsel %vm14146_vm6, %v4258_v22, %v4262_v40  ;;  %v4265_v17 = vsel %vm14147_vm5, %v4260_v1, %v4264_v25  ;;  %v3857_v32 = vadd.f32 %v3856_v6, %v3841_v4  ;;  %v4270_v53 = vrot.slane %v4243_v51, 1  ;;  %v14157_v51 = vld [vmem:[#allocation91_spill] sm:$0xff]  ;;  %v14159_v6 = vld [vmem:[#allocation92_spill] sm:$0xff]  ;;  %vm14193_vm6 = vmmov %vm14064_vm0 }
 0x31b   : > { %v4267_v21 = vsel %vm14148_vm9, %v4262_v40, %v4266_v36  ;;  %v4269_v15 = vsel %vm14149_vm12, %v4264_v25, %v4268_v42  ;;  %v4280_v33 = vadd.f32 %v4259_v49, %v4256_v58  ;;  %v14151_v8 = vrot.slane %v14150_v60, 7  ;;  %v11538_v40 = vpop.f32.mrf.mxu1  ;;  %v14160_v42 = vld [vmem:[#allocation93_spill] sm:$0xff]  ;;  %v14163_v60 = vld [vmem:[#allocation79_spill] sm:$0xff]  ;;  %vm14194_vm5 = vmmov %vm14064_vm0 }
 0x31c   : > { %v14153_v35 = vrot.slane %v14152_v55, 7  ;;  %v4129_v52 = vmul.f32 %v14154_v16, %v11261_v9  ;;  %v3858_v61 = vadd.f32 %v3857_v32, %v3843_v34  ;;  %v4271_v4 = vsel %vm14155_vm13, %v4266_v36, %v4270_v53  ;;  %14158 = vst [vmem:[#allocation33_spill] sm:$0xff] %v11538_v40  ;;  %v14161_v36 = vld [vmem:[#allocation74_spill] sm:$0xff]  ;;  %vm14195_vm9 = vmmov %vm14064_vm0 }
 0x31d   : > { %v4127_v0 = vmul.f32 %v14151_v8, %v11213_v28  ;;  %v4130_v22 = vmul.f32 %v14156_v29, %v11278_v18  ;;  %v4131_v1 = vmul.f32 %v14157_v51, %v11293_v2  ;;  %v4281_v25 = vadd.f32 %v4280_v33, %v4261_v56  ;;  %vm14197_vm12 = vmmov %vm14064_vm0 }
 0x31e   : > { %v4128_v19 = vmul.f32 %v14153_v35, %v11236_v3  ;;  %v4132_v58 = vmul.f32 %v14159_v6, %v11308_v11  ;;  %v4133_v49 = vmul.f32 %v14160_v42, %v11324_v26  ;;  %v4134_v34 = vmul.f32 %v10909_v43, %v11336_v5  ;;  %3859 = vadd.xlane.f32.xlu0 %v3858_v61  ;;  %v11553_v61 = vpop.f32.mrf.mxu1  ;;  %vm14198_vm13 = vmmov %vm14064_vm0 }
 0x31f   : > { %v14162_v32 = vrot.slane %v14161_v36, 7  ;;  %v14164_v8 = vrot.slane %v14163_v60, 7  ;;  %v4147_v35 = vrot.slane %v4127_v0, 1  ;;  %v4148_v56 = vrot.slane %v4129_v52, 1 }
 0x320   : > { %v4282_v33 = vadd.f32 %v4281_v25, %v4263_v31  ;;  %v4150_v16 = vrot.slane %v4128_v19, 1  ;;  %v4151_v29 = vrot.slane %v4130_v22, 1  ;;  %v4153_v51 = vrot.slane %v4131_v1, 1 }
 0x321   : > { %v4135_v53 = vmul.f32 %v14162_v32, %v11345_v14  ;;  %v4136_v55 = vmul.f32 %v14164_v8, %v11354_v10  ;;  %v4149_v6 = vsel %vm14165_vm4, %v4147_v35, %v4148_v56  ;;  %v4155_v42 = vrot.slane %v4132_v58, 1  ;;  %v14172_v58 = vld [vmem:[#allocation66_spill] sm:$0xff]  ;;  %vm14204_vm4 = vmmov %vm14064_vm0 }
 0x322   : > { %v4157_v27 = vrot.slane %v4133_v49, 1  ;;  %v4159_v43 = vrot.slane %v4134_v34, 1  ;;  %v4283_v40 = vadd.f32 %v4282_v33, %v4265_v17  ;;  %v4152_v36 = vsel %vm14166_vm11, %v4150_v16, %v4151_v29  ;;  %v14174_v34 = vld [vmem:[#allocation72_spill] sm:$0xff]  ;;  %v14177_v33 = vld [vmem:[#allocation82_spill] sm:$0xff]  ;;  %vm14214_vm11 = vmmov %vm14064_vm0 }
 0x323   : > { %v4154_v32 = vsel %vm14167_vm15, %v4148_v56, %v4153_v51  ;;  %v4161_v60 = vrot.slane %v4135_v53, 1  ;;  %v4156_v0 = vsel %vm14168_vm3, %v4151_v29, %v4155_v42  ;;  %v4163_v52 = vrot.slane %v4136_v55, 1  ;;  %v14175_v53 = vld [vmem:[#allocation80_spill] sm:$0xff]  ;;  %vm14215_vm15 = vmmov %vm14064_vm0 }
 0x324   : > { %v4158_v31 = vsel %vm14169_vm8, %v4153_v51, %v4157_v27  ;;  %v4160_v19 = vsel %vm14170_vm14, %v4155_v42, %v4159_v43  ;;  %v4284_v22 = vadd.f32 %v4283_v40, %v4267_v21  ;;  %v4173_v25 = vadd.f32 %v4152_v36, %v4149_v6  ;;  %v11572_v21 = vpop.f32.mrf.mxu1  ;;  %vm14216_vm3 = vmmov %vm14064_vm0 }
 0x325   : > { %v4162_v1 = vsel %vm14171_vm7, %v4157_v27, %v4161_v60  ;;  %v3558_v49 = vadd.f32 %v11438_v13, %v14172_v58  ;;  %v4164_v17 = vsel %vm14173_vm2, %v4159_v43, %v4163_v52  ;;  %v3559_v8 = vadd.f32 %v11451_v39, %v14174_v34  ;;  %v14179_v13 = vld [vmem:[#allocation94_spill] sm:$0xff]  ;;  %v14180_v39 = vld [vmem:[#allocation99_spill] sm:$0xff]  ;;  %v14182_v60 = vld [vmem:[#allocation104_spill] sm:$0xff] }
 0x326   : > { %v14176_v35 = vrot.slane %v14175_v53, 7  ;;  %v14178_v16 = vrot.slane %v14177_v33, 7  ;;  %v4285_v27 = vadd.f32 %v4284_v22, %v4269_v15  ;;  %v4174_v40 = vadd.f32 %v4173_v25, %v4154_v32  ;;  %v14181_v43 = vld [vmem:[#allocation103_spill] sm:$0xff]  ;;  %v14184_v32 = vld [vmem:[#allocation106_spill] sm:$0xff]  ;;  %v14187_v53 = vld [vmem:[#allocation88_spill] sm:$0xff] }
 0x327   : > { %v3604_v29 = vadd.f32 %v10386_v46, %v3558_v49  ;;  %v4450_v51 = vmul.f32 %v14179_v13, %v11261_v9  ;;  %v3605_v6 = vadd.f32 %v10424_v57, %v3559_v8  ;;  %v4451_v42 = vmul.f32 %v14180_v39, %v11278_v18  ;;  %v14186_v49 = vld [vmem:[#allocation107_spill] sm:$0xff]  ;;  %vm14217_vm8 = vmmov %vm14064_vm0 }
 0x328   : > { %v4448_v56 = vmul.f32 %v14176_v35, %v11213_v28  ;;  %v4449_v55 = vmul.f32 %v14178_v16, %v11236_v3  ;;  %v4452_v36 = vmul.f32 %v14181_v43, %v11293_v2  ;;  %v4453_v52 = vmul.f32 %v14182_v60, %v11308_v11  ;;  %v14189_v16 = vld [vmem:[#allocation89_spill] sm:$0xff]  ;;  %vm14218_vm14 = vmmov %vm14064_vm0 }
 0x329   : > { %v4286_v58 = vadd.f32 %v4285_v27, %v4271_v4  ;;  %v4175_v34 = vadd.f32 %v4174_v40, %v4156_v0  ;;  %v11584_v15 = vmax.f32 %v3604_v29, 0.0  ;;  %v4454_v22 = vmul.f32 %v14184_v32, %v11324_v26  ;;  %v11598_v4 = vpop.f32.mrf.mxu1  ;;  %vm14219_vm7 = vmmov %vm14064_vm0 }
 0x32a   : > { %v11588_v25 = vmax.f32 %v3605_v6, 0.0  ;;  %v4455_v8 = vmul.f32 %v14186_v49, %v11336_v5  ;;  %v14188_v35 = vrot.slane %v14187_v53, 7  ;;  %v14190_v13 = vrot.slane %v14189_v16, 7  ;;  %14191 = vst [vmem:[#allocation11_spill] sm:$0xff] %v11598_v4  ;;  %vm14220_vm2 = vmmov %vm14064_vm0 }
 0x32b   : > { %14183 = vst [vmem:[#allocation42_spill] sm:$0xff] %v11584_v15  ;;  %4287 = vadd.xlane.f32.xlu1 %v4286_v58  ;;  %v4176_v0 = vadd.f32 %v4175_v34, %v4158_v31  ;;  %v4468_v27 = vrot.slane %v4448_v56, 1  ;;  %v4469_v40 = vrot.slane %v4450_v51, 1  ;;  %v4471_v29 = vrot.slane %v4449_v55, 1  ;;  %v11605_v56 = vpop.f32.mrf.mxu1 }
 0x32c   : > { %14185 = vst [vmem:[#allocation53_spill] sm:$0xff] %v11588_v25  ;;  %v4456_v33 = vmul.f32 %v14188_v35, %v11345_v14  ;;  %v4457_v39 = vmul.f32 %v14190_v13, %v11354_v10  ;;  %v4472_v6 = vrot.slane %v4451_v42, 1  ;;  %v4474_v43 = vrot.slane %v4452_v36, 1  ;;  %14196 = vst [vmem:[#allocation34_spill] sm:$0xff] %v11605_v56 }
 0x32d   : > { %v4476_v60 = vrot.slane %v4453_v52, 1  ;;  %v4478_v32 = vrot.slane %v4454_v22, 1  ;;  %v4177_v49 = vadd.f32 %v4176_v0, %v4160_v19  ;;  %v4470_v25 = vsel %vm14064_vm0, %v4468_v27, %v4469_v40  ;;  %v14199_v52 = vld [vmem:[#allocation95_spill] sm:$0xff]  ;;  %v14201_v22 = vld [vmem:[#allocation98_spill] sm:$0xff]  ;;  %v14203_v0 = vld [vmem:[#allocation108_spill] sm:$0xff] }
 0x32e   : > { %v4480_v53 = vrot.slane %v4455_v8, 1  ;;  %v4482_v35 = vrot.slane %v4456_v33, 1  ;;  %v4473_v15 = vsel %vm14192_vm1, %v4471_v29, %v4472_v6  ;;  %v4475_v16 = vsel %vm14193_vm6, %v4469_v40, %v4474_v43  ;;  %v14205_v29 = vld [vmem:[#allocation109_spill] sm:$0xff]  ;;  %vm14232_vm1 = vmmov %vm14064_vm0 }
 0x32f   : > { %v4477_v13 = vsel %vm14194_vm5, %v4472_v6, %v4476_v60  ;;  %v4479_v31 = vsel %vm14195_vm9, %v4474_v43, %v4478_v32  ;;  %v4178_v55 = vadd.f32 %v4177_v49, %v4162_v1  ;;  %v4484_v19 = vrot.slane %v4457_v39, 1  ;;  %v14206_v39 = vld [vmem:[#allocation110_spill] sm:$0xff]  ;;  %vm14233_vm6 = vmmov %vm14064_vm0 }
 0x330   : > { %v4481_v51 = vsel %vm14197_vm12, %v4476_v60, %v4480_v53  ;;  %v4483_v42 = vsel %vm14198_vm13, %v4478_v32, %v4482_v35  ;;  %v4494_v36 = vadd.f32 %v4473_v15, %v4470_v25  ;;  %v14200_v58 = vrot.slane %v14199_v52, 7  ;;  %v14207_v43 = vld [vmem:[#allocation114_spill] sm:$0xff]  ;;  %v14208_v32 = vld [vmem:[#allocation115_spill] sm:$0xff]  ;;  %v11628_v52 = vpop.f32.mrf.mxu1  ;;  %vm14234_vm5 = vmmov %vm14064_vm0 }
 0x331   : > { %v14202_v8 = vrot.slane %v14201_v22, 7  ;;  %v4343_v27 = vmul.f32 %v14203_v0, %v11261_v9  ;;  %v4179_v40 = vadd.f32 %v4178_v55, %v4164_v17  ;;  %v4485_v1 = vsel %vm14204_vm4, %v4480_v53, %v4484_v19  ;;  %14209 = vst [vmem:[#allocation44_spill] sm:$0xff] %v11628_v52  ;;  %v14210_v17 = vld [vmem:[#allocation96_spill] sm:$0xff]  ;;  %v14212_v19 = vld [vmem:[#allocation101_spill] sm:$0xff]  ;;  %vm14235_vm9 = vmmov %vm14064_vm0 }
 0x332   : > { %v4341_v34 = vmul.f32 %v14200_v58, %v11213_v28  ;;  %v4344_v6 = vmul.f32 %v14205_v29, %v11278_v18  ;;  %v4345_v15 = vmul.f32 %v14206_v39, %v11293_v2  ;;  %v4495_v25 = vadd.f32 %v4494_v36, %v4475_v16  ;;  %v11639_v4 = vpop.f32.mrf.mxu1  ;;  %vm14236_vm12 = vmmov %vm14064_vm0 }
 0x333   : > { %v4342_v33 = vmul.f32 %v14202_v8, %v11236_v3  ;;  %v4346_v60 = vmul.f32 %v14207_v43, %v11308_v11  ;;  %v4347_v49 = vmul.f32 %v14208_v32, %v11324_v26  ;;  %v4348_v35 = vmul.f32 %v11051_v48, %v11336_v5  ;;  %4180 = vadd.xlane.f32.xlu0 %v4179_v40  ;;  %vm14237_vm13 = vmmov %vm14064_vm0 }
 0x334   : > { %v14211_v53 = vrot.slane %v14210_v17, 7  ;;  %v14213_v58 = vrot.slane %v14212_v19, 7  ;;  %v4361_v36 = vrot.slane %v4341_v34, 1  ;;  %v4362_v22 = vrot.slane %v4343_v27, 1  ;;  %vm14238_vm4 = vmmov %vm14064_vm0 }
 0x335   : > { %v4496_v8 = vadd.f32 %v4495_v25, %v4477_v13  ;;  %v4364_v0 = vrot.slane %v4342_v33, 1  ;;  %v4365_v29 = vrot.slane %v4344_v6, 1  ;;  %v4367_v39 = vrot.slane %v4345_v15, 1 }
 0x336   : > { %v4349_v55 = vmul.f32 %v14211_v53, %v11345_v14  ;;  %v4350_v16 = vmul.f32 %v14213_v58, %v11354_v10  ;;  %v4363_v43 = vsel %vm14214_vm11, %v4361_v36, %v4362_v22  ;;  %v4369_v48 = vrot.slane %v4346_v60, 1  ;;  %v14221_v60 = vld [vmem:[#allocation78_spill] sm:$0xff]  ;;  %vm14244_vm11 = vmmov %vm14064_vm0 }
 0x337   : > { %v4371_v32 = vrot.slane %v4347_v49, 1  ;;  %v4373_v52 = vrot.slane %v4348_v35, 1  ;;  %v4497_v40 = vadd.f32 %v4496_v8, %v4479_v31  ;;  %v4366_v56 = vsel %vm14215_vm15, %v4364_v0, %v4365_v29  ;;  %v11647_v49 = vpop.f32.mrf.mxu1  ;;  %v14223_v58 = vld [vmem:[#allocation102_spill] sm:$0xff]  ;;  %vm14254_vm15 = vmmov %vm14064_vm0 }
 0x338   : > { %v4368_v17 = vsel %vm14216_vm3, %v4362_v22, %v4367_v39  ;;  %v4375_v53 = vrot.slane %v4349_v55, 1  ;;  %v4370_v34 = vsel %vm14217_vm8, %v4365_v29, %v4369_v48  ;;  %v4377_v27 = vrot.slane %v4350_v16, 1  ;;  %v14222_v55 = vld [vmem:[#allocation83_spill] sm:$0xff]  ;;  %vm14255_vm8 = vmmov %vm14064_vm0 }
 0x339   : > { %v4372_v13 = vsel %vm14218_vm14, %v4367_v39, %v4371_v32  ;;  %v4374_v33 = vsel %vm14219_vm7, %v4369_v48, %v4373_v52  ;;  %v4498_v6 = vadd.f32 %v4497_v40, %v4481_v51  ;;  %v4387_v25 = vadd.f32 %v4366_v56, %v4363_v43  ;;  %v3535_v39 = vpop.f32.mrf.mxu1  ;;  %vm14256_vm14 = vmmov %vm14064_vm0 }
 0x33a   : > { %v4376_v15 = vsel %vm14220_vm2, %v4371_v32, %v4375_v53  ;;  %v3560_v31 = vadd.f32 %v11471_v41, %v14221_v60  ;;  %v4378_v35 = vsel %vm14064_vm0, %v4373_v52, %v4377_v27  ;;  %v3561_v19 = vadd.f32 %v11480_v30, %v14222_v55  ;;  %v14226_v41 = vld [vmem:[#allocation116_spill] sm:$0xff]  ;;  %vm14257_vm7 = vmmov %vm14064_vm0 }
 0x33b   : > { %v14224_v36 = vrot.slane %v14223_v58, 7  ;;  %v14225_v51 = vrot.slane %v10944_v7, 7  ;;  %v4499_v8 = vadd.f32 %v4498_v6, %v4483_v42  ;;  %v4388_v56 = vadd.f32 %v4387_v25, %v4368_v17  ;;  %v3536_v17 = vpop.f32.mrf.mxu1  ;;  %v14227_v27 = vld [vmem:[#allocation124_spill] sm:$0xff]  ;;  %vm14258_vm2 = vmmov %vm14064_vm0 }
 0x33c   : > { %v3606_v0 = vadd.f32 %v10386_v46, %v3560_v31  ;;  %v4664_v29 = vmul.f32 %v14226_v41, %v11261_v9  ;;  %v3607_v52 = vadd.f32 %v10424_v57, %v3561_v19  ;;  %v4665_v30 = vmul.f32 %v11062_v47, %v11278_v18  ;;  %v14228_v47 = vld [vmem:[#allocation111_spill] sm:$0xff]  ;;  %v14230_v60 = vld [vmem:[#allocation112_spill] sm:$0xff] }
 0x33d   : > { %v4662_v22 = vmul.f32 %v14224_v36, %v11213_v28  ;;  %v4663_v16 = vmul.f32 %v14225_v51, %v11236_v3  ;;  %v4666_v43 = vmul.f32 %v11065_v54, %v11293_v2  ;;  %v4667_v7 = vmul.f32 %v11068_v63, %v11308_v11 }
 0x33e   : > { %v4500_v48 = vadd.f32 %v4499_v8, %v4485_v1  ;;  %v4389_v42 = vadd.f32 %v4388_v56, %v4370_v34  ;;  %v11668_v32 = vmax.f32 %v3606_v0, 0.0  ;;  %v4668_v40 = vmul.f32 %v11077_v38, %v11324_v26 }
 0x33f   : > { %v11672_v53 = vmax.f32 %v3607_v52, 0.0  ;;  %v4669_v6 = vmul.f32 %v14227_v27, %v11336_v5  ;;  %v14229_v25 = vrot.slane %v14228_v47, 7  ;;  %v14231_v63 = vrot.slane %v14230_v60, 7 }
 0x340   : > { %4501 = vadd.xlane.f32.xlu1 %v4500_v48  ;;  %v4390_v34 = vadd.f32 %v4389_v42, %v4372_v13  ;;  %v4682_v31 = vrot.slane %v4662_v22, 1  ;;  %v4683_v55 = vrot.slane %v4664_v29, 1  ;;  %v4685_v19 = vrot.slane %v4663_v16, 1  ;;  %v14241_v42 = vld [vmem:[#allocation121_spill] sm:$0xff] }
 0x341   : > { %v4670_v54 = vmul.f32 %v14229_v25, %v11345_v14  ;;  %v4671_v1 = vmul.f32 %v14231_v63, %v11354_v10  ;;  %v4686_v38 = vrot.slane %v4665_v30, 1  ;;  %v4688_v58 = vrot.slane %v4666_v43, 1  ;;  %v14246_v63 = vld [vmem:[#allocation127_spill] sm:$0xff] }
 0x342   : > { %v4690_v36 = vrot.slane %v4667_v7, 1  ;;  %v4692_v51 = vrot.slane %v4668_v40, 1  ;;  %v4391_v8 = vadd.f32 %v4390_v34, %v4374_v33  ;;  %v4684_v56 = vsel %vm14232_vm1, %v4682_v31, %v4683_v55  ;;  %v14239_v33 = vld [vmem:[#allocation117_spill] sm:$0xff]  ;;  %v14247_v31 = vld [vmem:[#allocation128_spill] sm:$0xff]  ;;  %vm14259_vm1 = vmmov %vm14064_vm0 }
 0x343   : > { %v4694_v0 = vrot.slane %v4669_v6, 1  ;;  %v4696_v41 = vrot.slane %v4670_v54, 1  ;;  %v4687_v39 = vsel %vm14233_vm6, %v4685_v19, %v4686_v38  ;;  %v4689_v52 = vsel %vm14234_vm5, %v4683_v55, %v4688_v58  ;;  %v14243_v6 = vld [vmem:[#allocation125_spill] sm:$0xff]  ;;  %v14245_v54 = vld [vmem:[#allocation126_spill] sm:$0xff]  ;;  %vm14261_vm6 = vmmov %vm14064_vm0 }
 0x344   : > { %v4691_v17 = vsel %vm14235_vm9, %v4686_v38, %v4690_v36  ;;  %v4693_v13 = vsel %vm14236_vm12, %v4688_v58, %v4692_v51  ;;  %v4392_v22 = vadd.f32 %v4391_v8, %v4376_v15  ;;  %v4698_v30 = vrot.slane %v4671_v1, 1  ;;  %v14248_v55 = vld [vmem:[#allocation130_spill] sm:$0xff]  ;;  %vm14410_vm5 = vmmov %vm14064_vm0 }
 0x345   : > { %v4695_v16 = vsel %vm14237_vm13, %v4690_v36, %v4694_v0  ;;  %v4697_v29 = vsel %vm14238_vm4, %v4692_v51, %v4696_v41  ;;  %v4708_v43 = vadd.f32 %v4687_v39, %v4684_v56  ;;  %v14240_v7 = vrot.slane %v14239_v33, 7  ;;  %vm14411_vm9 = vmmov %vm14064_vm0 }
 0x346   : > { %v14242_v40 = vrot.slane %v14241_v42, 7  ;;  %v4557_v47 = vmul.f32 %v14243_v6, %v11261_v9  ;;  %v4393_v25 = vadd.f32 %v4392_v22, %v4378_v35  ;;  %v4699_v15 = vsel %vm14244_vm11, %v4694_v0, %v4698_v30  ;;  %v14250_v9 = vld [vmem:[#allocation118_spill] sm:$0xff]  ;;  %vm14414_vm12 = vmmov %vm14064_vm0 }
 0x347   : > { %v4555_v48 = vmul.f32 %v14240_v7, %v11213_v28  ;;  %v4558_v60 = vmul.f32 %v14245_v54, %v11278_v18  ;;  %v4559_v1 = vmul.f32 %v14246_v63, %v11293_v2  ;;  %v4709_v34 = vadd.f32 %v4708_v43, %v4689_v52  ;;  %v14252_v18 = vld [vmem:[#allocation119_spill] sm:$0xff]  ;;  %v14262_v54 = vld [vmem:[#allocation97_spill] sm:$0xff]  ;;  %v14263_v63 = vld [vmem:[#allocation26_spill] sm:$0xff] }
 0x348   : > { %v4556_v27 = vmul.f32 %v14242_v40, %v11236_v3  ;;  %v4560_v28 = vmul.f32 %v14247_v31, %v11308_v11  ;;  %v4561_v19 = vmul.f32 %v14248_v55, %v11324_v26  ;;  %v14249_v3 = vld [vmem:[#allocation131_spill] sm:$0xff]  ;;  %4394 = vadd.xlane.f32.xlu0 %v4393_v25  ;;  %v14251_v35 = vrot.slane %v14250_v9, 7  ;;  %vm14415_vm13 = vmmov %vm14064_vm0 }
 0x349   : > { %v4562_v38 = vmul.f32 %v14249_v3, %v11336_v5  ;;  %v14253_v36 = vrot.slane %v14252_v18, 7  ;;  %v4575_v2 = vrot.slane %v4555_v48, 1  ;;  %v4576_v8 = vrot.slane %v4557_v47, 1  ;;  %v14260_v47 = vld [vmem:[#allocation90_spill] sm:$0xff]  ;;  %v14266_v3 = vld [vmem:[#allocation13_spill] sm:$0xff]  ;;  %vm14417_vm4 = vmmov %vm14064_vm0 }
 0x34a   : > { %v4563_v58 = vmul.f32 %v14251_v35, %v11345_v14  ;;  %v4710_v56 = vadd.f32 %v4709_v34, %v4691_v17  ;;  %v4578_v0 = vrot.slane %v4556_v27, 1  ;;  %v4579_v11 = vrot.slane %v4558_v60, 1  ;;  %v14268_v35 = vld [vmem:[#allocation135_spill] sm:$0xff] }
 0x34b   : > { %v4564_v51 = vmul.f32 %v14253_v36, %v11354_v10  ;;  %v4581_v41 = vrot.slane %v4559_v1, 1  ;;  %v4577_v26 = vsel %vm14254_vm15, %v4575_v2, %v4576_v8  ;;  %v4583_v39 = vrot.slane %v4560_v28, 1  ;;  %v14270_v36 = vld [vmem:[#allocation138_spill] sm:$0xff] }
 0x34c   : > { %v4585_v52 = vrot.slane %v4561_v19, 1  ;;  %v4587_v5 = vrot.slane %v4562_v38, 1  ;;  %vm4773_vm3 = vcmask 1044480   ;;  %v4711_v22 = vadd.f32 %v4710_v56, %v4693_v13  ;;  %v14267_v38 = vld [vmem:[#allocation133_spill] sm:$0xff] }
 0x34d   : > { %v4580_v30 = vsel %vm14255_vm8, %v4578_v0, %v4579_v11  ;;  %v4582_v43 = vsel %vm14256_vm14, %v4576_v8, %v4581_v41  ;;  %v4589_v33 = vrot.slane %v4563_v58, 1  ;;  %v4584_v7 = vsel %vm14257_vm7, %v4579_v11, %v4583_v39  ;;  %v14269_v58 = vld [vmem:[#allocation136_spill] sm:$0xff]  ;;  %v14271_v8 = vld [vmem:[#allocation139_spill] sm:$0xff] }
 0x34e   : > { %v4586_v48 = vsel %vm14258_vm2, %v4581_v41, %v4585_v52  ;;  %v4588_v17 = vsel %vm14064_vm0, %v4583_v39, %v4587_v5  ;;  %v4591_v42 = vrot.slane %v4564_v51, 1  ;;  %v4712_v40 = vadd.f32 %v4711_v22, %v4695_v16  ;;  %v14272_v11 = vld [vmem:[#allocation140_spill] sm:$0xff] }
 0x34f   : > { %v4590_v27 = vsel %vm14259_vm1, %v4585_v52, %v4589_v33  ;;  %v4601_v6 = vadd.f32 %v4580_v30, %v4577_v26  ;;  %v3562_v25 = vadd.f32 %v11503_v62, %v14260_v47  ;;  %v3563_v60 = vadd.f32 %v11517_v37, %v14262_v54  ;;  %v14274_v52 = vld [vmem:[#allocation57_spill] sm:$0xff] }
 0x350   : > { %v4592_v13 = vsel %vm14261_vm6, %v4587_v5, %v4591_v42  ;;  %v14264_v1 = vrot.slane %v14263_v63, 5  ;;  %v14265_v31 = vrot.slane %v10577_v45, 5  ;;  %v4713_v16 = vadd.f32 %v4712_v40, %v4697_v29  ;;  %v14275_v5 = vld [vmem:[#allocation50_spill] sm:$0xff]  ;;  %vm14442_vm6 = vmmov %vm14259_vm1 }
 0x351   : > { %v4602_v55 = vadd.f32 %v4601_v6, %v4582_v43  ;;  %v3608_v19 = vadd.f32 %v10386_v46, %v3562_v25  ;;  %v4846_v62 = vmul.f32 %v14267_v38, %v14266_v3  ;;  %v3609_v9 = vadd.f32 %v10424_v57, %v3563_v60 }
 0x352   : > { %v4844_v34 = vmul.f32 %v14264_v1, %v11345_v14  ;;  %v4845_v28 = vmul.f32 %v14265_v31, %v11354_v10  ;;  %v4847_v37 = vmul.f32 %v14268_v35, %v11376_v12  ;;  %v4848_v18 = vmul.f32 %v14269_v58, %v11385_v59  ;;  %v14281_v58 = vld [vmem:[#allocation134_spill] sm:$0xff] }
 0x353   : > { %v4849_v51 = vmul.f32 %v14270_v36, %v11394_v24  ;;  %v4714_v45 = vadd.f32 %v4713_v16, %v4699_v15  ;;  %v4603_v2 = vadd.f32 %v4602_v55, %v4584_v7  ;;  %v11742_v29 = vmax.f32 %v3608_v19, 0.0 }
 0x354   : > { %v4850_v56 = vmul.f32 %v14271_v8, %v11400_v44  ;;  %v11746_v0 = vmax.f32 %v3609_v9, 0.0  ;;  %v4851_v41 = vmul.f32 %v14272_v11, %v11409_v20  ;;  %v14273_v26 = vrot.slane %v10591_v50, 5  ;;  %v14279_v9 = vld [vmem:[#allocation28_spill] sm:$0xff]  ;;  %v14284_v11 = vld [vmem:[#allocation143_spill] sm:$0xff] }
 0x355   : > { %v14276_v22 = vrot.slane %v14275_v5, 5  ;;  %4715 = vadd.xlane.f32.xlu1 %v4714_v45  ;;  %v4604_v15 = vadd.f32 %v4603_v2, %v4586_v48  ;;  %v4864_v43 = vrot.slane %v4844_v34, 3  ;;  %v4865_v33 = vrot.slane %v4846_v62, 3  ;;  %v14283_v2 = vld [vmem:[#allocation142_spill] sm:$0xff]  ;;  %v14286_v5 = vld [vmem:[#allocation147_spill] sm:$0xff] }
 0x356   : > { %v4852_v39 = vmul.f32 %v14273_v26, %v11430_v23  ;;  %v4867_v7 = vrot.slane %v4845_v28, 3  ;;  %v4868_v42 = vrot.slane %v4847_v37, 3  ;;  %v4870_v40 = vrot.slane %v4848_v18, 3  ;;  %v14285_v26 = vld [vmem:[#allocation144_spill] sm:$0xff] }
 0x357   : > { %v4853_v30 = vmul.f32 %v14276_v22, %v14274_v52  ;;  %v4872_v6 = vrot.slane %v4849_v51, 3  ;;  %v4874_v47 = vrot.slane %v4850_v56, 3  ;;  %v4605_v25 = vadd.f32 %v4604_v15, %v4588_v17  ;;  %v14277_v17 = vld [vmem:[#allocation22_spill] sm:$0xff]  ;;  %v14282_v51 = vld [vmem:[#allocation137_spill] sm:$0xff] }
 0x358   : > { %v4866_v54 = vsel %vm4773_vm3, %v4864_v43, %v4865_v33  ;;  %v4876_v60 = vrot.slane %v4851_v41, 3  ;;  %v4878_v63 = vrot.slane %v4852_v39, 3  ;;  %v4869_v50 = vsel %vm4773_vm3, %v4867_v7, %v4868_v42  ;;  %v14289_v43 = vld [vmem:[#allocation7_spill] sm:$0xff] }
 0x359   : > { %v4871_v1 = vsel %vm4773_vm3, %v4865_v33, %v4870_v40  ;;  %v4873_v31 = vsel %vm4773_vm3, %v4868_v42, %v4872_v6  ;;  %v4875_v48 = vsel %vm4773_vm3, %v4870_v40, %v4874_v47  ;;  %v4606_v34 = vadd.f32 %v4605_v25, %v4590_v27 }
 0x35a   : > { %v4877_v28 = vsel %vm4773_vm3, %v4872_v6, %v4876_v60  ;;  %v4879_v16 = vsel %vm4773_vm3, %v4874_v47, %v4878_v63  ;;  %v4880_v55 = vrot.slane %v4853_v30, 3  ;;  %v4890_v19 = vadd.f32 %v4869_v50, %v4866_v54 }
 0x35b   : > { %v14278_v38 = vrot.slane %v14277_v17, 5  ;;  %v14280_v35 = vrot.slane %v14279_v9, 5  ;;  %v4755_v18 = vmul.f32 %v14281_v58, %v14266_v3  ;;  %v4607_v36 = vadd.f32 %v4606_v34, %v4592_v13  ;;  %v14287_v13 = vld [vmem:[#allocation30_spill] sm:$0xff] }
 0x35c   : > { %v4881_v27 = vsel %vm4773_vm3, %v4876_v60, %v4880_v55  ;;  %v4756_v45 = vmul.f32 %v14282_v51, %v11376_v12  ;;  %v4757_v8 = vmul.f32 %v14283_v2, %v11385_v59  ;;  %v4891_v56 = vadd.f32 %v4890_v19, %v4871_v1 }
 0x35d   : > { %v4753_v62 = vmul.f32 %v14278_v38, %v11345_v14  ;;  %v4754_v37 = vmul.f32 %v14280_v35, %v11354_v10  ;;  %v4758_v41 = vmul.f32 %v14284_v11, %v11394_v24  ;;  %v4759_v39 = vmul.f32 %v14285_v26, %v11400_v44  ;;  %4608 = vadd.xlane.f32.xlu0 %v4607_v36  ;;  %v14292_v36 = vld [vmem:[#allocation33_spill] sm:$0xff] }
 0x35e   : > { %v4760_v22 = vmul.f32 %v14286_v5, %v11409_v20  ;;  %v14288_v30 = vrot.slane %v14287_v13, 5  ;;  %v14290_v33 = vrot.slane %v14289_v43, 5  ;;  %v4775_v40 = vrot.slane %v4755_v18, 3  ;;  %v14291_v18 = vld [vmem:[#allocation100_spill] sm:$0xff]  ;;  %v14298_v13 = vld [vmem:[#allocation141_spill] sm:$0xff] }
 0x35f   : > { %v4774_v42 = vrot.slane %v4753_v62, 3  ;;  %v4892_v6 = vadd.f32 %v4891_v56, %v4873_v31  ;;  %v4777_v47 = vrot.slane %v4754_v37, 3  ;;  %v4778_v25 = vrot.slane %v4756_v45, 3  ;;  %v14293_v45 = vld [vmem:[#allocation105_spill] sm:$0xff] }
 0x360   : > { %v4761_v15 = vmul.f32 %v14288_v30, %v11430_v23  ;;  %v4762_v7 = vmul.f32 %v14290_v33, %v14274_v52  ;;  %v4780_v54 = vrot.slane %v4757_v8, 3  ;;  %v4782_v63 = vrot.slane %v4758_v41, 3  ;;  %v14294_v8 = vld [vmem:[#allocation25_spill] sm:$0xff]  ;;  %v14296_v41 = vld [vmem:[#allocation36_spill] sm:$0xff]  ;;  %v14300_v33 = vld [vmem:[#allocation146_spill] sm:$0xff] }
 0x361   : > { %v4776_v60 = vsel %vm4773_vm3, %v4774_v42, %v4775_v40  ;;  %v4784_v50 = vrot.slane %v4759_v39, 3  ;;  %v4786_v1 = vrot.slane %v4760_v22, 3  ;;  %v4893_v34 = vadd.f32 %v4892_v6, %v4875_v48  ;;  %v14299_v43 = vld [vmem:[#allocation145_spill] sm:$0xff]  ;;  %v14301_v42 = vld [vmem:[#allocation148_spill] sm:$0xff] }
 0x362   : > { %v4779_v55 = vsel %vm4773_vm3, %v4777_v47, %v4778_v25  ;;  %v4781_v19 = vsel %vm4773_vm3, %v4775_v40, %v4780_v54  ;;  %v4788_v17 = vrot.slane %v4761_v15, 3  ;;  %v4783_v38 = vsel %vm4773_vm3, %v4778_v25, %v4782_v63  ;;  %v14303_v25 = vld [vmem:[#allocation8_spill] sm:$0xff] }
 0x363   : > { %v4785_v62 = vsel %vm4773_vm3, %v4780_v54, %v4784_v50  ;;  %v4787_v31 = vsel %vm4773_vm3, %v4782_v63, %v4786_v1  ;;  %v4790_v9 = vrot.slane %v4762_v7, 3  ;;  %v4894_v35 = vadd.f32 %v4893_v34, %v4877_v28  ;;  %v14305_v63 = vld [vmem:[#allocation149_spill] sm:$0xff] }
 0x364   : > { %v4789_v37 = vsel %vm4773_vm3, %v4784_v50, %v4788_v17  ;;  %v4800_v58 = vadd.f32 %v4779_v55, %v4776_v60  ;;  %v3564_v51 = vadd.f32 %v14292_v36, %v14291_v18  ;;  %v3565_v2 = vadd.f32 %v11553_v61, %v14293_v45 }
 0x365   : > { %v4791_v48 = vsel %vm4773_vm3, %v4786_v1, %v4790_v9  ;;  %v14295_v56 = vrot.slane %v14294_v8, 5  ;;  %v14297_v26 = vrot.slane %v14296_v41, 5  ;;  %v4895_v28 = vadd.f32 %v4894_v35, %v4879_v16  ;;  %v14306_v1 = vld [vmem:[#allocation43_spill] sm:$0xff] }
 0x366   : > { %v4801_v5 = vadd.f32 %v4800_v58, %v4781_v19  ;;  %v3610_v22 = vadd.f32 %v10386_v46, %v3564_v51  ;;  %v5024_v30 = vmul.f32 %v14298_v13, %v14266_v3  ;;  %v3611_v15 = vadd.f32 %v10424_v57, %v3565_v2  ;;  %v14308_v19 = vld [vmem:[#allocation49_spill] sm:$0xff] }
 0x367   : > { %v5022_v11 = vmul.f32 %v14295_v56, %v11345_v14  ;;  %v5023_v39 = vmul.f32 %v14297_v26, %v11354_v10  ;;  %v5025_v61 = vmul.f32 %v14299_v43, %v11376_v12  ;;  %v5026_v7 = vmul.f32 %v14300_v33, %v11385_v59  ;;  %v14312_v43 = vld [vmem:[#allocation20_spill] sm:$0xff] }
 0x368   : > { %v5027_v40 = vmul.f32 %v14301_v42, %v11394_v24  ;;  %v4896_v6 = vadd.f32 %v4895_v28, %v4881_v27  ;;  %v4802_v47 = vadd.f32 %v4801_v5, %v4783_v38  ;;  %v11816_v16 = vmax.f32 %v3610_v22, 0.0 }
 0x369   : > { %v5028_v54 = vmul.f32 %v14303_v25, %v11400_v44  ;;  %v11820_v60 = vmax.f32 %v3611_v15, 0.0  ;;  %v5029_v50 = vmul.f32 %v14305_v63, %v11409_v20  ;;  %v14307_v34 = vrot.slane %v14306_v1, 5  ;;  %v8414_v25 = vld [vmem:[%s13563_s5 + $0xb0] sm:$0xff]  ;;  %v8415_v63 = vld [vmem:[%s13563_s5 + $0xb8] sm:$0xff] }
 0x36a   : > { %14302 = vst [vmem:[#allocation54_spill] sm:$0xff] %v11816_v16  ;;  %v14309_v17 = vrot.slane %v14308_v19, 5  ;;  %4897 = vadd.xlane.f32.xlu1 %v4896_v6  ;;  %v4803_v27 = vadd.f32 %v4802_v47, %v4785_v62  ;;  %v5042_v38 = vrot.slane %v5022_v11, 3  ;;  %v5043_v35 = vrot.slane %v5024_v30, 3 }
 0x36b   : > { %14304 = vst [vmem:[#allocation12_spill] sm:$0xff] %v11820_v60  ;;  %v5030_v55 = vmul.f32 %v14307_v34, %v11430_v23  ;;  %v5045_v58 = vrot.slane %v5023_v39, 3  ;;  %v5046_v18 = vrot.slane %v5025_v61, 3  ;;  %v5048_v36 = vrot.slane %v5026_v7, 3  ;;  %v8412_v7 = vld [vmem:[%s13563_s5 + $0xa0] sm:$0xff] }
 0x36c   : > { %v5031_v9 = vmul.f32 %v14309_v17, %v14274_v52  ;;  %v5050_v51 = vrot.slane %v5027_v40, 3  ;;  %v5052_v45 = vrot.slane %v5028_v54, 3  ;;  %v4804_v2 = vadd.f32 %v4803_v27, %v4787_v31  ;;  %v14310_v31 = vld [vmem:[#allocation21_spill] sm:$0xff]  ;;  %v14314_v34 = vld [vmem:[#allocation19_spill] sm:$0xff] }
 0x36d   : > { %v5044_v8 = vsel %vm4773_vm3, %v5042_v38, %v5043_v35  ;;  %v5054_v56 = vrot.slane %v5029_v50, 3  ;;  %v5056_v41 = vrot.slane %v5030_v55, 3  ;;  %v5047_v26 = vsel %vm4773_vm3, %v5045_v58, %v5046_v18 }
 0x36e   : > { %v5049_v28 = vsel %vm4773_vm3, %v5043_v35, %v5048_v36  ;;  %v5051_v5 = vsel %vm4773_vm3, %v5046_v18, %v5050_v51  ;;  %v5053_v62 = vsel %vm4773_vm3, %v5048_v36, %v5052_v45  ;;  %v4805_v11 = vadd.f32 %v4804_v2, %v4789_v37  ;;  %v8413_v37 = vld [vmem:[%s13563_s5 + $0xa8] sm:$0xff] }
 0x36f   : > { %v5055_v39 = vsel %vm4773_vm3, %v5050_v51, %v5054_v56  ;;  %v5057_v22 = vsel %vm4773_vm3, %v5052_v45, %v5056_v41  ;;  %v5058_v13 = vrot.slane %v5031_v9, 3  ;;  %v5068_v30 = vadd.f32 %v5047_v26, %v5044_v8  ;;  %v14317_v9 = vld [vmem:[#allocation18_spill] sm:$0xff] }
 0x370   : > { %v14311_v15 = vrot.slane %v14310_v31, 5  ;;  %v14313_v61 = vrot.slane %v14312_v43, 5  ;;  %v4915_v42 = vrot.slane %v8412_v7, 5  ;;  %v4917_v40 = vrot.slane %v8413_v37, 5  ;;  %v14320_v51 = vld [vmem:[#allocation150_spill] sm:$0xff] }
 0x371   : > { %v4806_v6 = vadd.f32 %v4805_v11, %v4791_v48  ;;  %v5059_v47 = vsel %vm4773_vm3, %v5054_v56, %v5058_v13  ;;  %v4919_v54 = vrot.slane %v8414_v25, 5  ;;  %v4921_v50 = vrot.slane %v8415_v63, 5 }
 0x372   : > { %v4914_v33 = vsel %vm2106_vm10, %v14313_v61, %v14311_v15  ;;  %v5069_v1 = vadd.f32 %v5068_v30, %v5049_v28  ;;  %v14315_v55 = vrot.slane %v14314_v34, 5  ;;  %v14316_v17 = vmov %v14311_v15 }
 0x373   : > { %v4918_v48 = vsel %vm2106_vm10, %v14316_v17, %v4917_v40  ;;  %v14318_v27 = vrot.slane %v14317_v9, 5  ;;  %4807 = vadd.xlane.f32.xlu0 %v4806_v6  ;;  %v4920_v35 = vsel %vm2106_vm10, %v4915_v42, %v4919_v54  ;;  %v4922_v58 = vsel %vm2106_vm10, %v4917_v40, %v4921_v50  ;;  %v14323_v9 = vld [vmem:[#allocation11_spill] sm:$0xff] }
 0x374   : > { %v4916_v19 = vsel %vm2106_vm10, %v14315_v55, %v4915_v42  ;;  %v14319_v18 = vmov %v14313_v61  ;;  %v4935_v45 = vmul.f32 %v14320_v51, %v14266_v3  ;;  %v5070_v2 = vadd.f32 %v5069_v1, %v5051_v5 }
 0x375   : > { %v4933_v38 = vmul.f32 %v14318_v27, %v11345_v14  ;;  %v4934_v36 = vmul.f32 %v14319_v18, %v11354_v10  ;;  %v4936_v8 = vmul.f32 %v4914_v33, %v11376_v12  ;;  %v4937_v56 = vmul.f32 %v4916_v19, %v11385_v59  ;;  %v8417_v18 = vld [vmem:[%s13563_s5 + $0x148] sm:$0xff] }
 0x376   : > { %v4938_v41 = vmul.f32 %v4918_v48, %v11394_v24  ;;  %v4939_v26 = vmul.f32 %v4920_v35, %v11400_v44  ;;  %v4940_v28 = vmul.f32 %v4922_v58, %v11409_v20  ;;  %v4941_v11 = vmul.f32 %v4919_v54, %v11430_v23  ;;  %v14322_v48 = vld [vmem:[#allocation120_spill] sm:$0xff] }
 0x377   : > { %v4942_v13 = vmul.f32 %v4921_v50, %v14274_v52  ;;  %v5071_v30 = vadd.f32 %v5070_v2, %v5053_v62  ;;  %v4953_v31 = vrot.slane %v4933_v38, 3  ;;  %v4954_v15 = vrot.slane %v4935_v45, 3  ;;  %v8416_v38 = vld [vmem:[%s13563_s5 + $0x140] sm:$0xff] }
 0x378   : > { %v4956_v43 = vrot.slane %v4934_v36, 3  ;;  %v4957_v61 = vrot.slane %v4936_v8, 3  ;;  %v4959_v5 = vrot.slane %v4937_v56, 3  ;;  %v4961_v7 = vrot.slane %v4938_v41, 3 }
 0x379   : > { %v4963_v33 = vrot.slane %v4939_v26, 3  ;;  %v5072_v42 = vadd.f32 %v5071_v30, %v5055_v39  ;;  %v4955_v37 = vsel %vm4773_vm3, %v4953_v31, %v4954_v15  ;;  %v4965_v40 = vrot.slane %v4940_v28, 3  ;;  %v14321_v39 = vld [vmem:[#allocation113_spill] sm:$0xff]  ;;  %v11908_v26 = vld [vmem:[%s13563_s5 + $0x160] sm:$0xff] }
 0x37a   : > { %v4967_v6 = vrot.slane %v4941_v11, 3  ;;  %v4958_v25 = vsel %vm4773_vm3, %v4956_v43, %v4957_v61  ;;  %v4960_v63 = vsel %vm4773_vm3, %v4954_v15, %v4959_v5  ;;  %v4962_v54 = vsel %vm4773_vm3, %v4957_v61, %v4961_v7  ;;  %v8421_v11 = vld [vmem:[%s13563_s5 + $0x168] sm:$0xff]  ;;  %v8422_v30 = vld [vmem:[%s13563_s5 + $0x170] sm:$0xff] }
 0x37b   : > { %v4964_v62 = vsel %vm4773_vm3, %v4959_v5, %v4963_v33  ;;  %v5073_v50 = vadd.f32 %v5072_v42, %v5057_v22  ;;  %v4966_v1 = vsel %vm4773_vm3, %v4961_v7, %v4965_v40  ;;  %v4969_v55 = vrot.slane %v4942_v13, 3 }
 0x37c   : > { %v4968_v34 = vsel %vm4773_vm3, %v4963_v33, %v4967_v6  ;;  %v4979_v19 = vadd.f32 %v4958_v25, %v4955_v37  ;;  %v3566_v17 = vadd.f32 %v11572_v21, %v14321_v39  ;;  %v3567_v27 = vadd.f32 %v14323_v9, %v14322_v48  ;;  %v8418_v21 = vld [vmem:[%s13563_s5 + $0x150] sm:$0xff]  ;;  %v11928_v37 = vld [vmem:[%s13563_s5 + $0x178] sm:$0xff] }
 0x37d   : > { %v5176_v35 = vrot.slane %v8416_v38, 5  ;;  %v5074_v58 = vadd.f32 %v5073_v50, %v5059_v47  ;;  %v4970_v22 = vsel %vm4773_vm3, %v4965_v40, %v4969_v55  ;;  %v5177_v36 = vrot.slane %v8417_v18, 5  ;;  %v8419_v47 = vld [vmem:[%s13563_s5 + $0x158] sm:$0xff] }
 0x37e   : > { %v5178_v51 = vrot.slane %v8418_v21, 5  ;;  %v4980_v45 = vadd.f32 %v4979_v19, %v4960_v63  ;;  %v3612_v2 = vadd.f32 %v10386_v46, %v3566_v17  ;;  %v3613_v8 = vadd.f32 %v10424_v57, %v3567_v27 }
 0x37f   : > { %v5180_v56 = vrot.slane %v8419_v47, 5  ;;  %5075 = vadd.xlane.f32.xlu1 %v5074_v58  ;;  %v5182_v28 = vrot.slane %v11908_v26, 5  ;;  %v5184_v13 = vrot.slane %v8421_v11, 5  ;;  %v5186_v31 = vrot.slane %v8422_v30, 5 }
 0x380   : > { %v5179_v41 = vsel %vm2106_vm10, %v5176_v35, %v5178_v51  ;;  %v4981_v15 = vadd.f32 %v4980_v45, %v4962_v54  ;;  %v11917_v43 = vmax.f32 %v3612_v2, 0.0  ;;  %v11919_v61 = vmax.f32 %v3613_v8, 0.0 }
 0x381   : > { %v5181_v5 = vsel %vm2106_vm10, %v5177_v36, %v5180_v56  ;;  %v5183_v7 = vsel %vm2106_vm10, %v5178_v51, %v5182_v28  ;;  %v5185_v33 = vsel %vm2106_vm10, %v5180_v56, %v5184_v13  ;;  %v5187_v42 = vsel %vm2106_vm10, %v5182_v28, %v5186_v31 }
 0x382   : > { %14324 = vst [vmem:[#allocation37_spill] sm:$0xff] %v11917_v43  ;;  %14325 = vst [vmem:[#allocation45_spill] sm:$0xff] %v11919_v61  ;;  %v5188_v40 = vrot.slane %v11928_v37, 5  ;;  %v4982_v6 = vadd.f32 %v4981_v15, %v4964_v62  ;;  %v5200_v25 = vmul.f32 %v5176_v35, %v11345_v14  ;;  %v5201_v63 = vmul.f32 %v5177_v36, %v11354_v10  ;;  %v11952_v15 = vld [vmem:[%s13563_s5 + $0x100] sm:$0xff] }
 0x383   : > { %v5202_v54 = vmul.f32 %v5179_v41, %v14266_v3  ;;  %v5203_v55 = vmul.f32 %v5181_v5, %v11376_v12  ;;  %v5204_v19 = vmul.f32 %v5183_v7, %v11385_v59  ;;  %v5205_v39 = vmul.f32 %v5185_v33, %v11394_v24  ;;  %v8425_v5 = vld [vmem:[%s13563_s5 + $0x108] sm:$0xff]  ;;  %v8426_v33 = vld [vmem:[%s13563_s5 + $0x110] sm:$0xff] }
 0x384   : > { %v5189_v50 = vsel %vm2106_vm10, %v5184_v13, %v5188_v40  ;;  %v4983_v17 = vadd.f32 %v4982_v6, %v4966_v1  ;;  %v5206_v48 = vmul.f32 %v5187_v42, %v11400_v44  ;;  %v5208_v62 = vmul.f32 %v5186_v31, %v11430_v23  ;;  %v11965_v6 = vld [vmem:[%s13563_s5 + $0x118] sm:$0xff] }
 0x385   : > { %v5207_v9 = vmul.f32 %v5189_v50, %v11409_v20  ;;  %v5209_v27 = vmul.f32 %v5188_v40, %v14274_v52  ;;  %v5220_v38 = vrot.slane %v5200_v25, 3  ;;  %v5221_v35 = vrot.slane %v5202_v54, 3  ;;  %v8429_v50 = vld [vmem:[%s13563_s5 + $0x128] sm:$0xff] }
 0x386   : > { %v5223_v58 = vrot.slane %v5201_v63, 3  ;;  %v4984_v18 = vadd.f32 %v4983_v17, %v4968_v34  ;;  %v5224_v36 = vrot.slane %v5203_v55, 3  ;;  %v5226_v21 = vrot.slane %v5204_v19, 3  ;;  %v8428_v63 = vld [vmem:[%s13563_s5 + $0x120] sm:$0xff]  ;;  %v11978_v17 = vld [vmem:[%s13563_s5 + $0x130] sm:$0xff] }
 0x387   : > { %v5228_v51 = vrot.slane %v5205_v39, 3  ;;  %v5222_v45 = vsel %vm4773_vm3, %v5220_v38, %v5221_v35  ;;  %v5230_v2 = vrot.slane %v5206_v48, 3  ;;  %v5232_v8 = vrot.slane %v5207_v9, 3  ;;  %v8431_v9 = vld [vmem:[%s13563_s5 + $0x138] sm:$0xff] }
 0x388   : > { %v5234_v1 = vrot.slane %v5208_v62, 3  ;;  %v4985_v47 = vadd.f32 %v4984_v18, %v4970_v22  ;;  %v5225_v56 = vsel %vm4773_vm3, %v5223_v58, %v5224_v36  ;;  %v5227_v41 = vsel %vm4773_vm3, %v5221_v35, %v5226_v21 }
 0x389   : > { %v5229_v28 = vsel %vm4773_vm3, %v5224_v36, %v5228_v51  ;;  %v5231_v11 = vsel %vm4773_vm3, %v5226_v21, %v5230_v2  ;;  %v5233_v13 = vsel %vm4773_vm3, %v5228_v51, %v5232_v8  ;;  %v5236_v30 = vrot.slane %v5209_v27, 3 }
 0x38a   : > { %v5235_v34 = vsel %vm4773_vm3, %v5230_v2, %v5234_v1  ;;  %4986 = vadd.xlane.f32.xlu0 %v4985_v47  ;;  %v5246_v31 = vadd.f32 %v5225_v56, %v5222_v45  ;;  %v5087_v22 = vrot.slane %v11952_v15, 5  ;;  %v5088_v7 = vrot.slane %v8425_v5, 5 }
 0x38b   : > { %v5089_v42 = vrot.slane %v8426_v33, 5  ;;  %v5237_v40 = vsel %vm4773_vm3, %v5232_v8, %v5236_v30  ;;  %v5091_v25 = vrot.slane %v11965_v6, 5  ;;  %v5093_v54 = vrot.slane %v8428_v63, 5 }
 0x38c   : > { %v5095_v55 = vrot.slane %v8429_v50, 5  ;;  %v5247_v19 = vadd.f32 %v5246_v31, %v5227_v41  ;;  %v5097_v48 = vrot.slane %v11978_v17, 5  ;;  %v5099_v62 = vrot.slane %v8431_v9, 5 }
 0x38d   : > { %v5090_v39 = vsel %vm2106_vm10, %v5087_v22, %v5089_v42  ;;  %v5092_v27 = vsel %vm2106_vm10, %v5088_v7, %v5091_v25  ;;  %v5094_v38 = vsel %vm2106_vm10, %v5089_v42, %v5093_v54  ;;  %v5111_v58 = vmul.f32 %v5087_v22, %v11345_v14 }
 0x38e   : > { %v5096_v35 = vsel %vm2106_vm10, %v5091_v25, %v5095_v55  ;;  %v5248_v18 = vadd.f32 %v5247_v19, %v5229_v28  ;;  %v5098_v36 = vsel %vm2106_vm10, %v5093_v54, %v5097_v48  ;;  %v5100_v21 = vsel %vm2106_vm10, %v5095_v55, %v5099_v62 }
 0x38f   : > { %v5112_v51 = vmul.f32 %v5088_v7, %v11354_v10  ;;  %v5113_v45 = vmul.f32 %v5090_v39, %v14266_v3  ;;  %v5114_v2 = vmul.f32 %v5092_v27, %v11376_v12  ;;  %v5115_v8 = vmul.f32 %v5094_v38, %v11385_v59 }
 0x390   : > { %v5116_v1 = vmul.f32 %v5096_v35, %v11394_v24  ;;  %v5249_v47 = vadd.f32 %v5248_v18, %v5231_v11  ;;  %v5117_v56 = vmul.f32 %v5098_v36, %v11400_v44  ;;  %v5118_v41 = vmul.f32 %v5100_v21, %v11409_v20  ;;  %v14327_v18 = vld [vmem:[#allocation34_spill] sm:$0xff]  ;;  %v14328_v21 = vld [vmem:[#allocation123_spill] sm:$0xff] }
 0x391   : > { %v5119_v28 = vmul.f32 %v5097_v48, %v11430_v23  ;;  %v5120_v30 = vmul.f32 %v5099_v62, %v14274_v52  ;;  %v5131_v31 = vrot.slane %v5111_v58, 3  ;;  %v5132_v22 = vrot.slane %v5113_v45, 3  ;;  %v14326_v58 = vld [vmem:[#allocation122_spill] sm:$0xff] }
 0x392   : > { %v5134_v5 = vrot.slane %v5112_v51, 3  ;;  %v5250_v7 = vadd.f32 %v5249_v47, %v5233_v13  ;;  %v5135_v33 = vrot.slane %v5114_v2, 3  ;;  %v5137_v42 = vrot.slane %v5115_v8, 3  ;;  %v12014_v2 = vld [vmem:[%s13563_s5 + $0x1c0] sm:$0xff]  ;;  %v12026_v47 = vld [vmem:[%s13563_s5 + $0x1d0] sm:$0xff] }
 0x393   : > { %v5139_v25 = vrot.slane %v5116_v1, 3  ;;  %v5133_v63 = vsel %vm4773_vm3, %v5131_v31, %v5132_v22  ;;  %v5141_v54 = vrot.slane %v5117_v56, 3  ;;  %v5143_v50 = vrot.slane %v5118_v41, 3  ;;  %v12034_v31 = vld [vmem:[%s13563_s5 + $0x1d8] sm:$0xff] }
 0x394   : > { %v5145_v11 = vrot.slane %v5119_v28, 3  ;;  %v5251_v55 = vadd.f32 %v5250_v7, %v5235_v34  ;;  %v5136_v19 = vsel %vm4773_vm3, %v5134_v5, %v5135_v33  ;;  %v5138_v39 = vsel %vm4773_vm3, %v5132_v22, %v5137_v42  ;;  %v14329_v34 = vld [vmem:[#allocation44_spill] sm:$0xff]  ;;  %v12041_v7 = vld [vmem:[%s13563_s5 + $0x1e0] sm:$0xff] }
 0x395   : > { %v5140_v48 = vsel %vm4773_vm3, %v5135_v33, %v5139_v25  ;;  %v5142_v9 = vsel %vm4773_vm3, %v5137_v42, %v5141_v54  ;;  %v5144_v62 = vsel %vm4773_vm3, %v5139_v25, %v5143_v50  ;;  %v5147_v27 = vrot.slane %v5120_v30, 3  ;;  %v12047_v42 = vld [vmem:[%s13563_s5 + $0x1e8] sm:$0xff] }
 0x396   : > { %v5146_v13 = vsel %vm4773_vm3, %v5141_v54, %v5145_v11  ;;  %v5252_v38 = vadd.f32 %v5251_v55, %v5237_v40  ;;  %v5157_v35 = vadd.f32 %v5136_v19, %v5133_v63  ;;  %v3568_v36 = vadd.f32 %v14327_v18, %v14326_v58  ;;  %v12020_v40 = vld [vmem:[%s13563_s5 + $0x1c8] sm:$0xff]  ;;  %v12053_v63 = vld [vmem:[%s13563_s5 + $0x1f0] sm:$0xff] }
 0x397   : > { %v3569_v51 = vadd.f32 %v14329_v34, %v14328_v21  ;;  %v5148_v45 = vsel %vm4773_vm3, %v5143_v50, %v5147_v27  ;;  %v5354_v8 = vrot.slane %v12014_v2, 5  ;;  %v5355_v1 = vrot.slane %v12020_v40, 5 }
 0x398   : > { %v5356_v56 = vrot.slane %v12026_v47, 5  ;;  %5253 = vadd.xlane.f32.xlu1 %v5252_v38  ;;  %v5158_v41 = vadd.f32 %v5157_v35, %v5138_v39  ;;  %v3614_v28 = vadd.f32 %v10386_v46, %v3568_v36  ;;  %v5358_v22 = vrot.slane %v12034_v31, 5  ;;  %v12067_v35 = vld [vmem:[%s13563_s5 + $0x1f8] sm:$0xff] }
 0x399   : > { %v3615_v30 = vadd.f32 %v10424_v57, %v3569_v51  ;;  %v5360_v33 = vrot.slane %v12041_v7, 5  ;;  %v5362_v25 = vrot.slane %v12047_v42, 5  ;;  %v5364_v54 = vrot.slane %v12053_v63, 5 }
 0x39a   : > { %v5357_v5 = vsel %vm2106_vm10, %v5354_v8, %v5356_v56  ;;  %v5159_v50 = vadd.f32 %v5158_v41, %v5140_v48  ;;  %v12056_v11 = vmax.f32 %v3614_v28, 0.0  ;;  %v5359_v19 = vsel %vm2106_vm10, %v5355_v1, %v5358_v22 }
 0x39b   : > { %v12058_v55 = vmax.f32 %v3615_v30, 0.0  ;;  %v5361_v39 = vsel %vm2106_vm10, %v5356_v56, %v5360_v33  ;;  %v5363_v27 = vsel %vm2106_vm10, %v5358_v22, %v5362_v25  ;;  %v5365_v38 = vsel %vm2106_vm10, %v5360_v33, %v5364_v54 }
 0x39c   : > { %14330 = vst [vmem:[#allocation14_spill] sm:$0xff] %v12056_v11  ;;  %v5366_v58 = vrot.slane %v12067_v35, 5  ;;  %v5160_v48 = vadd.f32 %v5159_v50, %v5142_v9  ;;  %v5378_v18 = vmul.f32 %v5354_v8, %v11345_v14  ;;  %v5379_v36 = vmul.f32 %v5355_v1, %v11354_v10 }
 0x39d   : > { %14331 = vst [vmem:[#allocation38_spill] sm:$0xff] %v12058_v55  ;;  %v5380_v21 = vmul.f32 %v5357_v5, %v14266_v3  ;;  %v5381_v51 = vmul.f32 %v5359_v19, %v11376_v12  ;;  %v5382_v56 = vmul.f32 %v5361_v39, %v11385_v59  ;;  %v5383_v41 = vmul.f32 %v5363_v27, %v11394_v24 }
 0x39e   : > { %v5367_v34 = vsel %vm2106_vm10, %v5362_v25, %v5366_v58  ;;  %v5161_v28 = vadd.f32 %v5160_v48, %v5144_v62  ;;  %v5384_v30 = vmul.f32 %v5365_v38, %v11400_v44  ;;  %v5386_v9 = vmul.f32 %v5364_v54, %v11430_v23 }
 0x39f   : > { %v5385_v22 = vmul.f32 %v5367_v34, %v11409_v20  ;;  %v5387_v8 = vmul.f32 %v5366_v58, %v14274_v52  ;;  %v5398_v1 = vrot.slane %v5378_v18, 3  ;;  %v5399_v33 = vrot.slane %v5380_v21, 3 }
 0x3a0   : > { %v5401_v5 = vrot.slane %v5379_v36, 3  ;;  %v5162_v50 = vadd.f32 %v5161_v28, %v5146_v13  ;;  %v5402_v25 = vrot.slane %v5381_v51, 3  ;;  %v5404_v55 = vrot.slane %v5382_v56, 3  ;;  %v12091_v51 = vld [vmem:[%s13563_s5 + $0x180] sm:$0xff]  ;;  %v12097_v56 = vld [vmem:[%s13563_s5 + $0x188] sm:$0xff] }
 0x3a1   : > { %v5406_v19 = vrot.slane %v5383_v41, 3  ;;  %v5400_v39 = vsel %vm4773_vm3, %v5398_v1, %v5399_v33  ;;  %v5408_v11 = vrot.slane %v5384_v30, 3  ;;  %v5410_v27 = vrot.slane %v5385_v22, 3  ;;  %v12110_v30 = vld [vmem:[%s13563_s5 + $0x198] sm:$0xff]  ;;  %v12122_v1 = vld [vmem:[%s13563_s5 + $0x1a8] sm:$0xff] }
 0x3a2   : > { %v5412_v62 = vrot.slane %v5386_v9, 3  ;;  %v5163_v48 = vadd.f32 %v5162_v50, %v5148_v45  ;;  %v5403_v38 = vsel %vm4773_vm3, %v5401_v5, %v5402_v25  ;;  %v5405_v34 = vsel %vm4773_vm3, %v5399_v33, %v5404_v55  ;;  %14332 = vst [vmem:[#allocation47_spill] sm:$0xff] %v12110_v30  ;;  %v12116_v9 = vld [vmem:[%s13563_s5 + $0x1a0] sm:$0xff]  ;;  %14334 = vst [vmem:[#allocation39_spill] sm:$0xff] %v12122_v1 }
 0x3a3   : > { %v5407_v54 = vsel %vm4773_vm3, %v5402_v25, %v5406_v19  ;;  %v5409_v58 = vsel %vm4773_vm3, %v5404_v55, %v5408_v11  ;;  %v5411_v18 = vsel %vm4773_vm3, %v5406_v19, %v5410_v27  ;;  %v5414_v36 = vrot.slane %v5387_v8, 3  ;;  %14333 = vst [vmem:[#allocation15_spill] sm:$0xff] %v12116_v9  ;;  %v12129_v25 = vld [vmem:[%s13563_s5 + $0x1b0] sm:$0xff] }
 0x3a4   : > { %v5413_v13 = vsel %vm4773_vm3, %v5408_v11, %v5412_v62  ;;  %5164 = vadd.xlane.f32.xlu0 %v5163_v48  ;;  %v5424_v21 = vadd.f32 %v5403_v38, %v5400_v39  ;;  %v5265_v45 = vrot.slane %v12091_v51, 5  ;;  %v5266_v55 = vrot.slane %v12097_v56, 5  ;;  %v12103_v11 = vld [vmem:[%s13563_s5 + $0x190] sm:$0xff]  ;;  %14335 = vst [vmem:[#allocation48_spill] sm:$0xff] %v12129_v25  ;;  %v12135_v39 = vld [vmem:[%s13563_s5 + $0x1b8] sm:$0xff] }
 0x3a5   : > { %v5267_v41 = vrot.slane %v12103_v11, 5  ;;  %v5415_v28 = vsel %vm4773_vm3, %v5410_v27, %v5414_v36  ;;  %v5269_v22 = vrot.slane %v12110_v30, 5  ;;  %v5271_v8 = vrot.slane %v12116_v9, 5  ;;  %14336 = vst [vmem:[#allocation17_spill] sm:$0xff] %v12135_v39 }
 0x3a6   : > { %v5273_v33 = vrot.slane %v12122_v1, 5  ;;  %v5425_v5 = vadd.f32 %v5424_v21, %v5405_v34  ;;  %v5275_v19 = vrot.slane %v12129_v25, 5  ;;  %v5277_v27 = vrot.slane %v12135_v39, 5 }
 0x3a7   : > { %v5268_v50 = vsel %vm2106_vm10, %v5265_v45, %v5267_v41  ;;  %v5270_v62 = vsel %vm2106_vm10, %v5266_v55, %v5269_v22  ;;  %v5272_v48 = vsel %vm2106_vm10, %v5267_v41, %v5271_v8  ;;  %v5289_v34 = vmul.f32 %v5265_v45, %v11345_v14 }
 0x3a8   : > { %v5274_v38 = vsel %vm2106_vm10, %v5269_v22, %v5273_v33  ;;  %v5426_v36 = vadd.f32 %v5425_v5, %v5407_v54  ;;  %v5276_v21 = vsel %vm2106_vm10, %v5271_v8, %v5275_v19  ;;  %v5278_v61 = vsel %vm2106_vm10, %v5273_v33, %v5277_v27 }
 0x3a9   : > { %v5290_v43 = vmul.f32 %v5266_v55, %v11354_v10  ;;  %v5291_v60 = vmul.f32 %v5268_v50, %v14266_v3  ;;  %v5292_v16 = vmul.f32 %v5270_v62, %v11376_v12  ;;  %v5293_v39 = vmul.f32 %v5272_v48, %v11385_v59 }
 0x3aa   : > { %v5294_v25 = vmul.f32 %v5274_v38, %v11394_v24  ;;  %v5427_v41 = vadd.f32 %v5426_v36, %v5409_v58  ;;  %v5295_v22 = vmul.f32 %v5276_v21, %v11400_v44  ;;  %v5296_v45 = vmul.f32 %v5278_v61, %v11409_v20 }
 0x3ab   : > { %v5297_v54 = vmul.f32 %v5275_v19, %v11430_v23  ;;  %v5298_v8 = vmul.f32 %v5277_v27, %v14274_v52  ;;  %v5309_v33 = vrot.slane %v5289_v34, 3  ;;  %v5310_v5 = vrot.slane %v5291_v60, 3 }
 0x3ac   : > { %v5312_v55 = vrot.slane %v5290_v43, 3  ;;  %v5428_v1 = vadd.f32 %v5427_v41, %v5411_v18  ;;  %v5313_v50 = vrot.slane %v5292_v16, 3  ;;  %v5315_v9 = vrot.slane %v5293_v39, 3  ;;  %v14337_v39 = vld [vmem:[#allocation129_spill] sm:$0xff]  ;;  %v14338_v41 = vld [vmem:[#allocation132_spill] sm:$0xff] }
 0x3ad   : > { %v5317_v62 = vrot.slane %v5294_v25, 3  ;;  %v5311_v48 = vsel %vm4773_vm3, %v5309_v33, %v5310_v5  ;;  %v5319_v30 = vrot.slane %v5295_v22, 3  ;;  %v5321_v38 = vrot.slane %v5296_v45, 3  ;;  %v12168_v22 = vld [vmem:[%s13563_s5 + $0x240] sm:$0xff]  ;;  %v12188_v33 = vld [vmem:[%s13563_s5 + $0x258] sm:$0xff] }
 0x3ae   : > { %v5323_v58 = vrot.slane %v5297_v54, 3  ;;  %v5429_v36 = vadd.f32 %v5428_v1, %v5413_v13  ;;  %v5314_v21 = vsel %vm4773_vm3, %v5312_v55, %v5313_v50  ;;  %v5316_v61 = vsel %vm4773_vm3, %v5310_v5, %v5315_v9 }
 0x3af   : > { %v5318_v19 = vsel %vm4773_vm3, %v5313_v50, %v5317_v62  ;;  %v5320_v27 = vsel %vm4773_vm3, %v5315_v9, %v5319_v30  ;;  %v5322_v60 = vsel %vm4773_vm3, %v5317_v62, %v5321_v38  ;;  %v5325_v43 = vrot.slane %v5298_v8, 3  ;;  %v12195_v50 = vld [vmem:[%s13563_s5 + $0x260] sm:$0xff] }
 0x3b0   : > { %v5324_v16 = vsel %vm4773_vm3, %v5319_v30, %v5323_v58  ;;  %v5430_v18 = vadd.f32 %v5429_v36, %v5415_v28  ;;  %v5335_v25 = vadd.f32 %v5314_v21, %v5311_v48  ;;  %v3570_v34 = vadd.f32 %v11639_v4, %v14337_v39  ;;  %v12174_v28 = vld [vmem:[%s13563_s5 + $0x248] sm:$0xff]  ;;  %v12180_v4 = vld [vmem:[%s13563_s5 + $0x250] sm:$0xff]  ;;  %v12221_v39 = vld [vmem:[%s13563_s5 + $0x278] sm:$0xff] }
 0x3b1   : > { %v3571_v13 = vadd.f32 %v11647_v49, %v14338_v41  ;;  %v5326_v1 = vsel %vm4773_vm3, %v5321_v38, %v5325_v43  ;;  %v5532_v9 = vrot.slane %v12168_v22, 5  ;;  %v5533_v30 = vrot.slane %v12174_v28, 5  ;;  %v12207_v48 = vld [vmem:[%s13563_s5 + $0x270] sm:$0xff]  ;;  %14343 = vst [vmem:[#allocation23_spill] sm:$0xff] %v12221_v39 }
 0x3b2   : > { %v5534_v49 = vrot.slane %v12180_v4, 5  ;;  %5431 = vadd.xlane.f32.xlu1 %v5430_v18  ;;  %v5336_v45 = vadd.f32 %v5335_v25, %v5316_v61  ;;  %v3616_v54 = vadd.f32 %v10386_v46, %v3570_v34  ;;  %v5536_v5 = vrot.slane %v12188_v33, 5  ;;  %v12201_v46 = vld [vmem:[%s13563_s5 + $0x268] sm:$0xff]  ;;  %14340 = vst [vmem:[#allocation52_spill] sm:$0xff] %v12207_v48 }
 0x3b3   : > { %v3617_v8 = vadd.f32 %v10424_v57, %v3571_v13  ;;  %v5538_v62 = vrot.slane %v12195_v50, 5  ;;  %14339 = vst [vmem:[#allocation40_spill] sm:$0xff] %v12201_v46  ;;  %v5540_v57 = vrot.slane %v12201_v46, 5  ;;  %v5542_v38 = vrot.slane %v12207_v48, 5 }
 0x3b4   : > { %v5535_v55 = vsel %vm2106_vm10, %v5532_v9, %v5534_v49  ;;  %v5337_v58 = vadd.f32 %v5336_v45, %v5318_v19  ;;  %v12210_v36 = vmax.f32 %v3616_v54, 0.0  ;;  %v5537_v61 = vsel %vm2106_vm10, %v5533_v30, %v5536_v5 }
 0x3b5   : > { %v12212_v21 = vmax.f32 %v3617_v8, 0.0  ;;  %v5539_v43 = vsel %vm2106_vm10, %v5534_v49, %v5538_v62  ;;  %v5541_v18 = vsel %vm2106_vm10, %v5536_v5, %v5540_v57  ;;  %v5543_v25 = vsel %vm2106_vm10, %v5538_v62, %v5542_v38 }
 0x3b6   : > { %14341 = vst [vmem:[#allocation16_spill] sm:$0xff] %v12210_v36  ;;  %v5544_v34 = vrot.slane %v12221_v39, 5  ;;  %v5338_v19 = vadd.f32 %v5337_v58, %v5320_v27  ;;  %v5556_v41 = vmul.f32 %v5532_v9, %v11345_v14  ;;  %v5557_v13 = vmul.f32 %v5533_v30, %v11354_v10 }
 0x3b7   : > { %14342 = vst [vmem:[#allocation24_spill] sm:$0xff] %v12212_v21  ;;  %v5558_v45 = vmul.f32 %v5535_v55, %v14266_v3  ;;  %v5559_v54 = vmul.f32 %v5537_v61, %v11376_v12  ;;  %v5560_v8 = vmul.f32 %v5539_v43, %v11385_v59  ;;  %v5561_v5 = vmul.f32 %v5541_v18, %v11394_v24 }
 0x3b8   : > { %v5545_v49 = vsel %vm2106_vm10, %v5540_v57, %v5544_v34  ;;  %v5339_v62 = vadd.f32 %v5338_v19, %v5322_v60  ;;  %v5562_v21 = vmul.f32 %v5543_v25, %v11400_v44  ;;  %v5564_v27 = vmul.f32 %v5542_v38, %v11430_v23 }
 0x3b9   : > { %v5563_v36 = vmul.f32 %v5545_v49, %v11409_v20  ;;  %v5565_v9 = vmul.f32 %v5544_v34, %v14274_v52  ;;  %v5576_v30 = vrot.slane %v5556_v41, 3  ;;  %v5577_v58 = vrot.slane %v5558_v45, 3 }
 0x3ba   : > { %v5579_v55 = vrot.slane %v5557_v13, 3  ;;  %v5340_v39 = vadd.f32 %v5339_v62, %v5324_v16  ;;  %v5580_v57 = vrot.slane %v5559_v54, 3  ;;  %v5582_v48 = vrot.slane %v5560_v8, 3  ;;  %v12264_v8 = vld [vmem:[%s13563_s5 + $0x218] sm:$0xff]  ;;  %v12270_v62 = vld [vmem:[%s13563_s5 + $0x220] sm:$0xff] }
 0x3bb   : > { %v5584_v61 = vrot.slane %v5561_v5, 3  ;;  %v5578_v43 = vsel %vm4773_vm3, %v5576_v30, %v5577_v58  ;;  %v5586_v46 = vrot.slane %v5562_v21, 3  ;;  %v5588_v18 = vrot.slane %v5563_v36, 3  ;;  %v12245_v36 = vld [vmem:[%s13563_s5 + $0x200] sm:$0xff]  ;;  %v12251_v21 = vld [vmem:[%s13563_s5 + $0x208] sm:$0xff]  ;;  %14345 = vst [vmem:[#allocation27_spill] sm:$0xff] %v12264_v8 }
 0x3bc   : > { %v5590_v60 = vrot.slane %v5564_v27, 3  ;;  %v5341_v19 = vadd.f32 %v5340_v39, %v5326_v1  ;;  %v5581_v25 = vsel %vm4773_vm3, %v5579_v55, %v5580_v57  ;;  %v5583_v49 = vsel %vm4773_vm3, %v5577_v58, %v5582_v48  ;;  %14346 = vst [vmem:[#allocation32_spill] sm:$0xff] %v12270_v62 }
 0x3bd   : > { %v5585_v38 = vsel %vm4773_vm3, %v5580_v57, %v5584_v61  ;;  %v5587_v34 = vsel %vm4773_vm3, %v5582_v48, %v5586_v46  ;;  %v5589_v41 = vsel %vm4773_vm3, %v5584_v61, %v5588_v18  ;;  %v5592_v13 = vrot.slane %v5565_v9, 3  ;;  %v12276_v9 = vld [vmem:[%s13563_s5 + $0x228] sm:$0xff]  ;;  %v12283_v57 = vld [vmem:[%s13563_s5 + $0x230] sm:$0xff] }
 0x3be   : > { %v5591_v16 = vsel %vm4773_vm3, %v5586_v46, %v5590_v60  ;;  %5342 = vadd.xlane.f32.xlu0 %v5341_v19  ;;  %v5602_v45 = vadd.f32 %v5581_v25, %v5578_v43  ;;  %v5443_v1 = vrot.slane %v12245_v36, 5  ;;  %v5444_v48 = vrot.slane %v12251_v21, 5  ;;  %v12257_v46 = vld [vmem:[%s13563_s5 + $0x210] sm:$0xff]  ;;  %14347 = vst [vmem:[#allocation35_spill] sm:$0xff] %v12276_v9  ;;  %14348 = vst [vmem:[#allocation41_spill] sm:$0xff] %v12283_v57  ;;  %v12289_v43 = vld [vmem:[%s13563_s5 + $0x238] sm:$0xff] }
 0x3bf   : > { %14344 = vst [vmem:[#allocation29_spill] sm:$0xff] %v12257_v46  ;;  %v5445_v39 = vrot.slane %v12257_v46, 5  ;;  %v5593_v54 = vsel %vm4773_vm3, %v5588_v18, %v5592_v13  ;;  %v5447_v5 = vrot.slane %v12264_v8, 5  ;;  %v5449_v27 = vrot.slane %v12270_v62, 5  ;;  %14349 = vst [vmem:[#allocation56_spill] sm:$0xff] %v12289_v43 }
 0x3c0   : > { %v5451_v30 = vrot.slane %v12276_v9, 5  ;;  %v5603_v58 = vadd.f32 %v5602_v45, %v5583_v49  ;;  %v5453_v61 = vrot.slane %v12283_v57, 5  ;;  %v5455_v18 = vrot.slane %v12289_v43, 5 }
 0x3c1   : > { %v5446_v55 = vsel %vm2106_vm10, %v5443_v1, %v5445_v39  ;;  %v5448_v60 = vsel %vm2106_vm10, %v5444_v48, %v5447_v5  ;;  %v5450_v19 = vsel %vm2106_vm10, %v5445_v39, %v5449_v27  ;;  %v5467_v49 = vmul.f32 %v5443_v1, %v11345_v14 }
 0x3c2   : > { %v5452_v25 = vsel %vm2106_vm10, %v5447_v5, %v5451_v30  ;;  %v5604_v13 = vadd.f32 %v5603_v58, %v5585_v38  ;;  %v5454_v45 = vsel %vm2106_vm10, %v5449_v27, %v5453_v61  ;;  %v5456_v57 = vsel %vm2106_vm10, %v5451_v30, %v5455_v18 }
 0x3c3   : > { %v5468_v9 = vmul.f32 %v5444_v48, %v11354_v10  ;;  %v5469_v62 = vmul.f32 %v5446_v55, %v14266_v3  ;;  %v5470_v8 = vmul.f32 %v5448_v60, %v11376_v12  ;;  %v5471_v43 = vmul.f32 %v5450_v19, %v11385_v59 }
 0x3c4   : > { %v5472_v46 = vmul.f32 %v5452_v25, %v11394_v24  ;;  %v5605_v39 = vadd.f32 %v5604_v13, %v5587_v34  ;;  %v5473_v5 = vmul.f32 %v5454_v45, %v11400_v44  ;;  %v5474_v14 = vmul.f32 %v5456_v57, %v11409_v20  ;;  %v12336_v13 = vld [vmem:[%s13563_s5 + $0x58] sm:$0xff] }
 0x3c5   : > { %v5475_v38 = vmul.f32 %v5453_v61, %v11430_v23  ;;  %v5476_v1 = vmul.f32 %v5455_v18, %v14274_v52  ;;  %v5487_v27 = vrot.slane %v5467_v49, 3  ;;  %v5488_v30 = vrot.slane %v5469_v62, 3  ;;  %v12323_v18 = vld [vmem:[%s13563_s5 + $0x48] sm:$0xff]  ;;  %14352 = vst [vmem:[#allocation59_spill] sm:$0xff] %v12336_v13 }
 0x3c6   : > { %v5490_v10 = vrot.slane %v5468_v9, 3  ;;  %v5606_v48 = vadd.f32 %v5605_v39, %v5589_v41  ;;  %v5491_v3 = vrot.slane %v5470_v8, 3  ;;  %v5493_v58 = vrot.slane %v5471_v43, 3  ;;  %v12317_v43 = vld [vmem:[%s13563_s5 + $0x40] sm:$0xff]  ;;  %14350 = vst [vmem:[#allocation46_spill] sm:$0xff] %v12323_v18 }
 0x3c7   : > { %v5495_v12 = vrot.slane %v5472_v46, 3  ;;  %v5489_v59 = vsel %vm4773_vm3, %v5487_v27, %v5488_v30  ;;  %v5497_v55 = vrot.slane %v5473_v5, 3  ;;  %v5499_v24 = vrot.slane %v5474_v14, 3  ;;  %v12342_v39 = vld [vmem:[%s13563_s5 + $0x60] sm:$0xff]  ;;  %v12354_v27 = vld [vmem:[%s13563_s5 + $0x70] sm:$0xff] }
 0x3c8   : > { %v5501_v34 = vrot.slane %v5475_v38, 3  ;;  %v5607_v60 = vadd.f32 %v5606_v48, %v5591_v16  ;;  %v5492_v44 = vsel %vm4773_vm3, %v5490_v10, %v5491_v3  ;;  %v5494_v20 = vsel %vm4773_vm3, %v5488_v30, %v5493_v58  ;;  %14353 = vst [vmem:[#allocation67_spill] sm:$0xff] %v12342_v39  ;;  %v12348_v38 = vld [vmem:[%s13563_s5 + $0x68] sm:$0xff]  ;;  %14355 = vst [vmem:[#allocation61_spill] sm:$0xff] %v12354_v27  ;;  %v12360_v10 = vld [vmem:[%s13563_s5 + $0x78] sm:$0xff] }
 0x3c9   : > { %v5496_v57 = vsel %vm4773_vm3, %v5491_v3, %v5495_v12  ;;  %v5498_v61 = vsel %vm4773_vm3, %v5493_v58, %v5497_v55  ;;  %v5500_v62 = vsel %vm4773_vm3, %v5495_v12, %v5499_v24  ;;  %v5503_v8 = vrot.slane %v5476_v1, 3  ;;  %14354 = vst [vmem:[#allocation60_spill] sm:$0xff] %v12348_v38  ;;  %14356 = vst [vmem:[#allocation63_spill] sm:$0xff] %v12360_v10 }
 0x3ca   : > { %v5502_v41 = vsel %vm4773_vm3, %v5497_v55, %v5501_v34  ;;  %v5608_v46 = vadd.f32 %v5607_v60, %v5593_v54  ;;  %v5513_v9 = vadd.f32 %v5492_v44, %v5489_v59  ;;  %v5711_v16 = vrot.slane %v12317_v43, 3  ;;  %v12330_v54 = vld [vmem:[%s13563_s5 + $0x50] sm:$0xff] }
 0x3cb   : > { %v5712_v19 = vrot.slane %v12323_v18, 3  ;;  %v5504_v25 = vsel %vm4773_vm3, %v5499_v24, %v5503_v8  ;;  %14351 = vst [vmem:[#allocation58_spill] sm:$0xff] %v12330_v54  ;;  %v5713_v49 = vrot.slane %v12330_v54, 3  ;;  %v5715_v45 = vrot.slane %v12336_v13, 3 }
 0x3cc   : > { %v5717_v5 = vrot.slane %v12342_v39, 3  ;;  %5609 = vadd.xlane.f32.xlu1 %v5608_v46  ;;  %v5514_v14 = vadd.f32 %v5513_v9, %v5494_v20  ;;  %v5719_v1 = vrot.slane %v12348_v38, 3  ;;  %v5721_v30 = vrot.slane %v12354_v27, 3  ;;  %v14357_v20 = vld [vmem:[#allocation9_spill] sm:$0xff]  ;;  %v14358_v46 = vld [vmem:[#allocation10_spill] sm:$0xff] }
 0x3cd   : > { %v5723_v48 = vrot.slane %v12360_v10, 3  ;;  %v5714_v3 = vsel %vm4773_vm3, %v5711_v16, %v5713_v49  ;;  %v5716_v58 = vsel %vm4773_vm3, %v5712_v19, %v5715_v45  ;;  %v5735_v59 = vmul.f32 %v5711_v16, %v11430_v23  ;;  %v14359_v10 = vld [vmem:[#allocation42_spill] sm:$0xff]  ;;  %v14360_v39 = vld [vmem:[#allocation53_spill] sm:$0xff] }
 0x3ce   : > { %v5718_v12 = vsel %vm4773_vm3, %v5713_v49, %v5717_v5  ;;  %v5515_v55 = vadd.f32 %v5514_v14, %v5496_v57  ;;  %v5720_v24 = vsel %vm4773_vm3, %v5715_v45, %v5719_v1  ;;  %v5722_v34 = vsel %vm4773_vm3, %v5717_v5, %v5721_v30 }
 0x3cf   : > { %v5724_v60 = vsel %vm4773_vm3, %v5719_v1, %v5723_v48  ;;  %v5736_v44 = vmul.f32 %v5712_v19, %v14274_v52  ;;  %v5737_v8 = vmul.f32 %v5714_v3, %v14357_v20  ;;  %v5738_v9 = vmul.f32 %v5716_v58, %v14358_v46 }
 0x3d0   : > { %v5739_v27 = vmul.f32 %v5718_v12, %v14359_v10  ;;  %v5516_v38 = vadd.f32 %v5515_v55, %v5498_v61  ;;  %v5740_v49 = vmul.f32 %v5720_v24, %v14360_v39  ;;  %v5741_v16 = vmul.f32 %v5722_v34, %v11668_v32 }
 0x3d1   : > { %v5742_v57 = vmul.f32 %v5724_v60, %v11672_v53  ;;  %v5743_v45 = vmul.f32 %v5721_v30, %v11742_v29  ;;  %v5744_v5 = vmul.f32 %v5723_v48, %v11746_v0  ;;  %v5755_v14 = vrot.slane %v5735_v59, 5 }
 0x3d2   : > { %v5756_v1 = vrot.slane %v5737_v8, 5  ;;  %v5517_v19 = vadd.f32 %v5516_v38, %v5500_v62  ;;  %v5758_v13 = vrot.slane %v5736_v44, 5  ;;  %v5759_v3 = vrot.slane %v5738_v9, 5 }
 0x3d3   : > { %v5761_v54 = vrot.slane %v5739_v27, 5  ;;  %v5763_v12 = vrot.slane %v5740_v49, 5  ;;  %v5765_v61 = vrot.slane %v5741_v16, 5  ;;  %v5767_v55 = vrot.slane %v5742_v57, 5  ;;  %v12408_v49 = vld [vmem:[%s13563_s5 + $0x18] sm:$0xff] }
 0x3d4   : > { %v5757_v58 = vsel %vm2106_vm10, %v5755_v14, %v5756_v1  ;;  %v5518_v24 = vadd.f32 %v5517_v19, %v5502_v41  ;;  %v5760_v34 = vsel %vm2106_vm10, %v5758_v13, %v5759_v3  ;;  %v5769_v18 = vrot.slane %v5743_v45, 5  ;;  %v12389_v41 = vld [vmem:[%s13563_s5] sm:$0xff]  ;;  %14364 = vst [vmem:[#allocation51_spill] sm:$0xff] %v12408_v49  ;;  %v12420_v14 = vld [vmem:[%s13563_s5 + $0x28] sm:$0xff]  ;;  %v12426_v19 = vld [vmem:[%s13563_s5 + $0x30] sm:$0xff] }
 0x3d5   : > { %v5762_v60 = vsel %vm2106_vm10, %v5756_v1, %v5761_v54  ;;  %v5764_v30 = vsel %vm2106_vm10, %v5759_v3, %v5763_v12  ;;  %v5766_v48 = vsel %vm2106_vm10, %v5761_v54, %v5765_v61  ;;  %v5768_v62 = vsel %vm2106_vm10, %v5763_v12, %v5767_v55  ;;  %14361 = vst [vmem:[#allocation68_spill] sm:$0xff] %v12389_v41  ;;  %v12396_v54 = vld [vmem:[%s13563_s5 + $0x8] sm:$0xff]  ;;  %v12414_v45 = vld [vmem:[%s13563_s5 + $0x20] sm:$0xff] }
 0x3d6   : > { %v5771_v38 = vrot.slane %v5744_v5, 5  ;;  %v5519_v59 = vadd.f32 %v5518_v24, %v5504_v25  ;;  %v5770_v27 = vsel %vm2106_vm10, %v5765_v61, %v5769_v18  ;;  %v5781_v44 = vadd.f32 %v5760_v34, %v5757_v58  ;;  %14362 = vst [vmem:[#allocation69_spill] sm:$0xff] %v12396_v54  ;;  %v12402_v18 = vld [vmem:[%s13563_s5 + $0x10] sm:$0xff]  ;;  %14365 = vst [vmem:[#allocation55_spill] sm:$0xff] %v12414_v45  ;;  %v12434_v61 = vld [vmem:[%s13563_s5 + $0x38] sm:$0xff] }
 0x3d7   : > { %v5621_v13 = vrot.slane %v12389_v41, 3  ;;  %v5622_v9 = vrot.slane %v12396_v54, 3  ;;  %14363 = vst [vmem:[#allocation70_spill] sm:$0xff] %v12402_v18  ;;  %v5623_v25 = vrot.slane %v12402_v18, 3  ;;  %v5625_v16 = vrot.slane %v12408_v49, 3  ;;  %14366 = vst [vmem:[#allocation62_spill] sm:$0xff] %v12420_v14 }
 0x3d8   : > { %v5772_v8 = vsel %vm2106_vm10, %v5767_v55, %v5771_v38  ;;  %5520 = vadd.xlane.f32.xlu0 %v5519_v59  ;;  %v5782_v57 = vadd.f32 %v5781_v44, %v5762_v60  ;;  %v5627_v5 = vrot.slane %v12414_v45, 3  ;;  %v5629_v1 = vrot.slane %v12420_v14, 3  ;;  %14367 = vst [vmem:[#allocation75_spill] sm:$0xff] %v12426_v19  ;;  %14368 = vst [vmem:[#allocation76_spill] sm:$0xff] %v12434_v61 }
 0x3d9   : > { %v5631_v3 = vrot.slane %v12426_v19, 3  ;;  %v5624_v58 = vsel %vm4773_vm3, %v5621_v13, %v5623_v25  ;;  %v5626_v12 = vsel %vm4773_vm3, %v5622_v9, %v5625_v16  ;;  %v5633_v55 = vrot.slane %v12434_v61, 3 }
 0x3da   : > { %v5645_v24 = vmul.f32 %v5621_v13, %v11430_v23  ;;  %v5783_v34 = vadd.f32 %v5782_v57, %v5764_v30  ;;  %v5628_v60 = vsel %vm4773_vm3, %v5623_v25, %v5627_v5  ;;  %v5630_v38 = vsel %vm4773_vm3, %v5625_v16, %v5629_v1 }
 0x3db   : > { %v5632_v59 = vsel %vm4773_vm3, %v5627_v5, %v5631_v3  ;;  %v5634_v44 = vsel %vm4773_vm3, %v5629_v1, %v5633_v55  ;;  %v5646_v19 = vmul.f32 %v5622_v9, %v14274_v52  ;;  %v5647_v14 = vmul.f32 %v5624_v58, %v14357_v20 }
 0x3dc   : > { %v5648_v45 = vmul.f32 %v5626_v12, %v14358_v46  ;;  %v5784_v49 = vadd.f32 %v5783_v34, %v5766_v48  ;;  %v5649_v61 = vmul.f32 %v5628_v60, %v14359_v10  ;;  %v5650_v13 = vmul.f32 %v5630_v38, %v14360_v39 }
 0x3dd   : > { %v5651_v30 = vmul.f32 %v5632_v59, %v11668_v32  ;;  %v5652_v25 = vmul.f32 %v5634_v44, %v11672_v53  ;;  %v5653_v16 = vmul.f32 %v5631_v3, %v11742_v29  ;;  %v5654_v57 = vmul.f32 %v5633_v55, %v11746_v0 }
 0x3de   : > { %v5665_v5 = vrot.slane %v5645_v24, 5  ;;  %v5785_v1 = vadd.f32 %v5784_v49, %v5768_v62  ;;  %v5666_v9 = vrot.slane %v5647_v14, 5  ;;  %v5668_v18 = vrot.slane %v5646_v19, 5  ;;  %v12479_v24 = vld [vmem:[%s13563_s5 + $0xd8] sm:$0xff] }
 0x3df   : > { %v5669_v58 = vrot.slane %v5648_v45, 5  ;;  %v5671_v54 = vrot.slane %v5649_v61, 5  ;;  %v5673_v12 = vrot.slane %v5650_v13, 5  ;;  %v5675_v48 = vrot.slane %v5651_v30, 5  ;;  %v12467_v61 = vld [vmem:[%s13563_s5 + $0xc8] sm:$0xff]  ;;  %14372 = vst [vmem:[#allocation85_spill] sm:$0xff] %v12479_v24 }
 0x3e0   : > { %v5677_v34 = vrot.slane %v5652_v25, 5  ;;  %v5786_v60 = vadd.f32 %v5785_v1, %v5770_v27  ;;  %v5667_v38 = vsel %vm2106_vm10, %v5665_v5, %v5666_v9  ;;  %v5679_v41 = vrot.slane %v5653_v16, 5  ;;  %v12461_v27 = vld [vmem:[%s13563_s5 + $0xc0] sm:$0xff]  ;;  %14370 = vst [vmem:[#allocation81_spill] sm:$0xff] %v12467_v61  ;;  %v12492_v5 = vld [vmem:[%s13563_s5 + $0xe8] sm:$0xff] }
 0x3e1   : > { %v5670_v59 = vsel %vm2106_vm10, %v5668_v18, %v5669_v58  ;;  %v5672_v44 = vsel %vm2106_vm10, %v5666_v9, %v5671_v54  ;;  %v5674_v3 = vsel %vm2106_vm10, %v5669_v58, %v5673_v12  ;;  %v5676_v55 = vsel %vm2106_vm10, %v5671_v54, %v5675_v48  ;;  %14369 = vst [vmem:[#allocation77_spill] sm:$0xff] %v12461_v27  ;;  %v12486_v16 = vld [vmem:[%s13563_s5 + $0xe0] sm:$0xff] }
 0x3e2   : > { %v5678_v62 = vsel %vm2106_vm10, %v5673_v12, %v5677_v34  ;;  %v5787_v49 = vadd.f32 %v5786_v60, %v5772_v8  ;;  %v5680_v45 = vsel %vm2106_vm10, %v5675_v48, %v5679_v41  ;;  %v5681_v14 = vrot.slane %v5654_v57, 5  ;;  %v12473_v41 = vld [vmem:[%s13563_s5 + $0xd0] sm:$0xff]  ;;  %14373 = vst [vmem:[#allocation64_spill] sm:$0xff] %v12486_v16  ;;  %14374 = vst [vmem:[#allocation65_spill] sm:$0xff] %v12492_v5 }
 0x3e3   : > { %v5691_v19 = vadd.f32 %v5670_v59, %v5667_v38  ;;  %v5889_v18 = vrot.slane %v12461_v27, 3  ;;  %v5890_v54 = vrot.slane %v12467_v61, 3  ;;  %14371 = vst [vmem:[#allocation84_spill] sm:$0xff] %v12473_v41  ;;  %v5891_v8 = vrot.slane %v12473_v41, 3  ;;  %v12500_v12 = vld [vmem:[%s13563_s5 + $0xf0] sm:$0xff] }
 0x3e4   : > { %v5893_v13 = vrot.slane %v12479_v24, 3  ;;  %5788 = vadd.xlane.f32.xlu1 %v5787_v49  ;;  %v5682_v30 = vsel %vm2106_vm10, %v5677_v34, %v5681_v14  ;;  %v5895_v57 = vrot.slane %v12486_v16, 3  ;;  %v5897_v1 = vrot.slane %v12492_v5, 3  ;;  %14375 = vst [vmem:[#allocation71_spill] sm:$0xff] %v12500_v12  ;;  %v12506_v34 = vld [vmem:[%s13563_s5 + $0xf8] sm:$0xff] }
 0x3e5   : > { %v5692_v25 = vadd.f32 %v5691_v19, %v5672_v44  ;;  %v5892_v9 = vsel %vm4773_vm3, %v5889_v18, %v5891_v8  ;;  %v5899_v48 = vrot.slane %v12500_v12, 3  ;;  %14376 = vst [vmem:[#allocation73_spill] sm:$0xff] %v12506_v34  ;;  %v5901_v60 = vrot.slane %v12506_v34, 3 }
 0x3e6   : > { %v5894_v58 = vsel %vm4773_vm3, %v5890_v54, %v5893_v13  ;;  %v5896_v59 = vsel %vm4773_vm3, %v5891_v8, %v5895_v57  ;;  %v5898_v44 = vsel %vm4773_vm3, %v5893_v13, %v5897_v1  ;;  %v5913_v49 = vmul.f32 %v5889_v18, %v11430_v23 }
 0x3e7   : > { %v5693_v38 = vadd.f32 %v5692_v25, %v5674_v3  ;;  %v5900_v14 = vsel %vm4773_vm3, %v5895_v57, %v5899_v48  ;;  %v5902_v19 = vsel %vm4773_vm3, %v5897_v1, %v5901_v60  ;;  %v5914_v12 = vmul.f32 %v5890_v54, %v14274_v52 }
 0x3e8   : > { %v5915_v5 = vmul.f32 %v5892_v9, %v14357_v20  ;;  %v5916_v24 = vmul.f32 %v5894_v58, %v14358_v46  ;;  %v5917_v34 = vmul.f32 %v5896_v59, %v14359_v10  ;;  %v5918_v3 = vmul.f32 %v5898_v44, %v14360_v39 }
 0x3e9   : > { %v5694_v16 = vadd.f32 %v5693_v38, %v5676_v55  ;;  %v5919_v8 = vmul.f32 %v5900_v14, %v11668_v32  ;;  %v5920_v13 = vmul.f32 %v5902_v19, %v11672_v53  ;;  %v5921_v18 = vmul.f32 %v5899_v48, %v11742_v29 }
 0x3ea   : > { %v5922_v25 = vmul.f32 %v5901_v60, %v11746_v0  ;;  %v5933_v1 = vrot.slane %v5913_v49, 5  ;;  %v5934_v54 = vrot.slane %v5915_v5, 5  ;;  %v5936_v41 = vrot.slane %v5914_v12, 5  ;;  %v12539_v60 = vld [vmem:[%s13563_s5 + $0x88] sm:$0xff] }
 0x3eb   : > { %v5695_v57 = vadd.f32 %v5694_v16, %v5678_v62  ;;  %v5937_v9 = vrot.slane %v5916_v24, 5  ;;  %v5939_v55 = vrot.slane %v5917_v34, 5  ;;  %v5941_v38 = vrot.slane %v5918_v3, 5  ;;  %14378 = vst [vmem:[#allocation87_spill] sm:$0xff] %v12539_v60  ;;  %v12552_v3 = vld [vmem:[%s13563_s5 + $0x98] sm:$0xff] }
 0x3ec   : > { %v5943_v58 = vrot.slane %v5919_v8, 5  ;;  %v5935_v59 = vsel %vm2106_vm10, %v5933_v1, %v5934_v54  ;;  %v5945_v44 = vrot.slane %v5920_v13, 5  ;;  %v5947_v27 = vrot.slane %v5921_v18, 5  ;;  %14380 = vst [vmem:[#allocation92_spill] sm:$0xff] %v12552_v3  ;;  %v12558_v13 = vld [vmem:[%s13563_s5 + $0xa0] sm:$0xff] }
 0x3ed   : > { %v5696_v61 = vadd.f32 %v5695_v57, %v5680_v45  ;;  %v5938_v14 = vsel %vm2106_vm10, %v5936_v41, %v5937_v9  ;;  %v5940_v19 = vsel %vm2106_vm10, %v5934_v54, %v5939_v55  ;;  %v5942_v48 = vsel %vm2106_vm10, %v5937_v9, %v5941_v38  ;;  %v12533_v45 = vld [vmem:[%s13563_s5 + $0x80] sm:$0xff]  ;;  %14381 = vst [vmem:[#allocation93_spill] sm:$0xff] %v12558_v13  ;;  %v12571_v9 = vld [vmem:[%s13563_s5 + $0xb0] sm:$0xff] }
 0x3ee   : > { %v5944_v62 = vsel %vm2106_vm10, %v5939_v55, %v5943_v58  ;;  %v5946_v5 = vsel %vm2106_vm10, %v5941_v38, %v5945_v44  ;;  %v5948_v24 = vsel %vm2106_vm10, %v5943_v58, %v5947_v27  ;;  %v5949_v12 = vrot.slane %v5922_v25, 5  ;;  %14377 = vst [vmem:[#allocation86_spill] sm:$0xff] %v12533_v45  ;;  %v12545_v27 = vld [vmem:[%s13563_s5 + $0x90] sm:$0xff]  ;;  %v12564_v25 = vld [vmem:[%s13563_s5 + $0xa8] sm:$0xff]  ;;  %14383 = vst [vmem:[#allocation79_spill] sm:$0xff] %v12571_v9 }
 0x3ef   : > { %v5697_v16 = vadd.f32 %v5696_v61, %v5682_v30  ;;  %v5959_v34 = vadd.f32 %v5938_v14, %v5935_v59  ;;  %v5800_v41 = vrot.slane %v12533_v45, 3  ;;  %v5801_v61 = vrot.slane %v12539_v60, 3  ;;  %14379 = vst [vmem:[#allocation91_spill] sm:$0xff] %v12545_v27  ;;  %14382 = vst [vmem:[#allocation74_spill] sm:$0xff] %v12564_v25  ;;  %v12577_v38 = vld [vmem:[%s13563_s5 + $0xb8] sm:$0xff] }
 0x3f0   : > { %v5802_v30 = vrot.slane %v12545_v27, 3  ;;  %v5950_v49 = vsel %vm2106_vm10, %v5945_v44, %v5949_v12  ;;  %v5804_v8 = vrot.slane %v12552_v3, 3  ;;  %v5806_v18 = vrot.slane %v12558_v13, 3  ;;  %14384 = vst [vmem:[#allocation66_spill] sm:$0xff] %v12577_v38 }
 0x3f1   : > { %5698 = vadd.xlane.f32.xlu0 %v5697_v16  ;;  %v5808_v57 = vrot.slane %v12564_v25, 3  ;;  %v5960_v1 = vadd.f32 %v5959_v34, %v5940_v19  ;;  %v5810_v55 = vrot.slane %v12571_v9, 3  ;;  %v5812_v58 = vrot.slane %v12577_v38, 3 }
 0x3f2   : > { %v5803_v54 = vsel %vm4773_vm3, %v5800_v41, %v5802_v30  ;;  %v5805_v59 = vsel %vm4773_vm3, %v5801_v61, %v5804_v8  ;;  %v5807_v44 = vsel %vm4773_vm3, %v5802_v30, %v5806_v18  ;;  %v5824_v19 = vmul.f32 %v5800_v41, %v11430_v23 }
 0x3f3   : > { %v5809_v14 = vsel %vm4773_vm3, %v5804_v8, %v5808_v57  ;;  %v5961_v16 = vadd.f32 %v5960_v1, %v5942_v48  ;;  %v5811_v12 = vsel %vm4773_vm3, %v5806_v18, %v5810_v55  ;;  %v5813_v34 = vsel %vm4773_vm3, %v5808_v57, %v5812_v58 }
 0x3f4   : > { %v5825_v9 = vmul.f32 %v5801_v61, %v14274_v52  ;;  %v5826_v25 = vmul.f32 %v5803_v54, %v14357_v20  ;;  %v5827_v13 = vmul.f32 %v5805_v59, %v14358_v46  ;;  %v5828_v38 = vmul.f32 %v5807_v44, %v14359_v10 }
 0x3f5   : > { %v5829_v3 = vmul.f32 %v5809_v14, %v14360_v39  ;;  %v5962_v30 = vadd.f32 %v5961_v16, %v5944_v62  ;;  %v5830_v8 = vmul.f32 %v5811_v12, %v11668_v32  ;;  %v5831_v41 = vmul.f32 %v5813_v34, %v11672_v53 }
 0x3f6   : > { %v5832_v48 = vmul.f32 %v5810_v55, %v11742_v29  ;;  %v5833_v18 = vmul.f32 %v5812_v58, %v11746_v0  ;;  %v5844_v57 = vrot.slane %v5824_v19, 5  ;;  %v5845_v1 = vrot.slane %v5826_v25, 5 }
 0x3f7   : > { %v5847_v61 = vrot.slane %v5825_v9, 5  ;;  %v5963_v27 = vadd.f32 %v5962_v30, %v5946_v5  ;;  %v5848_v54 = vrot.slane %v5827_v13, 5  ;;  %v5850_v60 = vrot.slane %v5828_v38, 5  ;;  %v12605_v38 = vld [vmem:[%s13563_s5 + $0x140] sm:$0xff]  ;;  %v12624_v30 = vld [vmem:[%s13563_s5 + $0x158] sm:$0xff] }
 0x3f8   : > { %v5852_v59 = vrot.slane %v5829_v3, 5  ;;  %v5846_v44 = vsel %vm2106_vm10, %v5844_v57, %v5845_v1  ;;  %v5854_v45 = vrot.slane %v5830_v8, 5  ;;  %v5856_v14 = vrot.slane %v5831_v41, 5  ;;  %14386 = vst [vmem:[#allocation80_spill] sm:$0xff] %v12624_v30 }
 0x3f9   : > { %v5858_v62 = vrot.slane %v5832_v48, 5  ;;  %v5964_v16 = vadd.f32 %v5963_v27, %v5948_v24  ;;  %v5849_v12 = vsel %vm2106_vm10, %v5847_v61, %v5848_v54  ;;  %v5851_v34 = vsel %vm2106_vm10, %v5845_v1, %v5850_v60  ;;  %v12611_v27 = vld [vmem:[%s13563_s5 + $0x148] sm:$0xff]  ;;  %v12637_v1 = vld [vmem:[%s13563_s5 + $0x170] sm:$0xff] }
 0x3fa   : > { %v5853_v55 = vsel %vm2106_vm10, %v5848_v54, %v5852_v59  ;;  %v5855_v58 = vsel %vm2106_vm10, %v5850_v60, %v5854_v45  ;;  %v5857_v25 = vsel %vm2106_vm10, %v5852_v59, %v5856_v14  ;;  %v5860_v13 = vrot.slane %v5833_v18, 5  ;;  %v12631_v18 = vld [vmem:[%s13563_s5 + $0x168] sm:$0xff]  ;;  %14388 = vst [vmem:[#allocation94_spill] sm:$0xff] %v12637_v1 }
 0x3fb   : > { %v5859_v5 = vsel %vm2106_vm10, %v5854_v45, %v5858_v62  ;;  %v5965_v3 = vadd.f32 %v5964_v16, %v5950_v49  ;;  %v5870_v9 = vadd.f32 %v5849_v12, %v5846_v44  ;;  %v6067_v24 = vrot.slane %v12605_v38, 3  ;;  %v12618_v45 = vld [vmem:[%s13563_s5 + $0x150] sm:$0xff]  ;;  %14387 = vst [vmem:[#allocation82_spill] sm:$0xff] %v12631_v18 }
 0x3fc   : > { %v6068_v60 = vrot.slane %v12611_v27, 3  ;;  %v5861_v19 = vsel %vm2106_vm10, %v5856_v14, %v5860_v13  ;;  %14385 = vst [vmem:[#allocation72_spill] sm:$0xff] %v12618_v45  ;;  %v6069_v49 = vrot.slane %v12618_v45, 3  ;;  %v6071_v8 = vrot.slane %v12624_v30, 3 }
 0x3fd   : > { %v6073_v41 = vrot.slane %v11908_v26, 3  ;;  %5966 = vadd.xlane.f32.xlu1 %v5965_v3  ;;  %v5871_v48 = vadd.f32 %v5870_v9, %v5851_v34  ;;  %v6075_v57 = vrot.slane %v12631_v18, 3  ;;  %v6077_v61 = vrot.slane %v12637_v1, 3 }
 0x3fe   : > { %v6079_v54 = vrot.slane %v11928_v37, 3  ;;  %v6070_v26 = vsel %vm4773_vm3, %v6067_v24, %v6069_v49  ;;  %v6072_v59 = vsel %vm4773_vm3, %v6068_v60, %v6071_v8  ;;  %v6091_v14 = vmul.f32 %v6067_v24, %v11430_v23 }
 0x3ff   : > { %v6074_v44 = vsel %vm4773_vm3, %v6069_v49, %v6073_v41  ;;  %v5872_v62 = vadd.f32 %v5871_v48, %v5853_v55  ;;  %v6076_v16 = vsel %vm4773_vm3, %v6071_v8, %v6075_v57  ;;  %v6078_v12 = vsel %vm4773_vm3, %v6073_v41, %v6077_v61 }
 0x400   : > { %v6080_v34 = vsel %vm4773_vm3, %v6075_v57, %v6079_v54  ;;  %v6092_v13 = vmul.f32 %v6068_v60, %v14274_v52  ;;  %v6093_v3 = vmul.f32 %v6070_v26, %v14357_v20  ;;  %v6094_v37 = vmul.f32 %v6072_v59, %v14358_v46 }
 0x401   : > { %v6095_v9 = vmul.f32 %v6074_v44, %v14359_v10  ;;  %v5873_v1 = vadd.f32 %v5872_v62, %v5855_v58  ;;  %v6096_v49 = vmul.f32 %v6076_v16, %v14360_v39  ;;  %v6097_v24 = vmul.f32 %v6078_v12, %v11668_v32 }
 0x402   : > { %v6098_v55 = vmul.f32 %v6080_v34, %v11672_v53  ;;  %v6099_v8 = vmul.f32 %v6077_v61, %v11742_v29  ;;  %v6100_v41 = vmul.f32 %v6079_v54, %v11746_v0  ;;  %v6111_v48 = vrot.slane %v6091_v14, 5 }
 0x403   : > { %v6112_v57 = vrot.slane %v6093_v3, 5  ;;  %v5874_v60 = vadd.f32 %v5873_v1, %v5857_v25  ;;  %v6114_v18 = vrot.slane %v6092_v13, 5  ;;  %v6115_v26 = vrot.slane %v6094_v37, 5 }
 0x404   : > { %v6117_v30 = vrot.slane %v6095_v9, 5  ;;  %v6119_v44 = vrot.slane %v6096_v49, 5  ;;  %v6121_v58 = vrot.slane %v6097_v24, 5  ;;  %v6123_v62 = vrot.slane %v6098_v55, 5  ;;  %v12682_v49 = vld [vmem:[%s13563_s5 + $0x120] sm:$0xff]  ;;  %v12688_v55 = vld [vmem:[%s13563_s5 + $0x128] sm:$0xff] }
 0x405   : > { %v6113_v59 = vsel %vm2106_vm10, %v6111_v48, %v6112_v57  ;;  %v5875_v16 = vadd.f32 %v5874_v60, %v5859_v5  ;;  %v6116_v12 = vsel %vm2106_vm10, %v6114_v18, %v6115_v26  ;;  %v6125_v45 = vrot.slane %v6099_v8, 5  ;;  %v12669_v18 = vld [vmem:[%s13563_s5 + $0x108] sm:$0xff]  ;;  %14389 = vst [vmem:[#allocation99_spill] sm:$0xff] %v12688_v55 }
 0x406   : > { %v6118_v34 = vsel %vm2106_vm10, %v6112_v57, %v6117_v30  ;;  %v6120_v61 = vsel %vm2106_vm10, %v6115_v26, %v6119_v44  ;;  %v6122_v54 = vsel %vm2106_vm10, %v6117_v30, %v6121_v58  ;;  %v6124_v25 = vsel %vm2106_vm10, %v6119_v44, %v6123_v62  ;;  %v12675_v30 = vld [vmem:[%s13563_s5 + $0x110] sm:$0xff]  ;;  %v12697_v57 = vld [vmem:[%s13563_s5 + $0x138] sm:$0xff] }
 0x407   : > { %v6127_v1 = vrot.slane %v6100_v41, 5  ;;  %v5876_v14 = vadd.f32 %v5875_v16, %v5861_v19  ;;  %v6126_v13 = vsel %vm2106_vm10, %v6121_v58, %v6125_v45  ;;  %v6137_v3 = vadd.f32 %v6116_v12, %v6113_v59  ;;  %14390 = vst [vmem:[#allocation103_spill] sm:$0xff] %v12697_v57 }
 0x408   : > { %v5978_v37 = vrot.slane %v11952_v15, 3  ;;  %v5979_v9 = vrot.slane %v12669_v18, 3  ;;  %v5980_v19 = vrot.slane %v12675_v30, 3  ;;  %v5982_v45 = vrot.slane %v11965_v6, 3 }
 0x409   : > { %v6128_v5 = vsel %vm2106_vm10, %v6123_v62, %v6127_v1  ;;  %5877 = vadd.xlane.f32.xlu0 %v5876_v14  ;;  %v6138_v15 = vadd.f32 %v6137_v3, %v6118_v34  ;;  %v5984_v24 = vrot.slane %v12682_v49, 3  ;;  %v5986_v8 = vrot.slane %v12688_v55, 3 }
 0x40a   : > { %v5988_v41 = vrot.slane %v11978_v17, 3  ;;  %v5981_v6 = vsel %vm4773_vm3, %v5978_v37, %v5980_v19  ;;  %v5983_v48 = vsel %vm4773_vm3, %v5979_v9, %v5982_v45  ;;  %v5990_v60 = vrot.slane %v12697_v57, 3 }
 0x40b   : > { %v6002_v26 = vmul.f32 %v5978_v37, %v11430_v23  ;;  %v6139_v59 = vadd.f32 %v6138_v15, %v6120_v61  ;;  %v5985_v44 = vsel %vm4773_vm3, %v5980_v19, %v5984_v24  ;;  %v5987_v58 = vsel %vm4773_vm3, %v5982_v45, %v5986_v8 }
 0x40c   : > { %v5989_v17 = vsel %vm4773_vm3, %v5984_v24, %v5988_v41  ;;  %v5991_v62 = vsel %vm4773_vm3, %v5986_v8, %v5990_v60  ;;  %v6003_v16 = vmul.f32 %v5979_v9, %v14274_v52  ;;  %v6004_v12 = vmul.f32 %v5981_v6, %v14357_v20 }
 0x40d   : > { %v6005_v34 = vmul.f32 %v5983_v48, %v14358_v46  ;;  %v6140_v1 = vadd.f32 %v6139_v59, %v6122_v54  ;;  %v6006_v14 = vmul.f32 %v5985_v44, %v14359_v10  ;;  %v6007_v3 = vmul.f32 %v5987_v58, %v14360_v39 }
 0x40e   : > { %v6008_v61 = vmul.f32 %v5989_v17, %v11668_v32  ;;  %v6009_v37 = vmul.f32 %v5991_v62, %v11672_v53  ;;  %v6010_v19 = vmul.f32 %v5988_v41, %v11742_v29  ;;  %v6011_v45 = vmul.f32 %v5990_v60, %v11746_v0 }
 0x40f   : > { %v6022_v15 = vrot.slane %v6002_v26, 5  ;;  %v6141_v24 = vadd.f32 %v6140_v1, %v6124_v25  ;;  %v6023_v9 = vrot.slane %v6004_v12, 5  ;;  %v6025_v8 = vrot.slane %v6003_v16, 5 }
 0x410   : > { %v6026_v6 = vrot.slane %v6005_v34, 5  ;;  %v6028_v57 = vrot.slane %v6006_v14, 5  ;;  %v6030_v48 = vrot.slane %v6007_v3, 5  ;;  %v6032_v54 = vrot.slane %v6008_v61, 5 }
 0x411   : > { %v6034_v59 = vrot.slane %v6009_v37, 5  ;;  %v6142_v44 = vadd.f32 %v6141_v24, %v6126_v13  ;;  %v6024_v58 = vsel %vm2106_vm10, %v6022_v15, %v6023_v9  ;;  %v6036_v55 = vrot.slane %v6010_v19, 5 }
 0x412   : > { %v6027_v17 = vsel %vm2106_vm10, %v6025_v8, %v6026_v6  ;;  %v6029_v62 = vsel %vm2106_vm10, %v6023_v9, %v6028_v57  ;;  %v6031_v41 = vsel %vm2106_vm10, %v6026_v6, %v6030_v48  ;;  %v6033_v60 = vsel %vm2106_vm10, %v6028_v57, %v6032_v54 }
 0x413   : > { %v6035_v25 = vsel %vm2106_vm10, %v6030_v48, %v6034_v59  ;;  %v6143_v26 = vadd.f32 %v6142_v44, %v6128_v5  ;;  %v6037_v16 = vsel %vm2106_vm10, %v6032_v54, %v6036_v55  ;;  %v6038_v12 = vrot.slane %v6011_v45, 5 }
 0x414   : > { %v6048_v34 = vadd.f32 %v6027_v17, %v6024_v58  ;;  %v6245_v13 = vrot.slane %v12014_v2, 3  ;;  %v6246_v1 = vrot.slane %v12020_v40, 3  ;;  %v6247_v14 = vrot.slane %v12026_v47, 3 }
 0x415   : > { %v6249_v3 = vrot.slane %v12034_v31, 3  ;;  %6144 = vadd.xlane.f32.xlu1 %v6143_v26  ;;  %v6039_v61 = vsel %vm2106_vm10, %v6034_v59, %v6038_v12  ;;  %v6251_v57 = vrot.slane %v12041_v7, 3  ;;  %v6253_v5 = vrot.slane %v12047_v42, 3 }
 0x416   : > { %v6049_v37 = vadd.f32 %v6048_v34, %v6029_v62  ;;  %v6248_v55 = vsel %vm4773_vm3, %v6245_v13, %v6247_v14  ;;  %v6255_v2 = vrot.slane %v12053_v63, 3  ;;  %v6257_v40 = vrot.slane %v12067_v35, 3 }
 0x417   : > { %v6250_v19 = vsel %vm4773_vm3, %v6246_v1, %v6249_v3  ;;  %v6252_v47 = vsel %vm4773_vm3, %v6247_v14, %v6251_v57  ;;  %v6254_v31 = vsel %vm4773_vm3, %v6249_v3, %v6253_v5  ;;  %v6269_v15 = vmul.f32 %v6245_v13, %v11430_v23 }
 0x418   : > { %v6050_v45 = vadd.f32 %v6049_v37, %v6031_v41  ;;  %v6256_v24 = vsel %vm4773_vm3, %v6251_v57, %v6255_v2  ;;  %v6258_v7 = vsel %vm4773_vm3, %v6253_v5, %v6257_v40  ;;  %v6270_v42 = vmul.f32 %v6246_v1, %v14274_v52 }
 0x419   : > { %v6271_v9 = vmul.f32 %v6248_v55, %v14357_v20  ;;  %v6272_v63 = vmul.f32 %v6250_v19, %v14358_v46  ;;  %v6273_v35 = vmul.f32 %v6252_v47, %v14359_v10  ;;  %v6274_v6 = vmul.f32 %v6254_v31, %v14360_v39 }
 0x41a   : > { %v6051_v8 = vadd.f32 %v6050_v45, %v6033_v60  ;;  %v6275_v48 = vmul.f32 %v6256_v24, %v11668_v32  ;;  %v6276_v54 = vmul.f32 %v6258_v7, %v11672_v53  ;;  %v6277_v59 = vmul.f32 %v6255_v2, %v11742_v29  ;;  %v14391_v24 = vld [vmem:[#allocation47_spill] sm:$0xff] }
 0x41b   : > { %v6278_v44 = vmul.f32 %v6257_v40, %v11746_v0  ;;  %v6289_v17 = vrot.slane %v6269_v15, 5  ;;  %v6290_v62 = vrot.slane %v6271_v9, 5  ;;  %v6292_v41 = vrot.slane %v6270_v42, 5  ;;  %v14392_v42 = vld [vmem:[#allocation15_spill] sm:$0xff] }
 0x41c   : > { %v6052_v58 = vadd.f32 %v6051_v8, %v6035_v25  ;;  %v6293_v26 = vrot.slane %v6272_v63, 5  ;;  %v6295_v60 = vrot.slane %v6273_v35, 5  ;;  %v6297_v12 = vrot.slane %v6274_v6, 5  ;;  %v14394_v6 = vld [vmem:[#allocation48_spill] sm:$0xff] }
 0x41d   : > { %v6299_v34 = vrot.slane %v6275_v48, 5  ;;  %v6291_v1 = vsel %vm2106_vm10, %v6289_v17, %v6290_v62  ;;  %v6301_v14 = vrot.slane %v6276_v54, 5  ;;  %v6303_v3 = vrot.slane %v6277_v59, 5  ;;  %v14395_v54 = vld [vmem:[#allocation17_spill] sm:$0xff] }
 0x41e   : > { %v6053_v13 = vadd.f32 %v6052_v58, %v6037_v16  ;;  %v6294_v37 = vsel %vm2106_vm10, %v6292_v41, %v6293_v26  ;;  %v6296_v57 = vsel %vm2106_vm10, %v6290_v62, %v6295_v60  ;;  %v6298_v5 = vsel %vm2106_vm10, %v6293_v26, %v6297_v12 }
 0x41f   : > { %v6300_v25 = vsel %vm2106_vm10, %v6295_v60, %v6299_v34  ;;  %v6302_v19 = vsel %vm2106_vm10, %v6297_v12, %v6301_v14  ;;  %v6304_v2 = vsel %vm2106_vm10, %v6299_v34, %v6303_v3  ;;  %v6305_v40 = vrot.slane %v6278_v44, 5 }
 0x420   : > { %v6054_v55 = vadd.f32 %v6053_v13, %v6039_v61  ;;  %v6315_v45 = vadd.f32 %v6294_v37, %v6291_v1  ;;  %v6156_v16 = vrot.slane %v12091_v51, 3  ;;  %v6157_v47 = vrot.slane %v12097_v56, 3  ;;  %v14393_v61 = vld [vmem:[#allocation39_spill] sm:$0xff] }
 0x421   : > { %v6158_v31 = vrot.slane %v12103_v11, 3  ;;  %v6306_v15 = vsel %vm2106_vm10, %v6301_v14, %v6305_v40  ;;  %v6160_v7 = vrot.slane %v14391_v24, 3  ;;  %v6162_v9 = vrot.slane %v14392_v42, 3 }
 0x422   : > { %6055 = vadd.xlane.f32.xlu0 %v6054_v55  ;;  %v6164_v8 = vrot.slane %v14393_v61, 3  ;;  %v6316_v63 = vadd.f32 %v6315_v45, %v6296_v57  ;;  %v6166_v48 = vrot.slane %v14394_v6, 3  ;;  %v6168_v51 = vrot.slane %v14395_v54, 3 }
 0x423   : > { %v6159_v35 = vsel %vm4773_vm3, %v6156_v16, %v6158_v31  ;;  %v6161_v56 = vsel %vm4773_vm3, %v6157_v47, %v6160_v7  ;;  %v6163_v11 = vsel %vm4773_vm3, %v6158_v31, %v6162_v9  ;;  %v6180_v44 = vmul.f32 %v6156_v16, %v11430_v23 }
 0x424   : > { %v6165_v59 = vsel %vm4773_vm3, %v6160_v7, %v6164_v8  ;;  %v6317_v58 = vadd.f32 %v6316_v63, %v6298_v5  ;;  %v6167_v17 = vsel %vm4773_vm3, %v6162_v9, %v6166_v48  ;;  %v6169_v62 = vsel %vm4773_vm3, %v6164_v8, %v6168_v51 }
 0x425   : > { %v6181_v41 = vmul.f32 %v6157_v47, %v14274_v52  ;;  %v6182_v26 = vmul.f32 %v6159_v35, %v14357_v20  ;;  %v6183_v60 = vmul.f32 %v6161_v56, %v14358_v46  ;;  %v6184_v12 = vmul.f32 %v6163_v11, %v14359_v10 }
 0x426   : > { %v6185_v34 = vmul.f32 %v6165_v59, %v14360_v39  ;;  %v6318_v13 = vadd.f32 %v6317_v58, %v6300_v25  ;;  %v6186_v1 = vmul.f32 %v6167_v17, %v11668_v32  ;;  %v6187_v14 = vmul.f32 %v6169_v62, %v11672_v53  ;;  %v14396_v17 = vld [vmem:[#allocation40_spill] sm:$0xff] }
 0x427   : > { %v6188_v3 = vmul.f32 %v6166_v48, %v11742_v29  ;;  %v6189_v37 = vmul.f32 %v6168_v51, %v11746_v0  ;;  %v6200_v57 = vrot.slane %v6180_v44, 5  ;;  %v6201_v5 = vrot.slane %v6182_v26, 5 }
 0x428   : > { %v6203_v55 = vrot.slane %v6181_v41, 5  ;;  %v6319_v40 = vadd.f32 %v6318_v13, %v6302_v19  ;;  %v6204_v45 = vrot.slane %v6183_v60, 5  ;;  %v6206_v16 = vrot.slane %v6184_v12, 5  ;;  %v14397_v41 = vld [vmem:[#allocation52_spill] sm:$0xff] }
 0x429   : > { %v6208_v47 = vrot.slane %v6185_v34, 5  ;;  %v6202_v31 = vsel %vm2106_vm10, %v6200_v57, %v6201_v5  ;;  %v6210_v24 = vrot.slane %v6186_v1, 5  ;;  %v6212_v7 = vrot.slane %v6187_v14, 5 }
 0x42a   : > { %v6214_v25 = vrot.slane %v6188_v3, 5  ;;  %v6320_v42 = vadd.f32 %v6319_v40, %v6304_v2  ;;  %v6205_v9 = vsel %vm2106_vm10, %v6203_v55, %v6204_v45  ;;  %v6207_v61 = vsel %vm2106_vm10, %v6201_v5, %v6206_v16 }
 0x42b   : > { %v6209_v8 = vsel %vm2106_vm10, %v6204_v45, %v6208_v47  ;;  %v6211_v63 = vsel %vm2106_vm10, %v6206_v16, %v6210_v24  ;;  %v6213_v35 = vsel %vm2106_vm10, %v6208_v47, %v6212_v7  ;;  %v6216_v6 = vrot.slane %v6189_v37, 5 }
 0x42c   : > { %v6215_v19 = vsel %vm2106_vm10, %v6210_v24, %v6214_v25  ;;  %v6321_v48 = vadd.f32 %v6320_v42, %v6306_v15  ;;  %v6226_v54 = vadd.f32 %v6205_v9, %v6202_v31  ;;  %v6423_v51 = vrot.slane %v12168_v22, 3  ;;  %v14398_v15 = vld [vmem:[#allocation23_spill] sm:$0xff] }
 0x42d   : > { %v6424_v56 = vrot.slane %v12174_v28, 3  ;;  %v6217_v2 = vsel %vm2106_vm10, %v6212_v7, %v6216_v6  ;;  %v6425_v11 = vrot.slane %v12180_v4, 3  ;;  %v6427_v59 = vrot.slane %v12188_v33, 3 }
 0x42e   : > { %v6429_v44 = vrot.slane %v12195_v50, 3  ;;  %6322 = vadd.xlane.f32.xlu1 %v6321_v48  ;;  %v6227_v58 = vadd.f32 %v6226_v54, %v6207_v61  ;;  %v6431_v62 = vrot.slane %v14396_v17, 3  ;;  %v6433_v26 = vrot.slane %v14397_v41, 3 }
 0x42f   : > { %v6435_v60 = vrot.slane %v14398_v15, 3  ;;  %v6426_v22 = vsel %vm4773_vm3, %v6423_v51, %v6425_v11  ;;  %v6428_v28 = vsel %vm4773_vm3, %v6424_v56, %v6427_v59  ;;  %v6447_v4 = vmul.f32 %v6423_v51, %v11430_v23 }
 0x430   : > { %v6430_v12 = vsel %vm4773_vm3, %v6425_v11, %v6429_v44  ;;  %v6228_v34 = vadd.f32 %v6227_v58, %v6209_v8  ;;  %v6432_v33 = vsel %vm4773_vm3, %v6427_v59, %v6431_v62  ;;  %v6434_v50 = vsel %vm4773_vm3, %v6429_v44, %v6433_v26 }
 0x431   : > { %v6436_v13 = vsel %vm4773_vm3, %v6431_v62, %v6435_v60  ;;  %v6448_v1 = vmul.f32 %v6424_v56, %v14274_v52  ;;  %v6449_v14 = vmul.f32 %v6426_v22, %v14357_v20  ;;  %v6450_v3 = vmul.f32 %v6428_v28, %v14358_v46 }
 0x432   : > { %v6451_v37 = vmul.f32 %v6430_v12, %v14359_v10  ;;  %v6229_v57 = vadd.f32 %v6228_v34, %v6211_v63  ;;  %v6452_v5 = vmul.f32 %v6432_v33, %v14360_v39  ;;  %v6453_v55 = vmul.f32 %v6434_v50, %v11668_v32  ;;  %v14401_v12 = vld [vmem:[#allocation32_spill] sm:$0xff]  ;;  %v14402_v34 = vld [vmem:[#allocation35_spill] sm:$0xff] }
 0x433   : > { %v6454_v40 = vmul.f32 %v6436_v13, %v11672_v53  ;;  %v6455_v45 = vmul.f32 %v6433_v26, %v11742_v29  ;;  %v6456_v16 = vmul.f32 %v6435_v60, %v11746_v0  ;;  %v6467_v47 = vrot.slane %v6447_v4, 5  ;;  %v14399_v26 = vld [vmem:[#allocation29_spill] sm:$0xff]  ;;  %v14400_v60 = vld [vmem:[#allocation27_spill] sm:$0xff] }
 0x434   : > { %v6468_v31 = vrot.slane %v6449_v14, 5  ;;  %v6230_v24 = vadd.f32 %v6229_v57, %v6213_v35  ;;  %v6470_v7 = vrot.slane %v6448_v1, 5  ;;  %v6471_v25 = vrot.slane %v6450_v3, 5  ;;  %v14404_v1 = vld [vmem:[#allocation56_spill] sm:$0xff] }
 0x435   : > { %v6473_v42 = vrot.slane %v6451_v37, 5  ;;  %v6475_v61 = vrot.slane %v6452_v5, 5  ;;  %v6477_v8 = vrot.slane %v6453_v55, 5  ;;  %v6479_v63 = vrot.slane %v6454_v40, 5 }
 0x436   : > { %v6469_v9 = vsel %vm2106_vm10, %v6467_v47, %v6468_v31  ;;  %v6231_v6 = vadd.f32 %v6230_v24, %v6215_v19  ;;  %v6472_v48 = vsel %vm2106_vm10, %v6470_v7, %v6471_v25  ;;  %v6481_v51 = vrot.slane %v6455_v45, 5 }
 0x437   : > { %v6474_v54 = vsel %vm2106_vm10, %v6468_v31, %v6473_v42  ;;  %v6476_v56 = vsel %vm2106_vm10, %v6471_v25, %v6475_v61  ;;  %v6478_v11 = vsel %vm2106_vm10, %v6473_v42, %v6477_v8  ;;  %v6480_v35 = vsel %vm2106_vm10, %v6475_v61, %v6479_v63 }
 0x438   : > { %v6483_v59 = vrot.slane %v6456_v16, 5  ;;  %v6232_v44 = vadd.f32 %v6231_v6, %v6217_v2  ;;  %v6482_v58 = vsel %vm2106_vm10, %v6477_v8, %v6481_v51  ;;  %v6493_v17 = vadd.f32 %v6472_v48, %v6469_v9  ;;  %v14403_v2 = vld [vmem:[#allocation41_spill] sm:$0xff] }
 0x439   : > { %v6334_v62 = vrot.slane %v12245_v36, 3  ;;  %v6335_v41 = vrot.slane %v12251_v21, 3  ;;  %v6336_v15 = vrot.slane %v14399_v26, 3  ;;  %v6338_v22 = vrot.slane %v14400_v60, 3  ;;  %v14406_v26 = vld [vmem:[#allocation58_spill] sm:$0xff]  ;;  %v14407_v60 = vld [vmem:[#allocation59_spill] sm:$0xff] }
 0x43a   : > { %v6484_v19 = vsel %vm2106_vm10, %v6479_v63, %v6483_v59  ;;  %6233 = vadd.xlane.f32.xlu0 %v6232_v44  ;;  %v6494_v28 = vadd.f32 %v6493_v17, %v6474_v54  ;;  %v6340_v4 = vrot.slane %v14401_v12, 3  ;;  %v6342_v33 = vrot.slane %v14402_v34, 3 }
 0x43b   : > { %v6344_v50 = vrot.slane %v14403_v2, 3  ;;  %v6337_v13 = vsel %vm4773_vm3, %v6334_v62, %v6336_v15  ;;  %v6339_v36 = vsel %vm4773_vm3, %v6335_v41, %v6338_v22  ;;  %v6346_v14 = vrot.slane %v14404_v1, 3 }
 0x43c   : > { %v6358_v21 = vmul.f32 %v6334_v62, %v11430_v23  ;;  %v6495_v3 = vadd.f32 %v6494_v28, %v6476_v56  ;;  %v6341_v37 = vsel %vm4773_vm3, %v6336_v15, %v6340_v4  ;;  %v6343_v57 = vsel %vm4773_vm3, %v6338_v22, %v6342_v33  ;;  %v14405_v62 = vld [vmem:[#allocation46_spill] sm:$0xff] }
 0x43d   : > { %v6345_v5 = vsel %vm4773_vm3, %v6340_v4, %v6344_v50  ;;  %v6347_v55 = vsel %vm4773_vm3, %v6342_v33, %v6346_v14  ;;  %v6359_v40 = vmul.f32 %v6335_v41, %v14274_v52  ;;  %v6360_v45 = vmul.f32 %v6337_v13, %v14357_v20  ;;  %v14408_v4 = vld [vmem:[#allocation67_spill] sm:$0xff]  ;;  %v14409_v33 = vld [vmem:[#allocation60_spill] sm:$0xff]  ;;  %v14412_v13 = vld [vmem:[#allocation61_spill] sm:$0xff] }
 0x43e   : > { %v6361_v16 = vmul.f32 %v6339_v36, %v14358_v46  ;;  %v6496_v47 = vadd.f32 %v6495_v3, %v6478_v11  ;;  %v6362_v31 = vmul.f32 %v6341_v37, %v14359_v10  ;;  %v6363_v23 = vmul.f32 %v6343_v57, %v14360_v39  ;;  %v14413_v36 = vld [vmem:[#allocation63_spill] sm:$0xff] }
 0x43f   : > { %v6364_v24 = vmul.f32 %v6345_v5, %v11668_v32  ;;  %v6365_v7 = vmul.f32 %v6347_v55, %v11672_v53  ;;  %v6366_v25 = vmul.f32 %v6344_v50, %v11742_v29  ;;  %v6367_v42 = vmul.f32 %v6346_v14, %v11746_v0 }
 0x440   : > { %v6378_v9 = vrot.slane %v6358_v21, 5  ;;  %v6497_v61 = vadd.f32 %v6496_v47, %v6480_v35  ;;  %v6379_v52 = vrot.slane %v6360_v45, 5  ;;  %v6381_v8 = vrot.slane %v6359_v40, 5  ;;  %v14418_v40 = vld [vmem:[#allocation54_spill] sm:$0xff]  ;;  %v14419_v47 = vld [vmem:[#allocation12_spill] sm:$0xff] }
 0x441   : > { %v6382_v20 = vrot.slane %v6361_v16, 5  ;;  %v6384_v63 = vrot.slane %v6362_v31, 5  ;;  %v6386_v46 = vrot.slane %v6363_v23, 5  ;;  %v6388_v6 = vrot.slane %v6364_v24, 5  ;;  %v14420_v23 = vld [vmem:[#allocation37_spill] sm:$0xff] }
 0x442   : > { %v6390_v48 = vrot.slane %v6365_v7, 5  ;;  %v6498_v10 = vadd.f32 %v6497_v61, %v6482_v58  ;;  %v6380_v39 = vsel %vm2106_vm10, %v6378_v9, %v6379_v52  ;;  %v6392_v54 = vrot.slane %v6366_v25, 5  ;;  %v14421_v7 = vld [vmem:[#allocation45_spill] sm:$0xff]  ;;  %v14423_v61 = vld [vmem:[#allocation38_spill] sm:$0xff] }
 0x443   : > { %v6383_v32 = vsel %vm2106_vm10, %v6381_v8, %v6382_v20  ;;  %v6385_v53 = vsel %vm2106_vm10, %v6379_v52, %v6384_v63  ;;  %v6387_v51 = vsel %vm2106_vm10, %v6382_v20, %v6386_v46  ;;  %v6389_v56 = vsel %vm2106_vm10, %v6384_v63, %v6388_v6  ;;  %v14424_v8 = vld [vmem:[#allocation16_spill] sm:$0xff] }
 0x444   : > { %v6391_v11 = vsel %vm2106_vm10, %v6386_v46, %v6390_v48  ;;  %v6499_v35 = vadd.f32 %v6498_v10, %v6484_v19  ;;  %v6393_v59 = vsel %vm2106_vm10, %v6388_v6, %v6392_v54  ;;  %v6394_v44 = vrot.slane %v6367_v42, 5  ;;  %v14422_v42 = vld [vmem:[#allocation14_spill] sm:$0xff]  ;;  %v14425_v63 = vld [vmem:[#allocation24_spill] sm:$0xff] }
 0x445   : > { %v6404_v17 = vadd.f32 %v6383_v32, %v6380_v39  ;;  %v6602_v58 = vrot.slane %v12317_v43, 1  ;;  %v6603_v41 = vrot.slane %v14405_v62, 1  ;;  %v6604_v15 = vrot.slane %v14406_v26, 1 }
 0x446   : > { %v6606_v22 = vrot.slane %v14407_v60, 1  ;;  %6500 = vadd.xlane.f32.xlu1 %v6499_v35  ;;  %v6395_v28 = vsel %vm2106_vm10, %v6390_v48, %v6394_v44  ;;  %v6608_v34 = vrot.slane %v14408_v4, 1  ;;  %v6610_v19 = vrot.slane %v14409_v33, 1  ;;  %vm14416_vm10 = vmmov %vm14064_vm0 }
 0x447   : > { %v6405_v12 = vadd.f32 %v6404_v17, %v6385_v53  ;;  %v6605_v2 = vsel %vm14410_vm5, %v6602_v58, %v6604_v15  ;;  %v6612_v43 = vrot.slane %v14412_v13, 1  ;;  %v6614_v1 = vrot.slane %v14413_v36, 1  ;;  %v14437_v13 = vld [vmem:[#allocation51_spill] sm:$0xff]  ;;  %vm14443_vm5 = vmmov %vm14259_vm1 }
 0x448   : > { %v6607_v50 = vsel %vm14411_vm9, %v6603_v41, %v6606_v22  ;;  %v6609_v21 = vsel %vm14414_vm12, %v6604_v15, %v6608_v34  ;;  %v6611_v3 = vsel %vm14415_vm13, %v6606_v22, %v6610_v19  ;;  %v6626_v37 = vmul.f32 %v6602_v58, %v11742_v29  ;;  %v14438_v36 = vld [vmem:[#allocation55_spill] sm:$0xff]  ;;  %vm14444_vm9 = vmmov %vm14259_vm1 }
 0x449   : > { %v6406_v14 = vadd.f32 %v6405_v12, %v6387_v51  ;;  %v6613_v57 = vsel %vm14416_vm10, %v6608_v34, %v6612_v43  ;;  %v6615_v5 = vsel %vm14417_vm4, %v6610_v19, %v6614_v1  ;;  %v6627_v55 = vmul.f32 %v6603_v41, %v11746_v0  ;;  %v14434_v34 = vld [vmem:[#allocation69_spill] sm:$0xff]  ;;  %v14435_v19 = vld [vmem:[#allocation70_spill] sm:$0xff]  ;;  %vm14445_vm12 = vmmov %vm14259_vm1 }
 0x44a   : > { %v6628_v45 = vmul.f32 %v6605_v2, %v14418_v40  ;;  %v6629_v31 = vmul.f32 %v6607_v50, %v14419_v47  ;;  %v6630_v24 = vmul.f32 %v6609_v21, %v14420_v23  ;;  %v6631_v25 = vmul.f32 %v6611_v3, %v14421_v7  ;;  %vm14446_vm13 = vmmov %vm14259_vm1 }
 0x44b   : > { %v6407_v16 = vadd.f32 %v6406_v14, %v6389_v56  ;;  %v6632_v9 = vmul.f32 %v6613_v57, %v14422_v42  ;;  %v6633_v52 = vmul.f32 %v6615_v5, %v14423_v61  ;;  %v6634_v20 = vmul.f32 %v6612_v43, %v14424_v8  ;;  %v14441_v5 = vld [vmem:[#allocation76_spill] sm:$0xff] }
 0x44c   : > { %v6635_v46 = vmul.f32 %v6614_v1, %v14425_v63  ;;  %v6646_v48 = vrot.slane %v6626_v37, 7  ;;  %v6647_v10 = vrot.slane %v6628_v45, 7  ;;  %v6649_v39 = vrot.slane %v6627_v55, 7  ;;  %v14440_v37 = vld [vmem:[#allocation75_spill] sm:$0xff] }
 0x44d   : > { %v6408_v6 = vadd.f32 %v6407_v16, %v6391_v11  ;;  %v6650_v32 = vrot.slane %v6629_v31, 7  ;;  %v6652_v54 = vrot.slane %v6630_v24, 7  ;;  %v6654_v53 = vrot.slane %v6631_v25, 7 }
 0x44e   : > { %v6656_v51 = vrot.slane %v6632_v9, 7  ;;  %vm14426_vm11 = vcmask 1040384   ;;  %v6658_v44 = vrot.slane %v6633_v52, 7  ;;  %v6660_v17 = vrot.slane %v6634_v20, 7 }
 0x44f   : > { %v6409_v56 = vadd.f32 %v6408_v6, %v6393_v59  ;;  %v6648_v35 = vsel %vm14426_vm11, %v6646_v48, %v6647_v10  ;;  %vm14427_vm15 = vmmov %vm14426_vm11  ;;  %v6662_v22 = vrot.slane %v6635_v46, 7  ;;  %v14433_v59 = vld [vmem:[#allocation68_spill] sm:$0xff]  ;;  %v6513_v33 = vrot.slane %v14434_v34, 1 }
 0x450   : > { %v6651_v58 = vsel %vm14427_vm15, %v6649_v39, %v6650_v32  ;;  %vm14428_vm3 = vmmov %vm14426_vm11  ;;  %v6512_v4 = vrot.slane %v14433_v59, 1  ;;  %v6514_v2 = vrot.slane %v14435_v19, 1  ;;  %v6516_v43 = vrot.slane %v14437_v13, 1 }
 0x451   : > { %v6653_v62 = vsel %vm14428_vm3, %v6647_v10, %v6652_v54  ;;  %vm14429_vm8 = vmmov %vm14428_vm3  ;;  %v6410_v26 = vadd.f32 %v6409_v56, %v6395_v28  ;;  %v6672_v12 = vadd.f32 %v6651_v58, %v6648_v35  ;;  %v6518_v1 = vrot.slane %v14438_v36, 1  ;;  %v14439_v28 = vld [vmem:[#allocation62_spill] sm:$0xff] }
 0x452   : > { %v6655_v41 = vsel %vm14429_vm8, %v6650_v32, %v6654_v53  ;;  %vm14430_vm14 = vmmov %vm14428_vm3  ;;  %v6520_v14 = vrot.slane %v14439_v28, 1  ;;  %v6515_v3 = vsel %vm14259_vm1, %v6512_v4, %v6514_v2  ;;  %v6522_v57 = vrot.slane %v14440_v37, 1 }
 0x453   : > { %v6657_v11 = vsel %vm14430_vm14, %v6652_v54, %v6656_v51  ;;  %vm14431_vm7 = vmmov %vm14428_vm3  ;;  %6411 = vadd.xlane.f32.xlu0 %v6410_v26  ;;  %v6673_v21 = vadd.f32 %v6672_v12, %v6653_v62  ;;  %v6524_v55 = vrot.slane %v14441_v5, 1  ;;  %v6517_v45 = vsel %vm14442_vm6, %v6513_v33, %v6516_v43 }
 0x454   : > { %v6659_v15 = vsel %vm14431_vm7, %v6654_v53, %v6658_v44  ;;  %vm14432_vm2 = vmmov %vm14428_vm3  ;;  %v6519_v16 = vsel %vm14443_vm5, %v6514_v2, %v6518_v1  ;;  %v6521_v31 = vsel %vm14444_vm9, %v6516_v43, %v6520_v14  ;;  %v6536_v24 = vmul.f32 %v6512_v4, %v11742_v29 }
 0x455   : > { %v6661_v60 = vsel %vm14432_vm2, %v6656_v51, %v6660_v17  ;;  %vm14436_vm0 = vmmov %vm14432_vm2  ;;  %v6674_v25 = vadd.f32 %v6673_v21, %v6655_v41  ;;  %v6523_v9 = vsel %vm14445_vm12, %v6518_v1, %v6522_v57  ;;  %v6525_v52 = vsel %vm14446_vm13, %v6520_v14, %v6524_v55  ;;  %v14454_v1 = vld [vmem:[#allocation77_spill] sm:$0xff] }
 0x456   : > { %v6663_v50 = vsel %vm14436_vm0, %v6658_v44, %v6662_v22  ;;  %v6537_v20 = vmul.f32 %v6513_v33, %v11746_v0  ;;  %v6538_v46 = vmul.f32 %v6515_v3, %v14418_v40  ;;  %v6539_v6 = vmul.f32 %v6517_v45, %v14419_v47  ;;  %vm14447_vm10 = vmmov %vm14436_vm0  ;;  %v14455_v14 = vld [vmem:[#allocation81_spill] sm:$0xff]  ;;  %v14457_v3 = vld [vmem:[#allocation84_spill] sm:$0xff] }
 0x457   : > { %v6540_v48 = vmul.f32 %v6519_v16, %v14420_v23  ;;  %v6541_v10 = vmul.f32 %v6521_v31, %v14421_v7  ;;  %v6675_v39 = vadd.f32 %v6674_v25, %v6657_v11  ;;  %v6542_v32 = vmul.f32 %v6523_v9, %v14422_v42  ;;  %vm14448_vm4 = vmmov %vm14436_vm0  ;;  %v14460_v31 = vld [vmem:[#allocation65_spill] sm:$0xff]  ;;  %v14461_v25 = vld [vmem:[#allocation71_spill] sm:$0xff] }
 0x458   : > { %v6543_v54 = vmul.f32 %v6525_v52, %v14423_v61  ;;  %v6544_v53 = vmul.f32 %v6522_v57, %v14424_v8  ;;  %v6545_v51 = vmul.f32 %v6524_v55, %v14425_v63  ;;  %v6556_v56 = vrot.slane %v6536_v24, 7  ;;  %vm14449_vm11 = vmmov %vm14436_vm0  ;;  %v14458_v57 = vld [vmem:[#allocation85_spill] sm:$0xff]  ;;  %v14459_v55 = vld [vmem:[#allocation64_spill] sm:$0xff] }
 0x459   : > { %v6557_v35 = vrot.slane %v6538_v46, 7  ;;  %v6559_v44 = vrot.slane %v6537_v20, 7  ;;  %v6676_v17 = vadd.f32 %v6675_v39, %v6659_v15  ;;  %v6560_v58 = vrot.slane %v6539_v6, 7  ;;  %vm14450_vm15 = vmmov %vm14436_vm0 }
 0x45a   : > { %v6562_v62 = vrot.slane %v6540_v48, 7  ;;  %v6564_v41 = vrot.slane %v6541_v10, 7  ;;  %v6566_v22 = vrot.slane %v6542_v32, 7  ;;  %v6568_v12 = vrot.slane %v6543_v54, 7  ;;  %vm14451_vm3 = vmmov %vm14436_vm0 }
 0x45b   : > { %v6558_v26 = vsel %vm14447_vm10, %v6556_v56, %v6557_v35  ;;  %v6570_v11 = vrot.slane %v6544_v53, 7  ;;  %v6677_v59 = vadd.f32 %v6676_v17, %v6661_v60  ;;  %v6561_v4 = vsel %vm14448_vm4, %v6559_v44, %v6560_v58  ;;  %vm14452_vm8 = vmmov %vm14436_vm0 }
 0x45c   : > { %v6563_v34 = vsel %vm14449_vm11, %v6557_v35, %v6562_v62  ;;  %v6565_v33 = vsel %vm14450_vm15, %v6560_v58, %v6564_v41  ;;  %v6567_v19 = vsel %vm14451_vm3, %v6562_v62, %v6566_v22  ;;  %v6569_v2 = vsel %vm14452_vm8, %v6564_v41, %v6568_v12  ;;  %vm14453_vm14 = vmmov %vm14436_vm0 }
 0x45d   : > { %v6571_v15 = vsel %vm14453_vm14, %v6566_v22, %v6570_v11  ;;  %v6572_v13 = vrot.slane %v6545_v51, 7  ;;  %v6678_v43 = vadd.f32 %v6677_v59, %v6663_v50  ;;  %v6582_v36 = vadd.f32 %v6561_v4, %v6558_v26  ;;  %vm14456_vm7 = vmmov %vm14436_vm0  ;;  %v14462_v50 = vld [vmem:[#allocation73_spill] sm:$0xff] }
 0x45e   : > { %v6780_v28 = vrot.slane %v14454_v1, 1  ;;  %v6781_v21 = vrot.slane %v14455_v14, 1  ;;  %v6782_v37 = vrot.slane %v14457_v3, 1  ;;  %v6784_v5 = vrot.slane %v14458_v57, 1  ;;  %vm14463_vm2 = vmmov %vm14259_vm1 }
 0x45f   : > { %v6573_v60 = vsel %vm14456_vm7, %v6568_v12, %v6572_v13  ;;  %v6786_v45 = vrot.slane %v14459_v55, 1  ;;  %6679 = vadd.xlane.f32.xlu1 %v6678_v43  ;;  %v6583_v16 = vadd.f32 %v6582_v36, %v6563_v34  ;;  %v6788_v24 = vrot.slane %v14460_v31, 1  ;;  %vm14464_vm0 = vmmov %vm14259_vm1  ;;  %v14477_v31 = vld [vmem:[#allocation87_spill] sm:$0xff] }
 0x460   : > { %v6790_v9 = vrot.slane %v14461_v25, 1  ;;  %v6792_v52 = vrot.slane %v14462_v50, 1  ;;  %v6783_v20 = vsel %vm14463_vm2, %v6780_v28, %v6782_v37  ;;  %v6785_v46 = vsel %vm14464_vm0, %v6781_v21, %v6784_v5  ;;  %vm14465_vm1 = vmmov %vm14464_vm0  ;;  %v14478_v25 = vld [vmem:[#allocation91_spill] sm:$0xff]  ;;  %v14479_v50 = vld [vmem:[#allocation92_spill] sm:$0xff] }
 0x461   : > { %v6787_v6 = vsel %vm14465_vm1, %v6782_v37, %v6786_v45  ;;  %v6804_v48 = vmul.f32 %v6780_v28, %v11742_v29  ;;  %v6584_v10 = vadd.f32 %v6583_v16, %v6565_v33  ;;  %vm14466_vm6 = vmmov %vm14464_vm0  ;;  %v6805_v53 = vmul.f32 %v6781_v21, %v11746_v0 }
 0x462   : > { %v6789_v39 = vsel %vm14466_vm6, %v6784_v5, %v6788_v24  ;;  %vm14467_vm5 = vmmov %vm14464_vm0  ;;  %v6806_v51 = vmul.f32 %v6783_v20, %v14418_v40  ;;  %v6807_v56 = vmul.f32 %v6785_v46, %v14419_v47  ;;  %v6808_v35 = vmul.f32 %v6787_v6, %v14420_v23  ;;  %v14480_v46 = vld [vmem:[#allocation93_spill] sm:$0xff] }
 0x463   : > { %v6791_v32 = vsel %vm14467_vm5, %v6786_v45, %v6790_v9  ;;  %vm14468_vm9 = vmmov %vm14464_vm0  ;;  %v6585_v44 = vadd.f32 %v6584_v10, %v6567_v19  ;;  %v6809_v17 = vmul.f32 %v6789_v39, %v14421_v7  ;;  %v6812_v41 = vmul.f32 %v6790_v9, %v14424_v8  ;;  %v14475_v45 = vld [vmem:[#allocation86_spill] sm:$0xff] }
 0x464   : > { %v6793_v54 = vsel %vm14468_vm9, %v6788_v24, %v6792_v52  ;;  %v6810_v58 = vmul.f32 %v6791_v32, %v14422_v42  ;;  %v6813_v26 = vmul.f32 %v6792_v52, %v14425_v63  ;;  %v6824_v22 = vrot.slane %v6804_v48, 7  ;;  %vm14469_vm12 = vmmov %vm14451_vm3  ;;  %v14481_v48 = vld [vmem:[#allocation74_spill] sm:$0xff] }
 0x465   : > { %v6811_v62 = vmul.f32 %v6793_v54, %v14423_v61  ;;  %v6825_v12 = vrot.slane %v6806_v51, 7  ;;  %v6586_v11 = vadd.f32 %v6585_v44, %v6569_v2  ;;  %v6827_v59 = vrot.slane %v6805_v53, 7  ;;  %vm14470_vm13 = vmmov %vm14451_vm3  ;;  %v14485_v53 = vld [vmem:[#allocation66_spill] sm:$0xff] }
 0x466   : > { %v6828_v4 = vrot.slane %v6807_v56, 7  ;;  %v6830_v34 = vrot.slane %v6808_v35, 7  ;;  %v6832_v13 = vrot.slane %v6809_v17, 7  ;;  %v6834_v19 = vrot.slane %v6810_v58, 7  ;;  %vm14471_vm10 = vmmov %vm14451_vm3 }
 0x467   : > { %v6826_v33 = vsel %vm14469_vm12, %v6824_v22, %v6825_v12  ;;  %v6836_v43 = vrot.slane %v6811_v62, 7  ;;  %v6587_v36 = vadd.f32 %v6586_v11, %v6571_v15  ;;  %v6838_v14 = vrot.slane %v6812_v41, 7  ;;  %vm14472_vm4 = vmmov %vm14451_vm3 }
 0x468   : > { %v6829_v1 = vsel %vm14470_vm13, %v6827_v59, %v6828_v4  ;;  %v6831_v28 = vsel %vm14471_vm10, %v6825_v12, %v6830_v34  ;;  %v6833_v21 = vsel %vm14472_vm4, %v6828_v4, %v6832_v13  ;;  %vm14473_vm11 = vmmov %vm14451_vm3  ;;  %v6840_v37 = vrot.slane %v6813_v26, 7 }
 0x469   : > { %v6835_v3 = vsel %vm14473_vm11, %v6830_v34, %v6834_v19  ;;  %vm14474_vm15 = vmmov %vm14451_vm3  ;;  %v6588_v57 = vadd.f32 %v6587_v36, %v6573_v60  ;;  %v6839_v5 = vsel %vm14451_vm3, %v6834_v19, %v6838_v14  ;;  %v6850_v55 = vadd.f32 %v6829_v1, %v6826_v33  ;;  %v14482_v60 = vld [vmem:[#allocation79_spill] sm:$0xff] }
 0x46a   : > { %v6837_v2 = vsel %vm14474_vm15, %v6832_v13, %v6836_v43  ;;  %v6691_v16 = vrot.slane %v14475_v45, 1  ;;  %vm14476_vm8 = vmmov %vm14451_vm3  ;;  %v6692_v24 = vrot.slane %v14477_v31, 1  ;;  %v6693_v9 = vrot.slane %v14478_v25, 1 }
 0x46b   : > { %v6841_v15 = vsel %vm14476_vm8, %v6836_v43, %v6840_v37  ;;  %v6695_v52 = vrot.slane %v14479_v50, 1  ;;  %6589 = vadd.xlane.f32.xlu0 %v6588_v57  ;;  %v6851_v20 = vadd.f32 %v6850_v55, %v6831_v28  ;;  %v6697_v6 = vrot.slane %v14480_v46, 1  ;;  %vm14483_vm14 = vmmov %vm14464_vm0 }
 0x46c   : > { %v6699_v10 = vrot.slane %v14481_v48, 1  ;;  %v6701_v39 = vrot.slane %v14482_v60, 1  ;;  %v6694_v32 = vsel %vm14483_vm14, %v6691_v16, %v6693_v9  ;;  %vm14484_vm7 = vmmov %vm14464_vm0  ;;  %v6703_v51 = vrot.slane %v14485_v53, 1  ;;  %v14499_v53 = vld [vmem:[#allocation82_spill] sm:$0xff] }
 0x46d   : > { %v6696_v54 = vsel %vm14484_vm7, %v6692_v24, %v6695_v52  ;;  %v6715_v56 = vmul.f32 %v6691_v16, %v11742_v29  ;;  %v6852_v35 = vadd.f32 %v6851_v20, %v6833_v21  ;;  %vm14486_vm2 = vmmov %vm14464_vm0  ;;  %v6716_v41 = vmul.f32 %v6692_v24, %v11746_v0 }
 0x46e   : > { %v6698_v44 = vsel %vm14486_vm2, %v6693_v9, %v6697_v6  ;;  %v6700_v17 = vsel %vm14464_vm0, %v6695_v52, %v6699_v10  ;;  %vm14487_vm1 = vmmov %vm14464_vm0  ;;  %v6717_v26 = vmul.f32 %v6694_v32, %v14418_v40  ;;  %v6718_v22 = vmul.f32 %v6696_v54, %v14419_v47 }
 0x46f   : > { %v6702_v58 = vsel %vm14487_vm1, %v6697_v6, %v6701_v39  ;;  %vm14488_vm6 = vmmov %vm14464_vm0  ;;  %v6853_v12 = vadd.f32 %v6852_v35, %v6835_v3  ;;  %v6719_v11 = vmul.f32 %v6698_v44, %v14420_v23  ;;  %v6720_v59 = vmul.f32 %v6700_v17, %v14421_v7  ;;  %v14496_v6 = vld [vmem:[#allocation72_spill] sm:$0xff]  ;;  %v8508_v44 = vld [vmem:[%s13563_s5 + $0x178] sm:$0xff] }
 0x470   : > { %v6704_v62 = vsel %vm14488_vm6, %v6699_v10, %v6703_v51  ;;  %v6721_v4 = vmul.f32 %v6702_v58, %v14422_v42  ;;  %v6723_v33 = vmul.f32 %v6701_v39, %v14424_v8  ;;  %v6724_v13 = vmul.f32 %v6703_v51, %v14425_v63  ;;  %vm14489_vm5 = vmmov %vm14451_vm3  ;;  %v14497_v10 = vld [vmem:[#allocation80_spill] sm:$0xff] }
 0x471   : > { %v6722_v34 = vmul.f32 %v6704_v62, %v14423_v61  ;;  %v6735_v19 = vrot.slane %v6715_v56, 7  ;;  %v6854_v43 = vadd.f32 %v6853_v12, %v6837_v2  ;;  %v6736_v36 = vrot.slane %v6717_v26, 7  ;;  %vm14490_vm9 = vmmov %vm14451_vm3 }
 0x472   : > { %v6738_v1 = vrot.slane %v6716_v41, 7  ;;  %v6739_v28 = vrot.slane %v6718_v22, 7  ;;  %v6741_v14 = vrot.slane %v6719_v11, 7  ;;  %v6743_v21 = vrot.slane %v6720_v59, 7  ;;  %vm14491_vm12 = vmmov %vm14451_vm3 }
 0x473   : > { %v6745_v3 = vrot.slane %v6721_v4, 7  ;;  %v6747_v37 = vrot.slane %v6722_v34, 7  ;;  %v6855_v57 = vadd.f32 %v6854_v43, %v6839_v5  ;;  %v6737_v55 = vsel %vm14489_vm5, %v6735_v19, %v6736_v36  ;;  %vm14492_vm13 = vmmov %vm14451_vm3 }
 0x474   : > { %v6740_v45 = vsel %vm14490_vm9, %v6738_v1, %v6739_v28  ;;  %v6749_v16 = vrot.slane %v6723_v33, 7  ;;  %v6742_v31 = vsel %vm14491_vm12, %v6736_v36, %v6741_v14  ;;  %v6744_v24 = vsel %vm14492_vm13, %v6739_v28, %v6743_v21  ;;  %vm14493_vm10 = vmmov %vm14451_vm3 }
 0x475   : > { %v6746_v25 = vsel %vm14493_vm10, %v6741_v14, %v6745_v3  ;;  %vm14494_vm4 = vmmov %vm14451_vm3  ;;  %v6856_v9 = vadd.f32 %v6855_v57, %v6841_v15  ;;  %v6751_v52 = vrot.slane %v6724_v13, 7  ;;  %v6761_v20 = vadd.f32 %v6740_v45, %v6737_v55  ;;  %v8507_v15 = vld [vmem:[%s13563_s5 + $0x160] sm:$0xff] }
 0x476   : > { %v6748_v2 = vsel %vm14494_vm4, %v6743_v21, %v6747_v37  ;;  %vm14495_vm11 = vmmov %vm14451_vm3  ;;  %v6958_v5 = vrot.slane %v12605_v38, 1  ;;  %v6959_v46 = vrot.slane %v12611_v27, 1  ;;  %v6960_v48 = vrot.slane %v14496_v6, 1  ;;  %v14502_v27 = vld [vmem:[#allocation94_spill] sm:$0xff] }
 0x477   : > { %v6750_v50 = vsel %vm14495_vm11, %v6745_v3, %v6749_v16  ;;  %v6962_v60 = vrot.slane %v14497_v10, 1  ;;  %6857 = vadd.xlane.f32.xlu1 %v6856_v9  ;;  %vm14498_vm15 = vmmov %vm14451_vm3  ;;  %v6762_v32 = vadd.f32 %v6761_v20, %v6742_v31  ;;  %v6964_v54 = vrot.slane %v8507_v15, 1 }
 0x478   : > { %v6752_v39 = vsel %vm14498_vm15, %v6747_v37, %v6751_v52  ;;  %v6966_v51 = vrot.slane %v14499_v53, 1  ;;  %vm14500_vm3 = vmmov %vm14464_vm0  ;;  %v6968_v35 = vrot.slane %v14502_v27, 1  ;;  %v6970_v17 = vrot.slane %v8508_v44, 1  ;;  %v14516_v44 = vld [vmem:[#allocation103_spill] sm:$0xff] }
 0x479   : > { %v6961_v56 = vsel %vm14500_vm3, %v6958_v5, %v6960_v48  ;;  %vm14501_vm8 = vmmov %vm14464_vm0  ;;  %v6763_v58 = vadd.f32 %v6762_v32, %v6744_v24  ;;  %v6982_v26 = vmul.f32 %v6958_v5, %v11742_v29  ;;  %v6983_v11 = vmul.f32 %v6959_v46, %v11746_v0 }
 0x47a   : > { %v6963_v38 = vsel %vm14501_vm8, %v6959_v46, %v6962_v60  ;;  %vm14503_vm14 = vmmov %vm14464_vm0  ;;  %v6971_v12 = vsel %vm14464_vm0, %v6966_v51, %v6970_v17  ;;  %v6984_v59 = vmul.f32 %v6961_v56, %v14418_v40  ;;  %v6990_v36 = vmul.f32 %v6968_v35, %v14424_v8  ;;  %v14514_v56 = vld [vmem:[#allocation99_spill] sm:$0xff] }
 0x47b   : > { %v6965_v62 = vsel %vm14503_vm14, %v6960_v48, %v6964_v54  ;;  %vm14504_vm7 = vmmov %vm14464_vm0  ;;  %v6764_v4 = vadd.f32 %v6763_v58, %v6746_v25  ;;  %v6985_v34 = vmul.f32 %v6963_v38, %v14419_v47  ;;  %v6989_v43 = vmul.f32 %v6971_v12, %v14423_v61 }
 0x47c   : > { %v6967_v41 = vsel %vm14504_vm7, %v6962_v60, %v6966_v51  ;;  %vm14505_vm2 = vmmov %vm14464_vm0  ;;  %v6986_v33 = vmul.f32 %v6965_v62, %v14420_v23  ;;  %v6991_v1 = vmul.f32 %v6970_v17, %v14425_v63  ;;  %v7002_v14 = vrot.slane %v6982_v26, 7 }
 0x47d   : > { %v6969_v22 = vsel %vm14505_vm2, %v6964_v54, %v6968_v35  ;;  %v6987_v13 = vmul.f32 %v6967_v41, %v14421_v7  ;;  %v6765_v28 = vadd.f32 %v6764_v4, %v6748_v2  ;;  %v7003_v21 = vrot.slane %v6984_v59, 7  ;;  %vm14506_vm1 = vmmov %vm14494_vm4 }
 0x47e   : > { %v6988_v19 = vmul.f32 %v6969_v22, %v14422_v42  ;;  %v7005_v3 = vrot.slane %v6983_v11, 7  ;;  %v7006_v37 = vrot.slane %v6985_v34, 7  ;;  %v7008_v57 = vrot.slane %v6986_v33, 7  ;;  %vm14507_vm6 = vmmov %vm14506_vm1 }
 0x47f   : > { %v7010_v55 = vrot.slane %v6987_v13, 7  ;;  %v6766_v16 = vadd.f32 %v6765_v28, %v6750_v50  ;;  %v7004_v31 = vsel %vm14506_vm1, %v7002_v14, %v7003_v21  ;;  %v7014_v24 = vrot.slane %v6989_v43, 7  ;;  %vm14508_vm5 = vmmov %vm14506_vm1  ;;  %v8509_v50 = vld [vmem:[%s13563_s5 + $0x100] sm:$0xff] }
 0x480   : > { %v7012_v45 = vrot.slane %v6988_v19, 7  ;;  %v7016_v25 = vrot.slane %v6990_v36, 7  ;;  %v7007_v9 = vsel %vm14507_vm6, %v7005_v3, %v7006_v37  ;;  %v7009_v52 = vsel %vm14508_vm5, %v7003_v21, %v7008_v57  ;;  %vm14509_vm9 = vmmov %vm14506_vm1 }
 0x481   : > { %v7011_v20 = vsel %vm14509_vm9, %v7006_v37, %v7010_v55  ;;  %vm14510_vm12 = vmmov %vm14506_vm1  ;;  %v6767_v5 = vadd.f32 %v6766_v16, %v6752_v39  ;;  %v7018_v48 = vrot.slane %v6991_v1, 7  ;;  %v7028_v10 = vadd.f32 %v7007_v9, %v7004_v31  ;;  %v8510_v39 = vld [vmem:[%s13563_s5 + $0x118] sm:$0xff] }
 0x482   : > { %v7013_v2 = vsel %vm14510_vm12, %v7008_v57, %v7012_v45  ;;  %vm14511_vm13 = vmmov %vm14506_vm1  ;;  %v6869_v60 = vrot.slane %v8509_v50, 1  ;;  %v6870_v32 = vrot.slane %v12669_v18, 1  ;;  %v6871_v15 = vrot.slane %v12675_v30, 1  ;;  %v8511_v18 = vld [vmem:[%s13563_s5 + $0x130] sm:$0xff] }
 0x483   : > { %v7015_v46 = vsel %vm14511_vm13, %v7010_v55, %v7014_v24  ;;  %vm14512_vm10 = vmmov %vm14506_vm1  ;;  %6768 = vadd.xlane.f32.xlu0 %v6767_v5  ;;  %v6873_v53 = vrot.slane %v8510_v39, 1  ;;  %v6875_v51 = vrot.slane %v12682_v49, 1  ;;  %v6877_v38 = vrot.slane %v14514_v56, 1  ;;  %v8514_v56 = vld [vmem:[%s13563_s5 + $0x1d0] sm:$0xff] }
 0x484   : > { %v7017_v6 = vsel %vm14512_vm10, %v7012_v45, %v7016_v25  ;;  %vm14513_vm4 = vmmov %vm14506_vm1  ;;  %v7029_v27 = vadd.f32 %v7028_v10, %v7009_v52  ;;  %v6879_v30 = vrot.slane %v8511_v18, 1  ;;  %v6881_v17 = vrot.slane %v14516_v44, 1  ;;  %v13051_v10 = vpop.xlane.xlu1 %3966  ;;  %v8517_v44 = vld [vmem:[%s13563_s5 + $0x1e8] sm:$0xff] }
 0x485   : > { %v7019_v54 = vsel %vm14513_vm4, %v7014_v24, %v7018_v48  ;;  %vm14515_vm11 = vmmov %vm14464_vm0  ;;  %v6893_v49 = vmul.f32 %v6869_v60, %v11742_v29  ;;  %v6894_v11 = vmul.f32 %v6870_v32, %v11746_v0 }
 0x486   : > { %v6872_v35 = vsel %vm14515_vm11, %v6869_v60, %v6871_v15  ;;  %vm14517_vm15 = vmmov %vm14464_vm0  ;;  %v7030_v26 = vadd.f32 %v7029_v27, %v7011_v20  ;;  %v6901_v36 = vmul.f32 %v6879_v30, %v14424_v8  ;;  %v6902_v1 = vmul.f32 %v6881_v17, %v14425_v63 }
 0x487   : > { %v6874_v58 = vsel %vm14517_vm15, %v6870_v32, %v6873_v53  ;;  %vm14518_vm3 = vmmov %vm14464_vm0  ;;  %v6895_v59 = vmul.f32 %v6872_v35, %v14418_v40  ;;  %v6913_v28 = vrot.slane %v6893_v49, 7  ;;  %v6916_v21 = vrot.slane %v6894_v11, 7  ;;  %v8516_v35 = vld [vmem:[%s13563_s5 + $0x1e0] sm:$0xff] }
 0x488   : > { %v6876_v62 = vsel %vm14518_vm3, %v6871_v15, %v6875_v51  ;;  %vm14519_vm8 = vmmov %vm14464_vm0  ;;  %v6896_v4 = vmul.f32 %v6874_v58, %v14419_v47  ;;  %v7031_v13 = vadd.f32 %v7030_v26, %v7013_v2  ;;  %v6927_v24 = vrot.slane %v6901_v36, 7  ;;  %v8513_v15 = vld [vmem:[%s13563_s5 + $0x1c8] sm:$0xff]  ;;  %v8518_v58 = vld [vmem:[%s13563_s5 + $0x1f0] sm:$0xff] }
 0x489   : > { %v6878_v41 = vsel %vm14519_vm8, %v6873_v53, %v6877_v38  ;;  %vm14520_vm14 = vmmov %vm14464_vm0  ;;  %v6897_v34 = vmul.f32 %v6876_v62, %v14420_v23  ;;  %v6914_v14 = vrot.slane %v6895_v59, 7  ;;  %v6929_v48 = vrot.slane %v6902_v1, 7  ;;  %v13059_v53 = vpop.xlane.xlu0 %3751  ;;  %v13091_v1 = vpop.xlane.xlu1 %4073 }
 0x48a   : > { %v6880_v22 = vsel %vm14520_vm14, %v6875_v51, %v6879_v30  ;;  %vm14521_vm7 = vmmov %vm14464_vm0  ;;  %v6898_v33 = vmul.f32 %v6878_v41, %v14421_v7  ;;  %v7032_v3 = vadd.f32 %v7031_v13, %v7015_v46  ;;  %v6917_v37 = vrot.slane %v6896_v4, 7  ;;  %v8519_v41 = vld [vmem:[%s13563_s5 + $0x1f8] sm:$0xff] }
 0x48b   : > { %v6882_v12 = vsel %vm14521_vm7, %v6877_v38, %v6881_v17  ;;  %v6899_v19 = vmul.f32 %v6880_v22, %v14422_v42  ;;  %v6919_v57 = vrot.slane %v6897_v34, 7  ;;  %vm14522_vm2 = vmmov %vm14506_vm1  ;;  %v7137_v39 = vrot.slane %v8513_v15, 1  ;;  %v8515_v38 = vld [vmem:[%s13563_s5 + $0x1d8] sm:$0xff] }
 0x48c   : > { %v6900_v43 = vmul.f32 %v6882_v12, %v14423_v61  ;;  %v6921_v55 = vrot.slane %v6898_v33, 7  ;;  %v6915_v45 = vsel %vm14522_vm2, %v6913_v28, %v6914_v14  ;;  %v7033_v25 = vadd.f32 %v7032_v3, %v7017_v6  ;;  %vm14523_vm0 = vmmov %vm14506_vm1  ;;  %v8512_v6 = vld [vmem:[%s13563_s5 + $0x1c0] sm:$0xff] }
 0x48d   : > { %v6923_v16 = vrot.slane %v6899_v19, 7  ;;  %v6918_v9 = vsel %vm14523_vm0, %v6916_v21, %v6917_v37  ;;  %vm14524_vm1 = vmmov %vm14523_vm0  ;;  %v7136_v32 = vrot.slane %v8512_v6, 1  ;;  %v7140_v27 = vrot.slane %v8515_v38, 1 }
 0x48e   : > { %v6925_v31 = vrot.slane %v6900_v43, 7  ;;  %v6920_v52 = vsel %vm14524_vm1, %v6914_v14, %v6919_v57  ;;  %vm14525_vm6 = vmmov %vm14523_vm0  ;;  %v7034_v50 = vadd.f32 %v7033_v25, %v7019_v54  ;;  %v6939_v60 = vadd.f32 %v6918_v9, %v6915_v45 }
 0x48f   : > { %v6922_v20 = vsel %vm14525_vm6, %v6917_v37, %v6921_v55  ;;  %vm14526_vm5 = vmmov %vm14523_vm0  ;;  %v7138_v54 = vrot.slane %v8514_v56, 1  ;;  %v7142_v18 = vrot.slane %v8516_v35, 1  ;;  %v7144_v17 = vrot.slane %v8517_v44, 1  ;;  %v13096_v37 = vpop.xlane.xlu0 %3859 }
 0x490   : > { %v6924_v2 = vsel %vm14526_vm5, %v6919_v57, %v6923_v16  ;;  %vm14527_vm9 = vmmov %vm14523_vm0  ;;  %7035 = vadd.xlane.f32.xlu1 %v7034_v50  ;;  %v6940_v30 = vadd.f32 %v6939_v60, %v6920_v52  ;;  %v7146_v62 = vrot.slane %v8518_v58, 1  ;;  %v7148_v49 = vrot.slane %v8519_v41, 1  ;;  %v8523_v41 = vld [vmem:[%s13563_s5 + $0x198] sm:$0xff] }
 0x491   : > { %v6926_v5 = vsel %vm14527_vm9, %v6921_v55, %v6925_v31  ;;  %vm14528_vm12 = vmmov %vm14523_vm0  ;;  %v7160_v11 = vmul.f32 %v7136_v32, %v11742_v29  ;;  %v7161_v13 = vmul.f32 %v7137_v39, %v11746_v0 }
 0x492   : > { %v6928_v46 = vsel %vm14528_vm12, %v6923_v16, %v6927_v24  ;;  %vm14529_vm13 = vmmov %vm14523_vm0  ;;  %v6941_v59 = vadd.f32 %v6940_v30, %v6922_v20  ;;  %v7147_v34 = vsel %vm14518_vm3, %v7142_v18, %v7146_v62  ;;  %v7168_v57 = vmul.f32 %v7146_v62, %v14424_v8 }
 0x493   : > { %v6930_v51 = vsel %vm14529_vm13, %v6925_v31, %v6929_v48  ;;  %vm14530_vm10 = vmmov %vm14518_vm3  ;;  %v7166_v21 = vmul.f32 %v7147_v34, %v14422_v42  ;;  %v7169_v55 = vmul.f32 %v7148_v49, %v14425_v63  ;;  %v7180_v45 = vrot.slane %v7160_v11, 7  ;;  %v13112_v30 = vpop.xlane.xlu0 %4180  ;;  %v8525_v11 = vld [vmem:[%s13563_s5 + $0x1a8] sm:$0xff] }
 0x494   : > { %v7139_v26 = vsel %vm14530_vm10, %v7136_v32, %v7138_v54  ;;  %vm14531_vm4 = vmmov %vm14518_vm3  ;;  %v6942_v28 = vadd.f32 %v6941_v59, %v6924_v2  ;;  %v7183_v24 = vrot.slane %v7161_v13, 7  ;;  %v7194_v32 = vrot.slane %v7168_v57, 7 }
 0x495   : > { %v7141_v22 = vsel %vm14531_vm4, %v7137_v39, %v7140_v27  ;;  %vm14532_vm11 = vmmov %vm14518_vm3  ;;  %v7162_v19 = vmul.f32 %v7139_v26, %v14418_v40  ;;  %v7190_v2 = vrot.slane %v7166_v21, 7  ;;  %v7196_v56 = vrot.slane %v7169_v55, 7 }
 0x496   : > { %v7143_v12 = vsel %vm14532_vm11, %v7138_v54, %v7142_v18  ;;  %vm14533_vm15 = vmmov %vm14518_vm3  ;;  %v7163_v43 = vmul.f32 %v7141_v22, %v14419_v47  ;;  %v6943_v31 = vadd.f32 %v6942_v28, %v6926_v5  ;;  %v13106_v54 = vpop.xlane.xlu1 %4287  ;;  %v8524_v22 = vld [vmem:[%s13563_s5 + $0x1a0] sm:$0xff]  ;;  %v7055_v59 = vrot.slane %v8525_v11, 1 }
 0x497   : > { %v7145_v4 = vsel %vm14533_vm15, %v7140_v27, %v7144_v17  ;;  %vm14534_vm8 = vmmov %vm14518_vm3  ;;  %v7164_v36 = vmul.f32 %v7143_v12, %v14420_v23  ;;  %v7181_v16 = vrot.slane %v7162_v19, 7  ;;  %v7053_v12 = vrot.slane %v8524_v22, 1  ;;  %v8527_v19 = vld [vmem:[%s13563_s5 + $0x1b8] sm:$0xff] }
 0x498   : > { %v7149_v33 = vsel %vm14534_vm8, %v7144_v17, %v7148_v49  ;;  %v7165_v14 = vmul.f32 %v7145_v4, %v14421_v7  ;;  %v7184_v25 = vrot.slane %v7163_v43, 7  ;;  %vm14535_vm14 = vmmov %vm14523_vm0  ;;  %v6944_v50 = vadd.f32 %v6943_v31, %v6928_v46  ;;  %v8520_v46 = vld [vmem:[%s13563_s5 + $0x180] sm:$0xff]  ;;  %v8521_v17 = vld [vmem:[%s13563_s5 + $0x188] sm:$0xff] }
 0x499   : > { %v7167_v3 = vmul.f32 %v7149_v33, %v14423_v61  ;;  %v7186_v9 = vrot.slane %v7164_v36, 7  ;;  %v7182_v52 = vsel %vm14535_vm14, %v7180_v45, %v7181_v16  ;;  %vm14536_vm7 = vmmov %vm14523_vm0  ;;  %v7047_v18 = vrot.slane %v8520_v46, 1  ;;  %v8526_v4 = vld [vmem:[%s13563_s5 + $0x1b0] sm:$0xff] }
 0x49a   : > { %v7188_v20 = vrot.slane %v7165_v14, 7  ;;  %v7185_v60 = vsel %vm14536_vm7, %v7183_v24, %v7184_v25  ;;  %vm14537_vm2 = vmmov %vm14523_vm0  ;;  %v6945_v38 = vadd.f32 %v6944_v50, %v6930_v51  ;;  %v7048_v58 = vrot.slane %v8521_v17, 1  ;;  %v8522_v51 = vld [vmem:[%s13563_s5 + $0x190] sm:$0xff]  ;;  %v13146_v31 = vpop.xlane.xlu1 %4501 }
 0x49b   : > { %v7192_v48 = vrot.slane %v7167_v3, 7  ;;  %v7187_v6 = vsel %vm14537_vm2, %v7181_v16, %v7186_v9  ;;  %vm14538_vm1 = vmmov %vm14523_vm0  ;;  %v7206_v35 = vadd.f32 %v7185_v60, %v7182_v52  ;;  %v7049_v62 = vrot.slane %v8522_v51, 1 }
 0x49c   : > { %v7189_v15 = vsel %vm14523_vm0, %v7184_v25, %v7188_v20  ;;  %v7191_v39 = vsel %vm14538_vm1, %v7186_v9, %v7190_v2  ;;  %vm14539_vm6 = vmmov %vm14523_vm0  ;;  %v7051_v49 = vrot.slane %v8523_v41, 1  ;;  %6946 = vadd.xlane.f32.xlu0 %v6945_v38  ;;  %v7057_v34 = vrot.slane %v8526_v4, 1  ;;  %v8528_v4 = vld [vmem:[%s13563_s5 + $0x240] sm:$0xff] }
 0x49d   : > { %v7193_v5 = vsel %vm14539_vm6, %v7188_v20, %v7192_v48  ;;  %vm14540_vm5 = vmmov %vm14523_vm0  ;;  %v7207_v26 = vadd.f32 %v7206_v35, %v7187_v6  ;;  %v7059_v43 = vrot.slane %v8527_v19, 1  ;;  %v7071_v36 = vmul.f32 %v7047_v18, %v11742_v29  ;;  %v13151_v20 = vpop.xlane.xlu0 %4394 }
 0x49e   : > { %v7195_v27 = vsel %vm14540_vm5, %v7190_v2, %v7194_v32  ;;  %vm14541_vm9 = vmmov %vm14523_vm0  ;;  %v7072_v55 = vmul.f32 %v7048_v58, %v11746_v0 }
 0x49f   : > { %v7197_v44 = vsel %vm14541_vm9, %v7192_v48, %v7196_v56  ;;  %vm14542_vm12 = vmmov %vm14518_vm3  ;;  %v7208_v28 = vadd.f32 %v7207_v26, %v7189_v15  ;;  %v7079_v48 = vmul.f32 %v7057_v34, %v14424_v8  ;;  %v7080_v50 = vmul.f32 %v7059_v43, %v14425_v63  ;;  %v13162_v26 = vpop.xlane.xlu1 %4715 }
 0x4a0   : > { %v7050_v33 = vsel %vm14542_vm12, %v7047_v18, %v7049_v62  ;;  %vm14543_vm13 = vmmov %vm14518_vm3  ;;  %v7091_v60 = vrot.slane %v7071_v36, 7  ;;  %v7094_v15 = vrot.slane %v7072_v55, 7 }
 0x4a1   : > { %v7052_v13 = vsel %vm14543_vm13, %v7048_v58, %v7051_v49  ;;  %vm14544_vm10 = vmmov %vm14518_vm3  ;;  %v7073_v45 = vmul.f32 %v7050_v33, %v14418_v40  ;;  %v7209_v24 = vadd.f32 %v7208_v28, %v7191_v39  ;;  %v7105_v51 = vrot.slane %v7079_v48, 7  ;;  %v8529_v33 = vld [vmem:[%s13563_s5 + $0x248] sm:$0xff] }
 0x4a2   : > { %v7054_v14 = vsel %vm14544_vm10, %v7049_v62, %v7053_v12  ;;  %vm14545_vm4 = vmmov %vm14518_vm3  ;;  %v7074_v16 = vmul.f32 %v7052_v13, %v14419_v47  ;;  %v7107_v11 = vrot.slane %v7080_v50, 7  ;;  %v7315_v13 = vrot.slane %v8529_v33, 1 }
 0x4a3   : > { %v7056_v21 = vsel %vm14545_vm4, %v7051_v49, %v7055_v59  ;;  %vm14546_vm11 = vmmov %vm14518_vm3  ;;  %v7075_v25 = vmul.f32 %v7054_v14, %v14420_v23  ;;  %v7210_v6 = vadd.f32 %v7209_v24, %v7193_v5  ;;  %v7092_v32 = vrot.slane %v7073_v45, 7  ;;  %v8534_v24 = vld [vmem:[%s13563_s5 + $0x270] sm:$0xff] }
 0x4a4   : > { %v7058_v3 = vsel %vm14546_vm11, %v7053_v12, %v7057_v34  ;;  %vm14547_vm15 = vmmov %vm14518_vm3  ;;  %v7076_v9 = vmul.f32 %v7056_v21, %v14421_v7  ;;  %v7095_v56 = vrot.slane %v7074_v16, 7  ;;  %v7314_v34 = vrot.slane %v8528_v4, 1  ;;  %v8532_v21 = vld [vmem:[%s13563_s5 + $0x260] sm:$0xff] }
 0x4a5   : > { %v7060_v57 = vsel %vm14547_vm15, %v7055_v59, %v7059_v43  ;;  %v7077_v52 = vmul.f32 %v7058_v3, %v14422_v42  ;;  %v7097_v39 = vrot.slane %v7075_v25, 7  ;;  %v7211_v18 = vadd.f32 %v7210_v6, %v7195_v27  ;;  %vm14548_vm3 = vmmov %vm14523_vm0  ;;  %v13165_v59 = vpop.xlane.xlu0 %4608  ;;  %v8531_v43 = vld [vmem:[%s13563_s5 + $0x258] sm:$0xff] }
 0x4a6   : > { %v7078_v2 = vmul.f32 %v7060_v57, %v14423_v61  ;;  %v7099_v38 = vrot.slane %v7076_v9, 7  ;;  %v7093_v17 = vsel %vm14548_vm3, %v7091_v60, %v7092_v32  ;;  %vm14549_vm8 = vmmov %vm14523_vm0  ;;  %v7318_v36 = vrot.slane %v8531_v43, 1  ;;  %v8533_v57 = vld [vmem:[%s13563_s5 + $0x268] sm:$0xff]  ;;  %v8535_v9 = vld [vmem:[%s13563_s5 + $0x278] sm:$0xff] }
 0x4a7   : > { %v7101_v35 = vrot.slane %v7077_v52, 7  ;;  %v7096_v58 = vsel %vm14549_vm8, %v7094_v15, %v7095_v56  ;;  %vm14550_vm14 = vmmov %vm14523_vm0  ;;  %v7212_v22 = vadd.f32 %v7211_v18, %v7197_v44  ;;  %v8530_v44 = vld [vmem:[%s13563_s5 + $0x250] sm:$0xff]  ;;  %v7320_v3 = vrot.slane %v8532_v21, 1 }
 0x4a8   : > { %v7103_v46 = vrot.slane %v7078_v2, 7  ;;  %v7098_v62 = vsel %vm14550_vm14, %v7092_v32, %v7097_v39  ;;  %vm14551_vm7 = vmmov %vm14523_vm0  ;;  %v7117_v27 = vadd.f32 %v7096_v58, %v7093_v17  ;;  %v7316_v19 = vrot.slane %v8530_v44, 1 }
 0x4a9   : > { %v7100_v41 = vsel %vm14551_vm7, %v7095_v56, %v7099_v38  ;;  %vm14552_vm2 = vmmov %vm14523_vm0  ;;  %7213 = vadd.xlane.f32.xlu1 %v7212_v22  ;;  %v7322_v55 = vrot.slane %v8533_v57, 1  ;;  %v7324_v25 = vrot.slane %v8534_v24, 1  ;;  %v7326_v52 = vrot.slane %v8535_v9, 1  ;;  %v13206_v17 = vpop.xlane.xlu0 %4807  ;;  %v8536_v9 = vld [vmem:[%s13563_s5 + $0x200] sm:$0xff] }
 0x4aa   : > { %v7102_v49 = vsel %vm14552_vm2, %v7097_v39, %v7101_v35  ;;  %v7104_v5 = vsel %vm14523_vm0, %v7099_v38, %v7103_v46  ;;  %vm14553_vm1 = vmmov %vm14523_vm0  ;;  %v7118_v14 = vadd.f32 %v7117_v27, %v7098_v62  ;;  %v7338_v60 = vmul.f32 %v7314_v34, %v11742_v29  ;;  %v13201_v39 = vpop.xlane.xlu1 %4897 }
 0x4ab   : > { %v7106_v12 = vsel %vm14553_vm1, %v7101_v35, %v7105_v51  ;;  %vm14554_vm6 = vmmov %vm14523_vm0  ;;  %v7327_v32 = vsel %vm14545_vm4, %v7322_v55, %v7326_v52  ;;  %v7339_v15 = vmul.f32 %v7315_v13, %v11746_v0  ;;  %v7346_v62 = vmul.f32 %v7324_v25, %v14424_v8 }
 0x4ac   : > { %v7108_v28 = vsel %vm14554_vm6, %v7103_v46, %v7107_v11  ;;  %vm14555_vm5 = vmmov %vm14545_vm4  ;;  %v7119_v2 = vadd.f32 %v7118_v14, %v7100_v41  ;;  %v7345_v51 = vmul.f32 %v7327_v32, %v14423_v61  ;;  %v7347_v41 = vmul.f32 %v7326_v52, %v14425_v63 }
 0x4ad   : > { %v7317_v45 = vsel %vm14555_vm5, %v7314_v34, %v7316_v19  ;;  %vm14556_vm9 = vmmov %vm14545_vm4  ;;  %v7358_v11 = vrot.slane %v7338_v60, 7  ;;  %v13221_v24 = vpop.xlane.xlu0 %4986  ;;  %v7225_v52 = vrot.slane %v8536_v9, 1 }
 0x4ae   : > { %v7319_v16 = vsel %vm14556_vm9, %v7315_v13, %v7318_v36  ;;  %vm14557_vm12 = vmmov %vm14545_vm4  ;;  %v7340_v56 = vmul.f32 %v7317_v45, %v14418_v40  ;;  %v7120_v38 = vadd.f32 %v7119_v2, %v7102_v49  ;;  %v7361_v49 = vrot.slane %v7339_v15, 7  ;;  %v13217_v57 = vpop.xlane.xlu1 %5075  ;;  %v8537_v2 = vld [vmem:[%s13563_s5 + $0x208] sm:$0xff]  ;;  %v8540_v15 = vld [vmem:[%s13563_s5 + $0x220] sm:$0xff] }
 0x4af   : > { %v7321_v48 = vsel %vm14557_vm12, %v7316_v19, %v7320_v3  ;;  %vm14558_vm13 = vmmov %vm14545_vm4  ;;  %v7341_v35 = vmul.f32 %v7319_v16, %v14419_v47  ;;  %v7370_v43 = vrot.slane %v7345_v51, 7 }
 0x4b0   : > { %v7323_v50 = vsel %vm14558_vm13, %v7318_v36, %v7322_v55  ;;  %vm14559_vm10 = vmmov %vm14545_vm4  ;;  %v7342_v46 = vmul.f32 %v7321_v48, %v14420_v23  ;;  %v7121_v22 = vadd.f32 %v7120_v38, %v7104_v5  ;;  %v7359_v27 = vrot.slane %v7340_v56, 7  ;;  %v8541_v38 = vld [vmem:[%s13563_s5 + $0x228] sm:$0xff] }
 0x4b1   : > { %v7325_v6 = vsel %vm14559_vm10, %v7320_v3, %v7324_v25  ;;  %v7343_v18 = vmul.f32 %v7323_v50, %v14421_v7  ;;  %v7362_v4 = vrot.slane %v7341_v35, 7  ;;  %vm14560_vm11 = vmmov %vm14523_vm0  ;;  %v7372_v36 = vrot.slane %v7346_v62, 7  ;;  %v8543_v62 = vld [vmem:[%s13563_s5 + $0x238] sm:$0xff] }
 0x4b2   : > { %v7344_v58 = vmul.f32 %v7325_v6, %v14422_v42  ;;  %v7364_v34 = vrot.slane %v7342_v46, 7  ;;  %v7122_v44 = vadd.f32 %v7121_v22, %v7106_v12  ;;  %v7360_v19 = vsel %vm14560_vm11, %v7358_v11, %v7359_v27  ;;  %vm14561_vm15 = vmmov %vm14523_vm0  ;;  %v8539_v6 = vld [vmem:[%s13563_s5 + $0x218] sm:$0xff] }
 0x4b3   : > { %v7366_v33 = vrot.slane %v7343_v18, 7  ;;  %v7363_v14 = vsel %vm14561_vm15, %v7361_v49, %v7362_v4  ;;  %vm14562_vm3 = vmmov %vm14523_vm0  ;;  %v7374_v12 = vrot.slane %v7347_v41, 7  ;;  %v7226_v48 = vrot.slane %v8537_v2, 1 }
 0x4b4   : > { %v7368_v13 = vrot.slane %v7344_v58, 7  ;;  %v7365_v21 = vsel %vm14562_vm3, %v7359_v27, %v7364_v34  ;;  %vm14563_vm8 = vmmov %vm14523_vm0  ;;  %v7123_v55 = vadd.f32 %v7122_v44, %v7108_v28  ;;  %v7384_v25 = vadd.f32 %v7363_v14, %v7360_v19  ;;  %v8538_v28 = vld [vmem:[%s13563_s5 + $0x210] sm:$0xff]  ;;  %v13256_v44 = vpop.xlane.xlu1 %5253 }
 0x4b5   : > { %v7367_v3 = vsel %vm14563_vm8, %v7362_v4, %v7366_v33  ;;  %vm14564_vm14 = vmmov %vm14523_vm0  ;;  %v7227_v50 = vrot.slane %v8538_v28, 1  ;;  %v7375_v60 = vsel %vm14523_vm0, %v7370_v43, %v7374_v12  ;;  %v7229_v32 = vrot.slane %v8539_v6, 1  ;;  %v8542_v58 = vld [vmem:[%s13563_s5 + $0x230] sm:$0xff] }
 0x4b6   : > { %v7369_v5 = vsel %vm14564_vm14, %v7364_v34, %v7368_v13  ;;  %vm14565_vm7 = vmmov %vm14523_vm0  ;;  %7124 = vadd.xlane.f32.xlu0 %v7123_v55  ;;  %v7231_v56 = vrot.slane %v8540_v15, 1  ;;  %v7233_v35 = vrot.slane %v8541_v38, 1  ;;  %v7385_v46 = vadd.f32 %v7384_v25, %v7365_v21  ;;  %v13262_v21 = vpop.xlane.xlu0 %5164 }
 0x4b7   : > { %v7371_v45 = vsel %vm14565_vm7, %v7366_v33, %v7370_v43  ;;  %vm14566_vm2 = vmmov %vm14523_vm0  ;;  %v7235_v51 = vrot.slane %v8542_v58, 1  ;;  %v7237_v41 = vrot.slane %v8543_v62, 1  ;;  %v7249_v49 = vmul.f32 %v7225_v52, %v11742_v29 }
 0x4b8   : > { %v7373_v16 = vsel %vm14566_vm2, %v7368_v13, %v7372_v36  ;;  %vm14567_vm1 = vmmov %vm14545_vm4  ;;  %v7386_v4 = vadd.f32 %v7385_v46, %v7367_v3  ;;  %v7250_v13 = vmul.f32 %v7226_v48, %v11746_v0  ;;  %v3753_v46 = vrot.slane %v13059_v53, 4 }
 0x4b9   : > { %v7228_v18 = vsel %vm14567_vm1, %v7225_v52, %v7227_v50  ;;  %vm14568_vm6 = vmmov %vm14567_vm1  ;;  %v7257_v12 = vmul.f32 %v7235_v51, %v14424_v8  ;;  %v7258_v0 = vmul.f32 %v7237_v41, %v14425_v63  ;;  %v7269_v25 = vrot.slane %v7249_v49, 7  ;;  %v13272_v63 = vpop.xlane.xlu1 %5431 }
 0x4ba   : > { %v7230_v22 = vsel %vm14568_vm6, %v7226_v48, %v7229_v32  ;;  %vm14569_vm5 = vmmov %vm14567_vm1  ;;  %v7251_v19 = vmul.f32 %v7228_v18, %v14418_v40  ;;  %v7387_v29 = vadd.f32 %v7386_v4, %v7369_v5  ;;  %v7272_v40 = vrot.slane %v7250_v13, 7 }
 0x4bb   : > { %v7232_v11 = vsel %vm14569_vm5, %v7227_v50, %v7231_v56  ;;  %vm14570_vm9 = vmmov %vm14567_vm1  ;;  %v7252_v43 = vmul.f32 %v7230_v22, %v14419_v47  ;;  %v7283_v5 = vrot.slane %v7257_v12, 7  ;;  %v7285_v15 = vrot.slane %v7258_v0, 7 }
 0x4bc   : > { %v7234_v27 = vsel %vm14570_vm9, %v7229_v32, %v7233_v35  ;;  %vm14571_vm12 = vmmov %vm14567_vm1  ;;  %v7253_v36 = vmul.f32 %v7232_v11, %v14420_v23  ;;  %v7270_v9 = vrot.slane %v7251_v19, 7  ;;  %v7388_v52 = vadd.f32 %v7387_v29, %v7371_v45 }
 0x4bd   : > { %v7236_v34 = vsel %vm14571_vm12, %v7231_v56, %v7235_v51  ;;  %vm14572_vm13 = vmmov %vm14567_vm1  ;;  %v7254_v14 = vmul.f32 %v7234_v27, %v14421_v7  ;;  %v7273_v47 = vrot.slane %v7252_v43, 7  ;;  %v13277_v56 = vpop.xlane.xlu0 %5342  ;;  %v4075_v58 = vrot.slane %v13091_v1, 4 }
 0x4be   : > { %v7238_v33 = vsel %vm14572_vm13, %v7233_v35, %v7237_v41  ;;  %v7255_v3 = vmul.f32 %v7236_v34, %v14422_v42  ;;  %v7275_v2 = vrot.slane %v7253_v36, 7  ;;  %vm14573_vm10 = vmmov %vm14523_vm0  ;;  %v7389_v50 = vadd.f32 %v7388_v52, %v7373_v16  ;;  %v13293_v36 = vpop.xlane.xlu1 %5609 }
 0x4bf   : > { %v7256_v55 = vmul.f32 %v7238_v33, %v14423_v61  ;;  %v7277_v23 = vrot.slane %v7254_v14, 7  ;;  %v7271_v7 = vsel %vm14573_vm10, %v7269_v25, %v7270_v9  ;;  %vm14574_vm4 = vmmov %vm14523_vm0  ;;  %v3968_v16 = vrot.slane %v13051_v10, 4 }
 0x4c0   : > { %v7279_v48 = vrot.slane %v7255_v3, 7  ;;  %v7274_v42 = vsel %vm14574_vm4, %v7272_v40, %v7273_v47  ;;  %vm14575_vm11 = vmmov %vm14523_vm0  ;;  %v7390_v38 = vadd.f32 %v7389_v50, %v7375_v60  ;;  %v3861_v51 = vrot.slane %v13096_v37, 4 }
 0x4c1   : > { %v7281_v28 = vrot.slane %v7256_v55, 7  ;;  %v7276_v61 = vsel %vm14575_vm11, %v7270_v9, %v7275_v2  ;;  %vm14576_vm15 = vmmov %vm14523_vm0  ;;  %v7295_v35 = vadd.f32 %v7274_v42, %v7271_v7  ;;  %v4289_v62 = vrot.slane %v13106_v54, 4  ;;  %v13296_v3 = vpop.xlane.xlu0 %5520 }
 0x4c2   : > { %v7278_v8 = vsel %vm14576_vm15, %v7273_v47, %v7277_v23  ;;  %vm14577_vm3 = vmmov %vm14523_vm0  ;;  %7391 = vadd.xlane.f32.xlu1 %v7390_v38  ;;  %v3969_v22 = vadd.f32 %v3968_v16, %v13051_v10  ;;  %v3754_v11 = vadd.f32 %v3753_v46, %v13059_v53  ;;  %v4182_v60 = vrot.slane %v13112_v30, 4  ;;  %v13304_v42 = vpop.xlane.xlu1 %5788 }
 0x4c3   : > { %v7280_v6 = vsel %vm14577_vm3, %v7275_v2, %v7279_v48  ;;  %vm14578_vm8 = vmmov %vm14523_vm0  ;;  %v7296_v41 = vadd.f32 %v7295_v35, %v7276_v61  ;;  %v4076_v27 = vadd.f32 %v4075_v58, %v13091_v1  ;;  %v3862_v49 = vadd.f32 %v3861_v51, %v13096_v37 }
 0x4c4   : > { %v7282_v45 = vsel %vm14578_vm8, %v7277_v23, %v7281_v28  ;;  %vm14579_vm14 = vmmov %vm14523_vm0  ;;  %v4290_v4 = vadd.f32 %v4289_v62, %v13106_v54  ;;  %v4503_v34 = vrot.slane %v13146_v31, 4  ;;  %v3970_v13 = vrot.slane %v3969_v22, 2 }
 0x4c5   : > { %v7284_v32 = vsel %vm14579_vm14, %v7279_v48, %v7283_v5  ;;  %vm14580_vm7 = vmmov %vm14523_vm0  ;;  %v7297_v33 = vadd.f32 %v7296_v41, %v7278_v8  ;;  %v3755_v19 = vrot.slane %v3754_v11, 2  ;;  %v4183_v43 = vadd.f32 %v4182_v60, %v13112_v30 }
 0x4c6   : > { %v7286_v18 = vsel %vm14580_vm7, %v7281_v28, %v7285_v15  ;;  %v4077_v10 = vrot.slane %v4076_v27, 2  ;;  %v3863_v14 = vrot.slane %v3862_v49, 2  ;;  %v4291_v53 = vrot.slane %v4290_v4, 2  ;;  %v13306_v15 = vpop.xlane.xlu0 %5698 }
 0x4c7   : > { %v4504_v29 = vadd.f32 %v4503_v34, %v13146_v31  ;;  %v7298_v1 = vadd.f32 %v7297_v33, %v7280_v6  ;;  %v4184_v37 = vrot.slane %v4183_v43, 2  ;;  %v4396_v54 = vrot.slane %v13151_v20, 4  ;;  %v13316_v33 = vpop.xlane.xlu1 %5966 }
 0x4c8   : > { %v3756_v55 = vadd.f32 %v3755_v19, %v3754_v11  ;;  %v4717_v0 = vrot.slane %v13162_v26, 4  ;;  %v4610_v25 = vrot.slane %v13165_v59, 4  ;;  %v3864_v30 = vadd.f32 %v3863_v14, %v3862_v49 }
 0x4c9   : > { %v4505_v12 = vrot.slane %v4504_v29, 2  ;;  %v7299_v9 = vadd.f32 %v7298_v1, %v7282_v45  ;;  %v4397_v40 = vadd.f32 %v4396_v54, %v13151_v20  ;;  %v3971_v47 = vadd.f32 %v3970_v13, %v3969_v22 }
 0x4ca   : > { %v3757_v52 = vrot.slane %v3756_v55, 1  ;;  %v4718_v31 = vadd.f32 %v4717_v0, %v13162_v26  ;;  %v4611_v2 = vadd.f32 %v4610_v25, %v13165_v59  ;;  %v3865_v23 = vrot.slane %v3864_v30, 1 }
 0x4cb   : > { %v4078_v7 = vadd.f32 %v4077_v10, %v4076_v27  ;;  %v7300_v48 = vadd.f32 %v7299_v9, %v7284_v32  ;;  %v4398_v28 = vrot.slane %v4397_v40, 2  ;;  %v3972_v50 = vrot.slane %v3971_v47, 1 }
 0x4cc   : > { %v3758_v5 = vadd.f32 %v3757_v52, %v3756_v55  ;;  %v4719_v61 = vrot.slane %v4718_v31, 2  ;;  %v4612_v8 = vrot.slane %v4611_v2, 2  ;;  %v3866_v6 = vadd.f32 %v3865_v23, %v3864_v30  ;;  %v6145_v23 = vpop.xlane.xlu1 %6144 }
 0x4cd   : > { %v4079_v45 = vrot.slane %v4078_v7, 1  ;;  %v7301_v20 = vadd.f32 %v7300_v48, %v7286_v18  ;;  %v3973_v38 = vadd.f32 %v3972_v50, %v3971_v47  ;;  %v4899_v26 = vrot.slane %v13201_v39, 4 }
 0x4ce   : > { %8015 = vpush %v3758_v5  ;;  %v4809_v59 = vrot.slane %v13206_v17, 4  ;;  %v4185_v35 = vadd.f32 %v4184_v37, %v4183_v43  ;;  %v4292_v16 = vadd.f32 %v4291_v53, %v4290_v4  ;;  %v5077_v46 = vrot.slane %v13217_v57, 4  ;;  %v13318_v43 = vpop.xlane.xlu0 %5877 }
 0x4cf   : > { %8017 = vpush %v3866_v6  ;;  %v4080_v32 = vadd.f32 %v4079_v45, %v4078_v7  ;;  %7302 = vadd.xlane.f32.xlu0 %v7301_v20  ;;  %v4900_v58 = vadd.f32 %v4899_v26, %v13201_v39  ;;  %v4988_v18 = vrot.slane %v13221_v24, 4  ;;  %v4399_v62 = vadd.f32 %v4398_v28, %v4397_v40 }
 0x4d0   : > { %8019 = vpush %v3973_v38  ;;  %v4810_v51 = vadd.f32 %v4809_v59, %v13206_v17  ;;  %v4186_v41 = vrot.slane %v4185_v35, 1  ;;  %v4293_v22 = vrot.slane %v4292_v16, 1  ;;  %v5078_v11 = vadd.f32 %v5077_v46, %v13217_v57 }
 0x4d1   : > { %8021 = vpush %v4080_v32  ;;  %v4506_v60 = vadd.f32 %v4505_v12, %v4504_v29  ;;  %v4901_v27 = vrot.slane %v4900_v58, 2  ;;  %v4989_v4 = vadd.f32 %v4988_v18, %v13221_v24  ;;  %v4400_v34 = vrot.slane %v4399_v62, 1 }
 0x4d2   : > { %v4811_v49 = vrot.slane %v4810_v51, 2  ;;  %v4187_v13 = vadd.f32 %v4186_v41, %v4185_v35  ;;  %v4294_v39 = vadd.f32 %v4293_v22, %v4292_v16  ;;  %v5079_v19 = vrot.slane %v5078_v11, 2  ;;  %v6056_v28 = vpop.xlane.xlu0 %6055  ;;  %v6323_v41 = vpop.xlane.xlu1 %6322 }
 0x4d3   : > { %v4507_v17 = vrot.slane %v4506_v60, 1  ;;  %v4990_v10 = vrot.slane %v4989_v4, 2  ;;  %v4401_v14 = vadd.f32 %v4400_v34, %v4399_v62  ;;  %v5255_v53 = vrot.slane %v13256_v44, 4 }
 0x4d4   : > { %v5166_v57 = vrot.slane %v13262_v21, 4  ;;  %8023 = vpush %v4187_v13  ;;  %v4613_v1 = vadd.f32 %v4612_v8, %v4611_v2  ;;  %v4720_v37 = vadd.f32 %v4719_v61, %v4718_v31  ;;  %v5433_v24 = vrot.slane %v13272_v63, 4 }
 0x4d5   : > { %v4508_v29 = vadd.f32 %v4507_v17, %v4506_v60  ;;  %8025 = vpush %v4294_v39  ;;  %v5256_v54 = vadd.f32 %v5255_v53, %v13256_v44  ;;  %v5344_v12 = vrot.slane %v13277_v56, 4  ;;  %v4812_v0 = vadd.f32 %v4811_v49, %v4810_v51 }
 0x4d6   : > { %v5167_v55 = vadd.f32 %v5166_v57, %v13262_v21  ;;  %8027 = vpush %v4401_v14  ;;  %v4614_v25 = vrot.slane %v4613_v1, 1  ;;  %v4721_v30 = vrot.slane %v4720_v37, 1  ;;  %v5434_v9 = vadd.f32 %v5433_v24, %v13272_v63  ;;  %v6234_v60 = vpop.xlane.xlu0 %6233 }
 0x4d7   : > { %v4902_v40 = vadd.f32 %v4901_v27, %v4900_v58  ;;  %8029 = vpush %v4508_v29  ;;  %v5257_v52 = vrot.slane %v5256_v54, 2  ;;  %v5345_v31 = vadd.f32 %v5344_v12, %v13277_v56  ;;  %v4813_v2 = vrot.slane %v4812_v0, 1  ;;  %v6501_v12 = vpop.xlane.xlu1 %6500 }
 0x4d8   : > { %v5168_v47 = vrot.slane %v5167_v55, 2  ;;  %v4615_v7 = vadd.f32 %v4614_v25, %v4613_v1  ;;  %v4722_v44 = vadd.f32 %v4721_v30, %v4720_v37  ;;  %v5435_v48 = vrot.slane %v5434_v9, 2 }
 0x4d9   : > { %v4903_v21 = vrot.slane %v4902_v40, 1  ;;  %v5346_v5 = vrot.slane %v5345_v31, 2  ;;  %v4814_v50 = vadd.f32 %v4813_v2, %v4812_v0  ;;  %v5611_v61 = vrot.slane %v13293_v36, 4 }
 0x4da   : > { %v5522_v8 = vrot.slane %v13296_v3, 4  ;;  %8031 = vpush %v4615_v7  ;;  %v4991_v6 = vadd.f32 %v4990_v10, %v4989_v4  ;;  %v5080_v45 = vadd.f32 %v5079_v19, %v5078_v11  ;;  %v5790_v20 = vrot.slane %v13304_v42, 4 }
 0x4db   : > { %v4904_v63 = vadd.f32 %v4903_v21, %v4902_v40  ;;  %8033 = vpush %v4722_v44  ;;  %v5612_v56 = vadd.f32 %v5611_v61, %v13293_v36  ;;  %v5700_v26 = vrot.slane %v13306_v15, 4  ;;  %v5169_v59 = vadd.f32 %v5168_v47, %v5167_v55 }
 0x4dc   : > { %v5523_v38 = vadd.f32 %v5522_v8, %v13296_v3  ;;  %8035 = vpush %v4814_v50  ;;  %v4992_v32 = vrot.slane %v4991_v6, 1  ;;  %v5081_v35 = vrot.slane %v5080_v45, 1  ;;  %v5791_v16 = vadd.f32 %v5790_v20, %v13304_v42 }
 0x4dd   : > { %v5258_v46 = vadd.f32 %v5257_v52, %v5256_v54  ;;  %8037 = vpush %v4904_v63  ;;  %v5613_v58 = vrot.slane %v5612_v56, 2  ;;  %v5701_v18 = vadd.f32 %v5700_v26, %v13306_v15  ;;  %v5170_v62 = vrot.slane %v5169_v59, 1 }
 0x4de   : > { %v5524_v51 = vrot.slane %v5523_v38, 2  ;;  %v4993_v22 = vadd.f32 %v4992_v32, %v4991_v6  ;;  %v5082_v36 = vadd.f32 %v5081_v35, %v5080_v45  ;;  %v5792_v11 = vrot.slane %v5791_v16, 2 }
 0x4df   : > { %v5259_v3 = vrot.slane %v5258_v46, 1  ;;  %v5702_v27 = vrot.slane %v5701_v18, 2  ;;  %v5171_v49 = vadd.f32 %v5170_v62, %v5169_v59  ;;  %v5968_v4 = vrot.slane %v13316_v33, 4 }
 0x4e0   : > { %v5879_v34 = vrot.slane %v13318_v43, 4  ;;  %8039 = vpush %v4993_v22  ;;  %v5347_v13 = vadd.f32 %v5346_v5, %v5345_v31  ;;  %v5436_v39 = vadd.f32 %v5435_v48, %v5434_v9  ;;  %v6146_v19 = vrot.slane %v6145_v23, 4 }
 0x4e1   : > { %v5260_v42 = vadd.f32 %v5259_v3, %v5258_v46  ;;  %8041 = vpush %v5082_v36  ;;  %v5969_v15 = vadd.f32 %v5968_v4, %v13316_v33  ;;  %v6057_v10 = vrot.slane %v6056_v28, 4  ;;  %v5525_v14 = vadd.f32 %v5524_v51, %v5523_v38  ;;  %v6412_v33 = vpop.xlane.xlu0 %6411 }
 0x4e2   : > { %v5880_v17 = vadd.f32 %v5879_v34, %v13318_v43  ;;  %8043 = vpush %v5171_v49  ;;  %v5348_v53 = vrot.slane %v5347_v13, 1  ;;  %v5437_v57 = vrot.slane %v5436_v39, 1  ;;  %v6147_v29 = vadd.f32 %v6146_v19, %v6145_v23 }
 0x4e3   : > { %v5614_v1 = vadd.f32 %v5613_v58, %v5612_v56  ;;  %8045 = vpush %v5260_v42  ;;  %v5970_v37 = vrot.slane %v5969_v15, 2  ;;  %v6058_v54 = vadd.f32 %v6057_v10, %v6056_v28  ;;  %v5526_v55 = vrot.slane %v5525_v14, 1 }
 0x4e4   : > { %v5881_v24 = vrot.slane %v5880_v17, 2  ;;  %v5349_v0 = vadd.f32 %v5348_v53, %v5347_v13  ;;  %v5438_v25 = vadd.f32 %v5437_v57, %v5436_v39  ;;  %v6148_v30 = vrot.slane %v6147_v29, 2 }
 0x4e5   : > { %v5615_v9 = vrot.slane %v5614_v1, 1  ;;  %v6059_v40 = vrot.slane %v6058_v54, 2  ;;  %v5527_v43 = vadd.f32 %v5526_v55, %v5525_v14  ;;  %v6324_v52 = vrot.slane %v6323_v41, 4 }
 0x4e6   : > { %v6235_v47 = vrot.slane %v6234_v60, 4  ;;  %8047 = vpush %v5349_v0  ;;  %v5703_v2 = vadd.f32 %v5702_v27, %v5701_v18  ;;  %v5793_v23 = vadd.f32 %v5792_v11, %v5791_v16  ;;  %v6502_v7 = vrot.slane %v6501_v12, 4 }
 0x4e7   : > { %v5616_v31 = vadd.f32 %v5615_v9, %v5614_v1  ;;  %8049 = vpush %v5438_v25  ;;  %v6325_v44 = vadd.f32 %v6324_v52, %v6323_v41  ;;  %v6413_v21 = vrot.slane %v6412_v33, 4  ;;  %v5882_v28 = vadd.f32 %v5881_v24, %v5880_v17 }
 0x4e8   : > { %v6236_v48 = vadd.f32 %v6235_v47, %v6234_v60  ;;  %8051 = vpush %v5527_v43  ;;  %v5704_v5 = vrot.slane %v5703_v2, 1  ;;  %v5794_v50 = vrot.slane %v5793_v23, 1  ;;  %v6503_v61 = vadd.f32 %v6502_v7, %v6501_v12  ;;  %v6680_v59 = vpop.xlane.xlu1 %6679 }
 0x4e9   : > { %v5971_v8 = vadd.f32 %v5970_v37, %v5969_v15  ;;  %8053 = vpush %v5616_v31  ;;  %v6326_v63 = vrot.slane %v6325_v44, 2  ;;  %v6414_v45 = vadd.f32 %v6413_v21, %v6412_v33  ;;  %v5883_v20 = vrot.slane %v5882_v28, 1 }
 0x4ea   : > { %v6237_v6 = vrot.slane %v6236_v48, 2  ;;  %v5705_v56 = vadd.f32 %v5704_v5, %v5703_v2  ;;  %v5795_v38 = vadd.f32 %v5794_v50, %v5793_v23  ;;  %v6504_v32 = vrot.slane %v6503_v61, 2 }
 0x4eb   : > { %v5972_v26 = vrot.slane %v5971_v8, 1  ;;  %v5884_v35 = vadd.f32 %v5883_v20, %v5882_v28  ;;  %v6060_v16 = vadd.f32 %v6059_v40, %v6058_v54  ;;  %v6415_v46 = vrot.slane %v6414_v45, 2 }
 0x4ec   : > { %8055 = vpush %v5705_v56  ;;  %v6681_v51 = vrot.slane %v6680_v59, 4  ;;  %v6149_v18 = vadd.f32 %v6148_v30, %v6147_v29  ;;  %v6238_v41 = vadd.f32 %v6237_v6, %v6236_v48  ;;  %v6327_v22 = vadd.f32 %v6326_v63, %v6325_v44 }
 0x4ed   : > { %v5973_v58 = vadd.f32 %v5972_v26, %v5971_v8  ;;  %8057 = vpush %v5795_v38  ;;  %v6061_v62 = vrot.slane %v6060_v16, 1  ;;  %v6416_v4 = vadd.f32 %v6415_v46, %v6414_v45  ;;  %v6505_v34 = vadd.f32 %v6504_v32, %v6503_v61 }
 0x4ee   : > { %8059 = vpush %v5884_v35  ;;  %v6150_v36 = vrot.slane %v6149_v18, 1  ;;  %v6239_v3 = vrot.slane %v6238_v41, 1  ;;  %v6328_v60 = vrot.slane %v6327_v22, 1  ;;  %v6682_v27 = vadd.f32 %v6681_v51, %v6680_v59 }
 0x4ef   : > { %8061 = vpush %v5973_v58  ;;  %v6062_v11 = vadd.f32 %v6061_v62, %v6060_v16  ;;  %v6417_v39 = vrot.slane %v6416_v4, 1  ;;  %v6506_v19 = vrot.slane %v6505_v34, 1  ;;  %v14581_v58 = vlaneseq }
 0x4f0   : > { %v6151_v49 = vadd.f32 %v6150_v36, %v6149_v18  ;;  %v6240_v42 = vadd.f32 %v6239_v3, %v6238_v41  ;;  %v6329_v13 = vadd.f32 %v6328_v60, %v6327_v22  ;;  %v6683_v15 = vrot.slane %v6682_v27, 2  ;;  %v14582_v22 = vld [vmem:[#allocation31_spill] sm:$0xff] }
 0x4f1   : > { %8063 = vpush %v6062_v11  ;;  %v6418_v17 = vadd.f32 %v6417_v39, %v6416_v4  ;;  %v6507_v10 = vadd.f32 %v6506_v19, %v6505_v34  ;;  %v13341_v51 = vand.u32 127, %v14581_v58  ;;  %vm3760_vm2 = vcmp.eq.s32.totalorder %v14582_v22, 0 }
 0x4f2   : > { %8065 = vpush %v6151_v49  ;;  %v6684_v57 = vadd.f32 %v6683_v15, %v6682_v27 }
 0x4f3   : > { %8067 = vpush %v6240_v42  ;;  %vm3761_vm0 = vcmp.eq.s32.totalorder %v13341_v51, 0  ;;  %vm3868_vm1 = vcmp.eq.s32.totalorder %v13341_v51, 1  ;;  %vm3975_vm9 = vcmp.eq.s32.totalorder %v13341_v51, 2  ;;  %vm4082_vm13 = vcmp.eq.s32.totalorder %v13341_v51, 3 }
 0x4f4   : > { %8069 = vpush %v6329_v13  ;;  %v6590_v14 = vpop.xlane.xlu0 %6589  ;;  %v6685_v37 = vrot.slane %v6684_v57, 1  ;;  %vm3762_vm6 = vmand %vm3760_vm2, %vm3761_vm0  ;;  %vm4189_vm4 = vcmp.eq.s32.totalorder %v13341_v51, 4  ;;  %vm4296_vm15 = vcmp.eq.s32.totalorder %v13341_v51, 5  ;;  %vm4403_vm3 = vcmp.eq.s32.totalorder %v13341_v51, 6 }
 0x4f5   : > { %8071 = vpush %v6418_v17  ;;  %v6591_v53 = vrot.slane %v6590_v14, 4  ;;  %vm3869_vm5 = vmand %vm3760_vm2, %vm3868_vm1  ;;  %vm4510_vm7 = vcmp.eq.s32.totalorder %v13341_v51, 7 }
 0x4f6   : > { %8073 = vpush %v6507_v10  ;;  %v6686_v55 = vadd.f32 %v6685_v37, %v6684_v57  ;;  %vm3976_vm12 = vmand %vm3760_vm2, %vm3975_vm9 }
 0x4f7   : > { %v6592_v29 = vadd.f32 %v6591_v53, %v6590_v14  ;;  %vm4083_vm10 = vmand %vm3760_vm2, %vm4082_vm13 }
 0x4f8   : > { %vm4190_vm11 = vmand %vm3760_vm2, %vm4189_vm4 }
 0x4f9   : > { %v6593_v1 = vrot.slane %v6592_v29, 2  ;;  %vm4297_vm8 = vmand %vm3760_vm2, %vm4296_vm15 }
 0x4fa   : > { %vm4404_vm14 = vmand %vm3760_vm2, %vm4403_vm3 }
 0x4fb   : > { %v6594_v24 = vadd.f32 %v6593_v1, %v6592_v29 }
 0x4fd   : > { %v6595_v54 = vrot.slane %v6594_v24, 1 }
 0x4ff   : > { %v6596_v12 = vadd.f32 %v6595_v54, %v6594_v24  ;;  %s8016_s18 = spop %8015 }
 0x500   : > { %v6858_v0 = vpop.xlane.xlu1 %6857  ;;  %s8018_s19 = spop %8017  ;;  %v3763_v60 = vstv %s8016_s18 }
 0x501   : > { %8075 = vpush %v6596_v12  ;;  %v6859_v25 = vrot.slane %v6858_v0, 4  ;;  %v3870_v27 = vstv %s8018_s19  ;;  %s8020_s20 = spop %8019  ;;  %v3764_v34 = vsel %vm3762_vm6, %v3763_v60, 0.0  ;;  %vm4617_vm6 = vcmp.eq.s32.totalorder %v13341_v51, 8 }
 0x502   : > { %8077 = vpush %v6686_v55  ;;  %v3871_v13 = vsel %vm3869_vm5, %v3870_v27, %v3764_v34  ;;  %v3977_v39 = vstv %s8020_s20  ;;  %s8022_s22 = spop %8021  ;;  %vm4511_vm5 = vmand %vm3760_vm2, %vm4510_vm7 }
 0x503   : > { %v6860_v30 = vadd.f32 %v6859_v25, %v6858_v0  ;;  %v3978_v15 = vsel %vm3976_vm12, %v3977_v39, %v3871_v13  ;;  %v4084_v10 = vstv %s8022_s22  ;;  %vm4618_vm12 = vmand %vm3760_vm2, %vm4617_vm6 }
 0x504   : > { %v4085_v14 = vsel %vm4083_vm10, %v4084_v10, %v3978_v15  ;;  %vm4724_vm10 = vcmp.eq.s32.totalorder %v13341_v51, 9 }
 0x505   : > { %v6861_v9 = vrot.slane %v6860_v30, 2  ;;  %s8024_s29 = spop %8023 }
 0x506   : > { %v4191_v53 = vstv %s8024_s29  ;;  %s8026_s23 = spop %8025 }
 0x507   : > { %v6862_v43 = vadd.f32 %v6861_v9, %v6860_v30  ;;  %s8028_s8 = spop %8027  ;;  %v4192_v29 = vsel %vm4190_vm11, %v4191_v53, %v4085_v14  ;;  %v4298_v1 = vstv %s8026_s23  ;;  %vm4816_vm11 = vcmp.eq.s32.totalorder %v14582_v22, 1 }
 0x508   : > { %v4405_v37 = vstv %s8028_s8  ;;  %s8030_s9 = spop %8029  ;;  %v4299_v54 = vsel %vm4297_vm8, %v4298_v1, %v4192_v29  ;;  %vm4725_vm8 = vmand %vm3760_vm2, %vm4724_vm10 }
 0x509   : > { %v6863_v31 = vrot.slane %v6862_v43, 1  ;;  %v4406_v55 = vsel %vm4404_vm14, %v4405_v37, %v4299_v54  ;;  %v4512_v12 = vstv %s8030_s9  ;;  %vm4817_vm14 = vmand %vm4816_vm11, %vm3761_vm0 }
 0x50a   : > { %vm4995_vm2 = vmand %vm4816_vm11, %vm3975_vm9 }
 0x50b   : > { %v6864_v7 = vadd.f32 %v6863_v31, %v6862_v43  ;;  %s8032_s13 = spop %8031 }
 0x50c   : > { %v6769_v33 = vpop.xlane.xlu0 %6768  ;;  %v4619_v30 = vstv %s8032_s13  ;;  %s8034_s14 = spop %8033 }
 0x50d   : > { %v6770_v40 = vrot.slane %v6769_v33, 4  ;;  %s8036_s15 = spop %8035 }
 0x50e   : > { %v4818_v31 = vstv %s8036_s15  ;;  %s8038_s16 = spop %8037 }
 0x50f   : > { %v6771_v52 = vadd.f32 %v6770_v40, %v6769_v33  ;;  %v4513_v33 = vsel %vm4511_vm5, %v4512_v12, %v4406_v55  ;;  %vm4906_vm5 = vmand %vm4816_vm11, %vm3868_vm1 }
 0x510   : > { %v4620_v43 = vsel %vm4618_vm12, %v4619_v30, %v4513_v33  ;;  %vm5084_vm12 = vmand %vm4816_vm11, %vm4082_vm13 }
 0x511   : > { %v6772_v47 = vrot.slane %v6771_v52, 2  ;;  %s8040_s21 = spop %8039 }
 0x512   : > { %s8042_s17 = spop %8041 }
 0x513   : > { %v6773_v2 = vadd.f32 %v6772_v47, %v6771_v52  ;;  %v4726_v52 = vstv %s8034_s14  ;;  %s8044_s18 = spop %8043 }
 0x514   : > { %s8046_s19 = spop %8045 }
 0x515   : > { %v6774_v23 = vrot.slane %v6773_v2, 1 }
 0x517   : > { %v6775_v44 = vadd.f32 %v6774_v23, %v6773_v2  ;;  %s8048_s20 = spop %8047 }
 0x518   : > { %s8050_s22 = spop %8049 }
 0x519   : > { %v7036_v48 = vpop.xlane.xlu1 %7035  ;;  %8079 = vpush %v6775_v44  ;;  %s8052_s29 = spop %8051 }
 0x51a   : > { %8081 = vpush %v6864_v7  ;;  %v7037_v21 = vrot.slane %v7036_v48, 4  ;;  %v4727_v7 = vsel %vm4725_vm8, %v4726_v52, %v4620_v43  ;;  %vm5173_vm8 = vmand %vm4816_vm11, %vm4189_vm4  ;;  %s8054_s23 = spop %8053 }
 0x51b   : > { %v4819_v44 = vsel %vm4817_vm14, %v4818_v31, %v4727_v7  ;;  %vm5262_vm14 = vmand %vm4816_vm11, %vm4296_vm15  ;;  %v5619_v58 = vstv %s8054_s23 }
 0x51c   : > { %v7038_v28 = vadd.f32 %v7037_v21, %v7036_v48  ;;  %v4907_v48 = vstv %s8038_s16  ;;  %v4996_v21 = vstv %s8040_s21 }
 0x51d   : > { %s8056_s8 = spop %8055 }
 0x51e   : > { %v7039_v5 = vrot.slane %v7038_v28, 2  ;;  %s8058_s9 = spop %8057 }
 0x51f   : > { %s8060_s13 = spop %8059 }
 0x520   : > { %v7040_v8 = vadd.f32 %v7039_v5, %v7038_v28  ;;  %s8062_s14 = spop %8061 }
 0x521   : > { %v5976_v27 = vstv %s8062_s14  ;;  %s272_s14 = sand.u32 1, %s8598_s25  }
 0x522   : > { %v7041_v45 = vrot.slane %v7040_v8, 1  ;;  %s8064_s15 = spop %8063 }
 0x523   : > { %s8066_s16 = spop %8065 }
 0x524   : > { %v7042_v38 = vadd.f32 %v7041_v45, %v7040_v8  ;;  %s8068_s21 = spop %8067 }
 0x525   : > { %v6947_v50 = vpop.xlane.xlu0 %6946  ;;  %v6243_v13 = vstv %s8068_s21 }
 0x526   : > { %v6948_v61 = vrot.slane %v6947_v50, 4 }
 0x528   : > { %v6949_v63 = vadd.f32 %v6948_v61, %v6947_v50  ;;  %v4908_v50 = vsel %vm4906_vm5, %v4907_v48, %v4819_v44  ;;  %vm5351_vm5 = vmand %vm4816_vm11, %vm4403_vm3 }
 0x529   : > { %v4997_v8 = vsel %vm4995_vm2, %v4996_v21, %v4908_v50  ;;  %vm5440_vm2 = vmand %vm4816_vm11, %vm4510_vm7 }
 0x52a   : > { %v6950_v6 = vrot.slane %v6949_v63, 2 }
 0x52c   : > { %v6951_v20 = vadd.f32 %v6950_v6, %v6949_v63  ;;  %v5085_v63 = vstv %s8042_s17  ;;  %v5174_v6 = vstv %s8044_s18  ;;  %s8070_s17 = spop %8069 }
 0x52d   : > { %v5086_v45 = vsel %vm5084_vm12, %v5085_v63, %v4997_v8  ;;  %vm5529_vm12 = vmand %vm4816_vm11, %vm4617_vm6  ;;  %s8072_s18 = spop %8071  ;;  %v6332_v15 = vstv %s8070_s17  ;;  %s7957_s17 = sshll.u32 %s8671_s28, 6 }
 0x52e   : > { %v6952_v56 = vrot.slane %v6951_v20, 1  ;;  %s7414_s28 = scalar_lea.sflag [#allocation5], %s272_s14 }
 0x530   : > { %v6953_v26 = vadd.f32 %v6952_v56, %v6951_v20  ;;  %v5175_v20 = vsel %vm5173_vm8, %v5174_v6, %v5086_v45  ;;  %v5263_v56 = vstv %s8046_s19  ;;  %vm5707_vm8 = vcmp.eq.s32.totalorder %v14582_v22, 2  ;;  %s8074_s19 = spop %8073 }
 0x531   : > { %v6510_v53 = vstv %s8074_s19 }
 0x532   : > { %v7214_v59 = vpop.xlane.xlu1 %7213  ;;  %8083 = vpush %v6953_v26  ;;  %v5264_v26 = vsel %vm5262_vm14, %v5263_v56, %v5175_v20  ;;  %vm5618_vm14 = vmand %vm4816_vm11, %vm4724_vm10 }
 0x533   : > { %v7215_v32 = vrot.slane %v7214_v59, 4  ;;  %8085 = vpush %v7042_v38  ;;  %v5352_v38 = vstv %s8048_s20  ;;  %vm5886_vm11 = vmand %vm5707_vm8, %vm3975_vm9  ;;  %s8076_s20 = spop %8075 }
 0x535   : > { %v7216_v35 = vadd.f32 %v7215_v32, %v7214_v59  ;;  %v5353_v59 = vsel %vm5351_vm5, %v5352_v38, %v5264_v26  ;;  %v5441_v32 = vstv %s8050_s22  ;;  %vm5708_vm5 = vmand %vm5707_vm8, %vm3761_vm0  ;;  %s8078_s22 = spop %8077 }
 0x536   : > { %v6689_v37 = vstv %s8078_s22 }
 0x537   : > { %v7217_v16 = vrot.slane %v7216_v35, 2 }
 0x539   : > { %v7218_v62 = vadd.f32 %v7217_v16, %v7216_v35  ;;  %v5530_v35 = vstv %s8052_s29  ;;  %v5442_v16 = vsel %vm5440_vm2, %v5441_v32, %v5353_v59  ;;  %vm5797_vm2 = vmand %vm5707_vm8, %vm3868_vm1 }
 0x53b   : > { %v7219_v11 = vrot.slane %v7218_v62, 1 }
 0x53d   : > { %v7220_v4 = vadd.f32 %v7219_v11, %v7218_v62  ;;  %v5887_v11 = vstv %s8060_s13 }
 0x53f   : > { %v7125_v46 = vpop.xlane.xlu0 %7124 }
 0x540   : > { %v7126_v18 = vrot.slane %v7125_v46, 4 }
 0x542   : > { %v7127_v41 = vadd.f32 %v7126_v18, %v7125_v46  ;;  %v5531_v46 = vsel %vm5529_vm12, %v5530_v35, %v5442_v16  ;;  %v5709_v18 = vstv %s8056_s8  ;;  %vm5975_vm12 = vmand %vm5707_vm8, %vm4082_vm13 }
 0x543   : > { %v5620_v62 = vsel %vm5618_vm14, %v5619_v58, %v5531_v46  ;;  %vm6064_vm14 = vmand %vm5707_vm8, %vm4189_vm4 }
 0x544   : > { %v7128_v36 = vrot.slane %v7127_v41, 2 }
 0x546   : > { %v7129_v3 = vadd.f32 %v7128_v36, %v7127_v41  ;;  %v5710_v41 = vsel %vm5708_vm5, %v5709_v18, %v5620_v62  ;;  %v5798_v36 = vstv %s8058_s9  ;;  %vm6153_vm5 = vmand %vm5707_vm8, %vm4296_vm15 }
 0x548   : > { %v7130_v49 = vrot.slane %v7129_v3, 1 }
 0x54a   : > { %v7131_v42 = vadd.f32 %v7130_v49, %v7129_v3  ;;  %v5799_v3 = vsel %vm5797_vm2, %v5798_v36, %v5710_v41  ;;  %v6065_v49 = vstv %s8064_s15  ;;  %vm6242_vm2 = vmand %vm5707_vm8, %vm4403_vm3  ;;  %s8080_s29 = spop %8079 }
 0x54b   : > { %v7392_v19 = vpop.xlane.xlu1 %7391  ;;  %v5888_v60 = vsel %vm5886_vm11, %v5887_v11, %v5799_v3  ;;  %vm6331_vm11 = vmand %vm5707_vm8, %vm4510_vm7  ;;  %s8082_s23 = spop %8081 }
 0x54c   : > { %8087 = vpush %v7131_v42  ;;  %v7393_v17 = vrot.slane %v7392_v19, 4  ;;  %v6154_v42 = vstv %s8066_s16  ;;  %v6867_v12 = vstv %s8082_s23  ;;  %s7490_s16 = sshll.u32 %s272_s14, 2 }
 0x54d   : > { %8089 = vpush %v7220_v4  ;;  %v5977_v4 = vsel %vm5975_vm12, %v5976_v27, %v5888_v60  ;;  %vm6420_vm12 = vmand %vm5707_vm8, %vm4617_vm6  ;;  %s274_s22 = scalar_lea.vmem [#allocation4], %s7490_s16 }
 0x54e   : > { %v7394_v57 = vadd.f32 %v7393_v17, %v7392_v19  ;;  %v6066_v34 = vsel %vm6064_vm14, %v6065_v49, %v5977_v4  ;;  %v6421_v17 = vstv %s8072_s18  ;;  %vm6598_vm14 = vcmp.eq.s32.totalorder %v14582_v22, 3 }
 0x54f   : > { %v6155_v39 = vsel %vm6153_vm5, %v6154_v42, %v6066_v34  ;;  %vm6509_vm5 = vmand %vm5707_vm8, %vm4724_vm10 }
 0x550   : > { %v7395_v24 = vrot.slane %v7394_v57, 2  ;;  %v6244_v19 = vsel %vm6242_vm2, %v6243_v13, %v6155_v39  ;;  %vm6599_vm2 = vmand %vm6598_vm14, %vm3761_vm0 }
 0x551   : > { %v6333_v10 = vsel %vm6331_vm11, %v6332_v15, %v6244_v19  ;;  %vm6688_vm11 = vmand %vm6598_vm14, %vm3868_vm1 }
 0x552   : > { %v7396_v9 = vadd.f32 %v7395_v24, %v7394_v57  ;;  %v6422_v14 = vsel %vm6420_vm12, %v6421_v17, %v6333_v10  ;;  %v6600_v57 = vstv %s8076_s20  ;;  %vm6777_vm8 = vmand %vm6598_vm14, %vm3975_vm9  ;;  %v6778_v24 = vstv %s8080_s29  ;;  %s7427_s29 = sshll.u32 %s274_s22, 4  ;;  %s7428_s29 = int_to_ptr.vmem [resolvable:$true] %s7427_s29 }
 0x553   : > { %v6511_v29 = vsel %vm6509_vm5, %v6510_v53, %v6422_v14  ;;  %vm6866_vm0 = vmand %vm6598_vm14, %vm4082_vm13 }
 0x554   : > { %v7397_v2 = vrot.slane %v7396_v9, 1  ;;  %v6601_v1 = vsel %vm6599_vm2, %v6600_v57, %v6511_v29  ;;  %vm6955_vm1 = vmand %vm6598_vm14, %vm4189_vm4 }
 0x555   : > { %v6690_v54 = vsel %vm6688_vm11, %v6689_v37, %v6601_v1  ;;  %vm7044_vm9 = vmand %vm6598_vm14, %vm4296_vm15 }
 0x556   : > { %v7398_v5 = vadd.f32 %v7397_v2, %v7396_v9  ;;  %v6779_v55 = vsel %vm6777_vm8, %v6778_v24, %v6690_v54  ;;  %vm7133_vm13 = vmand %vm6598_vm14, %vm4403_vm3  ;;  %v7955_v2 = vld [vmem:[%s13564_s6] ss:$0 sm:$0xff] }
 0x557   : > { %vm7222_vm4 = vmand %vm6598_vm14, %vm4510_vm7  ;;  %vm7411_vm7 = vcmask 76800  }
 0x558   : > { %v7303_v0 = vpop.xlane.xlu0 %7302  ;;  %vm7311_vm15 = vmand %vm6598_vm14, %vm4617_vm6 }
 0x559   : > { %v7304_v25 = vrot.slane %v7303_v0, 4  ;;  %vm7400_vm3 = vmand %vm6598_vm14, %vm4724_vm10 }
 0x55b   : > { %v7305_v40 = vadd.f32 %v7304_v25, %v7303_v0  ;;  %v6868_v25 = vsel %vm6866_vm0, %v6867_v12, %v6779_v55 }
 0x55d   : > { %v7306_v47 = vrot.slane %v7305_v40, 2 }
 0x55f   : > { %v7307_v23 = vadd.f32 %v7306_v47, %v7305_v40 }
 0x561   : > { %v7308_v28 = vrot.slane %v7307_v23, 1 }
 0x563   : > { %v7309_v61 = vadd.f32 %v7308_v28, %v7307_v23  ;;  %s8084_s8 = spop %8083 }
 0x564   : > { %v6956_v0 = vstv %s8084_s8  ;;  %s8086_s9 = spop %8085 }
 0x565   : > { %8091 = vpush %v7309_v61  ;;  %v6957_v30 = vsel %vm6955_vm1, %v6956_v0, %v6868_v25  ;;  %v7045_v9 = vstv %s8086_s9  ;;  %s7425_s9 = scalar_lea.hbm %s13565_s7, %s7957_s17 }
 0x566   : > { %8093 = vpush %v7398_v5  ;;  %v7046_v40 = vsel %vm7044_vm9, %v7045_v9, %v6957_v30 }
 0x57d   : > { %s8088_s13 = spop %8087 }
 0x57e   : > { %v7134_v33 = vstv %s8088_s13  ;;  %s8090_s15 = spop %8089  ;;  %s8546_s13 = scalar_lea.vmem %s7428_s29, 64 }
 0x57f   : > { %v7135_v43 = vsel %vm7133_vm13, %v7134_v33, %v7046_v40  ;;  %v7223_v52 = vstv %s8090_s15  ;;  %p8547_p11 = scmp.ne.s32.totalorder %s7428_s29, %s8546_s13  ;;  %s8609_s15 = smov [#allocation4]  }
 0x580   : > { %v7224_v47 = vsel %vm7222_vm4, %v7223_v52, %v7135_v43  ;;  %s8550_s16 = sshll.u32 %s8609_s15, 4  ;;  %s8551_s16 = int_to_ptr.vmem [resolvable:$false] %s8550_s16 }
 0x581   : > { %p8548_p12 = pnand %p8547_p11, %p8688_p5  ;;  %p8553_p0 = scmp.lt.s32.totalorder %s7428_s29, %s8551_s16 }
 0x583   : > { %p8549_p13 = pneg %p8548_p12 }
 0x596   : > { %s8092_s21 = spop %8091 }
 0x597   : > { %v7312_v31 = vstv %s8092_s21  ;;  %s8094_s18 = spop %8093  ;;  %s8552_s21 = scalar_lea.vmem %s8551_s16, 128 }
 0x598   : > { %v7313_v23 = vsel %vm7311_vm15, %v7312_v31, %v7224_v47  ;;  %v7401_v7 = vstv %s8094_s18  ;;  %p8554_p1 = scmp.lt.s32.totalorder %s8552_s21, %s8546_s13 }
 0x599   : > { %v7402_v44 = vsel %vm7400_vm3, %v7401_v7, %v7313_v23 }
 0x59a   : > { %v7410_v51 = vadd.f32 %v7955_v2, %v7402_v44  ;;  %p8555_p2 = por %p8554_p1, %p8553_p0 }
 0x59c   : > { %7412 = vst.msk [vmem:[%s274_s22] sm:$0xf] %vm7411_vm7, %v7410_v51  ;;  %p8556_p3 = pnand %p8555_p2, %p8549_p13 }
 0x59e   : > { %8559 = shalt.err (!%p8556_p3)
}
 0x59f   : > { %s8560_s18 = scalar_lea.hbm %s7425_s9, 64  ;;  %s8564_s19 = scalar_lea.hbm %s13565_s7, 128 }
 0x5a0   : > { %p8561_p4 = scmp.ne.s32.totalorder %s7425_s9, %s8560_s18  ;;  %p8565_p9 = scmp.lt.s32.totalorder %s7425_s9, %s13565_s7 }
 0x5a1   : > { %p8566_p10 = scmp.lt.s32.totalorder %s8564_s19, %s8560_s18 }
 0x5a2   : > { %p8562_p7 = pnand %p8561_p4, %p8688_p5 }
 0x5a3   : > { %p8567_p11 = por %p8566_p10, %p8565_p9 }
 0x5a4   : > { %p8563_p8 = pneg %p8562_p7 }
 0x5a6   : > { %p8568_p12 = pnand %p8567_p11, %p8563_p8 }
 0x5a8   : > { %8571 = shalt.err (!%p8568_p12)
}
 0x5a9   : > { %8095 = dma.vmem_to_hbm [thread:$0]  (%p8688_p5), %s7428_s29, 64, %s7425_s9, %s7414_s28  }
 0x5aa PF: > { %p8101_p13 = scmp.ge.s32.totalorder %s8606_s27, 2  ;;  %s7439_s23 = sand.u32 1, %s8594_s24  }
 0x5ab   : > { %s7440_s8 = scalar_lea.sflag [#allocation5], %s7439_s23 }
 0x5ac   : > { %p8098_p0 = pnand %p8101_p13, %p8692_p6 }
 0x5ae   : > { %p8099_p1 = pneg %p8098_p0 }
 0x5b0   : > { %8589 = dma.done.wait (%p8099_p1), %s7440_s8, 64  }
 0x5b1   : > { %8591 = vsyncadd (%p8099_p1), %s7440_s8, 4294967232  ;;  %p17_p2 = scmp.ge.s32.totalorder %s8675_s30, 4   ;;  %s14583_s24 = smov %s8598_s25 }
 0x5b2   : > { %s14584_s25 = smov %s8602_s26  ;;  %s14585_s26 = smov %s8686_s10 }
 0x5b3   : > { %s14586_s27 = smov %s8675_s30  ;;  %19 = sbr.rel (!%p17_p2) target bundleno = 3 (0x3), region = 101 }
 0x5b8   :  { %7445 = vsyncpa [#allocation5], 1 }
 0x5b9   :  { %7447 = vsyncpa [#allocation5 + $0x1], 1 }

</bundles_post_ra>
